<compile_context>
chip_gen: v7x
topology: tpu7x:2x2x1
jax: 0.10.0
libtpu: 0.0.40
codegen_flags: <defaults>
</compile_context>

<pallas_src>
import functools

import jax
import jax.numpy as jnp
from jax.experimental import pallas as pl
from jax.experimental.pallas import tpu as pltpu


# ---------------------------------------------------------------------------
# Kernel
# ---------------------------------------------------------------------------
def pcn_encoder_kernel(h_ref,                        # (Bt, N, 128) bf16
                       w2_ref,                       # (128, 256)  bf16
                       w3g_ref, w3f_ref, b3_ref,     # (256,512) bf16 x2, (1,512) f32
                       w4_ref, b4_ref,               # (512, L) bf16, (1, L) f32
                       out_ref,                      # (Bt, L) f32
                       feat_vmem,                    # (n_chunks, Bt*cn, 256) bf16
                       fglob_vmem,                   # (Bt, 256) f32
                       acc_vmem,                     # (Bt, L)   f32
                       *, chunk_n):
    bt, n, cin = h_ref.shape
    cn = chunk_n
    n_chunks = n // cn
    rows = bt * cn
    fdim = w2_ref.shape[-1]          # 256
    mid = w3f_ref.shape[-1]          # 512
    latent = out_ref.shape[-1]

    w2 = w2_ref[...]
    w3f = w3f_ref[...]
    w4 = w4_ref[...]

    # Running-max accumulators (scratch persists across grid steps -> re-init).
    fglob_vmem[...] = jnp.full(fglob_vmem.shape, -jnp.inf, dtype=fglob_vmem.dtype)
    acc_vmem[...] = jnp.full(acc_vmem.shape, -jnp.inf, dtype=acc_vmem.dtype)

    # ---- pass 1: first_conv[3] (Conv1d(128,256,1), bias folded away) --------
    # Per N-chunk matmul + running per-batch max -> global feature.
    @pl.loop(0, n_chunks)
    def _(c):
        start = pl.multiple_of(c * cn, cn)
        h_c = h_ref[:, pl.ds(start, cn), :].reshape(rows, cin)            # bf16
        feat_c = jnp.dot(h_c, w2, preferred_element_type=jnp.float32)     # (rows,256) f32
        fglob_vmem[...] = jnp.maximum(
            fglob_vmem[...], jnp.max(feat_c.reshape(bt, cn, fdim), axis=1))
        feat_vmem[c] = feat_c.astype(jnp.bfloat16)     # cache bf16 for pass 2

    # ---- global-feature bias (once per batch block) --------------------------
    # cat([fglob, feat]) @ w3 == fglob @ w3g + feat @ w3f; BN2 and b2 are folded
    # into w3*/b3 host-side.
    gbias = jnp.dot(fglob_vmem[...].astype(jnp.bfloat16), w3g_ref[...],
                    preferred_element_type=jnp.float32) + b3_ref[...]     # (Bt, 512)
    # Hoist the broadcast out of the inner loop (JAX does not CSE broadcasts).
    gbias_rows = jnp.broadcast_to(gbias[:, None, :], (bt, cn, mid)).reshape(rows, mid)

    # ---- pass 2: second_conv + fused final max over points -------------------
    @pl.loop(0, n_chunks)
    def _(c):
        feat_c = feat_vmem[c]                                             # (rows,256) bf16
        g = jnp.dot(feat_c, w3f, preferred_element_type=jnp.float32)      # (rows,512) f32
        g = jnp.maximum(g + gbias_rows, 0.0).astype(jnp.bfloat16)
        o = jnp.dot(g, w4, preferred_element_type=jnp.float32)            # (rows, L) f32
        acc_vmem[...] = jnp.maximum(
            acc_vmem[...], jnp.max(o.reshape(bt, cn, latent), axis=1))

    # b4 is constant across points -> add once, after the max.
    out_ref[...] = acc_vmem[...] + b4_ref[...]


# ---------------------------------------------------------------------------
# Tiling heuristics
# ---------------------------------------------------------------------------
def _pick_block_b(B):
    """Largest fat block in {32,16,8} dividing B that keeps >= 2 grid steps
    (v7x megacore); otherwise an 8-aligned single step; otherwise full B."""
    for cand in (32, 16, 8):
        if B % cand == 0 and B // cand >= 2:
            return cand
    if B % 8 == 0:
        return 8
    return B


def _pick_chunk_n(N, block_b, target_rows=1024):
    """Largest divisor of N (multiple of 8 when possible) so that
    block_b * chunk_n is ~target_rows matmul rows per chunk."""
    target = max(8, target_rows // max(block_b, 1))
    for cand in range(min(N, target), 0, -1):
        if N % cand == 0 and (cand % 8 == 0 or cand == N):
            return cand
    return N


# ---------------------------------------------------------------------------
# Wrapper
# ---------------------------------------------------------------------------
def pcn_encoder(xyz, kparams, *, block_b=None, chunk_n=None):
    """xyz: (B, N, 3) float32.  kparams from fold_params().  Returns (B, latent) f32."""
    B, N, _ = xyz.shape
    (w1f, b1f, w2, w3g, w3f, b3f, w4, b4) = kparams
    cin = w2.shape[0]       # 128
    fdim = w2.shape[1]      # 256
    mid = w3f.shape[1]      # 512
    latent = w4.shape[1]

    if block_b is None:
        block_b = _pick_block_b(B)
    assert B % block_b == 0, "batch must be divisible by block_b"
    if chunk_n is None:
        chunk_n = _pick_chunk_n(N, block_b)
    assert N % chunk_n == 0, "N must be divisible by chunk_n"
    n_chunks = N // chunk_n
    rows = block_b * chunk_n

    # first_conv[0..2] (Conv1d(3,128,1) + folded BN + ReLU) in XLA: a 3-wide
    # minor dim would be lane-padded to 128 inside the kernel; it's <0.1% of
    # the FLOPs and the kernel is heavily compute-bound.
    h = jnp.maximum(xyz @ w1f + b1f, 0.0).astype(jnp.bfloat16)     # (B, N, 128)

    kernel_weights = (w2, w3g, w3f, b3f, w4, b4)
    weight_spec = pl.BlockSpec(memory_space=pltpu.MemorySpace.VMEM)

    # Explicit VMEM budget (defaults are well below physical on every gen).
    w_bytes = sum(int(p.size) * p.dtype.itemsize for p in kernel_weights)
    h_bytes = 2 * block_b * N * cin * 2               # double-buffered input
    out_bytes = 2 * block_b * latent * 4              # double-buffered output
    feat_bytes = block_b * N * fdim * 2               # bf16 feat cache
    tmp_bytes = rows * (fdim + 3 * mid + latent) * 4  # per-chunk f32 temporaries
    acc_bytes = block_b * (fdim + latent) * 4
    vmem_bytes = int(1.25 * (w_bytes + h_bytes + out_bytes + feat_bytes
                             + tmp_bytes + acc_bytes))
    vmem_bytes = min(max(vmem_bytes, 16 * 2 ** 20), 64 * 2 ** 20)

    flops = 2 * B * N * (cin * fdim + fdim * mid + mid * latent) \
        + 2 * B * fdim * mid
    bytes_accessed = int(h.size) * 2 + w_bytes + B * latent * 4

    kernel = functools.partial(pcn_encoder_kernel, chunk_n=chunk_n)

    return pl.pallas_call(
        kernel,
        out_shape=jax.ShapeDtypeStruct((B, latent), jnp.float32),
        grid_spec=pltpu.PrefetchScalarGridSpec(
            num_scalar_prefetch=0,
            grid=(B // block_b,),
            in_specs=[pl.BlockSpec((block_b, N, cin), lambda b: (b, 0, 0))]
                     + [weight_spec] * len(kernel_weights),
            out_specs=pl.BlockSpec((block_b, latent), lambda b: (b, 0)),
            scratch_shapes=[
                pltpu.VMEM((n_chunks, rows, fdim), jnp.bfloat16),   # feat cache
                pltpu.VMEM((block_b, fdim), jnp.float32),           # running fglob
                pltpu.VMEM((block_b, latent), jnp.float32),         # running out max
            ]),
        compiler_params=pltpu.CompilerParams(
            dimension_semantics=("parallel",),
            vmem_limit_bytes=vmem_bytes),
        cost_estimate=pl.CostEstimate(
            flops=flops, transcendentals=0, bytes_accessed=bytes_accessed),
    )(h, *kernel_weights)


# ---------------------------------------------------------------------------
# Parameters (synthetic, matching Our_Encoder's layers) + host-side folding
# ---------------------------------------------------------------------------
def make_raw_params(key, latent_dim=1024):
    """Deterministic synthetic weights matching Our_Encoder's layer shapes
    (eval-mode BatchNorm running stats)."""
    ks = jax.random.split(key, 16)

    def w(k, cin, cout, scale=0.05):
        return scale * jax.random.normal(k, (cin, cout), jnp.float32)

    def vec(k, c, scale=0.05):
        return scale * jax.random.normal(k, (1, c), jnp.float32)

    # first_conv: Conv1d(3,128,1), BN(128), ReLU, Conv1d(128,256,1)
    w1, b1 = w(ks[0], 3, 128), vec(ks[1], 128)
    g1, be1 = 1.0 + vec(ks[2], 128), vec(ks[3], 128)
    rm1 = vec(ks[4], 128)
    rv1 = 1.0 + 0.1 * jax.nn.softplus(jax.random.normal(ks[5], (1, 128), jnp.float32))
    w2, b2 = w(ks[6], 128, 256), vec(ks[7], 256)
    # second_conv: Conv1d(512,512,1), BN(512), ReLU, Conv1d(512,latent,1)
    w3, b3 = w(ks[8], 512, 512), vec(ks[9], 512)
    g2, be2 = 1.0 + vec(ks[10], 512), vec(ks[11], 512)
    rm2 = vec(ks[12], 512)
    rv2 = 1.0 + 0.1 * jax.nn.softplus(jax.random.normal(ks[13], (1, 512), jnp.float32))
    w4, b4 = w(ks[14], 512, latent_dim), vec(ks[15], latent_dim)
    return dict(w1=w1, b1=b1, g1=g1, be1=be1, rm1=rm1, rv1=rv1,
                w2=w2, b2=b2,
                w3=w3, b3=b3, g2=g2, be2=be2, rm2=rm2, rv2=rv2,
                w4=w4, b4=b4)


def fold_params(p, eps=1e-5):
    """Fold eval-mode BatchNorm into the preceding k=1 convs, split w3 into
    global/per-point halves, fold b2 into b3, and cast MXU weights to bf16."""
    s1 = p["g1"] / jnp.sqrt(p["rv1"] + eps)
    t1 = p["be1"] - p["rm1"] * s1
    w1f = p["w1"] * s1                       # per-output-channel scale commutes with k=1 conv
    b1f = p["b1"] * s1 + t1

    s2 = p["g2"] / jnp.sqrt(p["rv2"] + eps)
    t2 = p["be2"] - p["rm2"] * s2
    w3_all = p["w3"] * s2                    # (512, 512), BN2 folded
    b3f = p["b3"] * s2 + t2                  # (1, 512)
    w3g = w3_all[:256]                       # rows hit by the broadcast global feature
    w3f = w3_all[256:]                       # rows hit by the per-point feature
    # b2 shifts both the per-point feature and (max commutes with a constant
    # shift) the global feature -> its contribution through w3 is b2 @ (w3g+w3f).
    b3f = b3f + p["b2"] @ (w3g + w3f)

    bf16 = jnp.bfloat16
    return (w1f, b1f,
            p["w2"].astype(bf16),
            w3g.astype(bf16), w3f.astype(bf16), b3f,
            p["w4"].astype(bf16), p["b4"])


# ---------------------------------------------------------------------------
# Pure-JAX references
# ---------------------------------------------------------------------------
def pcn_encoder_ref(xyz, p, eps=1e-5):
    """Straightforward f32 forward, same math as the PyTorch module (eval BN)."""
    s1 = p["g1"] / jnp.sqrt(p["rv1"] + eps); t1 = p["be1"] - p["rm1"] * s1
    s2 = p["g2"] / jnp.sqrt(p["rv2"] + eps); t2 = p["be2"] - p["rm2"] * s2
    h = jnp.maximum((xyz @ p["w1"] + p["b1"]) * s1 + t1, 0.0)
    feat = h @ p["w2"] + p["b2"]                              # (B, N, 256)
    fglob = jnp.max(feat, axis=1, keepdims=True)              # (B, 1, 256)
    cat = jnp.concatenate([jnp.broadcast_to(fglob, feat.shape), feat], axis=-1)
    g = jnp.maximum((cat @ p["w3"] + p["b3"]) * s2 + t2, 0.0)
    out = g @ p["w4"] + p["b4"]                               # (B, N, latent)
    return jnp.max(out, axis=1)                               # (B, latent)


def pcn_encoder_ref_folded(xyz, kparams):
    """Mirrors the kernel math (folding, w3 split, bf16 feeds/storage) in pure JAX."""
    (w1f, b1f, w2, w3g, w3f, b3f, w4, b4) = kparams
    B, N, _ = xyz.shape
    fdim = w2.shape[1]
    mid = w3f.shape[1]
    latent = w4.shape[1]
    h = jnp.maximum(xyz @ w1f + b1f, 0.0).astype(jnp.bfloat16)            # (B, N, 128)
    feat = jnp.dot(h.reshape(B * N, -1), w2,
                   preferred_element_type=jnp.float32).reshape(B, N, fdim)
    fglob = jnp.max(feat, axis=1)                                          # (B, 256) f32
    gbias = jnp.dot(fglob.astype(jnp.bfloat16), w3g,
                    preferred_element_type=jnp.float32) + b3f              # (B, 512)
    g = jnp.dot(feat.astype(jnp.bfloat16).reshape(B * N, fdim), w3f,
                preferred_element_type=jnp.float32).reshape(B, N, mid)
    g = jnp.maximum(g + gbias[:, None, :], 0.0).astype(jnp.bfloat16)
    out = jnp.dot(g.reshape(B * N, mid), w4,
                  preferred_element_type=jnp.float32).reshape(B, N, latent)
    return jnp.max(out, axis=1) + b4


if __name__ == "__main__":
    key = jax.random.PRNGKey(0)
    kx, kp = jax.random.split(key)

    B, N, latent_dim = 16, 64, 1024   # small point cloud; channel widths fixed by module
    xyz = jax.random.normal(kx, (B, N, 3), jnp.float32)

    raw = make_raw_params(kp, latent_dim=latent_dim)
    kparams = fold_params(raw)

    out = jax.block_until_ready(pcn_encoder(xyz, kparams))
    assert out.shape == (B, latent_dim)

    # Exact-math check (same folding / split / bf16 casts, pure JAX).
    ref_folded = pcn_encoder_ref_folded(xyz, kparams)
    assert jnp.allclose(out, ref_folded, atol=5e-3, rtol=5e-3), "mismatch vs folded reference"

    # Semantics check vs the straightforward f32 eval-mode forward
    # (bf16 MXU inputs give small absolute differences at these magnitudes).
    ref = pcn_encoder_ref(xyz, raw)
    assert jnp.allclose(out, ref, atol=3e-2, rtol=3e-2), "mismatch vs f32 reference"

    print("KERNEL_OK")
</pallas_src>

<mosaic_0001>
module attributes {stable_mosaic.version = 11 : i64} {
  func.func @pcn_encoder_kernel(%arg0: i32, %arg1: memref<8x64x128xbf16, #tpu.memory_space<vmem>>, %arg2: memref<128x256xbf16, #tpu.memory_space<vmem>>, %arg3: memref<256x512xbf16, #tpu.memory_space<vmem>>, %arg4: memref<256x512xbf16, #tpu.memory_space<vmem>>, %arg5: memref<1x512xf32, #tpu.memory_space<vmem>>, %arg6: memref<512x1024xbf16, #tpu.memory_space<vmem>>, %arg7: memref<1x1024xf32, #tpu.memory_space<vmem>>, %arg8: memref<8x1024xf32, #tpu.memory_space<vmem>>, %arg9: memref<1x512x256xbf16, #tpu.memory_space<vmem>>, %arg10: memref<8x256xf32, #tpu.memory_space<vmem>>, %arg11: memref<8x1024xf32, #tpu.memory_space<vmem>>) attributes {dimension_semantics = [#tpu.dimension_semantics<parallel>], iteration_bounds = array<i64: 2>, scalar_prefetch = 0 : i64, scratch_operands = 3 : i64, tpu.core_type = #tpu.core_type<tc>, window_params = [{transform_indices = @transform_0, window_bounds = array<i64: 8, 64, 128>}, {pipeline_mode = #tpu.pipeline_mode<synchronous>, transform_indices = @transform_1, window_bounds = array<i64: 128, 256>}, {pipeline_mode = #tpu.pipeline_mode<synchronous>, transform_indices = @transform_2, window_bounds = array<i64: 256, 512>}, {pipeline_mode = #tpu.pipeline_mode<synchronous>, transform_indices = @transform_3, window_bounds = array<i64: 256, 512>}, {pipeline_mode = #tpu.pipeline_mode<synchronous>, transform_indices = @transform_4, window_bounds = array<i64: 1, 512>}, {pipeline_mode = #tpu.pipeline_mode<synchronous>, transform_indices = @transform_5, window_bounds = array<i64: 512, 1024>}, {pipeline_mode = #tpu.pipeline_mode<synchronous>, transform_indices = @transform_6, window_bounds = array<i64: 1, 1024>}, {transform_indices = @transform_7, window_bounds = array<i64: 8, 1024>}]} {
    %c0 = arith.constant 0 : index
    %c0_0 = arith.constant 0 : index
    %0 = vector.load %arg2[%c0, %c0_0] : memref<128x256xbf16, #tpu.memory_space<vmem>>, vector<128x256xbf16>
    %c0_1 = arith.constant 0 : index
    %c0_2 = arith.constant 0 : index
    %1 = vector.load %arg4[%c0_1, %c0_2] : memref<256x512xbf16, #tpu.memory_space<vmem>>, vector<256x512xbf16>
    %c0_3 = arith.constant 0 : index
    %c0_4 = arith.constant 0 : index
    %2 = vector.load %arg6[%c0_3, %c0_4] : memref<512x1024xbf16, #tpu.memory_space<vmem>>, vector<512x1024xbf16>
    %cst = arith.constant 0xFF800000 : f32
    %3 = vector.broadcast %cst : f32 to vector<8x256xf32>
    %c0_5 = arith.constant 0 : index
    %c0_6 = arith.constant 0 : index
    %4 = vector.load %arg10[%c0_5, %c0_6] : memref<8x256xf32, #tpu.memory_space<vmem>>, vector<8x256xf32>
    tpu.vector_store %arg10[%c0_5, %c0_6], %3 {strides = array<i32>} : memref<8x256xf32, #tpu.memory_space<vmem>>, vector<8x256xf32>,
    %cst_7 = arith.constant 0xFF800000 : f32
    %5 = vector.broadcast %cst_7 : f32 to vector<8x1024xf32>
    %c0_8 = arith.constant 0 : index
    %c0_9 = arith.constant 0 : index
    %6 = vector.load %arg11[%c0_8, %c0_9] : memref<8x1024xf32, #tpu.memory_space<vmem>>, vector<8x1024xf32>
    tpu.vector_store %arg11[%c0_8, %c0_9], %5 {strides = array<i32>} : memref<8x1024xf32, #tpu.memory_space<vmem>>, vector<8x1024xf32>,
    %c0_i32 = arith.constant 0 : i32
    %c1_i32 = arith.constant 1 : i32
    %7 = arith.muli %c0_i32, %c1_i32 : i32
    %c0_i32_10 = arith.constant 0 : i32
    %8 = arith.addi %c0_i32_10, %7 : i32
    %c64_i32 = arith.constant 64 : i32
    %9 = arith.muli %8, %c64_i32 : i32
    %10 = tpu.assume_multiple %9, 64 : i32
    %c0_11 = arith.constant 0 : index
    %11 = arith.index_cast %10 : i32 to index
    %c0_12 = arith.constant 0 : index
    %12 = vector.load %arg1[%c0_11, %11, %c0_12] : memref<8x64x128xbf16, #tpu.memory_space<vmem>>, vector<8x64x128xbf16>
    %13 = vector.shape_cast %12 : vector<8x64x128xbf16> to vector<512x128xbf16>
    %cst_13 = arith.constant dense<0.000000e+00> : vector<512x256xf32>
    %14 = tpu.matmul %13, %0, %cst_13 {dimension_numbers = #tpu.dot_dimension_numbers<[1], [0], [0], [1], [0, 0, 1, 1], [], []>} : vector<512x128xbf16>, vector<128x256xbf16>, vector<512x256xf32> -> vector<512x256xf32>
    %c0_14 = arith.constant 0 : index
    %c0_15 = arith.constant 0 : index
    %15 = vector.load %arg10[%c0_14, %c0_15] : memref<8x256xf32, #tpu.memory_space<vmem>>, vector<8x256xf32>
    %16 = vector.shape_cast %14 : vector<512x256xf32> to vector<8x64x256xf32>
    %cst_16 = arith.constant dense<0xFF800000> : vector<8x256xf32>
    %17 = vector.multi_reduction <maximumf>, %16, %cst_16 [1] : vector<8x64x256xf32> to vector<8x256xf32>
    %18 = arith.maximumf %15, %17 : vector<8x256xf32>
    %c0_17 = arith.constant 0 : index
    %c0_18 = arith.constant 0 : index
    %19 = vector.load %arg10[%c0_17, %c0_18] : memref<8x256xf32, #tpu.memory_space<vmem>>, vector<8x256xf32>
    tpu.vector_store %arg10[%c0_17, %c0_18], %18 {strides = array<i32>} : memref<8x256xf32, #tpu.memory_space<vmem>>, vector<8x256xf32>,
    %20 = arith.truncf %14 : vector<512x256xf32> to vector<512x256xbf16>
    %21 = arith.index_cast %8 : i32 to index
    %c0_19 = arith.constant 0 : index
    %c0_20 = arith.constant 0 : index
    %22 = vector.load %arg9[%21, %c0_19, %c0_20] : memref<1x512x256xbf16, #tpu.memory_space<vmem>>, vector<1x512x256xbf16>
    %23 = vector.shape_cast %22 : vector<1x512x256xbf16> to vector<512x256xbf16>
    %24 = vector.shape_cast %20 : vector<512x256xbf16> to vector<1x512x256xbf16>
    tpu.vector_store %arg9[%21, %c0_19, %c0_20], %24 {strides = array<i32>} : memref<1x512x256xbf16, #tpu.memory_space<vmem>>, vector<1x512x256xbf16>,
    %c1_i32_21 = arith.constant 1 : i32
    %c0_22 = arith.constant 0 : index
    %c0_23 = arith.constant 0 : index
    %25 = vector.load %arg10[%c0_22, %c0_23] : memref<8x256xf32, #tpu.memory_space<vmem>>, vector<8x256xf32>
    %26 = arith.truncf %25 : vector<8x256xf32> to vector<8x256xbf16>
    %c0_24 = arith.constant 0 : index
    %c0_25 = arith.constant 0 : index
    %27 = vector.load %arg3[%c0_24, %c0_25] : memref<256x512xbf16, #tpu.memory_space<vmem>>, vector<256x512xbf16>
    %cst_26 = arith.constant dense<0.000000e+00> : vector<8x512xf32>
    %28 = tpu.matmul %26, %27, %cst_26 {dimension_numbers = #tpu.dot_dimension_numbers<[1], [0], [0], [1], [0, 0, 1, 1], [], []>} : vector<8x256xbf16>, vector<256x512xbf16>, vector<8x512xf32> -> vector<8x512xf32>
    %c0_27 = arith.constant 0 : index
    %c0_28 = arith.constant 0 : index
    %29 = vector.load %arg5[%c0_27, %c0_28] : memref<1x512xf32, #tpu.memory_space<vmem>>, vector<1x512xf32>
    %30 = vector.broadcast %29 : vector<1x512xf32> to vector<8x512xf32>
    %31 = arith.addf %28, %30 : vector<8x512xf32>
    %32 = vector.shape_cast %31 : vector<8x512xf32> to vector<8x1x512xf32>
    %33 = vector.shape_cast %32 : vector<8x1x512xf32> to vector<8x1x512xf32>
    %34 = vector.broadcast %33 : vector<8x1x512xf32> to vector<8x64x512xf32>
    %35 = vector.shape_cast %34 : vector<8x64x512xf32> to vector<512x512xf32>
    %c0_i32_29 = arith.constant 0 : i32
    %c1_i32_30 = arith.constant 1 : i32
    %36 = arith.muli %c0_i32_29, %c1_i32_30 : i32
    %c0_i32_31 = arith.constant 0 : i32
    %37 = arith.addi %c0_i32_31, %36 : i32
    %38 = arith.index_cast %37 : i32 to index
    %c0_32 = arith.constant 0 : index
    %c0_33 = arith.constant 0 : index
    %39 = vector.load %arg9[%38, %c0_32, %c0_33] : memref<1x512x256xbf16, #tpu.memory_space<vmem>>, vector<1x512x256xbf16>
    %40 = vector.shape_cast %39 : vector<1x512x256xbf16> to vector<512x256xbf16>
    %cst_34 = arith.constant dense<0.000000e+00> : vector<512x512xf32>
    %41 = tpu.matmul %40, %1, %cst_34 {dimension_numbers = #tpu.dot_dimension_numbers<[1], [0], [0], [1], [0, 0, 1, 1], [], []>} : vector<512x256xbf16>, vector<256x512xbf16>, vector<512x512xf32> -> vector<512x512xf32>
    %42 = arith.addf %41, %35 : vector<512x512xf32>
    %cst_35 = arith.constant 0.000000e+00 : f32
    %43 = vector.broadcast %cst_35 : f32 to vector<512x512xf32>
    %44 = arith.maximumf %42, %43 : vector<512x512xf32>
    %45 = arith.truncf %44 : vector<512x512xf32> to vector<512x512xbf16>
    %cst_36 = arith.constant dense<0.000000e+00> : vector<512x1024xf32>
    %46 = tpu.matmul %45, %2, %cst_36 {dimension_numbers = #tpu.dot_dimension_numbers<[1], [0], [0], [1], [0, 0, 1, 1], [], []>} : vector<512x512xbf16>, vector<512x1024xbf16>, vector<512x1024xf32> -> vector<512x1024xf32>
    %c0_37 = arith.constant 0 : index
    %c0_38 = arith.constant 0 : index
    %47 = vector.load %arg11[%c0_37, %c0_38] : memref<8x1024xf32, #tpu.memory_space<vmem>>, vector<8x1024xf32>
    %48 = vector.shape_cast %46 : vector<512x1024xf32> to vector<8x64x1024xf32>
    %cst_39 = arith.constant dense<0xFF800000> : vector<8x1024xf32>
    %49 = vector.multi_reduction <maximumf>, %48, %cst_39 [1] : vector<8x64x1024xf32> to vector<8x1024xf32>
    %50 = arith.maximumf %47, %49 : vector<8x1024xf32>
    %c0_40 = arith.constant 0 : index
    %c0_41 = arith.constant 0 : index
    %51 = vector.load %arg11[%c0_40, %c0_41] : memref<8x1024xf32, #tpu.memory_space<vmem>>, vector<8x1024xf32>
    tpu.vector_store %arg11[%c0_40, %c0_41], %50 {strides = array<i32>} : memref<8x1024xf32, #tpu.memory_space<vmem>>, vector<8x1024xf32>,
    %c1_i32_42 = arith.constant 1 : i32
    %c0_43 = arith.constant 0 : index
    %c0_44 = arith.constant 0 : index
    %52 = vector.load %arg11[%c0_43, %c0_44] : memref<8x1024xf32, #tpu.memory_space<vmem>>, vector<8x1024xf32>
    %c0_45 = arith.constant 0 : index
    %c0_46 = arith.constant 0 : index
    %53 = vector.load %arg7[%c0_45, %c0_46] : memref<1x1024xf32, #tpu.memory_space<vmem>>, vector<1x1024xf32>
    %54 = vector.broadcast %53 : vector<1x1024xf32> to vector<8x1024xf32>
    %55 = arith.addf %52, %54 : vector<8x1024xf32>
    %c0_47 = arith.constant 0 : index
    %c0_48 = arith.constant 0 : index
    %56 = vector.load %arg8[%c0_47, %c0_48] : memref<8x1024xf32, #tpu.memory_space<vmem>>, vector<8x1024xf32>
    tpu.vector_store %arg8[%c0_47, %c0_48], %55 {strides = array<i32>} : memref<8x1024xf32, #tpu.memory_space<vmem>>, vector<8x1024xf32>,
    return
  }
  func.func @transform_0(%arg0: i32) -> (i32, i32, i32) {
    %c0_i32 = arith.constant 0 : i32
    %c0_i32_0 = arith.constant 0 : i32
    %c0_i32_1 = arith.constant 0 : i32
    return %arg0, %c0_i32, %c0_i32_0 : i32, i32, i32
  }
  func.func @transform_1(%arg0: i32) -> (i32, i32) {
    %c0_i32 = arith.constant 0 : i32
    %c0_i32_0 = arith.constant 0 : i32
    %c0_i32_1 = arith.constant 0 : i32
    return %c0_i32, %c0_i32_0 : i32, i32
  }
  func.func @transform_2(%arg0: i32) -> (i32, i32) {
    %c0_i32 = arith.constant 0 : i32
    %c0_i32_0 = arith.constant 0 : i32
    %c0_i32_1 = arith.constant 0 : i32
    return %c0_i32, %c0_i32_0 : i32, i32
  }
  func.func @transform_3(%arg0: i32) -> (i32, i32) {
    %c0_i32 = arith.constant 0 : i32
    %c0_i32_0 = arith.constant 0 : i32
    %c0_i32_1 = arith.constant 0 : i32
    return %c0_i32, %c0_i32_0 : i32, i32
  }
  func.func @transform_4(%arg0: i32) -> (i32, i32) {
    %c0_i32 = arith.constant 0 : i32
    %c0_i32_0 = arith.constant 0 : i32
    %c0_i32_1 = arith.constant 0 : i32
    return %c0_i32, %c0_i32_0 : i32, i32
  }
  func.func @transform_5(%arg0: i32) -> (i32, i32) {
    %c0_i32 = arith.constant 0 : i32
    %c0_i32_0 = arith.constant 0 : i32
    %c0_i32_1 = arith.constant 0 : i32
    return %c0_i32, %c0_i32_0 : i32, i32
  }
  func.func @transform_6(%arg0: i32) -> (i32, i32) {
    %c0_i32 = arith.constant 0 : i32
    %c0_i32_0 = arith.constant 0 : i32
    %c0_i32_1 = arith.constant 0 : i32
    return %c0_i32, %c0_i32_0 : i32, i32
  }
  func.func @transform_7(%arg0: i32) -> (i32, i32) {
    %c0_i32 = arith.constant 0 : i32
    %c0_i32_0 = arith.constant 0 : i32
    return %arg0, %c0_i32 : i32, i32
  }
}

</mosaic_0001>

<bundles_post_ra>
// kernel: tpu_custom_call.1
= control target key start
LH: loop header
LB: loop body
LE: loop exit
PB: predicated region body
PF: predicated region fallthrough
CT: control target
= control target key end

     0   :  { %12 = vsyncpa [#allocation6], 0  ;;  %s13513_s0 = inlined_call_operand.hbm [shape: bf16[16,64,128], index: 0, kind: input, shape index: {}]   ;;  %s13514_s1 = inlined_call_operand.hbm [shape: bf16[128,256], index: 1, kind: input, shape index: {}]   ;;  %s13515_s2 = inlined_call_operand.hbm [shape: bf16[256,512], index: 2, kind: input, shape index: {}]   ;;  %s13516_s3 = inlined_call_operand.hbm [shape: bf16[256,512], index: 3, kind: input, shape index: {}]   ;;  %s13517_s4 = inlined_call_operand.vmem [shape: f32[1,512], index: 4, kind: input, shape index: {}]   ;;  %s13518_s5 = inlined_call_operand.hbm [shape: bf16[512,1024], index: 5, kind: input, shape index: {}]   ;;  %s13519_s6 = inlined_call_operand.vmem [shape: f32[1,1024], index: 6, kind: input, shape index: {}]   ;;  %s13520_s7 = inlined_call_operand.hbm [shape: f32[16,1024], index: 7, kind: output, shape index: {}]  }
   0x1   :  { %14 = vsyncpa [#allocation6 + $0x1], 0 }
   0x2   :  { %15 = vsyncpa [#allocation9], 0 }
   0x3   :  { %16 = vsyncpa [#allocation12], 0 }
   0x4   :  { %17 = vsyncpa [#allocation7], 0 }
   0x5   :  { %19 = vsyncpa [#allocation7 + $0x1], 0  ;;  %s10855_s24 = smov 0   ;;  %s10857_s25 = smov 0  }
   0x6   :  { %s10859_s26 = smov 0   ;;  %s10861_s27 = smov 0  }
   0x7 LB: > { %13822 = sst [smem:[#allocation19_spill]] %s10785_s24  ;;  %s10876_s28 = sadd.s32 4294967295, %s10797_s27   ;;  %s10797_s27 = sphi %s10861_s27, %s14456_s27   ;;  %s10793_s26 = sphi %s10859_s26, %s14455_s26   ;;  %s10789_s25 = sphi %s10857_s25, %s14454_s25   ;;  %s10785_s24 = sphi %s10855_s24, %s14453_s24  }
   0x8   : > { %s9249_s29 = sadd.s32 4294967294, %s10797_s27   ;;  %p45_p0 = scmp.ne.s32.totalorder %s10789_s25, %s10785_s24 }
   0x9   : > { %p13521_p1 = scmp.eq.s32.totalorder %s10876_s28, 0  ;;  %p201_p3 = scmp.eq.s32.totalorder %s9249_s29, 1 }
   0xa   : > { %p9250_p5 = scmp.ge.s32.totalorder %s10797_s27, 1  ;;  %p208_p7 = scmp.lt.s32.totalorder %s10797_s27, 3 }
   0xb   : > { %p10885_p4 = por %p13521_p1, %p45_p0  ;;  %p10890_p6 = por %p201_p3, %p45_p0 }
   0xc   : > { %p10895_p8 = pnand %p9250_p5, %p208_p7  ;;  %s10799_s10 = smov [#allocation8]  }
   0xd   : > { %s13823_s30 = scalar_select %p10885_p4, 1, 0 }
   0xe   : > { %s13824_s8 = scalar_select %p10890_p6, 1, 0 }
   0xf   : > { %s13826_s9 = scalar_select %p10895_p8, 1, 0 }
  0x10   : > { %13825 = sst [smem:[#allocation20_spill]] %s13824_s8  ;;  %s220_s11 = sshll.u32 %s10799_s10, 4  ;;  %s221_s11 = int_to_ptr.vmem [resolvable:$true] %s220_s11 }
  0x11   : > { %p10255_p9 = pneg %p10895_p8  ;;  %s10800_s13 = smov [#allocation11]  }
  0x12   : > { %s246_s14 = sshll.u32 %s10800_s13, 4  ;;  %s10581_s17 = scalar_lea.hbm %s13514_s1, 2048  ;;  %s247_s14 = int_to_ptr.vmem [resolvable:$true] %s246_s14 }
  0x13   : > { %p10904_p11 = pnand %p10255_p9, %p13521_p1  ;;  %p10582_p12 = scmp.ne.s32.totalorder %s13514_s1, %s10581_s17 }
  0x14   : > { %p10588_p5 = scmp.lt.u32.totalorder %s10581_s17, %s13514_s1 }
  0x15   : > { %p10916_p13 = pneg %p10904_p11 }
  0x17   : > { %p10584_p0 = pnand %p10916_p13, %p10582_p12 }
  0x19   : > { %p10585_p3 = pneg %p10584_p0 }
  0x1b   : > { %p10590_p7 = pnand %p10588_p5, %p10585_p3 }
  0x1d   : > { %10593 = shalt.err (!%p10590_p7)
}
  0x1e   : > { %s10594_s23 = scalar_lea.vmem %s221_s11, 2048  ;;  %p10602_p2 = scmp.lt.s32.totalorder %s221_s11, %s221_s11 }
  0x1f   : > { %p10595_p9 = scmp.ne.s32.totalorder %s221_s11, %s10594_s23  ;;  %p10603_p6 = scmp.lt.s32.totalorder %s10594_s23, %s10594_s23 }
  0x21   : > { %p10597_p10 = pnand %p10595_p9, %p10916_p13  ;;  %p10604_p4 = por %p10603_p6, %p10602_p2 }
  0x23   : > { %p10598_p1 = pneg %p10597_p10 }
  0x25   : > { %p10605_p8 = pnand %p10604_p4, %p10598_p1 }
  0x27   : > { %10608 = shalt.err (!%p10605_p8)
}
  0x28   : > { %s10801_s29 = smov 128   ;;  %s10802_s10 = smov 8  }
  0x29   : > { %10258 = dma.hbm_to_vmem [thread:$0]  (!%p10904_p11), %s13514_s1, 2048, %s221_s11, [#allocation9], %s10801_s29, %s10801_s29, %s10802_s10  }
  0x2a   : > { %s10803_s16 = smov [#allocation10]   ;;  %s10609_s21 = scalar_lea.hbm %s13516_s3, 8192 }
  0x2b   : > { %s233_s17 = sshll.u32 %s10803_s16, 4  ;;  %p10610_p1 = scmp.ne.s32.totalorder %s13516_s3, %s10609_s21  ;;  %s234_s17 = int_to_ptr.vmem [resolvable:$true] %s233_s17 }
  0x2c   : > { %p10616_p6 = scmp.lt.u32.totalorder %s10609_s21, %s13516_s3 }
  0x2d   : > { %p10612_p2 = pnand %p10610_p1, %p10916_p13 }
  0x2f   : > { %p10613_p4 = pneg %p10612_p2 }
  0x31   : > { %p10618_p8 = pnand %p10616_p6, %p10613_p4 }
  0x33   : > { %10621 = shalt.err (!%p10618_p8)
}
  0x34   : > { %s10622_s11 = scalar_lea.vmem %s247_s14, 8192  ;;  %p10630_p3 = scmp.lt.s32.totalorder %s247_s14, %s247_s14 }
  0x35   : > { %p10623_p10 = scmp.ne.s32.totalorder %s247_s14, %s10622_s11  ;;  %p10631_p5 = scmp.lt.s32.totalorder %s10622_s11, %s10622_s11 }
  0x37   : > { %p10625_p12 = pnand %p10623_p10, %p10916_p13  ;;  %p10632_p7 = por %p10631_p5, %p10630_p3 }
  0x39   : > { %p10626_p0 = pneg %p10625_p12 }
  0x3b   : > { %p10633_p9 = pnand %p10632_p7, %p10626_p0 }
  0x3d   : > { %10636 = shalt.err (!%p10633_p9)
}
  0x3e   : > { %s10804_s29 = smov 256   ;;  %s10805_s10 = smov 16  }
  0x3f   : > { %10264 = dma.hbm_to_vmem [thread:$0]  (!%p10904_p11), %s13516_s3, 8192, %s247_s14, [#allocation12], %s10804_s29, %s10804_s29, %s10805_s10  }
  0x40   : > { %s10637_s16 = scalar_lea.hbm %s13515_s2, 8192 }
  0x41   : > { %p10638_p1 = scmp.ne.s32.totalorder %s13515_s2, %s10637_s16  ;;  %p10644_p6 = scmp.lt.u32.totalorder %s10637_s16, %s13515_s2 }
  0x43   : > { %p10640_p2 = pnand %p10638_p1, %p10916_p13 }
  0x45   : > { %p10641_p4 = pneg %p10640_p2 }
  0x47   : > { %p10646_p8 = pnand %p10644_p6, %p10641_p4 }
  0x49   : > { %10649 = shalt.err (!%p10646_p8)
}
  0x4a   : > { %s10650_s23 = scalar_lea.vmem %s234_s17, 8192  ;;  %p10658_p3 = scmp.lt.s32.totalorder %s234_s17, %s234_s17 }
  0x4b   : > { %p10651_p10 = scmp.ne.s32.totalorder %s234_s17, %s10650_s23  ;;  %p10659_p5 = scmp.lt.s32.totalorder %s10650_s23, %s10650_s23 }
  0x4d   : > { %p10653_p12 = pnand %p10651_p10, %p10916_p13  ;;  %p10660_p7 = por %p10659_p5, %p10658_p3 }
  0x4f   : > { %p10654_p0 = pneg %p10653_p12 }
  0x51   : > { %p10661_p9 = pnand %p10660_p7, %p10654_p0 }
  0x53   : > { %10664 = shalt.err (!%p10661_p9)
}
  0x54   : > { %10261 = dma.hbm_to_vmem [thread:$0]  (!%p10904_p11), %s13515_s2, 8192, %s234_s17, [#allocation9], %s10804_s29, %s10804_s29, %s10805_s10  }
  0x55   : > { %s10806_s24 = smov [#allocation13]   ;;  %s10665_s16 = scalar_lea.hbm %s13518_s5, 32768 }
  0x56   : > { %s262_s8 = sshll.u32 %s10806_s24, 4  ;;  %p10666_p1 = scmp.ne.s32.totalorder %s13518_s5, %s10665_s16  ;;  %s263_s8 = int_to_ptr.vmem [resolvable:$true] %s262_s8 }
  0x57   : > { %p10672_p6 = scmp.lt.u32.totalorder %s10665_s16, %s13518_s5 }
  0x58   : > { %p10668_p2 = pnand %p10666_p1, %p10916_p13 }
  0x5a   : > { %p10669_p4 = pneg %p10668_p2 }
  0x5c   : > { %p10674_p8 = pnand %p10672_p6, %p10669_p4 }
  0x5e   : > { %10677 = shalt.err (!%p10674_p8)
}
  0x5f   : > { %s10678_s17 = scalar_lea.vmem %s263_s8, 32768  ;;  %p10686_p3 = scmp.lt.s32.totalorder %s263_s8, %s263_s8 }
  0x60   : > { %p10679_p10 = scmp.ne.s32.totalorder %s263_s8, %s10678_s17  ;;  %p10687_p5 = scmp.lt.s32.totalorder %s10678_s17, %s10678_s17 }
  0x62   : > { %p10681_p12 = pnand %p10679_p10, %p10916_p13  ;;  %p10688_p7 = por %p10687_p5, %p10686_p3 }
  0x64   : > { %p10682_p0 = pneg %p10681_p12 }
  0x66   : > { %p10689_p9 = pnand %p10688_p7, %p10682_p0 }
  0x68   : > { %10692 = shalt.err (!%p10689_p9)
}
  0x69   : > { %s10807_s29 = smov 512   ;;  %s10808_s20 = smov 32  }
  0x6a   : > { %10267 = dma.hbm_to_vmem [thread:$0]  (!%p10904_p11), %s13518_s5, 32768, %s263_s8, [#allocation12], %s10807_s29, %s10807_s29, %s10808_s20  }
  0x6b   : > { %s10987_s14 = sadd.s32 1, %s10797_s27   ;;  %s32_s24 = sadd.s32 1, %s10793_s26 }
  0x6c   : > { %s29_s11 = ssub.s32 %s10797_s27, %s10987_s14  ;;  %p39_p1 = scmp.ne.s32.totalorder %s10793_s26, %s10789_s25 }
  0x6d   : > { %p30_p13 = scmp.eq.s32.totalorder %s29_s11, 0  ;;  %p40_p2 = scmp.eq.s32.totalorder %s10797_s27, 0 }
  0x6e   : > { %p13829_p6 = scmp.eq.s32.totalorder %s10876_s28, 1  ;;  %p10280_p10 = scmp.lt.s32.totalorder %s10797_s27, 2 }
  0x6f   : > { %s10996_s13 = scalar_select %p30_p13, %s10793_s26, %s32_s24  }
  0x70   : > { %p41_p4 = por %p40_p2, %p39_p1  ;;  %p11000_p8 = por %p13829_p6, %p39_p1 }
  0x71   : > { %s279_s12 = sand.u32 1, %s10793_s26   ;;  %s9705_s8 = sshll.u32 %s10797_s27, 12 }
  0x72   : > { %s9256_s16 = sshll.u32 %s279_s12, 8  ;;  %s11010_s21 = scalar_lea.hbm %s13513_s0, %s9705_s8 }
  0x73   : > { %s283_s22 = scalar_lea.vmem [#allocation5], %s9256_s16  ;;  %p11014_p11 = pnand %p10280_p10, %p41_p4 }
  0x74   : > { %s291_s17 = sshll.u32 %s283_s22, 4  ;;  %s11018_s20 = scalar_lea.sflag [#allocation6], %s279_s12  ;;  %s11012_s17 = int_to_ptr.vmem [resolvable:$true] %s291_s17 }
  0x75   : > { %s10693_s10 = scalar_lea.hbm %s11010_s21, 4096  ;;  %p10695_p0 = pneg %p11014_p11 }
  0x76   : > { %p10694_p12 = scmp.ne.s32.totalorder %s11010_s21, %s10693_s10  ;;  %s10698_s24 = scalar_lea.hbm %s13513_s0, 8192 }
  0x77   : > { %p10699_p7 = scmp.lt.u32.totalorder %s11010_s21, %s13513_s0  ;;  %p10700_p9 = scmp.lt.u32.totalorder %s10698_s24, %s10693_s10 }
  0x78   : > { %p10696_p3 = pnand %p10695_p0, %p10694_p12  ;;  %p10702_p1 = scmp.lt.u32.totalorder %s10693_s10, %s11010_s21 }
  0x79   : > { %p10701_p13 = por %p10700_p9, %p10699_p7 }
  0x7a   : > { %p10697_p5 = pneg %p10696_p3 }
  0x7b   : > { %p10703_p2 = por %p10702_p1, %p10701_p13 }
  0x7d   : > { %p10704_p4 = pnand %p10703_p2, %p10697_p5 }
  0x7f   : > { %10707 = shalt.err (!%p10704_p4)
}
  0x80   : > { %s10708_s12 = scalar_lea.vmem %s11012_s17, 4096  ;;  %s10809_s18 = smov [#allocation5]  }
  0x81   : > { %p10709_p6 = scmp.ne.s32.totalorder %s11012_s17, %s10708_s12  ;;  %s10713_s19 = sshll.u32 %s10809_s18, 4  ;;  %s10714_s19 = int_to_ptr.vmem [resolvable:$false] %s10713_s19 }
  0x82   : > { %s10715_s22 = scalar_lea.vmem %s10714_s19, 8192  ;;  %p10716_p3 = scmp.lt.s32.totalorder %s11012_s17, %s10714_s19 }
  0x83   : > { %p10711_p10 = pnand %p10709_p6, %p10695_p0  ;;  %p10717_p7 = scmp.lt.s32.totalorder %s10715_s22, %s10708_s12 }
  0x85   : > { %p10712_p12 = pneg %p10711_p10  ;;  %p10718_p9 = por %p10717_p7, %p10716_p3 }
  0x87   : > { %p10719_p13 = pnand %p10718_p9, %p10712_p12 }
  0x89   : > { %10722 = shalt.err (!%p10719_p13)
}
  0x8a   : > { %s10810_s10 = smov 64   ;;  %s10811_s23 = smov 4  }
  0x8b   : > { %10271 = dma.hbm_to_vmem [thread:$0]  (!%p11014_p11), %s11010_s21, 4096, %s11012_s17, %s11018_s20, %s10810_s10, %s10810_s10, %s10811_s23  }
  0x8c   : > { %p13832_p0 = scmp.ne.s32.totalorder %s13826_s9, 0 }
  0x8e   : > { %303 = sbr.rel (%p13832_p0) target bundleno = 2264 (0x8d8), region = 48 }
  0x95   : > { %s11049_s11 = sand.u32 1, %s10789_s25   ;;  %p13833_p5 = scmp.ne.s32.totalorder %s13823_s30, 0 }
  0x96   : > { %s9261_s24 = sshll.u32 %s11049_s11, 8  ;;  %s306_s16 = scalar_lea.sflag [#allocation6], %s11049_s11 }
  0x97   : > { %s11053_s8 = scalar_lea.vmem [#allocation5], %s9261_s24 }
  0x98   : > { %10768 = dma.done.wait (%p13833_p5), %s306_s16, 4096  }
  0x99   : > { %10770 = vsyncadd (%p13833_p5), %s306_s16, 4294963200  ;;  %p13834_p11 = scmp.eq.s32.totalorder %s10876_s28, 0 }
  0x9b   : > { %10772 = dma.done.wait (%p13834_p11), [#allocation9], 10240   ;;  %p13835_p1 = pmov %p13834_p11 }
  0x9d   : > { %10774 = vsyncadd (%p13835_p1), [#allocation9], 4294957056  ;;  %p13836_p2 = pmov %p13835_p1 }
  0x9e   : > { %p13837_p4 = pmov %p13835_p1 }
  0x9f   : > { %10776 = dma.done.wait (%p13836_p2), [#allocation12], 40960  }
  0xa0   : > { %10778 = vsyncadd (%p13837_p4), [#allocation12], 4294926336  ;;  %v10812_v0 = vmov 0   ;;  %v10332_v1 = vld [vmem:[#allocation8 + $0x4] ss:$8 sps:$4 sm:$0xff]   ;;  %v10358_v21 = vld [vmem:[%s11053_s8 + $0x10] sm:$0xff]  }
  0xa1   : > { %1072 = vmatprep.mubr.bf16.mxu0 %v10812_v0  ;;  %1312 = vmatprep.mubr.bf16.mxu1 %v10812_v0  ;;  %v10334_v2 = vld [vmem:[#allocation8] ss:$8 sps:$4 sm:$0xff]   ;;  %v10335_v3 = vld [vmem:[#allocation8 + $0x14] ss:$8 sps:$4 sm:$0xff]   ;;  %v10337_v4 = vld [vmem:[#allocation8 + $0x10] ss:$8 sps:$4 sm:$0xff]  }
  0xa2   : > { %1040 = vmatprep.subr.bf16.mxu0 %v10332_v1  ;;  %9707 = vmatprep.subr.bf16.mxu1 %v10332_v1  ;;  %v10338_v5 = vld [vmem:[#allocation8 + $0x24] ss:$8 sps:$4 sm:$0xff]   ;;  %v10340_v6 = vld [vmem:[#allocation8 + $0x20] ss:$8 sps:$4 sm:$0xff]   ;;  %v10341_v7 = vld [vmem:[#allocation8 + $0x34] ss:$8 sps:$4 sm:$0xff]  }
  0xa3   : > { %1041 = vmatpush1.bf16.msra.mxu0 %v10334_v2  ;;  %9715 = vmatpush1.bf16.msra.mxu1 %v10334_v2  ;;  %v10343_v8 = vld [vmem:[#allocation8 + $0x30] ss:$8 sps:$4 sm:$0xff]   ;;  %v10344_v9 = vld [vmem:[#allocation8 + $0x44] ss:$8 sps:$4 sm:$0xff]   ;;  %v10346_v10 = vld [vmem:[#allocation8 + $0x40] ss:$8 sps:$4 sm:$0xff]  }
  0xa4   : > { %1042 = vmatprep.subr.bf16.mxu0 %v10335_v3  ;;  %9708 = vmatprep.subr.bf16.mxu1 %v10335_v3  ;;  %v10347_v11 = vld [vmem:[#allocation8 + $0x54] ss:$8 sps:$4 sm:$0xff]   ;;  %v10349_v12 = vld [vmem:[#allocation8 + $0x50] ss:$8 sps:$4 sm:$0xff]   ;;  %v10350_v13 = vld [vmem:[#allocation8 + $0x64] ss:$8 sps:$4 sm:$0xff]  }
  0xa5   : > { %v10352_v14 = vld [vmem:[#allocation8 + $0x60] ss:$8 sps:$4 sm:$0xff]   ;;  %v10353_v15 = vld [vmem:[#allocation8 + $0x74] ss:$8 sps:$4 sm:$0xff]   ;;  %v10355_v16 = vld [vmem:[#allocation8 + $0x70] ss:$8 sps:$4 sm:$0xff]  }
  0xa6   : > { %v10356_v17 = vld [vmem:[%s11053_s8] sm:$0xff]   ;;  %v10357_v19 = vld [vmem:[%s11053_s8 + $0x8] sm:$0xff]   ;;  %v10374_v22 = vld [vmem:[%s11053_s8 + $0xd0] sm:$0xff]   ;;  %vm1619_vm0 = vcmask 1041409   ;;  %vm1621_vm1 = vcmask 1042434   ;;  %vm1623_vm2 = vcmask 1043459  }
  0xa7   : > { %1043 = vmatpush1.bf16.msra.mxu0 %v10337_v4  ;;  %9716 = vmatpush1.bf16.msra.mxu1 %v10337_v4  ;;  %v10370_v18 = vld [vmem:[%s11053_s8 + $0xc0] sm:$0xff]   ;;  %v10372_v20 = vld [vmem:[%s11053_s8 + $0xc8] sm:$0xff]   ;;  %v10359_v23 = vld [vmem:[%s11053_s8 + $0x18] sm:$0xff]   ;;  %vm1625_vm3 = vcmask 1044484   ;;  %vm1627_vm4 = vcmask 1045509   ;;  %vm1629_vm5 = vcmask 1046534  }
  0xa8   : > { %1044 = vmatprep.subr.bf16.mxu0 %v10338_v5  ;;  %9709 = vmatprep.subr.bf16.mxu1 %v10338_v5  ;;  %v10376_v24 = vld [vmem:[%s11053_s8 + $0xd8] sm:$0xff]   ;;  %v10360_v29 = vld [vmem:[%s11053_s8 + $0x20] sm:$0xff]   ;;  %v10361_v35 = vld [vmem:[%s11053_s8 + $0x28] sm:$0xff]   ;;  %vm1631_vm6 = vcmask 1047559   ;;  %s9266_s29 = sshll.u32 %s11049_s11, 6  ;;  %s9706_s19 = sshll.u32 %s10876_s28, 10 }
  0xa9   : > { %v10382_v25 = vld [vmem:[#allocation11 + $0x8] ss:$16 sps:$4 sm:$0xff]   ;;  %v10384_v26 = vld [vmem:[#allocation11 + $0xc] ss:$16 sps:$4 sm:$0xff]   ;;  %v10378_v30 = vld [vmem:[%s11053_s8 + $0xe0] sm:$0xff]   ;;  %s13187_s20 = scalar_lea.vmem [#allocation14], %s9266_s29  ;;  %s13467_s24 = scalar_lea.hbm %s13520_s7, %s9706_s19 }
  0xaa   : > { %v10386_v27 = vld [vmem:[#allocation11 + $0x28] ss:$16 sps:$4 sm:$0xff]   ;;  %v10388_v28 = vld [vmem:[#allocation11 + $0x2c] ss:$16 sps:$4 sm:$0xff]   ;;  %v10362_v41 = vld [vmem:[%s11053_s8 + $0x30] sm:$0xff]   ;;  %s9141_s22 = sshll.u32 %s13187_s20, 4  ;;  %s13469_s22 = int_to_ptr.vmem [resolvable:$true] %s9141_s22 }
  0xab   : > { %1045 = vmatpush1.bf16.msra.mxu0 %v10340_v6  ;;  %9717 = vmatpush1.bf16.msra.mxu1 %v10340_v6  ;;  %v10390_v31 = vld [vmem:[#allocation11 + $0x48] ss:$16 sps:$4 sm:$0xff]   ;;  %v10392_v32 = vld [vmem:[#allocation11 + $0x4c] ss:$16 sps:$4 sm:$0xff]   ;;  %v10385_v42 = vld [vmem:[%s11053_s8 + $0xf0] sm:$0xff]   ;;  %s9127_s28 = scalar_lea.sflag [#allocation7], %s11049_s11 }
  0xac   : > { %1046 = vmatprep.subr.bf16.mxu0 %v10341_v7  ;;  %9710 = vmatprep.subr.bf16.mxu1 %v10341_v7  ;;  %v10394_v33 = vld [vmem:[#allocation11 + $0x68] ss:$16 sps:$4 sm:$0xff]   ;;  %v10396_v34 = vld [vmem:[#allocation11 + $0x6c] ss:$16 sps:$4 sm:$0xff]   ;;  %v10364_v53 = vld [vmem:[%s11053_s8 + $0x40] sm:$0xff]   ;;  %s10723_s16 = scalar_lea.vmem %s13469_s22, 1024 }
  0xad   : > { %v10380_v36 = vld [vmem:[%s11053_s8 + $0xe8] sm:$0xff]   ;;  %v10363_v47 = vld [vmem:[%s11053_s8 + $0x38] sm:$0xff]   ;;  %v10366_v63 = vld [vmem:[%s11053_s8 + $0x50] sm:$0xff]   ;;  %p10724_p6 = scmp.ne.s32.totalorder %s13469_s22, %s10723_s16 }
  0xae   : > { %v10398_v37 = vld [vmem:[#allocation11 + $0x88] ss:$16 sps:$4 sm:$0xff]   ;;  %v10400_v38 = vld [vmem:[#allocation11 + $0x8c] ss:$16 sps:$4 sm:$0xff]   ;;  %v10368_v6 = vld [vmem:[%s11053_s8 + $0x60] sm:$0xff]  }
  0xaf   : > { %1047 = vmatpush1.bf16.msra.mxu0 %v10343_v8  ;;  %9718 = vmatpush1.bf16.msra.mxu1 %v10343_v8  ;;  %v10401_v39 = vld [vmem:[#allocation11 + $0xa8] ss:$16 sps:$4 sm:$0xff]   ;;  %v10403_v40 = vld [vmem:[#allocation11 + $0xac] ss:$16 sps:$4 sm:$0xff]   ;;  %v10371_v8 = vld [vmem:[%s11053_s8 + $0x70] sm:$0xff]   ;;  %p10725_p10 = pnand %p10724_p6, %p11000_p8 }
  0xb0   : > { %1048 = vmatprep.subr.bf16.mxu0 %v10344_v9  ;;  %9711 = vmatprep.subr.bf16.mxu1 %v10344_v9  ;;  %v10405_v43 = vld [vmem:[#allocation11 + $0xc8] ss:$16 sps:$4 sm:$0xff]   ;;  %v10407_v44 = vld [vmem:[#allocation11 + $0xcc] ss:$16 sps:$4 sm:$0xff]  }
  0xb1   : > { %v10408_v45 = vld [vmem:[#allocation11 + $0xe8] ss:$16 sps:$4 sm:$0xff]   ;;  %v10410_v46 = vld [vmem:[#allocation11 + $0xec] ss:$16 sps:$4 sm:$0xff]   ;;  %p10726_p12 = pneg %p10725_p10 }
  0xb2   : > { %v10393_v48 = vld [vmem:[%s11053_s8 + $0xf8] sm:$0xff]   ;;  %v10365_v58 = vld [vmem:[%s11053_s8 + $0x48] sm:$0xff]  }
  0xb3   : > { %1049 = vmatpush1.bf16.msra.mxu0 %v10346_v10  ;;  %9719 = vmatpush1.bf16.msra.mxu1 %v10346_v10  ;;  %v10412_v49 = vld [vmem:[#allocation11 + $0x108] ss:$16 sps:$4 sm:$0xff]   ;;  %v10414_v50 = vld [vmem:[#allocation11 + $0x10c] ss:$16 sps:$4 sm:$0xff]   ;;  %v10375_v10 = vld [vmem:[%s11053_s8 + $0x80] sm:$0xff]  }
  0xb4   : > { %1050 = vmatprep.subr.bf16.mxu0 %v10347_v11  ;;  %9712 = vmatprep.subr.bf16.mxu1 %v10347_v11  ;;  %v10417_v51 = vld [vmem:[#allocation11 + $0x12c] ss:$16 sps:$4 sm:$0xff]   ;;  %v10415_v52 = vld [vmem:[#allocation11 + $0x128] ss:$16 sps:$4 sm:$0xff]  }
  0xb5   : > { %v10420_v54 = vld [vmem:[#allocation11 + $0x14c] ss:$16 sps:$4 sm:$0xff]   ;;  %v10418_v55 = vld [vmem:[#allocation11 + $0x148] ss:$16 sps:$4 sm:$0xff]  }
  0xb6   : > { %v10423_v56 = vld [vmem:[#allocation11 + $0x16c] ss:$16 sps:$4 sm:$0xff]   ;;  %v10421_v57 = vld [vmem:[#allocation11 + $0x168] ss:$16 sps:$4 sm:$0xff]  }
  0xb7   : > { %1051 = vmatpush1.bf16.msra.mxu0 %v10349_v12  ;;  %9720 = vmatpush1.bf16.msra.mxu1 %v10349_v12  ;;  %v10426_v59 = vld [vmem:[#allocation11 + $0x18c] ss:$16 sps:$4 sm:$0xff]   ;;  %v10424_v60 = vld [vmem:[#allocation11 + $0x188] ss:$16 sps:$4 sm:$0xff]   ;;  %v10379_v12 = vld [vmem:[%s11053_s8 + $0x90] sm:$0xff]  }
  0xb8   : > { %1052 = vmatprep.subr.bf16.mxu0 %v10350_v13  ;;  %9713 = vmatprep.subr.bf16.mxu1 %v10350_v13  ;;  %v10429_v61 = vld [vmem:[#allocation11 + $0x1ac] ss:$16 sps:$4 sm:$0xff]   ;;  %v10427_v62 = vld [vmem:[#allocation11 + $0x1a8] ss:$16 sps:$4 sm:$0xff]  }
  0xb9   : > { %v10432_v1 = vld [vmem:[#allocation11 + $0x1cc] ss:$16 sps:$4 sm:$0xff]   ;;  %v10430_v2 = vld [vmem:[#allocation11 + $0x1c8] ss:$16 sps:$4 sm:$0xff]  }
  0xba   : > { %v10367_v3 = vld [vmem:[%s11053_s8 + $0x58] sm:$0xff]   ;;  %v10369_v7 = vld [vmem:[%s11053_s8 + $0x68] sm:$0xff]  }
  0xbb   : > { %1053 = vmatpush1.bf16.msra.mxu0 %v10352_v14  ;;  %9721 = vmatpush1.bf16.msra.mxu1 %v10352_v14  ;;  %v10435_v4 = vld [vmem:[#allocation11 + $0x1ec] ss:$16 sps:$4 sm:$0xff]   ;;  %v10433_v5 = vld [vmem:[#allocation11 + $0x1e8] ss:$16 sps:$4 sm:$0xff]   ;;  %v10389_v14 = vld [vmem:[%s11053_s8 + $0xa0] sm:$0xff]  }
  0xbc   : > { %1054 = vmatprep.subr.bf16.mxu0 %v10353_v15  ;;  %9714 = vmatprep.subr.bf16.mxu1 %v10353_v15  ;;  %v10373_v9 = vld [vmem:[%s11053_s8 + $0x78] sm:$0xff]   ;;  %v10377_v11 = vld [vmem:[%s11053_s8 + $0x88] sm:$0xff]  }
  0xbd   : > { %v10381_v13 = vld [vmem:[%s11053_s8 + $0x98] sm:$0xff]   ;;  %v10397_v15 = vld [vmem:[%s11053_s8 + $0xa8] sm:$0xff]  }
  0xbf   : > { %1055 = vmatpush1.bf16.msra.mxu0 %v10355_v16  ;;  %9722 = vmatpush1.bf16.msra.mxu1 %v10355_v16  ;;  %v10404_v16 = vld [vmem:[%s11053_s8 + $0xb0] sm:$0xff]  }
  0xc0   : > { %3235 = vmatprep.subr.bf16.mxu0 %v10384_v26 }
  0xc2   : > { %1073 = vmatmul.mubr.bf16.vlgmr.msra.gmra.mrb[0].mxu0 %v10356_v17  ;;  %1313 = vmatmul.mubr.bf16.vlgmr.msra.gmra.mrb[0].mxu1 %v10370_v18  ;;  %v10411_v17 = vld [vmem:[%s11053_s8 + $0xb8] sm:$0xff]   ;;  %s10814_s8 = smov [#allocation14]  }
  0xc3   : > { %1082 = vmatprep.mubr.bf16.mxu0 %v10812_v0  ;;  %1322 = vmatprep.mubr.bf16.mxu1 %v10812_v0  ;;  %s10727_s30 = sshll.u32 %s10814_s8, 4  ;;  %s10728_s30 = int_to_ptr.vmem [resolvable:$false] %s10727_s30 }
  0xc4   : > { %3236 = vmatpush1.bf16.msra.mxu0 %v10382_v25  ;;  %s10729_s9 = scalar_lea.vmem %s10728_s30, 2048  ;;  %p10730_p3 = scmp.lt.s32.totalorder %s13469_s22, %s10728_s30 }
  0xc5   : > { %3237 = vmatprep.subr.bf16.mxu0 %v10388_v28  ;;  %p10731_p7 = scmp.lt.s32.totalorder %s10729_s9, %s10723_s16 }
  0xc7   : > { %p10732_p9 = por %p10731_p7, %p10730_p3 }
  0xc8   : > { %3238 = vmatpush1.bf16.msra.mxu0 %v10386_v27 }
  0xc9   : > { %3239 = vmatprep.subr.bf16.mxu0 %v10392_v32  ;;  %p10733_p13 = pnand %p10732_p9, %p10726_p12 }
  0xca   : > { %1083 = vmatmul.mubr.bf16.gmra.mrb[4].mxu0 %v10357_v19  ;;  %1323 = vmatmul.mubr.bf16.gmra.mrb[4].mxu1 %v10372_v20 }
  0xcb   : > { %1092 = vmatprep.mubr.bf16.mxu0 %v10812_v0  ;;  %1332 = vmatprep.mubr.bf16.mxu1 %v10812_v0 }
  0xcc   : > { %3240 = vmatpush1.bf16.msra.mxu0 %v10390_v31 }
  0xcd   : > { %3241 = vmatprep.subr.bf16.mxu0 %v10396_v34 }
  0xd0   : > { %3242 = vmatpush1.bf16.msra.mxu0 %v10394_v33 }
  0xd1   : > { %3243 = vmatprep.subr.bf16.mxu0 %v10400_v38 }
  0xd2   : > { %1093 = vmatmul.mubr.bf16.gmra.mrb[8].mxu0 %v10358_v21  ;;  %1333 = vmatmul.mubr.bf16.gmra.mrb[8].mxu1 %v10374_v22 }
  0xd3   : > { %1102 = vmatprep.mubr.bf16.mxu0 %v10812_v0  ;;  %1342 = vmatprep.mubr.bf16.mxu1 %v10812_v0 }
  0xd4   : > { %3244 = vmatpush1.bf16.msra.mxu0 %v10398_v37 }
  0xd5   : > { %3245 = vmatprep.subr.bf16.mxu0 %v10403_v40 }
  0xd8   : > { %3246 = vmatpush1.bf16.msra.mxu0 %v10401_v39 }
  0xd9   : > { %3247 = vmatprep.subr.bf16.mxu0 %v10407_v44 }
  0xda   : > { %1103 = vmatmul.mubr.bf16.gmra.mrb[12].mxu0 %v10359_v23  ;;  %1343 = vmatmul.mubr.bf16.gmra.mrb[12].mxu1 %v10376_v24 }
  0xdb   : > { %1112 = vmatprep.mubr.bf16.mxu0 %v10812_v0  ;;  %1352 = vmatprep.mubr.bf16.mxu1 %v10812_v0 }
  0xdc   : > { %3248 = vmatpush1.bf16.msra.mxu0 %v10405_v43 }
  0xdd   : > { %3249 = vmatprep.subr.bf16.mxu0 %v10410_v46 }
  0xe0   : > { %3250 = vmatpush1.bf16.msra.mxu0 %v10408_v45 }
  0xe1   : > { %3251 = vmatprep.subr.bf16.mxu0 %v10414_v50 }
  0xe2   : > { %1113 = vmatmul.mubr.bf16.gmra.mrb[16].mxu0 %v10360_v29  ;;  %1353 = vmatmul.mubr.bf16.gmra.mrb[16].mxu1 %v10378_v30 }
  0xe3   : > { %1122 = vmatprep.mubr.bf16.mxu0 %v10812_v0  ;;  %1362 = vmatprep.mubr.bf16.mxu1 %v10812_v0 }
  0xe4   : > { %3252 = vmatpush1.bf16.msra.mxu0 %v10412_v49 }
  0xe5   : > { %3253 = vmatprep.subr.bf16.mxu0 %v10417_v51 }
  0xe8   : > { %3254 = vmatpush1.bf16.msra.mxu0 %v10415_v52 }
  0xe9   : > { %3255 = vmatprep.subr.bf16.mxu0 %v10420_v54  ;;  %v10436_v54 = vld [vmem:[#allocation10] ss:$16 sps:$4 sm:$0xff]  }
  0xea   : > { %1123 = vmatmul.mubr.bf16.gmra.mrb[20].mxu0 %v10361_v35  ;;  %1363 = vmatmul.mubr.bf16.gmra.mrb[20].mxu1 %v10380_v36 }
  0xeb   : > { %1132 = vmatprep.mubr.bf16.mxu0 %v10812_v0  ;;  %1372 = vmatprep.mubr.bf16.mxu1 %v10812_v0 }
  0xec   : > { %3256 = vmatpush1.bf16.msra.mxu0 %v10418_v55 }
  0xed   : > { %3257 = vmatprep.subr.bf16.mxu0 %v10423_v56 }
  0xf0   : > { %3258 = vmatpush1.bf16.msra.mxu0 %v10421_v57 }
  0xf1   : > { %3259 = vmatprep.subr.bf16.mxu0 %v10426_v59 }
  0xf2   : > { %1133 = vmatmul.mubr.bf16.gmra.mrb[24].mxu0 %v10362_v41  ;;  %1373 = vmatmul.mubr.bf16.gmra.mrb[24].mxu1 %v10385_v42 }
  0xf3   : > { %1142 = vmatprep.mubr.bf16.mxu0 %v10812_v0  ;;  %1382 = vmatprep.mubr.bf16.mxu1 %v10812_v0 }
  0xf4   : > { %3260 = vmatpush1.bf16.msra.mxu0 %v10424_v60 }
  0xf5   : > { %3261 = vmatprep.subr.bf16.mxu0 %v10429_v61  ;;  %v10441_v61 = vld [vmem:[#allocation10 + $0x24] ss:$16 sps:$4 sm:$0xff]  }
  0xf8   : > { %3262 = vmatpush1.bf16.msra.mxu0 %v10427_v62 }
  0xf9   : > { %3263 = vmatprep.subr.bf16.mxu0 %v10432_v1 }
  0xfa   : > { %1143 = vmatmul.mubr.bf16.gmra.mrb[28].mxu0 %v10363_v47  ;;  %1383 = vmatmul.mubr.bf16.gmra.mrb[28].mxu1 %v10393_v48 }
  0xfb   : > { %1152 = vmatprep.mubr.bf16.mxu0 %v10812_v0 }
  0xfc   : > { %3264 = vmatpush1.bf16.msra.mxu0 %v10430_v2 }
  0xfd   : > { %3265 = vmatprep.subr.bf16.mxu0 %v10435_v4 }
 0x100   : > { %3266 = vmatpush1.bf16.msra.mxu0 %v10433_v5 }
 0x102   : > { %1153 = vmatmul.mubr.bf16.gmra.mrb[32].mxu0 %v10364_v53  ;;  %v10438_v53 = vld [vmem:[#allocation10 + $0x4] ss:$16 sps:$4 sm:$0xff]  }
 0x103   : > { %1162 = vmatprep.mubr.bf16.mxu0 %v10812_v0  ;;  %2184 = vmatprep.subr.bf16.mxu1 %v10438_v53 }
 0x104   : > { %2185 = vmatpush1.bf16.msra.mxu1 %v10436_v54  ;;  %v10451_v54 = vld [vmem:[#allocation10 + $0xa0] ss:$16 sps:$4 sm:$0xff]  }
 0x105   : > { %2186 = vmatprep.subr.bf16.mxu1 %v10441_v61 }
 0x10a   : > { %1163 = vmatmul.mubr.bf16.gmra.mrb[36].mxu0 %v10365_v58 }
 0x10b   : > { %1172 = vmatprep.mubr.bf16.mxu0 %v10812_v0 }
 0x112   : > { %1173 = vmatmul.mubr.bf16.gmra.mrb[40].mxu0 %v10366_v63 }
 0x113   : > { %1182 = vmatprep.mubr.bf16.mxu0 %v10812_v0 }
 0x11a   : > { %1183 = vmatmul.mubr.bf16.gmra.mrb[44].mxu0 %v10367_v3  ;;  %v10439_v3 = vld [vmem:[#allocation10 + $0x20] ss:$16 sps:$4 sm:$0xff]  }
 0x11b   : > { %1192 = vmatprep.mubr.bf16.mxu0 %v10812_v0  ;;  %2187 = vmatpush1.bf16.msra.mxu1 %v10439_v3 }
 0x122   : > { %1193 = vmatmul.mubr.bf16.gmra.mrb[48].mxu0 %v10368_v6 }
 0x123   : > { %1202 = vmatprep.mubr.bf16.mxu0 %v10812_v0 }
 0x12a   : > { %1203 = vmatmul.mubr.bf16.gmra.mrb[52].mxu0 %v10369_v7 }
 0x12b   : > { %1212 = vmatprep.mubr.bf16.mxu0 %v10812_v0 }
 0x132   : > { %1213 = vmatmul.mubr.bf16.gmra.mrb[56].mxu0 %v10371_v8 }
 0x133   : > { %1222 = vmatprep.mubr.bf16.mxu0 %v10812_v0 }
 0x13a   : > { %1223 = vmatmul.mubr.bf16.gmra.mrb[60].mxu0 %v10373_v9 }
 0x13b   : > { %1232 = vmatprep.mubr.bf16.mxu0 %v10812_v0 }
 0x142   : > { %1233 = vmatmul.mubr.bf16.gmra.mrb[64].mxu0 %v10375_v10 }
 0x143   : > { %1242 = vmatprep.mubr.bf16.mxu0 %v10812_v0 }
 0x14a   : > { %1243 = vmatmul.mubr.bf16.gmra.mrb[68].mxu0 %v10377_v11 }
 0x14b   : > { %1252 = vmatprep.mubr.bf16.mxu0 %v10812_v0 }
 0x152   : > { %1253 = vmatmul.mubr.bf16.gmra.mrb[72].mxu0 %v10379_v12 }
 0x153   : > { %1262 = vmatprep.mubr.bf16.mxu0 %v10812_v0 }
 0x15a   : > { %1263 = vmatmul.mubr.bf16.gmra.mrb[76].mxu0 %v10381_v13  ;;  %v10444_v13 = vld [vmem:[#allocation10 + $0x44] ss:$16 sps:$4 sm:$0xff]  }
 0x15b   : > { %1272 = vmatprep.mubr.bf16.mxu0 %v10812_v0  ;;  %2188 = vmatprep.subr.bf16.mxu1 %v10444_v13  ;;  %v10459_v13 = vld [vmem:[#allocation10 + $0xe4] ss:$16 sps:$4 sm:$0xff]  }
 0x162   : > { %1273 = vmatmul.mubr.bf16.gmra.mrb[80].mxu0 %v10389_v14 }
 0x163   : > { %1282 = vmatprep.mubr.bf16.mxu0 %v10812_v0 }
 0x16a   : > { %1283 = vmatmul.mubr.bf16.gmra.mrb[84].mxu0 %v10397_v15  ;;  %v10442_v15 = vld [vmem:[#allocation10 + $0x40] ss:$16 sps:$4 sm:$0xff]  }
 0x16b   : > { %1292 = vmatprep.mubr.bf16.mxu0 %v10812_v0  ;;  %2189 = vmatpush1.bf16.msra.mxu1 %v10442_v15 }
 0x172   : > { %1293 = vmatmul.mubr.bf16.gmra.mrb[88].mxu0 %v10404_v16 }
 0x173   : > { %1302 = vmatprep.mubr.bf16.mxu0 %v10812_v0 }
 0x17a   : > { %1303 = vmatmul.mubr.bf16.gmra.mrb[92].mxu0 %v10411_v17 }
 0x195   : > { %v1074_v18 = vpop.f32.mrb[0].mxu0  ;;  %v1314_v19 = vpop.f32.mrb[0].mxu1 }
 0x196   : > { %v1076_v20 = vpop.f32.mrb[1].mxu0  ;;  %v1316_v21 = vpop.f32.mrb[1].mxu1 }
 0x197   : > { %v1078_v22 = vpop.f32.mrb[2].mxu0  ;;  %v1318_v23 = vpop.f32.mrb[2].mxu1 }
 0x198   : > { %v1395_v24 = vmax.f32 %v1074_v18, %v1078_v22  ;;  %v11131_v25 = vpack.c.bf16 %v1078_v22, %v1074_v18  ;;  %v1080_v26 = vpop.f32.mrb[3].mxu0  ;;  %v1551_v27 = vmax.f32 %v1314_v19, %v1318_v23  ;;  %v1320_v28 = vpop.f32.mrb[3].mxu1  ;;  %v11133_v29 = vpack.c.bf16 %v1318_v23, %v1314_v19  ;;  %v10447_v22 = vld [vmem:[#allocation10 + $0x64] ss:$16 sps:$4 sm:$0xff]  }
 0x199   : > { %v1408_v30 = vmax.f32 %v1076_v20, %v1080_v26  ;;  %v11135_v31 = vpack.c.bf16 %v1080_v26, %v1076_v20  ;;  %v1564_v0 = vmax.f32 %v1316_v21, %v1320_v28  ;;  %v11137_v32 = vpack.c.bf16 %v1320_v28, %v1316_v21  ;;  %v10445_v28 = vld [vmem:[#allocation10 + $0x60] ss:$16 sps:$4 sm:$0xff]   ;;  %2190 = vmatprep.subr.bf16.mxu1 %v10447_v22 }
 0x19a   : > { %13838 = vst [vmem:[#allocation21_spill] sm:$0xff] %v11133_v29  ;;  %2191 = vmatpush1.bf16.msra.mxu1 %v10445_v28 }
 0x19b   : > { %3267 = vmatprep.mubr.bf16.mxu0 %v11135_v31 }
 0x19c   : > { %3268 = vmatmul.mubr.bf16.vlgmr.msra.gmra.mrb[96].mxu0 %v11131_v25 }
 0x19d   : > { %v1084_v33 = vpop.f32.mrb[4].mxu0  ;;  %v1324_v34 = vpop.f32.mrb[4].mxu1 }
 0x19e   : > { %v1396_v35 = vmax.f32 %v1395_v24, %v1084_v33  ;;  %v1086_v36 = vpop.f32.mrb[5].mxu0  ;;  %v1552_v37 = vmax.f32 %v1551_v27, %v1324_v34  ;;  %v1326_v38 = vpop.f32.mrb[5].mxu1 }
 0x19f   : > { %v1409_v39 = vmax.f32 %v1408_v30, %v1086_v36  ;;  %v1088_v40 = vpop.f32.mrb[6].mxu0  ;;  %v1565_v41 = vmax.f32 %v1564_v0, %v1326_v38  ;;  %v1328_v42 = vpop.f32.mrb[6].mxu1 }
 0x1a0   : > { %v1397_v43 = vmax.f32 %v1396_v35, %v1088_v40  ;;  %v1090_v44 = vpop.f32.mrb[7].mxu0  ;;  %v11141_v45 = vpack.c.bf16 %v1088_v40, %v1084_v33  ;;  %v1553_v46 = vmax.f32 %v1552_v37, %v1328_v42  ;;  %v1330_v47 = vpop.f32.mrb[7].mxu1  ;;  %v11143_v48 = vpack.c.bf16 %v1328_v42, %v1324_v34  ;;  %v10450_v40 = vld [vmem:[#allocation10 + $0x84] ss:$16 sps:$4 sm:$0xff]   ;;  %v10448_v42 = vld [vmem:[#allocation10 + $0x80] ss:$16 sps:$4 sm:$0xff]  }
 0x1a1   : > { %v1410_v49 = vmax.f32 %v1409_v39, %v1090_v44  ;;  %v11145_v50 = vpack.c.bf16 %v1090_v44, %v1086_v36  ;;  %v1566_v51 = vmax.f32 %v1565_v41, %v1330_v47  ;;  %v11147_v52 = vpack.c.bf16 %v1330_v47, %v1326_v38  ;;  %2192 = vmatprep.subr.bf16.mxu1 %v10450_v40 }
 0x1a2   : > { %13839 = vst [vmem:[#allocation22_spill] sm:$0xff] %v11143_v48  ;;  %2193 = vmatpush1.bf16.msra.mxu1 %v10448_v42  ;;  %v10460_v42 = vld [vmem:[#allocation10 + $0x100] ss:$16 sps:$4 sm:$0xff]  }
 0x1a3   : > { %13840 = vst [vmem:[#allocation23_spill] sm:$0xff] %v11147_v52  ;;  %3277 = vmatprep.mubr.bf16.mxu0 %v11145_v50 }
 0x1a4   : > { %3278 = vmatmul.mubr.bf16.gmra.mrb[100].mxu0 %v11141_v45 }
 0x1a5   : > { %v1094_v55 = vpop.f32.mrb[8].mxu0  ;;  %v1334_v56 = vpop.f32.mrb[8].mxu1 }
 0x1a6   : > { %v1398_v57 = vmax.f32 %v1397_v43, %v1094_v55  ;;  %v1096_v58 = vpop.f32.mrb[9].mxu0  ;;  %v1554_v59 = vmax.f32 %v1553_v46, %v1334_v56  ;;  %v1336_v60 = vpop.f32.mrb[9].mxu1 }
 0x1a7   : > { %v1411_v62 = vmax.f32 %v1410_v49, %v1096_v58  ;;  %v1098_v63 = vpop.f32.mrb[10].mxu0  ;;  %v1567_v1 = vmax.f32 %v1566_v51, %v1336_v60  ;;  %v1338_v2 = vpop.f32.mrb[10].mxu1  ;;  %v10453_v49 = vld [vmem:[#allocation10 + $0xa4] ss:$16 sps:$4 sm:$0xff]  }
 0x1a8   : > { %v1399_v4 = vmax.f32 %v1398_v57, %v1098_v63  ;;  %v1100_v5 = vpop.f32.mrb[11].mxu0  ;;  %v11151_v6 = vpack.c.bf16 %v1098_v63, %v1094_v55  ;;  %v1555_v7 = vmax.f32 %v1554_v59, %v1338_v2  ;;  %v1340_v8 = vpop.f32.mrb[11].mxu1  ;;  %v11157_v14 = vpack.c.bf16 %v1338_v2, %v1334_v56  ;;  %2194 = vmatprep.subr.bf16.mxu1 %v10453_v49  ;;  %v10456_v63 = vld [vmem:[#allocation10 + $0xc4] ss:$16 sps:$4 sm:$0xff]  }
 0x1a9   : > { %v1412_v9 = vmax.f32 %v1411_v62, %v1100_v5  ;;  %v11153_v10 = vpack.c.bf16 %v1100_v5, %v1096_v58  ;;  %v1568_v11 = vmax.f32 %v1567_v1, %v1340_v8  ;;  %v11155_v12 = vpack.c.bf16 %v1340_v8, %v1336_v60  ;;  %2195 = vmatpush1.bf16.msra.mxu1 %v10451_v54  ;;  %v10454_v1 = vld [vmem:[#allocation10 + $0xc0] ss:$16 sps:$4 sm:$0xff]  }
 0x1aa   : > { %13842 = vst [vmem:[#allocation25_spill] sm:$0xff] %v11157_v14  ;;  %2196 = vmatprep.subr.bf16.mxu1 %v10456_v63 }
 0x1ab   : > { %13841 = vst [vmem:[#allocation24_spill] sm:$0xff] %v11155_v12  ;;  %3287 = vmatprep.mubr.bf16.mxu0 %v11153_v10 }
 0x1ac   : > { %3288 = vmatmul.mubr.bf16.gmra.mrb[104].mxu0 %v11151_v6 }
 0x1ad   : > { %v1104_v16 = vpop.f32.mrb[12].mxu0  ;;  %v1344_v17 = vpop.f32.mrb[12].mxu1  ;;  %2197 = vmatpush1.bf16.msra.mxu1 %v10454_v1 }
 0x1ae   : > { %v1400_v18 = vmax.f32 %v1399_v4, %v1104_v16  ;;  %v1106_v19 = vpop.f32.mrb[13].mxu0  ;;  %v1556_v20 = vmax.f32 %v1555_v7, %v1344_v17  ;;  %v1346_v21 = vpop.f32.mrb[13].mxu1  ;;  %2198 = vmatprep.subr.bf16.mxu1 %v10459_v13 }
 0x1af   : > { %v1413_v23 = vmax.f32 %v1412_v9, %v1106_v19  ;;  %v1108_v24 = vpop.f32.mrb[14].mxu0  ;;  %v1569_v26 = vmax.f32 %v1568_v11, %v1346_v21  ;;  %v1348_v27 = vpop.f32.mrb[14].mxu1 }
 0x1b0   : > { %v11161_v30 = vmax.f32 %v1400_v18, %v1108_v24  ;;  %v1110_v0 = vpop.f32.mrb[15].mxu0  ;;  %v11163_v33 = vpack.c.bf16 %v1108_v24, %v1104_v16  ;;  %v11165_v34 = vmax.f32 %v1556_v20, %v1348_v27  ;;  %v1350_v35 = vpop.f32.mrb[15].mxu1  ;;  %v11175_v41 = vpack.c.bf16 %v1348_v27, %v1344_v17 }
 0x1b1   : > { %v11167_v36 = vmax.f32 %v1413_v23, %v1110_v0  ;;  %v11169_v37 = vpack.c.bf16 %v1110_v0, %v1106_v19  ;;  %v11171_v38 = vmax.f32 %v1569_v26, %v1350_v35  ;;  %v11173_v39 = vpack.c.bf16 %v1350_v35, %v1346_v21  ;;  %v10457_v19 = vld [vmem:[#allocation10 + $0xe0] ss:$16 sps:$4 sm:$0xff]   ;;  %v10462_v35 = vld [vmem:[#allocation10 + $0x104] ss:$16 sps:$4 sm:$0xff]  }
 0x1b2   : > { %13844 = vst [vmem:[#allocation27_spill] sm:$0xff] %v11175_v41  ;;  %2199 = vmatpush1.bf16.msra.mxu1 %v10457_v19  ;;  %v1402_v54 = vrot.slane %v11161_v30, 4 }
 0x1b3   : > { %13843 = vst [vmem:[#allocation26_spill] sm:$0xff] %v11173_v39  ;;  %3297 = vmatprep.mubr.bf16.mxu0 %v11169_v37  ;;  %2200 = vmatprep.subr.bf16.mxu1 %v10462_v35  ;;  %v10471_v35 = vld [vmem:[#allocation10 + $0x164] ss:$16 sps:$4 sm:$0xff]  }
 0x1b4   : > { %3298 = vmatmul.mubr.bf16.gmra.mrb[108].mxu0 %v11163_v33 }
 0x1b5   : > { %v1114_v43 = vpop.f32.mrb[16].mxu0  ;;  %v1354_v44 = vpop.f32.mrb[16].mxu1 }
 0x1b6   : > { %v1116_v46 = vpop.f32.mrb[17].mxu0  ;;  %v1356_v47 = vpop.f32.mrb[17].mxu1  ;;  %2201 = vmatpush1.bf16.msra.mxu1 %v10460_v42 }
 0x1b7   : > { %v1118_v51 = vpop.f32.mrb[18].mxu0  ;;  %v1358_v53 = vpop.f32.mrb[18].mxu1 }
 0x1b8   : > { %v1421_v55 = vmax.f32 %v1114_v43, %v1118_v51  ;;  %v1120_v56 = vpop.f32.mrb[19].mxu0  ;;  %v11179_v57 = vpack.c.bf16 %v1118_v51, %v1114_v43  ;;  %v1360_v58 = vpop.f32.mrb[19].mxu1  ;;  %v1577_v61 = vmax.f32 %v1354_v44, %v1358_v53  ;;  %v11186_v3 = vpack.c.bf16 %v1358_v53, %v1354_v44  ;;  %v10465_v53 = vld [vmem:[#allocation10 + $0x124] ss:$16 sps:$4 sm:$0xff]  }
 0x1b9   : > { %v1434_v59 = vmax.f32 %v1116_v46, %v1120_v56  ;;  %v11181_v60 = vpack.c.bf16 %v1120_v56, %v1116_v46  ;;  %v1590_v62 = vmax.f32 %v1356_v47, %v1360_v58  ;;  %v11184_v2 = vpack.c.bf16 %v1360_v58, %v1356_v47  ;;  %2202 = vmatprep.subr.bf16.mxu1 %v10465_v53 }
 0x1ba   : > { %13846 = vst [vmem:[#allocation29_spill] sm:$0xff] %v11186_v3 }
 0x1bb   : > { %3307 = vmatprep.mubr.bf16.mxu0 %v11181_v60  ;;  %13845 = vst [vmem:[#allocation28_spill] sm:$0xff] %v11184_v2 }
 0x1bc   : > { %3308 = vmatmul.mubr.bf16.gmra.mrb[112].mxu0 %v11179_v57 }
 0x1bd   : > { %v1124_v4 = vpop.f32.mrb[20].mxu0  ;;  %v1364_v5 = vpop.f32.mrb[20].mxu1 }
 0x1be   : > { %v1422_v7 = vmax.f32 %v1421_v55, %v1124_v4  ;;  %v1126_v8 = vpop.f32.mrb[21].mxu0  ;;  %v1578_v9 = vmax.f32 %v1577_v61, %v1364_v5  ;;  %v1366_v11 = vpop.f32.mrb[21].mxu1  ;;  %v10463_v61 = vld [vmem:[#allocation10 + $0x120] ss:$16 sps:$4 sm:$0xff]  }
 0x1bf   : > { %v1435_v15 = vmax.f32 %v1434_v59, %v1126_v8  ;;  %v1128_v16 = vpop.f32.mrb[22].mxu0  ;;  %v1591_v17 = vmax.f32 %v1590_v62, %v1366_v11  ;;  %v1368_v18 = vpop.f32.mrb[22].mxu1  ;;  %v1415_v62 = vrot.slane %v11167_v36, 4  ;;  %2203 = vmatpush1.bf16.msra.mxu1 %v10463_v61 }
 0x1c0   : > { %v1423_v20 = vmax.f32 %v1422_v7, %v1128_v16  ;;  %v1130_v21 = vpop.f32.mrb[23].mxu0  ;;  %v11189_v22 = vpack.c.bf16 %v1128_v16, %v1124_v4  ;;  %v1579_v23 = vmax.f32 %v1578_v9, %v1368_v18  ;;  %v1370_v24 = vpop.f32.mrb[23].mxu1  ;;  %v11195_v40 = vpack.c.bf16 %v1368_v18, %v1364_v5  ;;  %v10466_v18 = vld [vmem:[#allocation10 + $0x140] ss:$16 sps:$4 sm:$0xff]  }
 0x1c1   : > { %v1436_v26 = vmax.f32 %v1435_v15, %v1130_v21  ;;  %v11191_v27 = vpack.c.bf16 %v1130_v21, %v1126_v8  ;;  %v1592_v28 = vmax.f32 %v1591_v17, %v1370_v24  ;;  %v11193_v0 = vpack.c.bf16 %v1370_v24, %v1366_v11  ;;  %v10468_v15 = vld [vmem:[#allocation10 + $0x144] ss:$16 sps:$4 sm:$0xff]  }
 0x1c2   : > { %13848 = vst [vmem:[#allocation31_spill] sm:$0xff] %v11195_v40  ;;  %v1403_v17 = vmax.f32 %v11161_v30, %v1402_v54  ;;  %v1416_v19 = vmax.f32 %v11167_v36, %v1415_v62  ;;  %2204 = vmatprep.subr.bf16.mxu1 %v10468_v15 }
 0x1c3   : > { %13847 = vst [vmem:[#allocation30_spill] sm:$0xff] %v11193_v0  ;;  %3317 = vmatprep.mubr.bf16.mxu0 %v11191_v27  ;;  %2205 = vmatpush1.bf16.msra.mxu1 %v10466_v18 }
 0x1c4   : > { %3318 = vmatmul.mubr.bf16.gmra.mrb[116].mxu0 %v11189_v22  ;;  %v1404_v42 = vrot.slane %v1403_v17, 2  ;;  %2206 = vmatprep.subr.bf16.mxu1 %v10471_v35 }
 0x1c5   : > { %v1134_v43 = vpop.f32.mrb[24].mxu0  ;;  %v1374_v44 = vpop.f32.mrb[24].mxu1 }
 0x1c6   : > { %v1424_v46 = vmax.f32 %v1423_v20, %v1134_v43  ;;  %v1136_v47 = vpop.f32.mrb[25].mxu0  ;;  %v1580_v49 = vmax.f32 %v1579_v23, %v1374_v44  ;;  %v1376_v51 = vpop.f32.mrb[25].mxu1 }
 0x1c7   : > { %v1437_v55 = vmax.f32 %v1436_v26, %v1136_v47  ;;  %v1138_v56 = vpop.f32.mrb[26].mxu0  ;;  %v1593_v58 = vmax.f32 %v1592_v28, %v1376_v51  ;;  %v1378_v59 = vpop.f32.mrb[26].mxu1 }
 0x1c8   : > { %v1425_v63 = vmax.f32 %v1424_v46, %v1138_v56  ;;  %v1140_v1 = vpop.f32.mrb[27].mxu0  ;;  %v11201_v4 = vpack.c.bf16 %v1138_v56, %v1134_v43  ;;  %v1581_v5 = vmax.f32 %v1580_v49, %v1378_v59  ;;  %v1380_v7 = vpop.f32.mrb[27].mxu1  ;;  %v11207_v16 = vpack.c.bf16 %v1378_v59, %v1374_v44 }
 0x1c9   : > { %v1438_v8 = vmax.f32 %v1437_v55, %v1140_v1  ;;  %v11203_v9 = vpack.c.bf16 %v1140_v1, %v1136_v47  ;;  %v1594_v11 = vmax.f32 %v1593_v58, %v1380_v7  ;;  %v11205_v13 = vpack.c.bf16 %v1380_v7, %v1376_v51  ;;  %v10469_v47 = vld [vmem:[#allocation10 + $0x160] ss:$16 sps:$4 sm:$0xff]  }
 0x1ca   : > { %13850 = vst [vmem:[#allocation33_spill] sm:$0xff] %v11207_v16  ;;  %v1417_v49 = vrot.slane %v1416_v19, 2  ;;  %2207 = vmatpush1.bf16.msra.mxu1 %v10469_v47  ;;  %v10472_v7 = vld [vmem:[#allocation10 + $0x180] ss:$16 sps:$4 sm:$0xff]  }
 0x1cb   : > { %13849 = vst [vmem:[#allocation32_spill] sm:$0xff] %v11205_v13  ;;  %3327 = vmatprep.mubr.bf16.mxu0 %v11203_v9 }
 0x1cc   : > { %3328 = vmatmul.mubr.bf16.gmra.mrb[120].mxu0 %v11201_v4  ;;  %v1418_v15 = vmax.f32 %v1416_v19, %v1417_v49 }
 0x1cd   : > { %v1144_v20 = vpop.f32.mrb[28].mxu0  ;;  %v1384_v21 = vpop.f32.mrb[28].mxu1 }
 0x1ce   : > { %v1426_v23 = vmax.f32 %v1425_v63, %v1144_v20  ;;  %v1146_v24 = vpop.f32.mrb[29].mxu0  ;;  %v1582_v26 = vmax.f32 %v1581_v5, %v1384_v21  ;;  %v1386_v28 = vpop.f32.mrb[29].mxu1  ;;  %v10474_v63 = vld [vmem:[#allocation10 + $0x184] ss:$16 sps:$4 sm:$0xff]  }
 0x1cf   : > { %v1439_v43 = vmax.f32 %v1438_v8, %v1146_v24  ;;  %v1148_v44 = vpop.f32.mrb[30].mxu0  ;;  %v1595_v30 = vmax.f32 %v1594_v11, %v1386_v28  ;;  %v1388_v46 = vpop.f32.mrb[30].mxu1  ;;  %v1405_v8 = vmax.f32 %v1403_v17, %v1404_v42  ;;  %2208 = vmatprep.subr.bf16.mxu1 %v10474_v63  ;;  %v1419_v17 = vrot.slane %v1418_v15, 1 }
 0x1d0   : > { %v1427_v51 = vmax.f32 %v1426_v23, %v1148_v44  ;;  %v1150_v36 = vpop.f32.mrb[31].mxu0  ;;  %v11213_v53 = vpack.c.bf16 %v1148_v44, %v1144_v20  ;;  %v11215_v54 = vmax.f32 %v1582_v26, %v1388_v46  ;;  %v1390_v55 = vpop.f32.mrb[31].mxu1  ;;  %v11223_v1 = vpack.c.bf16 %v1388_v46, %v1384_v21  ;;  %2209 = vmatpush1.bf16.msra.mxu1 %v10472_v7  ;;  %v10477_v26 = vld [vmem:[#allocation10 + $0x1a4] ss:$16 sps:$4 sm:$0xff]   ;;  %v10475_v21 = vld [vmem:[#allocation10 + $0x1a0] ss:$16 sps:$4 sm:$0xff]  }
 0x1d1   : > { %v1440_v56 = vmax.f32 %v1439_v43, %v1150_v36  ;;  %v11217_v58 = vpack.c.bf16 %v1150_v36, %v1146_v24  ;;  %v11219_v59 = vmax.f32 %v1595_v30, %v1390_v55  ;;  %v11221_v61 = vpack.c.bf16 %v1390_v55, %v1386_v28  ;;  %2210 = vmatprep.subr.bf16.mxu1 %v10477_v26  ;;  %v10480_v36 = vld [vmem:[#allocation10 + $0x1c4] ss:$16 sps:$4 sm:$0xff]  }
 0x1d2   : > { %v1428_v62 = vrot.slane %v1427_v51, 4  ;;  %13852 = vst [vmem:[#allocation35_spill] sm:$0xff] %v11223_v1  ;;  %v1406_v43 = vrot.slane %v1405_v8, 1 }
 0x1d3   : > { %13851 = vst [vmem:[#allocation34_spill] sm:$0xff] %v11221_v61  ;;  %v1441_v5 = vrot.slane %v1440_v56, 4  ;;  %3337 = vmatprep.mubr.bf16.mxu0 %v11217_v58 }
 0x1d4   : > { %v1429_v11 = vmax.f32 %v1427_v51, %v1428_v62  ;;  %3338 = vmatmul.mubr.bf16.gmra.mrb[124].mxu0 %v11213_v53  ;;  %2211 = vmatpush1.bf16.msra.mxu1 %v10475_v21  ;;  %v1407_v62 = vmax.f32 %v1405_v8, %v1406_v43 }
 0x1d5   : > { %v1442_v18 = vmax.f32 %v1440_v56, %v1441_v5  ;;  %v1154_v20 = vpop.f32.mrb[32].mxu0  ;;  %v10478_v56 = vld [vmem:[#allocation10 + $0x1c0] ss:$16 sps:$4 sm:$0xff]   ;;  %2212 = vmatprep.subr.bf16.mxu1 %v10480_v36  ;;  %v1420_v5 = vmax.f32 %v1418_v15, %v1419_v17  ;;  %v10486_v17 = vld [vmem:[#allocation10 + $0xc] ss:$16 sps:$4 sm:$0xff]  }
 0x1d6   : > { %v1430_v23 = vrot.slane %v1429_v11, 2  ;;  %v1156_v24 = vpop.f32.mrb[33].mxu0 }
 0x1d7   : > { %v1443_v28 = vrot.slane %v1442_v18, 2  ;;  %v1158_v35 = vpop.f32.mrb[34].mxu0 }
 0x1d8   : > { %v1431_v44 = vmax.f32 %v1429_v11, %v1430_v23  ;;  %v1447_v30 = vmax.f32 %v1154_v20, %v1158_v35  ;;  %v1160_v46 = vpop.f32.mrb[35].mxu0  ;;  %v11227_v47 = vpack.c.bf16 %v1158_v35, %v1154_v20  ;;  %2213 = vmatpush1.bf16.msra.mxu1 %v10478_v56  ;;  %v10483_v20 = vld [vmem:[#allocation10 + $0x1e4] ss:$16 sps:$4 sm:$0xff]  }
 0x1d9   : > { %v1444_v42 = vmax.f32 %v1442_v18, %v1443_v28  ;;  %v1460_v51 = vmax.f32 %v1156_v24, %v1160_v46  ;;  %v11229_v19 = vpack.c.bf16 %v1160_v46, %v1156_v24  ;;  %v10481_v18 = vld [vmem:[#allocation10 + $0x1e0] ss:$16 sps:$4 sm:$0xff]   ;;  %2214 = vmatprep.subr.bf16.mxu1 %v10483_v20 }
 0x1da   : > { %13853 = vst [vmem:[#allocation36_spill] sm:$0xff] %v11227_v47  ;;  %v1432_v49 = vrot.slane %v1431_v44, 1 }
 0x1db   : > { %v1445_v55 = vrot.slane %v1444_v42, 1  ;;  %3347 = vmatprep.mubr.bf16.mxu0 %v11229_v19 }
 0x1dc   : > { %v1433_v63 = vmax.f32 %v1431_v44, %v1432_v49  ;;  %3348 = vmatmul.mubr.bf16.gmra.mrb[128].mxu0 %v11227_v47  ;;  %2215 = vmatpush1.bf16.msra.mxu1 %v10481_v18 }
 0x1dd   : > { %v1446_v7 = vmax.f32 %v1444_v42, %v1445_v55  ;;  %v1164_v11 = vpop.f32.mrb[36].mxu0  ;;  %2225 = vmatprep.subr.bf16.mxu1 %v10486_v17 }
 0x1de   : > { %v11234_v23 = vsel %vm1619_vm0, %v1433_v63, %v1407_v62  ;;  %v1448_v24 = vmax.f32 %v1447_v30, %v1164_v11  ;;  %v1166_v26 = vpop.f32.mrb[37].mxu0 }
 0x1df   : > { %v1461_v28 = vmax.f32 %v1460_v51, %v1166_v26  ;;  %v1168_v35 = vpop.f32.mrb[38].mxu0  ;;  %v11237_v8 = vsel %vm1619_vm0, %v1446_v7, %v1420_v5 }
 0x1e0   : > { %v1449_v21 = vmax.f32 %v1448_v24, %v1168_v35  ;;  %v1170_v43 = vpop.f32.mrb[39].mxu0  ;;  %v11239_v44 = vpack.c.bf16 %v1168_v35, %v1164_v11 }
 0x1e1   : > { %v1462_v15 = vmax.f32 %v1461_v28, %v1170_v43  ;;  %v11241_v46 = vpack.c.bf16 %v1170_v43, %v1166_v26 }
 0x1e2   : > { %13854 = vst [vmem:[#allocation37_spill] sm:$0xff] %v11239_v44 }
 0x1e3   : > { %13855 = vst [vmem:[#allocation38_spill] sm:$0xff] %v11241_v46  ;;  %3357 = vmatprep.mubr.bf16.mxu0 %v11241_v46 }
 0x1e4   : > { %3358 = vmatmul.mubr.bf16.gmra.mrb[132].mxu0 %v11239_v44 }
 0x1e5   : > { %v1174_v30 = vpop.f32.mrb[40].mxu0 }
 0x1e6   : > { %v1450_v42 = vmax.f32 %v1449_v21, %v1174_v30  ;;  %v1176_v51 = vpop.f32.mrb[41].mxu0 }
 0x1e7   : > { %v1463_v49 = vmax.f32 %v1462_v15, %v1176_v51  ;;  %v1178_v36 = vpop.f32.mrb[42].mxu0 }
 0x1e8   : > { %v1451_v55 = vmax.f32 %v1450_v42, %v1178_v36  ;;  %v1180_v56 = vpop.f32.mrb[43].mxu0  ;;  %v11245_v62 = vpack.c.bf16 %v1178_v36, %v1174_v30 }
 0x1e9   : > { %v1464_v63 = vmax.f32 %v1463_v49, %v1180_v56  ;;  %v11247_v5 = vpack.c.bf16 %v1180_v56, %v1176_v51 }
 0x1ea   : > { %13856 = vst [vmem:[#allocation39_spill] sm:$0xff] %v11245_v62 }
 0x1eb   : > { %13857 = vst [vmem:[#allocation40_spill] sm:$0xff] %v11247_v5  ;;  %3367 = vmatprep.mubr.bf16.mxu0 %v11247_v5 }
 0x1ec   : > { %3368 = vmatmul.mubr.bf16.gmra.mrb[136].mxu0 %v11245_v62 }
 0x1ed   : > { %v1184_v7 = vpop.f32.mrb[44].mxu0 }
 0x1ee   : > { %v1452_v11 = vmax.f32 %v1451_v55, %v1184_v7  ;;  %v1186_v18 = vpop.f32.mrb[45].mxu0 }
 0x1ef   : > { %v1465_v20 = vmax.f32 %v1464_v63, %v1186_v18  ;;  %v1188_v24 = vpop.f32.mrb[46].mxu0 }
 0x1f0   : > { %v1453_v26 = vmax.f32 %v1452_v11, %v1188_v24  ;;  %v1190_v28 = vpop.f32.mrb[47].mxu0  ;;  %v11251_v35 = vpack.c.bf16 %v1188_v24, %v1184_v7 }
 0x1f1   : > { %v1466_v21 = vmax.f32 %v1465_v20, %v1190_v28  ;;  %v11253_v43 = vpack.c.bf16 %v1190_v28, %v1186_v18 }
 0x1f2   : > { %13858 = vst [vmem:[#allocation41_spill] sm:$0xff] %v11251_v35  ;;  %v1454_v15 = vrot.slane %v1453_v26, 4 }
 0x1f3   : > { %13859 = vst [vmem:[#allocation42_spill] sm:$0xff] %v11253_v43  ;;  %v1467_v17 = vrot.slane %v1466_v21, 4  ;;  %3377 = vmatprep.mubr.bf16.mxu0 %v11253_v43 }
 0x1f4   : > { %v1455_v30 = vmax.f32 %v1453_v26, %v1454_v15  ;;  %3378 = vmatmul.mubr.bf16.gmra.mrb[140].mxu0 %v11251_v35 }
 0x1f5   : > { %v1468_v42 = vmax.f32 %v1466_v21, %v1467_v17  ;;  %v1194_v51 = vpop.f32.mrb[48].mxu0 }
 0x1f6   : > { %v1456_v49 = vrot.slane %v1455_v30, 2  ;;  %v1196_v36 = vpop.f32.mrb[49].mxu0 }
 0x1f7   : > { %v1469_v55 = vrot.slane %v1468_v42, 2  ;;  %v1198_v56 = vpop.f32.mrb[50].mxu0 }
 0x1f8   : > { %v1457_v63 = vmax.f32 %v1455_v30, %v1456_v49  ;;  %v1473_v11 = vmax.f32 %v1194_v51, %v1198_v56  ;;  %v1200_v7 = vpop.f32.mrb[51].mxu0  ;;  %v11257_v24 = vpack.c.bf16 %v1198_v56, %v1194_v51 }
 0x1f9   : > { %v1470_v18 = vmax.f32 %v1468_v42, %v1469_v55  ;;  %v1486_v20 = vmax.f32 %v1196_v36, %v1200_v7  ;;  %v11259_v28 = vpack.c.bf16 %v1200_v7, %v1196_v36 }
 0x1fa   : > { %13860 = vst [vmem:[#allocation43_spill] sm:$0xff] %v11257_v24  ;;  %v1458_v62 = vrot.slane %v1457_v63, 1 }
 0x1fb   : > { %13861 = vst [vmem:[#allocation44_spill] sm:$0xff] %v11259_v28  ;;  %v1471_v26 = vrot.slane %v1470_v18, 1  ;;  %3387 = vmatprep.mubr.bf16.mxu0 %v11259_v28 }
 0x1fc   : > { %v1459_v21 = vmax.f32 %v1457_v63, %v1458_v62  ;;  %3388 = vmatmul.mubr.bf16.gmra.mrb[144].mxu0 %v11257_v24 }
 0x1fd   : > { %v1472_v15 = vmax.f32 %v1470_v18, %v1471_v26  ;;  %v1204_v17 = vpop.f32.mrb[52].mxu0 }
 0x1fe   : > { %v1622_v30 = vsel %vm1621_vm1, %v1459_v21, %v11234_v23  ;;  %v1474_v49 = vmax.f32 %v1473_v11, %v1204_v17  ;;  %v1206_v51 = vpop.f32.mrb[53].mxu0 }
 0x1ff   : > { %v1487_v56 = vmax.f32 %v1486_v20, %v1206_v51  ;;  %v1208_v42 = vpop.f32.mrb[54].mxu0  ;;  %v1634_v36 = vsel %vm1621_vm1, %v1472_v15, %v11237_v8 }
 0x200   : > { %v1475_v55 = vmax.f32 %v1474_v49, %v1208_v42  ;;  %v1210_v7 = vpop.f32.mrb[55].mxu0  ;;  %v11267_v35 = vpack.c.bf16 %v1208_v42, %v1204_v17 }
 0x201   : > { %v1488_v28 = vmax.f32 %v1487_v56, %v1210_v7  ;;  %v11269_v62 = vpack.c.bf16 %v1210_v7, %v1206_v51 }
 0x202   : > { %13862 = vst [vmem:[#allocation45_spill] sm:$0xff] %v11267_v35 }
 0x203   : > { %13863 = vst [vmem:[#allocation46_spill] sm:$0xff] %v11269_v62  ;;  %3397 = vmatprep.mubr.bf16.mxu0 %v11269_v62 }
 0x204   : > { %3398 = vmatmul.mubr.bf16.gmra.mrb[148].mxu0 %v11267_v35 }
 0x205   : > { %v1214_v63 = vpop.f32.mrb[56].mxu0 }
 0x206   : > { %v1476_v23 = vmax.f32 %v1475_v55, %v1214_v63  ;;  %v1216_v11 = vpop.f32.mrb[57].mxu0 }
 0x207   : > { %v1489_v18 = vmax.f32 %v1488_v28, %v1216_v11  ;;  %v1218_v20 = vpop.f32.mrb[58].mxu0 }
 0x208   : > { %v1477_v26 = vmax.f32 %v1476_v23, %v1218_v20  ;;  %v1220_v21 = vpop.f32.mrb[59].mxu0  ;;  %v11273_v24 = vpack.c.bf16 %v1218_v20, %v1214_v63 }
 0x209   : > { %v1490_v8 = vmax.f32 %v1489_v18, %v1220_v21  ;;  %v11275_v15 = vpack.c.bf16 %v1220_v21, %v1216_v11 }
 0x20a   : > { %13864 = vst [vmem:[#allocation47_spill] sm:$0xff] %v11273_v24 }
 0x20b   : > { %13865 = vst [vmem:[#allocation48_spill] sm:$0xff] %v11275_v15  ;;  %3407 = vmatprep.mubr.bf16.mxu0 %v11275_v15 }
 0x20c   : > { %3408 = vmatmul.mubr.bf16.gmra.mrb[152].mxu0 %v11273_v24 }
 0x20d   : > { %v1224_v17 = vpop.f32.mrb[60].mxu0 }
 0x20e   : > { %v1478_v49 = vmax.f32 %v1477_v26, %v1224_v17  ;;  %v1226_v51 = vpop.f32.mrb[61].mxu0 }
 0x20f   : > { %v1491_v56 = vmax.f32 %v1490_v8, %v1226_v51  ;;  %v1228_v42 = vpop.f32.mrb[62].mxu0 }
 0x210   : > { %v1479_v55 = vmax.f32 %v1478_v49, %v1228_v42  ;;  %v1230_v7 = vpop.f32.mrb[63].mxu0  ;;  %v11279_v28 = vpack.c.bf16 %v1228_v42, %v1224_v17 }
 0x211   : > { %v1492_v23 = vmax.f32 %v1491_v56, %v1230_v7  ;;  %v11281_v35 = vpack.c.bf16 %v1230_v7, %v1226_v51 }
 0x212   : > { %13866 = vst [vmem:[#allocation49_spill] sm:$0xff] %v11279_v28  ;;  %v1480_v63 = vrot.slane %v1479_v55, 4 }
 0x213   : > { %13867 = vst [vmem:[#allocation50_spill] sm:$0xff] %v11281_v35  ;;  %v1493_v18 = vrot.slane %v1492_v23, 4  ;;  %3417 = vmatprep.mubr.bf16.mxu0 %v11281_v35 }
 0x214   : > { %v1481_v11 = vmax.f32 %v1479_v55, %v1480_v63  ;;  %3418 = vmatmul.mubr.bf16.gmra.mrb[156].mxu0 %v11279_v28 }
 0x215   : > { %v1494_v20 = vmax.f32 %v1492_v23, %v1493_v18  ;;  %v1234_v21 = vpop.f32.mrb[64].mxu0 }
 0x216   : > { %v1482_v26 = vrot.slane %v1481_v11, 2  ;;  %v1236_v24 = vpop.f32.mrb[65].mxu0 }
 0x217   : > { %v1495_v8 = vrot.slane %v1494_v20, 2  ;;  %v1238_v15 = vpop.f32.mrb[66].mxu0 }
 0x218   : > { %v1483_v49 = vmax.f32 %v1481_v11, %v1482_v26  ;;  %v1499_v62 = vmax.f32 %v1234_v21, %v1238_v15  ;;  %v1240_v17 = vpop.f32.mrb[67].mxu0  ;;  %v11285_v42 = vpack.c.bf16 %v1238_v15, %v1234_v21 }
 0x219   : > { %v1496_v51 = vmax.f32 %v1494_v20, %v1495_v8  ;;  %v1512_v56 = vmax.f32 %v1236_v24, %v1240_v17  ;;  %v11287_v7 = vpack.c.bf16 %v1240_v17, %v1236_v24 }
 0x21a   : > { %13868 = vst [vmem:[#allocation51_spill] sm:$0xff] %v11285_v42  ;;  %v1484_v43 = vrot.slane %v1483_v49, 1 }
 0x21b   : > { %13869 = vst [vmem:[#allocation52_spill] sm:$0xff] %v11287_v7  ;;  %v1497_v55 = vrot.slane %v1496_v51, 1  ;;  %3427 = vmatprep.mubr.bf16.mxu0 %v11287_v7 }
 0x21c   : > { %v1485_v23 = vmax.f32 %v1483_v49, %v1484_v43  ;;  %3428 = vmatmul.mubr.bf16.gmra.mrb[160].mxu0 %v11285_v42 }
 0x21d   : > { %v1498_v63 = vmax.f32 %v1496_v51, %v1497_v55  ;;  %v1244_v18 = vpop.f32.mrb[68].mxu0 }
 0x21e   : > { %v11292_v11 = vsel %vm1623_vm2, %v1485_v23, %v1622_v30  ;;  %v1500_v26 = vmax.f32 %v1499_v62, %v1244_v18  ;;  %v1246_v15 = vpop.f32.mrb[69].mxu0 }
 0x21f   : > { %v1513_v21 = vmax.f32 %v1512_v56, %v1246_v15  ;;  %v1248_v20 = vpop.f32.mrb[70].mxu0  ;;  %v1635_v24 = vsel %vm1623_vm2, %v1498_v63, %v1634_v36 }
 0x220   : > { %v1501_v8 = vmax.f32 %v1500_v26, %v1248_v20  ;;  %v1250_v17 = vpop.f32.mrb[71].mxu0  ;;  %v11295_v28 = vpack.c.bf16 %v1248_v20, %v1244_v18 }
 0x221   : > { %v1514_v35 = vmax.f32 %v1513_v21, %v1250_v17  ;;  %v11297_v7 = vpack.c.bf16 %v1250_v17, %v1246_v15 }
 0x222   : > { %13870 = vst [vmem:[#allocation53_spill] sm:$0xff] %v11295_v28 }
 0x223   : > { %13871 = vst [vmem:[#allocation54_spill] sm:$0xff] %v11297_v7  ;;  %3437 = vmatprep.mubr.bf16.mxu0 %v11297_v7 }
 0x224   : > { %3438 = vmatmul.mubr.bf16.gmra.mrb[164].mxu0 %v11295_v28 }
 0x225   : > { %v1254_v43 = vpop.f32.mrb[72].mxu0 }
 0x226   : > { %v1502_v30 = vmax.f32 %v1501_v8, %v1254_v43  ;;  %v1256_v49 = vpop.f32.mrb[73].mxu0 }
 0x227   : > { %v1515_v62 = vmax.f32 %v1514_v35, %v1256_v49  ;;  %v1258_v51 = vpop.f32.mrb[74].mxu0 }
 0x228   : > { %v1503_v56 = vmax.f32 %v1502_v30, %v1258_v51  ;;  %v1260_v55 = vpop.f32.mrb[75].mxu0  ;;  %v11301_v23 = vpack.c.bf16 %v1258_v51, %v1254_v43 }
 0x229   : > { %v1516_v36 = vmax.f32 %v1515_v62, %v1260_v55  ;;  %v11303_v63 = vpack.c.bf16 %v1260_v55, %v1256_v49 }
 0x22a   : > { %13872 = vst [vmem:[#allocation55_spill] sm:$0xff] %v11301_v23 }
 0x22b   : > { %13873 = vst [vmem:[#allocation56_spill] sm:$0xff] %v11303_v63  ;;  %3447 = vmatprep.mubr.bf16.mxu0 %v11303_v63 }
 0x22c   : > { %3448 = vmatmul.mubr.bf16.gmra.mrb[168].mxu0 %v11301_v23 }
 0x22d   : > { %v1264_v18 = vpop.f32.mrb[76].mxu0 }
 0x22e   : > { %v1504_v26 = vmax.f32 %v1503_v56, %v1264_v18  ;;  %v1266_v15 = vpop.f32.mrb[77].mxu0 }
 0x22f   : > { %v1517_v21 = vmax.f32 %v1516_v36, %v1266_v15  ;;  %v1268_v20 = vpop.f32.mrb[78].mxu0 }
 0x230   : > { %v1505_v8 = vmax.f32 %v1504_v26, %v1268_v20  ;;  %v1270_v17 = vpop.f32.mrb[79].mxu0  ;;  %v11307_v35 = vpack.c.bf16 %v1268_v20, %v1264_v18 }
 0x231   : > { %v1518_v30 = vmax.f32 %v1517_v21, %v1270_v17  ;;  %v11309_v28 = vpack.c.bf16 %v1270_v17, %v1266_v15 }
 0x232   : > { %13874 = vst [vmem:[#allocation57_spill] sm:$0xff] %v11307_v35  ;;  %v1506_v43 = vrot.slane %v1505_v8, 4 }
 0x233   : > { %13875 = vst [vmem:[#allocation58_spill] sm:$0xff] %v11309_v28  ;;  %v1519_v62 = vrot.slane %v1518_v30, 4  ;;  %3457 = vmatprep.mubr.bf16.mxu0 %v11309_v28 }
 0x234   : > { %v1507_v49 = vmax.f32 %v1505_v8, %v1506_v43  ;;  %3458 = vmatmul.mubr.bf16.gmra.mrb[172].mxu0 %v11307_v35 }
 0x235   : > { %v1520_v51 = vmax.f32 %v1518_v30, %v1519_v62  ;;  %v1274_v55 = vpop.f32.mrb[80].mxu0 }
 0x236   : > { %v1508_v56 = vrot.slane %v1507_v49, 2  ;;  %v1276_v23 = vpop.f32.mrb[81].mxu0 }
 0x237   : > { %v1521_v36 = vrot.slane %v1520_v51, 2  ;;  %v1278_v63 = vpop.f32.mrb[82].mxu0 }
 0x238   : > { %v1509_v26 = vmax.f32 %v1507_v49, %v1508_v56  ;;  %v1525_v7 = vmax.f32 %v1274_v55, %v1278_v63  ;;  %v1280_v18 = vpop.f32.mrb[83].mxu0  ;;  %v11313_v20 = vpack.c.bf16 %v1278_v63, %v1274_v55 }
 0x239   : > { %v1522_v15 = vmax.f32 %v1520_v51, %v1521_v36  ;;  %v1538_v21 = vmax.f32 %v1276_v23, %v1280_v18  ;;  %v11315_v17 = vpack.c.bf16 %v1280_v18, %v1276_v23 }
 0x23a   : > { %13876 = vst [vmem:[#allocation59_spill] sm:$0xff] %v11313_v20  ;;  %v1510_v42 = vrot.slane %v1509_v26, 1 }
 0x23b   : > { %13877 = vst [vmem:[#allocation60_spill] sm:$0xff] %v11315_v17  ;;  %v1523_v28 = vrot.slane %v1522_v15, 1  ;;  %3467 = vmatprep.mubr.bf16.mxu0 %v11315_v17 }
 0x23c   : > { %v1511_v8 = vmax.f32 %v1509_v26, %v1510_v42  ;;  %3468 = vmatmul.mubr.bf16.gmra.mrb[176].mxu0 %v11313_v20 }
 0x23d   : > { %v1524_v30 = vmax.f32 %v1522_v15, %v1523_v28  ;;  %v1284_v43 = vpop.f32.mrb[84].mxu0 }
 0x23e   : > { %v1526_v62 = vmax.f32 %v1525_v7, %v1284_v43  ;;  %v1286_v49 = vpop.f32.mrb[85].mxu0  ;;  %v11321_v63 = vsel %vm1625_vm3, %v1511_v8, %v11292_v11 }
 0x23f   : > { %v1539_v51 = vmax.f32 %v1538_v21, %v1286_v49  ;;  %v1288_v55 = vpop.f32.mrb[86].mxu0  ;;  %v11324_v23 = vsel %vm1625_vm3, %v1524_v30, %v1635_v24  ;;  %v1558_v30 = vrot.slane %v11165_v34, 4 }
 0x240   : > { %v1527_v56 = vmax.f32 %v1526_v62, %v1288_v55  ;;  %v1290_v36 = vpop.f32.mrb[87].mxu0  ;;  %v11326_v18 = vpack.c.bf16 %v1288_v55, %v1284_v43  ;;  %v1597_v55 = vrot.slane %v11219_v59, 4 }
 0x241   : > { %v1540_v42 = vmax.f32 %v1539_v51, %v1290_v36  ;;  %v11328_v26 = vpack.c.bf16 %v1290_v36, %v1286_v49  ;;  %v1571_v49 = vrot.slane %v11171_v38, 4  ;;  %v1584_v51 = vrot.slane %v11215_v54, 4 }
 0x242   : > { %13878 = vst [vmem:[#allocation61_spill] sm:$0xff] %v11326_v18 }
 0x243   : > { %13879 = vst [vmem:[#allocation62_spill] sm:$0xff] %v11328_v26  ;;  %3477 = vmatprep.mubr.bf16.mxu0 %v11328_v26 }
 0x244   : > { %3478 = vmatmul.mubr.bf16.gmra.mrb[180].mxu0 %v11326_v18 }
 0x245   : > { %v1294_v28 = vpop.f32.mrb[88].mxu0 }
 0x246   : > { %v1528_v7 = vmax.f32 %v1527_v56, %v1294_v28  ;;  %v1296_v11 = vpop.f32.mrb[89].mxu0  ;;  %v1559_v56 = vmax.f32 %v11165_v34, %v1558_v30 }
 0x247   : > { %v1541_v15 = vmax.f32 %v1540_v42, %v1296_v11  ;;  %v1298_v21 = vpop.f32.mrb[90].mxu0  ;;  %v1572_v42 = vmax.f32 %v11171_v38, %v1571_v49 }
 0x248   : > { %v1529_v8 = vmax.f32 %v1528_v7, %v1298_v21  ;;  %v1300_v20 = vpop.f32.mrb[91].mxu0  ;;  %v11332_v24 = vpack.c.bf16 %v1298_v21, %v1294_v28  ;;  %v1585_v28 = vmax.f32 %v11215_v54, %v1584_v51 }
 0x249   : > { %v1542_v43 = vmax.f32 %v1541_v15, %v1300_v20  ;;  %v11335_v62 = vpack.c.bf16 %v1300_v20, %v1296_v11  ;;  %v1598_v11 = vmax.f32 %v11219_v59, %v1597_v55  ;;  %v1573_v34 = vrot.slane %v1572_v42, 2 }
 0x24a   : > { %13880 = vst [vmem:[#allocation63_spill] sm:$0xff] %v11332_v24  ;;  %v1586_v30 = vrot.slane %v1585_v28, 2 }
 0x24b   : > { %13881 = vst [vmem:[#allocation64_spill] sm:$0xff] %v11335_v62  ;;  %3487 = vmatprep.mubr.bf16.mxu0 %v11335_v62  ;;  %v1560_v62 = vrot.slane %v1559_v56, 2  ;;  %v1599_v38 = vrot.slane %v1598_v11, 2 }
 0x24c   : > { %3488 = vmatmul.mubr.bf16.gmra.mrb[184].mxu0 %v11332_v24  ;;  %v1587_v51 = vmax.f32 %v1585_v28, %v1586_v30 }
 0x24d   : > { %v1304_v36 = vpop.f32.mrb[92].mxu0  ;;  %v1561_v59 = vmax.f32 %v1559_v56, %v1560_v62 }
 0x24e   : > { %v1530_v7 = vmax.f32 %v1529_v8, %v1304_v36  ;;  %v1306_v20 = vpop.f32.mrb[93].mxu0 }
 0x24f   : > { %v1543_v15 = vmax.f32 %v1542_v43, %v1306_v20  ;;  %v1308_v21 = vpop.f32.mrb[94].mxu0  ;;  %v1574_v43 = vmax.f32 %v1572_v42, %v1573_v34 }
 0x250   : > { %v1531_v18 = vmax.f32 %v1530_v7, %v1308_v21  ;;  %v1310_v26 = vpop.f32.mrb[95].mxu0  ;;  %v11346_v17 = vpack.c.bf16 %v1308_v21, %v1304_v36  ;;  %v1588_v21 = vrot.slane %v1587_v51, 1 }
 0x251   : > { %v1544_v35 = vmax.f32 %v1543_v15, %v1310_v26  ;;  %v11348_v24 = vpack.c.bf16 %v1310_v26, %v1306_v20  ;;  %v1600_v26 = vmax.f32 %v1598_v11, %v1599_v38  ;;  %v1562_v20 = vrot.slane %v1561_v59, 1 }
 0x252   : > { %v1532_v5 = vrot.slane %v1531_v18, 4  ;;  %v1575_v46 = vrot.slane %v1574_v43, 1  ;;  %v1589_v62 = vmax.f32 %v1587_v51, %v1588_v21  ;;  %v10490_v51 = vld [vmem:[#allocation10 + $0x48] ss:$16 sps:$4 sm:$0xff]  }
 0x253   : > { %13882 = vst [vmem:[#allocation65_spill] sm:$0xff] %v11348_v24  ;;  %v1545_v49 = vrot.slane %v1544_v35, 4  ;;  %3497 = vmatprep.mubr.bf16.mxu0 %v11348_v24  ;;  %v1601_v24 = vrot.slane %v1600_v26, 1 }
 0x254   : > { %v1533_v54 = vmax.f32 %v1531_v18, %v1532_v5  ;;  %3498 = vmatmul.mubr.bf16.gmra.mrb[188].mxu0 %v11346_v17  ;;  %v1576_v56 = vmax.f32 %v1574_v43, %v1575_v46  ;;  %v10489_v46 = vld [vmem:[#allocation10 + $0x2c] ss:$16 sps:$4 sm:$0xff]  }
 0x255   : > { %v1546_v8 = vmax.f32 %v1544_v35, %v1545_v49  ;;  %3507 = vmatprep.mubr.bf16.mxu0 %v11137_v32  ;;  %v1563_v35 = vmax.f32 %v1561_v59, %v1562_v20  ;;  %v1602_v28 = vmax.f32 %v1600_v26, %v1601_v24  ;;  %v443_v24 = vld [vmem:[#allocation13 + $0x28] sm:$0xff] }
 0x256   : > { %v1534_v55 = vrot.slane %v1533_v54, 2  ;;  %v10492_v59 = vld [vmem:[#allocation10 + $0x4c] ss:$16 sps:$4 sm:$0xff]  }
 0x257   : > { %v1547_v36 = vrot.slane %v1546_v8, 2 }
 0x258   : > { %v1535_v7 = vmax.f32 %v1533_v54, %v1534_v55  ;;  %v10495_v55 = vld [vmem:[#allocation10 + $0x6c] ss:$16 sps:$4 sm:$0xff]  }
 0x259   : > { %v1548_v15 = vmax.f32 %v1546_v8, %v1547_v36  ;;  %v10493_v36 = vld [vmem:[#allocation10 + $0x68] ss:$16 sps:$4 sm:$0xff]  }
 0x25a   : > { %v1536_v44 = vrot.slane %v1535_v7, 1 }
 0x25b   : > { %v1549_v47 = vrot.slane %v1548_v15, 1 }
 0x25c   : > { %v1537_v5 = vmax.f32 %v1535_v7, %v1536_v44  ;;  %3508 = vmatmul.mubr.bf16.gmra.mrb[192].mxu0 %v11133_v29  ;;  %v10498_v7 = vld [vmem:[#allocation10 + $0x8c] ss:$16 sps:$4 sm:$0xff]   ;;  %v10552_v29 = vld [vmem:[#allocation11 + $0xc4] ss:$16 sps:$4 sm:$0xff]  }
 0x25d   : > { %3517 = vmatprep.mubr.bf16.mxu0 %v11147_v52  ;;  %v1550_v18 = vmax.f32 %v1548_v15, %v1549_v47  ;;  %v10484_v47 = vld [vmem:[#allocation10 + $0x8] ss:$16 sps:$4 sm:$0xff]  }
 0x25e   : > { %v1628_v42 = vsel %vm1627_vm4, %v1537_v5, %v11321_v63  ;;  %v439_v63 = vld [vmem:[#allocation13 + $0x8] sm:$0xff] }
 0x25f   : > { %v1637_v11 = vsel %vm1627_vm4, %v1550_v18, %v11324_v23  ;;  %v1630_v34 = vsel %vm1629_vm5, %v1563_v35, %v1628_v42  ;;  %v10487_v23 = vld [vmem:[#allocation10 + $0x28] ss:$16 sps:$4 sm:$0xff]   ;;  %v9445_v8 = vcombine.low %v439_v63, %v443_v24  ;;  %v9446_v43 = vcombine.high %v439_v63, %v443_v24  ;;  %v10501_v35 = vld [vmem:[#allocation10 + $0xac] ss:$16 sps:$4 sm:$0xff]  }
 0x260   : > { %v1638_v44 = vsel %vm1629_vm5, %v1576_v56, %v1637_v11  ;;  %v1632_v30 = vsel %vm1631_vm6, %v1589_v62, %v1630_v34  ;;  %v10496_v5 = vld [vmem:[#allocation10 + $0x88] ss:$16 sps:$4 sm:$0xff]  }
 0x261   : > { %v1639_v38 = vsel %vm1631_vm6, %v1602_v28, %v1638_v44  ;;  %v11363_v54 = vpack.c.bf16 %v1632_v30, %v1632_v30  ;;  %5958 = vmatprep.subr.bf16.mxu0 %v9446_v43  ;;  %v447_v18 = vld [vmem:[#allocation13 + $0x48] sm:$0xff] }
 0x262   : > { %v1777_v49 = vpack.c.bf16 %v1639_v38, %v1639_v38  ;;  %5959 = vmatpush1.bf16.msra.mxu0 %v9445_v8  ;;  %v10499_v62 = vld [vmem:[#allocation10 + $0xa8] ss:$16 sps:$4 sm:$0xff]   ;;  %v10504_v28 = vld [vmem:[#allocation10 + $0xcc] ss:$16 sps:$4 sm:$0xff]  }
 0x263   : > { %v451_v56 = vld [vmem:[#allocation13 + $0x68] sm:$0xff] }
 0x264   : > { %2216 = vmatprep.mubr.bf16.mxu1 %v1777_v49  ;;  %3518 = vmatmul.mubr.bf16.gmra.mrb[196].mxu0 %v11143_v48  ;;  %v9453_v11 = vcombine.low %v447_v18, %v451_v56  ;;  %v9454_v34 = vcombine.high %v447_v18, %v451_v56  ;;  %v10508_v43 = vld [vmem:[#allocation10 + $0x108] ss:$16 sps:$4 sm:$0xff]  }
 0x265   : > { %2217 = vmatmul.mubr.bf16.vlgmr.msra.gmra.mrb[32].mxu1 %v11363_v54  ;;  %3527 = vmatprep.mubr.bf16.mxu0 %v11155_v12  ;;  %v479_v52 = vld [vmem:[#allocation13 + $0x148] sm:$0xff] }
 0x266   : > { %2226 = vmatpush1.bf16.msra.mxu1 %v10484_v47  ;;  %2257 = vmatprep.mubr.bf16.mxu1 %v1777_v49  ;;  %v10502_v49 = vld [vmem:[#allocation10 + $0xc8] ss:$16 sps:$4 sm:$0xff]   ;;  %v10507_v47 = vld [vmem:[#allocation10 + $0xec] ss:$16 sps:$4 sm:$0xff]  }
 0x267   : > { %2227 = vmatprep.subr.bf16.mxu1 %v10489_v46  ;;  %5960 = vmatprep.subr.bf16.mxu0 %v9454_v34  ;;  %v10505_v46 = vld [vmem:[#allocation10 + $0xe8] ss:$16 sps:$4 sm:$0xff]  }
 0x268   : > { %5961 = vmatpush1.bf16.msra.mxu0 %v9453_v11  ;;  %v10514_v34 = vld [vmem:[#allocation10 + $0x148] ss:$16 sps:$4 sm:$0xff]  }
 0x26a   : > { %2228 = vmatpush1.bf16.msra.mxu1 %v10487_v23  ;;  %v10510_v23 = vld [vmem:[#allocation10 + $0x10c] ss:$16 sps:$4 sm:$0xff]  }
 0x26b   : > { %2229 = vmatprep.subr.bf16.mxu1 %v10492_v59 }
 0x26c   : > { %3528 = vmatmul.mubr.bf16.gmra.mrb[200].mxu0 %v11157_v14 }
 0x26d   : > { %3537 = vmatprep.mubr.bf16.mxu0 %v11173_v39 }
 0x26e   : > { %2230 = vmatpush1.bf16.msra.mxu1 %v10490_v51  ;;  %v10513_v51 = vld [vmem:[#allocation10 + $0x12c] ss:$16 sps:$4 sm:$0xff]  }
 0x26f   : > { %v11370_v26 = vpop.f32.mrb[96].mxu0  ;;  %2231 = vmatprep.subr.bf16.mxu1 %v10495_v55  ;;  %v455_v55 = vld [vmem:[#allocation13 + $0x88] sm:$0xff] }
 0x270   : > { %v11372_v20 = vpop.f32.mrb[97].mxu0 }
 0x271   : > { %v11374_v15 = vpop.f32.mrb[98].mxu0 }
 0x272   : > { %2232 = vmatpush1.bf16.msra.mxu1 %v10493_v36  ;;  %v11376_v21 = vpop.f32.mrb[99].mxu0  ;;  %v10511_v36 = vld [vmem:[#allocation10 + $0x128] ss:$16 sps:$4 sm:$0xff]  }
 0x273   : > { %2233 = vmatprep.subr.bf16.mxu1 %v10498_v7  ;;  %v459_v7 = vld [vmem:[#allocation13 + $0xa8] sm:$0xff] }
 0x274   : > { %3538 = vmatmul.mubr.bf16.gmra.mrb[204].mxu0 %v11175_v41  ;;  %v9461_v18 = vcombine.low %v455_v55, %v459_v7 }
 0x275   : > { %3547 = vmatprep.mubr.bf16.mxu0 %v11184_v2  ;;  %v10540_v2 = vld [vmem:[#allocation11 + $0x44] ss:$16 sps:$4 sm:$0xff]  }
 0x276   : > { %2234 = vmatpush1.bf16.msra.mxu1 %v10496_v5 }
 0x277   : > { %v11380_v42 = vpop.f32.mrb[100].mxu0  ;;  %2235 = vmatprep.subr.bf16.mxu1 %v10501_v35  ;;  %v10516_v35 = vld [vmem:[#allocation10 + $0x14c] ss:$16 sps:$4 sm:$0xff]  }
 0x278   : > { %v11382_v44 = vpop.f32.mrb[101].mxu0 }
 0x279   : > { %v11384_v30 = vpop.f32.mrb[102].mxu0 }
 0x27a   : > { %2236 = vmatpush1.bf16.msra.mxu1 %v10499_v62  ;;  %v11386_v38 = vpop.f32.mrb[103].mxu0  ;;  %v9462_v62 = vcombine.high %v455_v55, %v459_v7  ;;  %v10525_v7 = vld [vmem:[#allocation10 + $0x1ac] ss:$16 sps:$4 sm:$0xff]  }
 0x27b   : > { %2237 = vmatprep.subr.bf16.mxu1 %v10504_v28 }
 0x27c   : > { %3548 = vmatmul.mubr.bf16.gmra.mrb[208].mxu0 %v11186_v3  ;;  %5962 = vmatprep.subr.bf16.mxu0 %v9462_v62  ;;  %v467_v62 = vld [vmem:[#allocation13 + $0xe8] sm:$0xff] }
 0x27d   : > { %3557 = vmatprep.mubr.bf16.mxu0 %v11193_v0  ;;  %5963 = vmatpush1.bf16.msra.mxu0 %v9461_v18  ;;  %v10523_v18 = vld [vmem:[#allocation10 + $0x1a8] ss:$16 sps:$4 sm:$0xff]  }
 0x27e   : > { %2238 = vmatpush1.bf16.msra.mxu1 %v10502_v49  ;;  %v10519_v49 = vld [vmem:[#allocation10 + $0x16c] ss:$16 sps:$4 sm:$0xff]  }
 0x27f   : > { %v11390_v63 = vpop.f32.mrb[104].mxu0  ;;  %2239 = vmatprep.subr.bf16.mxu1 %v10507_v47  ;;  %v10517_v47 = vld [vmem:[#allocation10 + $0x168] ss:$16 sps:$4 sm:$0xff]  }
 0x280   : > { %v11392_v24 = vpop.f32.mrb[105].mxu0 }
 0x281   : > { %v11394_v59 = vpop.f32.mrb[106].mxu0 }
 0x282   : > { %2240 = vmatpush1.bf16.msra.mxu1 %v10505_v46  ;;  %v11396_v8 = vpop.f32.mrb[107].mxu0 }
 0x283   : > { %2241 = vmatprep.subr.bf16.mxu1 %v10510_v23  ;;  %v10522_v23 = vld [vmem:[#allocation10 + $0x18c] ss:$16 sps:$4 sm:$0xff]  }
 0x284   : > { %3558 = vmatmul.mubr.bf16.gmra.mrb[212].mxu0 %v11195_v40  ;;  %v10526_v40 = vld [vmem:[#allocation10 + $0x1c8] ss:$16 sps:$4 sm:$0xff]  }
 0x285   : > { %3567 = vmatprep.mubr.bf16.mxu0 %v11205_v13 }
 0x286   : > { %2242 = vmatpush1.bf16.msra.mxu1 %v10508_v43 }
 0x287   : > { %v11400_v5 = vpop.f32.mrb[108].mxu0  ;;  %2243 = vmatprep.subr.bf16.mxu1 %v10513_v51 }
 0x288   : > { %v11402_v56 = vpop.f32.mrb[109].mxu0 }
 0x289   : > { %v11404_v28 = vpop.f32.mrb[110].mxu0 }
 0x28a   : > { %2244 = vmatpush1.bf16.msra.mxu1 %v10511_v36  ;;  %v11406_v11 = vpop.f32.mrb[111].mxu0  ;;  %v10520_v36 = vld [vmem:[#allocation10 + $0x188] ss:$16 sps:$4 sm:$0xff]  }
 0x28b   : > { %2245 = vmatprep.subr.bf16.mxu1 %v10516_v35  ;;  %v463_v35 = vld [vmem:[#allocation13 + $0xc8] sm:$0xff] }
 0x28c   : > { %3568 = vmatmul.mubr.bf16.gmra.mrb[216].mxu0 %v11207_v16  ;;  %v9470_v16 = vcombine.high %v463_v35, %v467_v62 }
 0x28d   : > { %3577 = vmatprep.mubr.bf16.mxu0 %v11221_v61  ;;  %v9469_v61 = vcombine.low %v463_v35, %v467_v62 }
 0x28e   : > { %2246 = vmatpush1.bf16.msra.mxu1 %v10514_v34  ;;  %5964 = vmatprep.subr.bf16.mxu0 %v9470_v16  ;;  %v10532_v16 = vld [vmem:[#allocation11] ss:$16 sps:$4 sm:$0xff]  }
 0x28f   : > { %v11410_v46 = vpop.f32.mrb[112].mxu0  ;;  %2247 = vmatprep.subr.bf16.mxu1 %v10519_v49  ;;  %v10528_v49 = vld [vmem:[#allocation10 + $0x1cc] ss:$16 sps:$4 sm:$0xff]   ;;  %5965 = vmatpush1.bf16.msra.mxu0 %v9469_v61 }
 0x290   : > { %v11412_v43 = vpop.f32.mrb[113].mxu0  ;;  %v471_v61 = vld [vmem:[#allocation13 + $0x108] sm:$0xff] }
 0x291   : > { %v11414_v51 = vpop.f32.mrb[114].mxu0 }
 0x292   : > { %2248 = vmatpush1.bf16.msra.mxu1 %v10517_v47  ;;  %v11416_v55 = vpop.f32.mrb[115].mxu0 }
 0x293   : > { %2249 = vmatprep.subr.bf16.mxu1 %v10522_v23 }
 0x294   : > { %3578 = vmatmul.mubr.bf16.gmra.mrb[220].mxu0 %v11223_v1  ;;  %v10529_v1 = vld [vmem:[#allocation10 + $0x1e8] ss:$16 sps:$4 sm:$0xff]  }
 0x296   : > { %2250 = vmatpush1.bf16.msra.mxu1 %v10520_v36  ;;  %v10531_v36 = vld [vmem:[#allocation10 + $0x1ec] ss:$16 sps:$4 sm:$0xff]  }
 0x297   : > { %v11419_v34 = vpop.f32.mrb[116].mxu0  ;;  %2251 = vmatprep.subr.bf16.mxu1 %v10525_v7  ;;  %v10534_v7 = vld [vmem:[#allocation11 + $0x4] ss:$16 sps:$4 sm:$0xff]  }
 0x298   : > { %v11421_v13 = vpop.f32.mrb[117].mxu0 }
 0x299   : > { %v11423_v47 = vpop.f32.mrb[118].mxu0 }
 0x29a   : > { %2252 = vmatpush1.bf16.msra.mxu1 %v10523_v18  ;;  %v11425_v23 = vpop.f32.mrb[119].mxu0  ;;  %v10537_v18 = vld [vmem:[#allocation11 + $0x24] ss:$16 sps:$4 sm:$0xff]  }
 0x29b   : > { %2253 = vmatprep.subr.bf16.mxu1 %v10528_v49  ;;  %v475_v49 = vld [vmem:[#allocation13 + $0x128] sm:$0xff] }
 0x29c   : > { %v9477_v41 = vcombine.low %v471_v61, %v475_v49  ;;  %v9478_v39 = vcombine.high %v471_v61, %v475_v49 }
 0x29e   : > { %2254 = vmatpush1.bf16.msra.mxu1 %v10526_v40  ;;  %v10535_v40 = vld [vmem:[#allocation11 + $0x20] ss:$16 sps:$4 sm:$0xff]   ;;  %5966 = vmatprep.subr.bf16.mxu0 %v9478_v39 }
 0x29f   : > { %v11427_v0 = vpop.f32.mrb[120].mxu0  ;;  %2255 = vmatprep.subr.bf16.mxu1 %v10531_v36  ;;  %5967 = vmatpush1.bf16.msra.mxu0 %v9477_v41  ;;  %v10544_v39 = vld [vmem:[#allocation11 + $0x80] ss:$16 sps:$4 sm:$0xff]  }
 0x2a0   : > { %v11429_v3 = vpop.f32.mrb[121].mxu0  ;;  %v10547_v41 = vld [vmem:[#allocation11 + $0xa0] ss:$16 sps:$4 sm:$0xff]  }
 0x2a1   : > { %v11431_v35 = vpop.f32.mrb[122].mxu0 }
 0x2a2   : > { %2256 = vmatpush1.bf16.msra.mxu1 %v10529_v1  ;;  %v11433_v62 = vpop.f32.mrb[123].mxu0 }
 0x2a3   : > { %2882 = vmatprep.subr.bf16.mxu1 %v10534_v7 }
 0x2a5   : > { %2258 = vmatmul.mubr.bf16.vlgmr.msra.gmra.mrb[36].mxu1 %v11363_v54  ;;  %v10538_v54 = vld [vmem:[#allocation11 + $0x40] ss:$16 sps:$4 sm:$0xff]  }
 0x2a6   : > { %2883 = vmatpush1.bf16.msra.mxu1 %v10532_v16  ;;  %2914 = vmatprep.mubr.bf16.mxu1 %v11135_v31  ;;  %v10543_v31 = vld [vmem:[#allocation11 + $0x64] ss:$16 sps:$4 sm:$0xff]   ;;  %v10541_v16 = vld [vmem:[#allocation11 + $0x60] ss:$16 sps:$4 sm:$0xff]  }
 0x2a7   : > { %v11437_v36 = vpop.f32.mrb[124].mxu0  ;;  %2884 = vmatprep.subr.bf16.mxu1 %v10537_v18  ;;  %v10546_v18 = vld [vmem:[#allocation11 + $0x84] ss:$16 sps:$4 sm:$0xff]  }
 0x2a8   : > { %13883 = vst [vmem:[#allocation66_spill] sm:$0xff] %v11437_v36  ;;  %v11439_v1 = vpop.f32.mrb[125].mxu0  ;;  %v458_v36 = vld [vmem:[#allocation13 + $0xa0] sm:$0xff] }
 0x2a9   : > { %v11441_v14 = vpop.f32.mrb[126].mxu0 }
 0x2aa   : > { %13884 = vst [vmem:[#allocation67_spill] sm:$0xff] %v11441_v14  ;;  %2885 = vmatpush1.bf16.msra.mxu1 %v10535_v40  ;;  %v11443_v7 = vpop.f32.mrb[127].mxu0  ;;  %v10549_v40 = vld [vmem:[#allocation11 + $0xa4] ss:$16 sps:$4 sm:$0xff]  }
 0x2ab   : > { %13885 = vst [vmem:[#allocation68_spill] sm:$0xff] %v11443_v7  ;;  %2886 = vmatprep.subr.bf16.mxu1 %v10540_v2  ;;  %v483_v2 = vld [vmem:[#allocation13 + $0x168] sm:$0xff] }
 0x2ae   : > { %2887 = vmatpush1.bf16.msra.mxu1 %v10538_v54 }
 0x2af   : > { %v11445_v12 = vpop.f32.mrb[128].mxu0  ;;  %2888 = vmatprep.subr.bf16.mxu1 %v10543_v31  ;;  %v9485_v31 = vcombine.low %v479_v52, %v483_v2 }
 0x2b0   : > { %13886 = vst [vmem:[#allocation69_spill] sm:$0xff] %v11445_v12  ;;  %v11447_v48 = vpop.f32.mrb[129].mxu0  ;;  %v9486_v12 = vcombine.high %v479_v52, %v483_v2 }
 0x2b1   : > { %13887 = vst [vmem:[#allocation70_spill] sm:$0xff] %v11447_v48  ;;  %v11449_v61 = vpop.f32.mrb[130].mxu0 }
 0x2b2   : > { %13888 = vst [vmem:[#allocation71_spill] sm:$0xff] %v11449_v61  ;;  %2889 = vmatpush1.bf16.msra.mxu1 %v10541_v16  ;;  %v11451_v49 = vpop.f32.mrb[131].mxu0  ;;  %5968 = vmatprep.subr.bf16.mxu0 %v9486_v12  ;;  %v10553_v61 = vld [vmem:[#allocation11 + $0xe0] ss:$16 sps:$4 sm:$0xff]  }
 0x2b3   : > { %13889 = vst [vmem:[#allocation72_spill] sm:$0xff] %v11451_v49  ;;  %2890 = vmatprep.subr.bf16.mxu1 %v10546_v18  ;;  %v10550_v18 = vld [vmem:[#allocation11 + $0xc0] ss:$16 sps:$4 sm:$0xff]   ;;  %5969 = vmatpush1.bf16.msra.mxu0 %v9485_v31  ;;  %v491_v31 = vld [vmem:[#allocation13 + $0x1a8] sm:$0xff] }
 0x2b4   : > { %v10556_v12 = vld [vmem:[#allocation11 + $0x100] ss:$16 sps:$4 sm:$0xff]  }
 0x2b6   : > { %2891 = vmatpush1.bf16.msra.mxu1 %v10544_v39  ;;  %v10555_v39 = vld [vmem:[#allocation11 + $0xe4] ss:$16 sps:$4 sm:$0xff]  }
 0x2b7   : > { %v11453_v54 = vpop.f32.mrb[132].mxu0  ;;  %2892 = vmatprep.subr.bf16.mxu1 %v10549_v40  ;;  %v10558_v40 = vld [vmem:[#allocation11 + $0x104] ss:$16 sps:$4 sm:$0xff]  }
 0x2b8   : > { %13890 = vst [vmem:[#allocation73_spill] sm:$0xff] %v11453_v54  ;;  %v11455_v14 = vpop.f32.mrb[133].mxu0 }
 0x2b9   : > { %13891 = vst [vmem:[#allocation74_spill] sm:$0xff] %v11455_v14  ;;  %v11457_v48 = vpop.f32.mrb[134].mxu0 }
 0x2ba   : > { %13892 = vst [vmem:[#allocation75_spill] sm:$0xff] %v11457_v48  ;;  %2893 = vmatpush1.bf16.msra.mxu1 %v10547_v41  ;;  %v11459_v16 = vpop.f32.mrb[135].mxu0  ;;  %v10561_v41 = vld [vmem:[#allocation11 + $0x124] ss:$16 sps:$4 sm:$0xff]   ;;  %v487_v48 = vld [vmem:[#allocation13 + $0x188] sm:$0xff] }
 0x2bb   : > { %13893 = vst [vmem:[#allocation76_spill] sm:$0xff] %v11459_v16  ;;  %2894 = vmatprep.subr.bf16.mxu1 %v10552_v29  ;;  %v10559_v29 = vld [vmem:[#allocation11 + $0x120] ss:$16 sps:$4 sm:$0xff]   ;;  %v9494_v16 = vcombine.high %v487_v48, %v491_v31 }
 0x2bd   : > { %5970 = vmatprep.subr.bf16.mxu0 %v9494_v16  ;;  %v10568_v16 = vld [vmem:[#allocation11 + $0x180] ss:$16 sps:$4 sm:$0xff]  }
 0x2be   : > { %2895 = vmatpush1.bf16.msra.mxu1 %v10550_v18 }
 0x2bf   : > { %v11461_v49 = vpop.f32.mrb[136].mxu0  ;;  %2896 = vmatprep.subr.bf16.mxu1 %v10555_v39  ;;  %v9493_v39 = vcombine.low %v487_v48, %v491_v31 }
 0x2c0   : > { %13894 = vst [vmem:[#allocation77_spill] sm:$0xff] %v11461_v49  ;;  %v11463_v54 = vpop.f32.mrb[137].mxu0  ;;  %v10564_v49 = vld [vmem:[#allocation11 + $0x144] ss:$16 sps:$4 sm:$0xff]  }
 0x2c1   : > { %13895 = vst [vmem:[#allocation78_spill] sm:$0xff] %v11463_v54  ;;  %v11465_v52 = vpop.f32.mrb[138].mxu0  ;;  %5971 = vmatpush1.bf16.msra.mxu0 %v9493_v39  ;;  %v499_v39 = vld [vmem:[#allocation13 + $0x1e8] sm:$0xff] }
 0x2c2   : > { %13896 = vst [vmem:[#allocation79_spill] sm:$0xff] %v11465_v52  ;;  %2897 = vmatpush1.bf16.msra.mxu1 %v10553_v61  ;;  %v11467_v2 = vpop.f32.mrb[139].mxu0  ;;  %v10565_v52 = vld [vmem:[#allocation11 + $0x160] ss:$16 sps:$4 sm:$0xff]  }
 0x2c3   : > { %13897 = vst [vmem:[#allocation80_spill] sm:$0xff] %v11467_v2  ;;  %2898 = vmatprep.subr.bf16.mxu1 %v10558_v40  ;;  %v10562_v40 = vld [vmem:[#allocation11 + $0x140] ss:$16 sps:$4 sm:$0xff]  }
 0x2c6   : > { %2899 = vmatpush1.bf16.msra.mxu1 %v10556_v12  ;;  %v10567_v12 = vld [vmem:[#allocation11 + $0x164] ss:$16 sps:$4 sm:$0xff]  }
 0x2c7   : > { %v11469_v18 = vpop.f32.mrb[140].mxu0  ;;  %2900 = vmatprep.subr.bf16.mxu1 %v10561_v41  ;;  %v10570_v41 = vld [vmem:[#allocation11 + $0x184] ss:$16 sps:$4 sm:$0xff]  }
 0x2c8   : > { %13898 = vst [vmem:[#allocation81_spill] sm:$0xff] %v11469_v18  ;;  %v11471_v14 = vpop.f32.mrb[141].mxu0 }
 0x2c9   : > { %13899 = vst [vmem:[#allocation82_spill] sm:$0xff] %v11471_v14  ;;  %v11473_v54 = vpop.f32.mrb[142].mxu0 }
 0x2ca   : > { %13900 = vst [vmem:[#allocation83_spill] sm:$0xff] %v11473_v54  ;;  %2901 = vmatpush1.bf16.msra.mxu1 %v10559_v29  ;;  %v11475_v61 = vpop.f32.mrb[143].mxu0  ;;  %v10573_v29 = vld [vmem:[#allocation11 + $0x1a4] ss:$16 sps:$4 sm:$0xff]   ;;  %v495_v54 = vld [vmem:[#allocation13 + $0x1c8] sm:$0xff] }
 0x2cb   : > { %13901 = vst [vmem:[#allocation84_spill] sm:$0xff] %v11475_v61  ;;  %2902 = vmatprep.subr.bf16.mxu1 %v10564_v49  ;;  %v10571_v49 = vld [vmem:[#allocation11 + $0x1a0] ss:$16 sps:$4 sm:$0xff]   ;;  %v9502_v61 = vcombine.high %v495_v54, %v499_v39 }
 0x2cd   : > { %5972 = vmatprep.subr.bf16.mxu0 %v9502_v61 }
 0x2ce   : > { %2903 = vmatpush1.bf16.msra.mxu1 %v10562_v40 }
 0x2cf   : > { %v11477_v2 = vpop.f32.mrb[144].mxu0  ;;  %2904 = vmatprep.subr.bf16.mxu1 %v10567_v12  ;;  %v9501_v12 = vcombine.low %v495_v54, %v499_v39 }
 0x2d0   : > { %13902 = vst [vmem:[#allocation85_spill] sm:$0xff] %v11477_v2  ;;  %v11479_v18 = vpop.f32.mrb[145].mxu0  ;;  %v10576_v2 = vld [vmem:[#allocation11 + $0x1c4] ss:$16 sps:$4 sm:$0xff]  }
 0x2d1   : > { %13903 = vst [vmem:[#allocation86_spill] sm:$0xff] %v11479_v18  ;;  %v11481_v48 = vpop.f32.mrb[146].mxu0  ;;  %5973 = vmatpush1.bf16.msra.mxu0 %v9501_v12 }
 0x2d2   : > { %13904 = vst [vmem:[#allocation87_spill] sm:$0xff] %v11481_v48  ;;  %2905 = vmatpush1.bf16.msra.mxu1 %v10565_v52  ;;  %v11483_v31 = vpop.f32.mrb[147].mxu0  ;;  %v438_v48 = vld [vmem:[#allocation13] sm:$0xff] }
 0x2d3   : > { %13905 = vst [vmem:[#allocation88_spill] sm:$0xff] %v11483_v31  ;;  %2906 = vmatprep.subr.bf16.mxu1 %v10570_v41  ;;  %v10574_v41 = vld [vmem:[#allocation11 + $0x1c0] ss:$16 sps:$4 sm:$0xff]  }
 0x2d4   : > { %v442_v31 = vld [vmem:[#allocation13 + $0x20] sm:$0xff] }
 0x2d5   : > { %v9444_v54 = vcombine.high %v438_v48, %v442_v31  ;;  %v9443_v12 = vcombine.low %v438_v48, %v442_v31  ;;  %v462_v48 = vld [vmem:[#allocation13 + $0xc0] sm:$0xff] }
 0x2d6   : > { %2907 = vmatpush1.bf16.msra.mxu1 %v10568_v16  ;;  %v10579_v16 = vld [vmem:[#allocation11 + $0x1e4] ss:$16 sps:$4 sm:$0xff]  }
 0x2d7   : > { %v11485_v40 = vpop.f32.mrb[148].mxu0  ;;  %2908 = vmatprep.subr.bf16.mxu1 %v10573_v29  ;;  %v466_v31 = vld [vmem:[#allocation13 + $0xe0] sm:$0xff] }
 0x2d8   : > { %13906 = vst [vmem:[#allocation89_spill] sm:$0xff] %v11485_v40  ;;  %v11487_v14 = vpop.f32.mrb[149].mxu0  ;;  %v10577_v40 = vld [vmem:[#allocation11 + $0x1e0] ss:$16 sps:$4 sm:$0xff]  }
 0x2d9   : > { %13907 = vst [vmem:[#allocation90_spill] sm:$0xff] %v11487_v14  ;;  %v11489_v18 = vpop.f32.mrb[150].mxu0  ;;  %v446_v14 = vld [vmem:[#allocation13 + $0x40] sm:$0xff] }
 0x2da   : > { %13908 = vst [vmem:[#allocation91_spill] sm:$0xff] %v11489_v18  ;;  %2909 = vmatpush1.bf16.msra.mxu1 %v10571_v49  ;;  %v11491_v52 = vpop.f32.mrb[151].mxu0  ;;  %v450_v18 = vld [vmem:[#allocation13 + $0x60] sm:$0xff] }
 0x2db   : > { %13909 = vst [vmem:[#allocation92_spill] sm:$0xff] %v11491_v52  ;;  %2910 = vmatprep.subr.bf16.mxu1 %v10576_v2  ;;  %v9452_v2 = vcombine.high %v446_v14, %v450_v18  ;;  %v454_v52 = vld [vmem:[#allocation13 + $0x80] sm:$0xff] }
 0x2de   : > { %2911 = vmatpush1.bf16.msra.mxu1 %v10574_v41  ;;  %v503_v41 = vld [vmem:[#allocation13 + $0x208] sm:$0xff] }
 0x2df   : > { %v11493_v29 = vpop.f32.mrb[152].mxu0  ;;  %2912 = vmatprep.subr.bf16.mxu1 %v10579_v16  ;;  %v9451_v16 = vcombine.low %v446_v14, %v450_v18  ;;  %v9468_v14 = vcombine.high %v462_v48, %v466_v31  ;;  %v470_v18 = vld [vmem:[#allocation13 + $0x100] sm:$0xff] }
 0x2e0   : > { %13910 = vst [vmem:[#allocation93_spill] sm:$0xff] %v11493_v29  ;;  %v11495_v39 = vpop.f32.mrb[153].mxu0  ;;  %v507_v29 = vld [vmem:[#allocation13 + $0x228] sm:$0xff] }
 0x2e1   : > { %13911 = vst [vmem:[#allocation94_spill] sm:$0xff] %v11495_v39  ;;  %v11497_v61 = vpop.f32.mrb[154].mxu0  ;;  %v9510_v7 = vcombine.high %v503_v41, %v507_v29 }
 0x2e2   : > { %13912 = vst [vmem:[#allocation95_spill] sm:$0xff] %v11497_v61  ;;  %2913 = vmatpush1.bf16.msra.mxu1 %v10577_v40  ;;  %v11499_v49 = vpop.f32.mrb[155].mxu0  ;;  %v9460_v61 = vcombine.high %v454_v52, %v458_v36  ;;  %v9509_v40 = vcombine.low %v503_v41, %v507_v29  ;;  %v9467_v29 = vcombine.low %v462_v48, %v466_v31  ;;  %v511_v48 = vld [vmem:[#allocation13 + $0x248] sm:$0xff] }
 0x2e3   : > { %13913 = vst [vmem:[#allocation96_spill] sm:$0xff] %v11499_v49  ;;  %5252 = vmatprep.subr.bf16.mxu1 %v9444_v54  ;;  %5974 = vmatprep.subr.bf16.mxu0 %v9510_v7 }
 0x2e4   : > { %5975 = vmatpush1.bf16.msra.mxu0 %v9509_v40  ;;  %v486_v40 = vld [vmem:[#allocation13 + $0x180] sm:$0xff] }
 0x2e5   : > { %2915 = vmatmul.mubr.bf16.vlgmr.msra.gmra.mrb[40].mxu1 %v11131_v25 }
 0x2e6   : > { %2924 = vmatprep.mubr.bf16.mxu1 %v11145_v50  ;;  %5253 = vmatpush1.bf16.msra.mxu1 %v9443_v12  ;;  %v9459_v50 = vcombine.low %v454_v52, %v458_v36  ;;  %v474_v12 = vld [vmem:[#allocation13 + $0x120] sm:$0xff] }
 0x2e7   : > { %v11503_v39 = vpop.f32.mrb[156].mxu0  ;;  %5254 = vmatprep.subr.bf16.mxu1 %v9452_v2  ;;  %v9476_v41 = vcombine.high %v470_v18, %v474_v12 }
 0x2e8   : > { %v11505_v49 = vpop.f32.mrb[157].mxu0 }
 0x2e9   : > { %v11507_v54 = vpop.f32.mrb[158].mxu0 }
 0x2ea   : > { %13914 = vst [vmem:[#allocation97_spill] sm:$0xff] %v11507_v54  ;;  %v11509_v25 = vpop.f32.mrb[159].mxu0  ;;  %5255 = vmatpush1.bf16.msra.mxu1 %v9451_v16  ;;  %v478_v54 = vld [vmem:[#allocation13 + $0x140] sm:$0xff] }
 0x2eb   : > { %5256 = vmatprep.subr.bf16.mxu1 %v9460_v61  ;;  %v482_v16 = vld [vmem:[#allocation13 + $0x160] sm:$0xff]  ;;  %v9475_v61 = vcombine.low %v470_v18, %v474_v12 }
 0x2ec   : > { %v9483_v31 = vcombine.low %v478_v54, %v482_v16  ;;  %v494_v18 = vld [vmem:[#allocation13 + $0x1c0] sm:$0xff] }
 0x2ed   : > { %2925 = vmatmul.mubr.bf16.gmra.mrb[44].mxu1 %v11141_v45  ;;  %v9484_v45 = vcombine.high %v478_v54, %v482_v16  ;;  %v498_v12 = vld [vmem:[#allocation13 + $0x1e0] sm:$0xff] }
 0x2ee   : > { %2934 = vmatprep.mubr.bf16.mxu1 %v11153_v10  ;;  %5257 = vmatpush1.bf16.msra.mxu1 %v9459_v50  ;;  %v490_v10 = vld [vmem:[#allocation13 + $0x1a0] sm:$0xff]  ;;  %v515_v50 = vld [vmem:[#allocation13 + $0x268] sm:$0xff]  ;;  %v9500_v54 = vcombine.high %v494_v18, %v498_v12 }
 0x2ef   : > { %v11513_v2 = vpop.f32.mrb[160].mxu0  ;;  %5258 = vmatprep.subr.bf16.mxu1 %v9468_v14  ;;  %v502_v16 = vld [vmem:[#allocation13 + $0x200] sm:$0xff] }
 0x2f0   : > { %13915 = vst [vmem:[#allocation98_spill] sm:$0xff] %v11513_v2  ;;  %v11515_v7 = vpop.f32.mrb[161].mxu0  ;;  %v9517_v2 = vcombine.low %v511_v48, %v515_v50 }
 0x2f1   : > { %v11517_v36 = vpop.f32.mrb[162].mxu0 }
 0x2f2   : > { %13916 = vst [vmem:[#allocation99_spill] sm:$0xff] %v11517_v36  ;;  %v11519_v52 = vpop.f32.mrb[163].mxu0  ;;  %5259 = vmatpush1.bf16.msra.mxu1 %v9467_v29  ;;  %v9492_v36 = vcombine.high %v486_v40, %v490_v10 }
 0x2f3   : > { %13917 = vst [vmem:[#allocation100_spill] sm:$0xff] %v11519_v52  ;;  %5260 = vmatprep.subr.bf16.mxu1 %v9476_v41  ;;  %v9518_v52 = vcombine.high %v511_v48, %v515_v50 }
 0x2f5   : > { %2935 = vmatmul.mubr.bf16.gmra.mrb[48].mxu1 %v11151_v6  ;;  %5976 = vmatprep.subr.bf16.mxu0 %v9518_v52 }
 0x2f6   : > { %2944 = vmatprep.mubr.bf16.mxu1 %v11169_v37  ;;  %5261 = vmatpush1.bf16.msra.mxu1 %v9475_v61  ;;  %v9491_v37 = vcombine.low %v486_v40, %v490_v10  ;;  %v506_v61 = vld [vmem:[#allocation13 + $0x220] sm:$0xff] }
 0x2f7   : > { %v11523_v14 = vpop.f32.mrb[164].mxu0  ;;  %5262 = vmatprep.subr.bf16.mxu1 %v9484_v45  ;;  %5977 = vmatpush1.bf16.msra.mxu0 %v9517_v2  ;;  %v9499_v45 = vcombine.low %v494_v18, %v498_v12  ;;  %v9508_v50 = vcombine.high %v502_v16, %v506_v61 }
 0x2f8   : > { %13918 = vst [vmem:[#allocation101_spill] sm:$0xff] %v11523_v14  ;;  %v11525_v29 = vpop.f32.mrb[165].mxu0 }
 0x2f9   : > { %13919 = vst [vmem:[#allocation102_spill] sm:$0xff] %v11525_v29  ;;  %v11527_v41 = vpop.f32.mrb[166].mxu0 }
 0x2fa   : > { %13920 = vst [vmem:[#allocation103_spill] sm:$0xff] %v11527_v41  ;;  %v11529_v6 = vpop.f32.mrb[167].mxu0  ;;  %5263 = vmatpush1.bf16.msra.mxu1 %v9483_v31  ;;  %v510_v41 = vld [vmem:[#allocation13 + $0x240] sm:$0xff] }
 0x2fb   : > { %13921 = vst [vmem:[#allocation104_spill] sm:$0xff] %v11529_v6  ;;  %5264 = vmatprep.subr.bf16.mxu1 %v9492_v36  ;;  %v514_v31 = vld [vmem:[#allocation13 + $0x260] sm:$0xff]  ;;  %v9507_v36 = vcombine.low %v502_v16, %v506_v61  ;;  %v519_v61 = vld [vmem:[#allocation13 + $0x288] sm:$0xff] }
 0x2fc   : > { %v522_v16 = vld [vmem:[#allocation13 + $0x2a0] sm:$0xff] }
 0x2fd   : > { %2945 = vmatmul.mubr.bf16.gmra.mrb[52].mxu1 %v11163_v33  ;;  %v9516_v33 = vcombine.high %v510_v41, %v514_v31 }
 0x2fe   : > { %2954 = vmatprep.mubr.bf16.mxu1 %v11181_v60  ;;  %5265 = vmatpush1.bf16.msra.mxu1 %v9491_v37  ;;  %v9515_v60 = vcombine.low %v510_v41, %v514_v31 }
 0x2ff   : > { %v11533_v48 = vpop.f32.mrb[168].mxu0  ;;  %5266 = vmatprep.subr.bf16.mxu1 %v9500_v54  ;;  %v518_v54 = vld [vmem:[#allocation13 + $0x280] sm:$0xff] }
 0x300   : > { %13922 = vst [vmem:[#allocation105_spill] sm:$0xff] %v11533_v48  ;;  %v11535_v52 = vpop.f32.mrb[169].mxu0 }
 0x301   : > { %13923 = vst [vmem:[#allocation106_spill] sm:$0xff] %v11535_v52  ;;  %v11537_v40 = vpop.f32.mrb[170].mxu0 }
 0x302   : > { %13924 = vst [vmem:[#allocation107_spill] sm:$0xff] %v11537_v40  ;;  %v11539_v2 = vpop.f32.mrb[171].mxu0  ;;  %5267 = vmatpush1.bf16.msra.mxu1 %v9499_v45  ;;  %v9524_v45 = vcombine.high %v518_v54, %v522_v16 }
 0x303   : > { %13925 = vst [vmem:[#allocation108_spill] sm:$0xff] %v11539_v2  ;;  %5268 = vmatprep.subr.bf16.mxu1 %v9508_v50 }
 0x305   : > { %2955 = vmatmul.mubr.bf16.gmra.mrb[56].mxu1 %v11179_v57  ;;  %v9523_v57 = vcombine.low %v518_v54, %v522_v16  ;;  %v530_v54 = vld [vmem:[#allocation13 + $0x2e0] sm:$0xff]  ;;  %v527_v16 = vld [vmem:[#allocation13 + $0x2c8] sm:$0xff] }
 0x306   : > { %2964 = vmatprep.mubr.bf16.mxu1 %v11191_v27  ;;  %5269 = vmatpush1.bf16.msra.mxu1 %v9507_v36  ;;  %v523_v27 = vld [vmem:[#allocation13 + $0x2a8] sm:$0xff] }
 0x307   : > { %v11543_v10 = vpop.f32.mrb[172].mxu0  ;;  %5270 = vmatprep.subr.bf16.mxu1 %v9516_v33  ;;  %v9525_v41 = vcombine.low %v519_v61, %v523_v27  ;;  %v9526_v50 = vcombine.high %v519_v61, %v523_v27  ;;  %v531_v27 = vld [vmem:[#allocation13 + $0x2e8] sm:$0xff] }
 0x308   : > { %13926 = vst [vmem:[#allocation109_spill] sm:$0xff] %v11543_v10  ;;  %v11545_v18 = vpop.f32.mrb[173].mxu0 }
 0x309   : > { %13927 = vst [vmem:[#allocation110_spill] sm:$0xff] %v11545_v18  ;;  %v11547_v12 = vpop.f32.mrb[174].mxu0  ;;  %5978 = vmatprep.subr.bf16.mxu0 %v9526_v50  ;;  %v9534_v50 = vcombine.high %v527_v16, %v531_v27 }
 0x30a   : > { %13928 = vst [vmem:[#allocation111_spill] sm:$0xff] %v11547_v12  ;;  %v11549_v37 = vpop.f32.mrb[175].mxu0  ;;  %5271 = vmatpush1.bf16.msra.mxu1 %v9515_v60  ;;  %5979 = vmatpush1.bf16.msra.mxu0 %v9525_v41 }
 0x30b   : > { %13929 = vst [vmem:[#allocation112_spill] sm:$0xff] %v11549_v37  ;;  %5272 = vmatprep.subr.bf16.mxu1 %v9524_v45  ;;  %5980 = vmatprep.subr.bf16.mxu0 %v9534_v50  ;;  %v538_v50 = vld [vmem:[#allocation13 + $0x320] sm:$0xff] }
 0x30d   : > { %2965 = vmatmul.mubr.bf16.gmra.mrb[60].mxu1 %v11189_v22  ;;  %v526_v22 = vld [vmem:[#allocation13 + $0x2c0] sm:$0xff] }
 0x30e   : > { %2974 = vmatprep.mubr.bf16.mxu1 %v11203_v9  ;;  %5273 = vmatpush1.bf16.msra.mxu1 %v9523_v57  ;;  %v9531_v9 = vcombine.low %v526_v22, %v530_v54  ;;  %v9532_v61 = vcombine.high %v526_v22, %v530_v54 }
 0x30f   : > { %v11553_v31 = vpop.f32.mrb[176].mxu0 }
 0x310   : > { %13930 = vst [vmem:[#allocation113_spill] sm:$0xff] %v11553_v31  ;;  %v11555_v36 = vpop.f32.mrb[177].mxu0  ;;  %v9533_v31 = vcombine.low %v527_v16, %v531_v27  ;;  %5274 = vmatprep.subr.bf16.mxu1 %v9532_v61  ;;  %v13942_v61 = vld [vmem:[#allocation36_spill] sm:$0xff]  ;;  %v534_v27 = vld [vmem:[#allocation13 + $0x300] sm:$0xff] }
 0x311   : > { %13931 = vst [vmem:[#allocation114_spill] sm:$0xff] %v11555_v36  ;;  %v11557_v33 = vpop.f32.mrb[178].mxu0 }
 0x312   : > { %13932 = vst [vmem:[#allocation115_spill] sm:$0xff] %v11557_v33  ;;  %v11559_v60 = vpop.f32.mrb[179].mxu0  ;;  %5275 = vmatpush1.bf16.msra.mxu1 %v9531_v9  ;;  %5981 = vmatpush1.bf16.msra.mxu0 %v9533_v31  ;;  %v535_v9 = vld [vmem:[#allocation13 + $0x308] sm:$0xff]  ;;  %v9539_v31 = vcombine.low %v534_v27, %v538_v50 }
 0x313   : > { %13933 = vst [vmem:[#allocation116_spill] sm:$0xff] %v11559_v60 }
 0x315   : > { %2975 = vmatmul.mubr.bf16.gmra.mrb[64].mxu1 %v11201_v4 }
 0x316   : > { %2984 = vmatprep.mubr.bf16.mxu1 %v11217_v58 }
 0x317   : > { %v11563_v45 = vpop.f32.mrb[180].mxu0 }
 0x318   : > { %13934 = vst [vmem:[#allocation117_spill] sm:$0xff] %v11563_v45  ;;  %v11565_v57 = vpop.f32.mrb[181].mxu0  ;;  %v9540_v45 = vcombine.high %v534_v27, %v538_v50  ;;  %v13950_v27 = vld [vmem:[#allocation40_spill] sm:$0xff] }
 0x319   : > { %13935 = vst [vmem:[#allocation118_spill] sm:$0xff] %v11565_v57  ;;  %v11567_v41 = vpop.f32.mrb[182].mxu0 }
 0x31a   : > { %13936 = vst [vmem:[#allocation119_spill] sm:$0xff] %v11567_v41  ;;  %v11569_v4 = vpop.f32.mrb[183].mxu0  ;;  %v13943_v41 = vld [vmem:[#allocation38_spill] sm:$0xff]  ;;  %5276 = vmatprep.subr.bf16.mxu1 %v9540_v45 }
 0x31b   : > { %13937 = vst [vmem:[#allocation120_spill] sm:$0xff] %v11569_v4  ;;  %5277 = vmatpush1.bf16.msra.mxu1 %v9539_v31  ;;  %v11609_v31 = vld [vmem:[%s13517_s4] sm:$0xf] }
 0x31d   : > { %2985 = vmatmul.mubr.bf16.gmra.mrb[68].mxu1 %v11213_v53  ;;  %v539_v53 = vld [vmem:[#allocation13 + $0x328] sm:$0xff] }
 0x31e   : > { %2994 = vmatprep.mubr.bf16.mxu1 %v11229_v19  ;;  %v9541_v19 = vcombine.low %v535_v9, %v539_v53 }
 0x31f   : > { %v11573_v58 = vpop.f32.mrb[184].mxu0 }
 0x320   : > { %13938 = vst [vmem:[#allocation121_spill] sm:$0xff] %v11573_v58  ;;  %v11575_v22 = vpop.f32.mrb[185].mxu0  ;;  %v9542_v58 = vcombine.high %v535_v9, %v539_v53 }
 0x321   : > { %13939 = vst [vmem:[#allocation122_spill] sm:$0xff] %v11575_v22  ;;  %v11577_v54 = vpop.f32.mrb[186].mxu0  ;;  %v13948_v22 = vld [vmem:[#allocation37_spill] sm:$0xff] }
 0x322   : > { %13940 = vst [vmem:[#allocation123_spill] sm:$0xff] %v11577_v54  ;;  %v11579_v16 = vpop.f32.mrb[187].mxu0  ;;  %5982 = vmatprep.subr.bf16.mxu0 %v9542_v58 }
 0x323   : > { %13941 = vst [vmem:[#allocation124_spill] sm:$0xff] %v11579_v16  ;;  %v1844_v16 = vlaneseq  ;;  %5983 = vmatpush1.bf16.msra.mxu0 %v9541_v19 }
 0x325   : > { %2995 = vmatmul.mubr.bf16.gmra.mrb[72].mxu1 %v13942_v61 }
 0x326   : > { %3004 = vmatprep.mubr.bf16.mxu1 %v13943_v41  ;;  %v11592_v41 = vshrl.u32 %v1844_v16, 7  ;;  %v13957_v16 = vld [vmem:[#allocation39_spill] sm:$0xff] }
 0x327   : > { %v11583_v4 = vpop.f32.mrb[188].mxu0 }
 0x328   : > { %13944 = vst [vmem:[#allocation36_spill] sm:$0xff] %v11583_v4  ;;  %v11585_v57 = vpop.f32.mrb[189].mxu0  ;;  %13949 = vst [vmem:[#allocation37_spill] sm:$0xff] %v11592_v41  ;;  %v11602_v45 = vsub.s32 0, %v11592_v41 }
 0x329   : > { %13945 = vst [vmem:[#allocation38_spill] sm:$0xff] %v11585_v57  ;;  %v11587_v54 = vpop.f32.mrb[190].mxu0 }
 0x32a   : > { %13946 = vst [vmem:[#allocation125_spill] sm:$0xff] %v11587_v54  ;;  %v11589_v61 = vpop.f32.mrb[191].mxu0  ;;  %13954 = vst [vmem:[#allocation129_spill] sm:$0xff] %v11602_v45  ;;  %v1847_v19 = vrot.slane %v11609_v31, %v11602_v45 }
 0x32b   : > { %13947 = vst [vmem:[#allocation126_spill] sm:$0xff] %v11589_v61  ;;  %v547_v61 = vld [vmem:[#allocation13 + $0x368] sm:$0xff] }
 0x32d   : > { %3005 = vmatmul.mubr.bf16.gmra.mrb[76].mxu1 %v13948_v22  ;;  %v11612_v22 = vsub.s32 1, %v11592_v41 }
 0x32e   : > { %3014 = vmatprep.mubr.bf16.mxu1 %v13950_v27  ;;  %v542_v27 = vld [vmem:[#allocation13 + $0x340] sm:$0xff] }
 0x32f   : > { %v11595_v50 = vpop.f32.mrb[192].mxu0  ;;  %13956 = vst [vmem:[#allocation131_spill] sm:$0xff] %v11612_v22 }
 0x330   : > { %13951 = vst [vmem:[#allocation40_spill] sm:$0xff] %v11595_v50  ;;  %v11597_v9 = vpop.f32.mrb[193].mxu0  ;;  %v543_v50 = vld [vmem:[#allocation13 + $0x348] sm:$0xff] }
 0x331   : > { %13952 = vst [vmem:[#allocation127_spill] sm:$0xff] %v11597_v9  ;;  %v11599_v53 = vpop.f32.mrb[194].mxu0  ;;  %v13958_v9 = vld [vmem:[#allocation42_spill] sm:$0xff]  ;;  %v9549_v33 = vcombine.low %v543_v50, %v547_v61  ;;  %v9550_v60 = vcombine.high %v543_v50, %v547_v61  ;;  %v13964_v50 = vld [vmem:[#allocation44_spill] sm:$0xff] }
 0x332   : > { %13953 = vst [vmem:[#allocation128_spill] sm:$0xff] %v11599_v53  ;;  %v11604_v58 = vpop.f32.mrb[195].mxu0  ;;  %v546_v53 = vld [vmem:[#allocation13 + $0x360] sm:$0xff] }
 0x333   : > { %13955 = vst [vmem:[#allocation130_spill] sm:$0xff] %v11604_v58  ;;  %v1851_v58 = vrot.slane %v11609_v31, %v11612_v22  ;;  %v9547_v54 = vcombine.low %v542_v27, %v546_v53  ;;  %v9548_v4 = vcombine.high %v542_v27, %v546_v53  ;;  %5984 = vmatprep.subr.bf16.mxu0 %v9550_v60  ;;  %v555_v60 = vld [vmem:[#allocation13 + $0x3a8] sm:$0xff] }
 0x334   : > { %5985 = vmatpush1.bf16.msra.mxu0 %v9549_v33 }
 0x335   : > { %3015 = vmatmul.mubr.bf16.gmra.mrb[80].mxu1 %v13957_v16  ;;  %5278 = vmatprep.subr.bf16.mxu1 %v9548_v4  ;;  %v13970_v4 = vld [vmem:[#allocation46_spill] sm:$0xff] }
 0x336   : > { %3024 = vmatprep.mubr.bf16.mxu1 %v13958_v9  ;;  %5279 = vmatpush1.bf16.msra.mxu1 %v9547_v54 }
 0x337   : > { %v11620_v57 = vpop.f32.mrb[196].mxu0 }
 0x338   : > { %13959 = vst [vmem:[#allocation39_spill] sm:$0xff] %v11620_v57  ;;  %v2218_v36 = vpop.f32.mrb[32].mxu1  ;;  %v11622_v16 = vpop.f32.mrb[197].mxu0 }
 0x339   : > { %13960 = vst [vmem:[#allocation42_spill] sm:$0xff] %v11622_v16  ;;  %v11624_v12 = vadd.f32 %v2218_v36, %v1847_v19  ;;  %v2220_v10 = vpop.f32.mrb[33].mxu1  ;;  %v11626_v37 = vpop.f32.mrb[198].mxu0  ;;  %v13963_v36 = vld [vmem:[#allocation41_spill] sm:$0xff]  ;;  %v551_v19 = vld [vmem:[#allocation13 + $0x388] sm:$0xff] }
 0x33a   : > { %13961 = vst [vmem:[#allocation132_spill] sm:$0xff] %v11626_v37  ;;  %v11628_v9 = vadd.f32 %v2220_v10, %v1851_v58  ;;  %v2222_v18 = vpop.f32.mrb[34].mxu1  ;;  %v11630_v53 = vpop.f32.mrb[199].mxu0  ;;  %v9557_v10 = vcombine.low %v551_v19, %v555_v60  ;;  %v559_v58 = vld [vmem:[#allocation13 + $0x3c8] sm:$0xff] }
 0x33b   : > { %13962 = vst [vmem:[#allocation133_spill] sm:$0xff] %v11630_v53  ;;  %v2223_v27 = vpop.f32.mrb[35].mxu1  ;;  %v9558_v18 = vcombine.high %v551_v19, %v555_v60  ;;  %v563_v37 = vld [vmem:[#allocation13 + $0x3e8] sm:$0xff]  ;;  %v554_v19 = vld [vmem:[#allocation13 + $0x3a0] sm:$0xff] }
 0x33c   : > { %v9566_v27 = vcombine.high %v559_v58, %v563_v37 }
 0x33d   : > { %3025 = vmatmul.mubr.bf16.gmra.mrb[84].mxu1 %v13963_v36  ;;  %5986 = vmatprep.subr.bf16.mxu0 %v9558_v18  ;;  %v9565_v36 = vcombine.low %v559_v58, %v563_v37  ;;  %v13975_v37 = vld [vmem:[#allocation45_spill] sm:$0xff] }
 0x33e   : > { %3034 = vmatprep.mubr.bf16.mxu1 %v13964_v50  ;;  %5987 = vmatpush1.bf16.msra.mxu0 %v9557_v10  ;;  %v13969_v50 = vld [vmem:[#allocation43_spill] sm:$0xff]  ;;  %v13976_v10 = vld [vmem:[#allocation48_spill] sm:$0xff] }
 0x33f   : > { %v11638_v54 = vpop.f32.mrb[200].mxu0  ;;  %5988 = vmatprep.subr.bf16.mxu0 %v9566_v27 }
 0x340   : > { %13965 = vst [vmem:[#allocation41_spill] sm:$0xff] %v11638_v54  ;;  %v11640_v33 = vpop.f32.mrb[201].mxu0  ;;  %v550_v54 = vld [vmem:[#allocation13 + $0x380] sm:$0xff] }
 0x341   : > { %13966 = vst [vmem:[#allocation44_spill] sm:$0xff] %v11640_v33  ;;  %v11642_v57 = vpop.f32.mrb[202].mxu0  ;;  %v9555_v53 = vcombine.low %v550_v54, %v554_v19  ;;  %v9556_v33 = vcombine.high %v550_v54, %v554_v19  ;;  %v13981_v54 = vld [vmem:[#allocation47_spill] sm:$0xff]  ;;  %v562_v19 = vld [vmem:[#allocation13 + $0x3e0] sm:$0xff] }
 0x342   : > { %13967 = vst [vmem:[#allocation134_spill] sm:$0xff] %v11642_v57  ;;  %v11644_v61 = vpop.f32.mrb[203].mxu0  ;;  %5989 = vmatpush1.bf16.msra.mxu0 %v9565_v36 }
 0x343   : > { %13968 = vst [vmem:[#allocation135_spill] sm:$0xff] %v11644_v61  ;;  %5280 = vmatprep.subr.bf16.mxu1 %v9556_v33  ;;  %v558_v33 = vld [vmem:[#allocation13 + $0x3c0] sm:$0xff] }
 0x344   : > { %5281 = vmatpush1.bf16.msra.mxu1 %v9555_v53  ;;  %v9563_v53 = vcombine.low %v558_v33, %v562_v19 }
 0x345   : > { %3035 = vmatmul.mubr.bf16.gmra.mrb[88].mxu1 %v13969_v50  ;;  %v13982_v50 = vld [vmem:[#allocation50_spill] sm:$0xff] }
 0x346   : > { %3044 = vmatprep.mubr.bf16.mxu1 %v13970_v4 }
 0x347   : > { %v11648_v60 = vpop.f32.mrb[204].mxu0 }
 0x348   : > { %13971 = vst [vmem:[#allocation43_spill] sm:$0xff] %v11648_v60  ;;  %v11650_v16 = vpop.f32.mrb[205].mxu0 }
 0x349   : > { %13972 = vst [vmem:[#allocation46_spill] sm:$0xff] %v11650_v16  ;;  %v11652_v57 = vpop.f32.mrb[206].mxu0 }
 0x34a   : > { %13973 = vst [vmem:[#allocation136_spill] sm:$0xff] %v11652_v57  ;;  %v11654_v18 = vpop.f32.mrb[207].mxu0 }
 0x34b   : > { %13974 = vst [vmem:[#allocation137_spill] sm:$0xff] %v11654_v18 }
 0x34d   : > { %3045 = vmatmul.mubr.bf16.gmra.mrb[92].mxu1 %v13975_v37  ;;  %v9564_v37 = vcombine.high %v558_v33, %v562_v19  ;;  %v13993_v33 = vld [vmem:[#allocation51_spill] sm:$0xff]  ;;  %v13994_v19 = vld [vmem:[#allocation54_spill] sm:$0xff] }
 0x34e   : > { %3054 = vmatprep.mubr.bf16.mxu1 %v13976_v10 }
 0x34f   : > { %v11658_v4 = vpop.f32.mrb[208].mxu0  ;;  %5282 = vmatprep.subr.bf16.mxu1 %v9564_v37  ;;  %v11688_v37 = vld [vmem:[#allocation13 + $0x400] sm:$0xff] }
 0x350   : > { %13977 = vst [vmem:[#allocation45_spill] sm:$0xff] %v11658_v4  ;;  %v11660_v58 = vpop.f32.mrb[209].mxu0  ;;  %5283 = vmatpush1.bf16.msra.mxu1 %v9563_v53  ;;  %13995 = vst [vmem:[#allocation51_spill] sm:$0xff] %v11688_v37  ;;  %v11692_v53 = vld [vmem:[#allocation13 + $0x408] sm:$0xff] }
 0x351   : > { %13978 = vst [vmem:[#allocation48_spill] sm:$0xff] %v11660_v58  ;;  %v11662_v27 = vpop.f32.mrb[210].mxu0  ;;  %13997 = vst [vmem:[#allocation144_spill] sm:$0xff] %v11692_v53 }
 0x352   : > { %13979 = vst [vmem:[#allocation138_spill] sm:$0xff] %v11662_v27  ;;  %v11664_v36 = vpop.f32.mrb[211].mxu0  ;;  %v13987_v27 = vld [vmem:[#allocation49_spill] sm:$0xff] }
 0x353   : > { %13980 = vst [vmem:[#allocation139_spill] sm:$0xff] %v11664_v36  ;;  %v13988_v36 = vld [vmem:[#allocation52_spill] sm:$0xff] }
 0x355   : > { %3055 = vmatmul.mubr.bf16.gmra.mrb[96].mxu1 %v13981_v54 }
 0x356   : > { %3064 = vmatprep.mubr.bf16.mxu1 %v13982_v50 }
 0x357   : > { %v11668_v57 = vpop.f32.mrb[212].mxu0 }
 0x358   : > { %13983 = vst [vmem:[#allocation47_spill] sm:$0xff] %v11668_v57  ;;  %v11670_v60 = vpop.f32.mrb[213].mxu0 }
 0x359   : > { %13984 = vst [vmem:[#allocation50_spill] sm:$0xff] %v11670_v60  ;;  %v11672_v10 = vpop.f32.mrb[214].mxu0  ;;  %v11715_v60 = vsub.s32 2, %v11592_v41 }
 0x35a   : > { %13985 = vst [vmem:[#allocation140_spill] sm:$0xff] %v11672_v10  ;;  %v11674_v4 = vpop.f32.mrb[215].mxu0  ;;  %v11690_v10 = vld [vmem:[#allocation13 + $0x420] sm:$0xff] }
 0x35b   : > { %13986 = vst [vmem:[#allocation141_spill] sm:$0xff] %v11674_v4  ;;  %13996 = vst [vmem:[#allocation54_spill] sm:$0xff] %v11690_v10  ;;  %v14004_v4 = vld [vmem:[#allocation56_spill] sm:$0xff] }
 0x35d   : > { %3065 = vmatmul.mubr.bf16.gmra.mrb[100].mxu1 %v13987_v27 }
 0x35e   : > { %3074 = vmatprep.mubr.bf16.mxu1 %v13988_v36  ;;  %v14003_v36 = vld [vmem:[#allocation53_spill] sm:$0xff] }
 0x35f   : > { %v11678_v54 = vpop.f32.mrb[216].mxu0  ;;  %14005 = vst [vmem:[#allocation53_spill] sm:$0xff] %v11715_v60 }
 0x360   : > { %13989 = vst [vmem:[#allocation49_spill] sm:$0xff] %v11678_v54  ;;  %v11680_v50 = vpop.f32.mrb[217].mxu0  ;;  %v11700_v54 = vld [vmem:[#allocation13 + $0x428] sm:$0xff] }
 0x361   : > { %13990 = vst [vmem:[#allocation52_spill] sm:$0xff] %v11680_v50  ;;  %v11682_v58 = vpop.f32.mrb[218].mxu0  ;;  %13999 = vst [vmem:[#allocation146_spill] sm:$0xff] %v11700_v54 }
 0x362   : > { %13991 = vst [vmem:[#allocation142_spill] sm:$0xff] %v11682_v58  ;;  %v11684_v57 = vpop.f32.mrb[219].mxu0  ;;  %v9572_v58 = vcombine.high %v11688_v37, %v11690_v10  ;;  %v14007_v37 = vld [vmem:[#allocation55_spill] sm:$0xff] }
 0x363   : > { %13992 = vst [vmem:[#allocation143_spill] sm:$0xff] %v11684_v57 }
 0x364   : > { %5605 = vmatprep.subr.bf16.mxu1 %v9572_v58  ;;  %v1855_v58 = vrot.slane %v11609_v31, %v11715_v60 }
 0x365   : > { %3075 = vmatmul.mubr.bf16.gmra.mrb[104].mxu1 %v13993_v33  ;;  %v11718_v33 = vsub.s32 3, %v11592_v41 }
 0x366   : > { %3084 = vmatprep.mubr.bf16.mxu1 %v13994_v19  ;;  %v9574_v19 = vcombine.high %v11692_v53, %v11700_v54 }
 0x367   : > { %v11694_v27 = vpop.f32.mrb[220].mxu0  ;;  %14006 = vst [vmem:[#allocation56_spill] sm:$0xff] %v11718_v33 }
 0x368   : > { %13998 = vst [vmem:[#allocation145_spill] sm:$0xff] %v11694_v27  ;;  %v11702_v57 = vpop.f32.mrb[221].mxu0  ;;  %6311 = vmatprep.subr.bf16.mxu0 %v9574_v19 }
 0x369   : > { %14000 = vst [vmem:[#allocation147_spill] sm:$0xff] %v11702_v57  ;;  %v11708_v50 = vpop.f32.mrb[222].mxu0  ;;  %v10813_v57 = vmov 1966171168  }
 0x36a   : > { %14001 = vst [vmem:[#allocation148_spill] sm:$0xff] %v11708_v50  ;;  %v11710_v27 = vpop.f32.mrb[223].mxu0  ;;  %v2275_v10 = vunpack.c.l.s4 %v10813_v57 }
 0x36b   : > { %14002 = vst [vmem:[#allocation149_spill] sm:$0xff] %v11710_v27  ;;  %v14008_v27 = vld [vmem:[#allocation58_spill] sm:$0xff] }
 0x36c   : > { %v2276_v50 = vunpack.c.0.s8 %v2275_v10  ;;  %v14010_v10 = vcombine.low %v11624_v12, %v11628_v9 }
 0x36d   : > { %3085 = vmatmul.mubr.bf16.gmra.mrb[108].mxu1 %v14003_v36  ;;  %v1859_v36 = vrot.slane %v11609_v31, %v11718_v33 }
 0x36e   : > { %3094 = vmatprep.mubr.bf16.mxu1 %v14004_v4  ;;  %v2279_v16 = vsub.s32 %v2276_v50, %v11592_v41 }
 0x370   : > { %v2280_v48 = vrot.slane %v14010_v10, %v2279_v16 }
 0x375   : > { %3095 = vmatmul.mubr.bf16.gmra.mrb[112].mxu1 %v14007_v37  ;;  %v14009_v37 = vld [vmem:[#allocation57_spill] sm:$0xff] }
 0x376   : > { %3104 = vmatprep.mubr.bf16.mxu1 %v14008_v27  ;;  %v14011_v27 = vcombine.high %v11624_v12, %v11628_v9  ;;  %v14017_v12 = vld [vmem:[#allocation59_spill] sm:$0xff]  ;;  %v11744_v9 = vld [vmem:[#allocation13 + $0x448] sm:$0xff] }
 0x377   : > { %14018 = vst [vmem:[#allocation59_spill] sm:$0xff] %v11744_v9 }
 0x378   : > { %v2259_v4 = vpop.f32.mrb[36].mxu1  ;;  %v2287_v31 = vrot.slane %v14011_v27, %v2279_v16 }
 0x379   : > { %v2260_v19 = vadd.f32 %v2259_v4, %v1855_v58  ;;  %v2261_v18 = vpop.f32.mrb[37].mxu1  ;;  %v14012_v4 = vld [vmem:[#allocation60_spill] sm:$0xff] }
 0x37a   : > { %v2262_v57 = vadd.f32 %v2261_v18, %v1859_v36  ;;  %v2263_v61 = vpop.f32.mrb[38].mxu1 }
 0x37b   : > { %v2264_v54 = vpop.f32.mrb[39].mxu1 }
 0x37c   : > { %v2272_v53 = vcombine.low %v2260_v19, %v2262_v57  ;;  %v2273_v40 = vcombine.high %v2260_v19, %v2262_v57  ;;  %v11735_v57 = vld [vmem:[#allocation13 + $0x440] sm:$0xff] }
 0x37d   : > { %3105 = vmatmul.mubr.bf16.gmra.mrb[116].mxu1 %v14009_v37  ;;  %14013 = vst [vmem:[#allocation55_spill] sm:$0xff] %v11735_v57  ;;  %v11737_v37 = vld [vmem:[#allocation13 + $0x460] sm:$0xff] }
 0x37e   : > { %v2294_v2 = vrot.slane %v2272_v53, %v2279_v16  ;;  %v2301_v58 = vrot.slane %v2273_v40, %v2279_v16  ;;  %3114 = vmatprep.mubr.bf16.mxu1 %v14012_v4  ;;  %14014 = vst [vmem:[#allocation58_spill] sm:$0xff] %v11737_v37  ;;  %v11746_v40 = vld [vmem:[#allocation13 + $0x468] sm:$0xff] }
 0x37f   : > { %14019 = vst [vmem:[#allocation150_spill] sm:$0xff] %v11746_v40  ;;  %v14020_v53 = vld [vmem:[#allocation62_spill] sm:$0xff] }
 0x380   : > { %v2302_v50 = vcombine.low %v2280_v48, %v2294_v2  ;;  %v2303_v18 = vcombine.high %v2280_v48, %v2294_v2  ;;  %v2304_v61 = vcombine.low %v2287_v31, %v2301_v58  ;;  %v2305_v54 = vcombine.high %v2287_v31, %v2301_v58 }
 0x382   : > { %v2312_v36 = vrot.slane %v2302_v50, %v2279_v16  ;;  %v2326_v19 = vrot.slane %v2303_v18, %v2279_v16  ;;  %v11739_v41 = vrot.slane %v2304_v61, %v2279_v16  ;;  %v11741_v10 = vrot.slane %v2305_v54, %v2279_v16 }
 0x384   : > { %14015 = vst [vmem:[#allocation57_spill] sm:$0xff] %v11739_v41  ;;  %14016 = vst [vmem:[#allocation60_spill] sm:$0xff] %v11741_v10  ;;  %v11749_v48 = vcombine.high %v2312_v36, %v2312_v36  ;;  %v11753_v27 = vcombine.high %v2326_v19, %v2326_v19  ;;  %v11763_v4 = vcombine.high %v11739_v41, %v11739_v41 }
 0x385   : > { %3115 = vmatmul.mubr.bf16.gmra.mrb[120].mxu1 %v14017_v12  ;;  %v11767_v50 = vcombine.high %v11741_v10, %v11741_v10  ;;  %v11770_v18 = vrot.slane %v2312_v36, %v11602_v45  ;;  %v11773_v61 = vrot.slane %v2312_v36, %v11612_v22  ;;  %v2349_v54 = vrot.slane %v2312_v36, %v11715_v60 }
 0x386   : > { %3124 = vmatprep.mubr.bf16.mxu1 %v14020_v53  ;;  %14021 = vst [vmem:[#allocation62_spill] sm:$0xff] %v11749_v48  ;;  %14022 = vst [vmem:[#allocation151_spill] sm:$0xff] %v11753_v27  ;;  %v2353_v12 = vrot.slane %v2312_v36, %v11718_v33  ;;  %v11778_v53 = vrot.slane %v2326_v19, %v11602_v45  ;;  %v11781_v2 = vrot.slane %v2326_v19, %v11612_v22 }
 0x387   : > { %14023 = vst [vmem:[#allocation152_spill] sm:$0xff] %v11773_v61  ;;  %v11784_v31 = vrot.slane %v2326_v19, %v11715_v60  ;;  %v11787_v16 = vrot.slane %v2326_v19, %v11718_v33  ;;  %v11791_v58 = vrot.slane %v11749_v48, %v11602_v45  ;;  %v11795_v37 = vrot.slane %v11749_v48, %v11715_v60 }
 0x388   : > { %14024 = vst [vmem:[#allocation153_spill] sm:$0xff] %v11778_v53  ;;  %14025 = vst [vmem:[#allocation154_spill] sm:$0xff] %v11781_v2  ;;  %v11799_v36 = vrot.slane %v11749_v48, %v11718_v33  ;;  %v11803_v22 = vrot.slane %v11753_v27, %v11715_v60  ;;  %v11807_v19 = vrot.slane %v11753_v27, %v11718_v33  ;;  %v14031_v2 = vld [vmem:[#allocation61_spill] sm:$0xff]  ;;  %v14032_v53 = vld [vmem:[#allocation64_spill] sm:$0xff] }
 0x389   : > { %14026 = vst [vmem:[#allocation155_spill] sm:$0xff] %v11791_v58  ;;  %v11811_v45 = vrot.slane %v11739_v41, %v11715_v60  ;;  %v11815_v58 = vrot.slane %v11739_v41, %v11718_v33  ;;  %v11819_v48 = vrot.slane %v11741_v10, %v11715_v60  ;;  %v11823_v57 = vrot.slane %v11741_v10, %v11718_v33 }
 0x38a   : > { %v11827_v27 = vrot.slane %v11763_v4, %v11715_v60  ;;  %v3272_v40 = vadd.f32 %v11372_v20, %v2353_v12  ;;  %v3276_v41 = vadd.f32 %v11376_v21, %v2353_v12  ;;  %v3270_v9 = vadd.f32 %v11370_v26, %v2349_v54 }
 0x38b   : > { %14027 = vst [vmem:[#allocation156_spill] sm:$0xff] %v11811_v45  ;;  %14028 = vst [vmem:[#allocation157_spill] sm:$0xff] %v11819_v48  ;;  %v3274_v48 = vadd.f32 %v11374_v15, %v2349_v54  ;;  %v3282_v52 = vadd.f32 %v11382_v44, %v2353_v12  ;;  %v3286_v10 = vadd.f32 %v11386_v38, %v2353_v12 }
 0x38c   : > { %14029 = vst [vmem:[#allocation158_spill] sm:$0xff] %v11823_v57  ;;  %14030 = vst [vmem:[#allocation159_spill] sm:$0xff] %v11827_v27  ;;  %v3280_v57 = vadd.f32 %v11380_v42, %v2349_v54  ;;  %v3284_v27 = vadd.f32 %v11384_v30, %v2349_v54  ;;  %v3591_v14 = vmax.f32 %v3272_v40, 0.0  ;;  %v3590_v6 = vmax.f32 %v3270_v9, 0.0  ;;  %v11857_v40 = vld [vmem:[#allocation13 + $0x480] sm:$0xff] }
 0x38d   : > { %3125 = vmatmul.mubr.bf16.gmra.mrb[124].mxu1 %v14031_v2  ;;  %v3595_v2 = vmax.f32 %v3276_v41, 0.0  ;;  %v3599_v29 = vmax.f32 %v3282_v52, 0.0  ;;  %v3603_v20 = vmax.f32 %v3286_v10, 0.0  ;;  %v3292_v15 = vadd.f32 %v11392_v24, %v2353_v12 }
 0x38e   : > { %3134 = vmatprep.mubr.bf16.mxu1 %v14032_v53  ;;  %v3594_v53 = vmax.f32 %v3274_v48, 0.0  ;;  %v3598_v45 = vmax.f32 %v3280_v57, 0.0  ;;  %v3602_v21 = vmax.f32 %v3284_v27, 0.0  ;;  %v3296_v44 = vadd.f32 %v11396_v8, %v2353_v12 }
 0x38f   : > { %v11839_v61 = vpack.c.bf16 %v3595_v2, %v3591_v14  ;;  %v11845_v38 = vpack.c.bf16 %v3603_v20, %v3599_v29  ;;  %v3290_v30 = vadd.f32 %v11390_v63, %v2349_v54  ;;  %v3294_v41 = vadd.f32 %v11394_v59, %v2349_v54  ;;  %v11859_v63 = vld [vmem:[#allocation13 + $0x4a0] sm:$0xff] }
 0x390   : > { %v11841_v26 = vpack.c.bf16 %v3594_v53, %v3590_v6  ;;  %v11847_v42 = vpack.c.bf16 %v3602_v21, %v3598_v45  ;;  %v3607_v52 = vmax.f32 %v3292_v15, 0.0  ;;  %v3611_v10 = vmax.f32 %v3296_v44, 0.0  ;;  %v14036_v6 = vld [vmem:[#allocation63_spill] sm:$0xff]  ;;  %v14037_v45 = vld [vmem:[#allocation65_spill] sm:$0xff] }
 0x391   : > { %14034 = vst [vmem:[#allocation64_spill] sm:$0xff] %v11845_v38  ;;  %v3302_v57 = vadd.f32 %v11402_v56, %v2353_v12  ;;  %v3306_v14 = vadd.f32 %v11406_v11, %v2353_v12  ;;  %v3606_v9 = vmax.f32 %v3290_v30, 0.0  ;;  %v3610_v24 = vmax.f32 %v3294_v41, 0.0 }
 0x392   : > { %14033 = vst [vmem:[#allocation61_spill] sm:$0xff] %v11841_v26  ;;  %14035 = vst [vmem:[#allocation160_spill] sm:$0xff] %v11847_v42  ;;  %v3300_v8 = vadd.f32 %v11400_v5, %v2349_v54  ;;  %v3304_v29 = vadd.f32 %v11404_v28, %v2349_v54  ;;  %v11861_v59 = vpack.c.bf16 %v3611_v10, %v3607_v52 }
 0x393   : > { %v3615_v48 = vmax.f32 %v3302_v57, 0.0  ;;  %v3619_v56 = vmax.f32 %v3306_v14, 0.0  ;;  %v3312_v11 = vadd.f32 %v11412_v43, %v11787_v16  ;;  %v11865_v27 = vpack.c.bf16 %v3610_v24, %v3606_v9 }
 0x394   : > { %14038 = vst [vmem:[#allocation63_spill] sm:$0xff] %v11861_v59  ;;  %v3614_v12 = vmax.f32 %v3300_v8, 0.0  ;;  %v3618_v2 = vmax.f32 %v3304_v29, 0.0  ;;  %v3316_v5 = vadd.f32 %v11416_v55, %v11787_v16  ;;  %v11871_v28 = vrot.slane %v11763_v4, %v11718_v33 }
 0x395   : > { %3135 = vmatmul.mubr.bf16.gmra.mrb[128].mxu1 %v14036_v6  ;;  %14039 = vst [vmem:[#allocation65_spill] sm:$0xff] %v11865_v27  ;;  %v11875_v54 = vrot.slane %v11767_v50, %v11715_v60  ;;  %v11877_v53 = vpack.c.bf16 %v3619_v56, %v3615_v48  ;;  %v3623_v20 = vmax.f32 %v3312_v11, 0.0  ;;  %v11881_v43 = vrot.slane %v11767_v50, %v11718_v33 }
 0x396   : > { %3144 = vmatprep.mubr.bf16.mxu1 %v14037_v45  ;;  %v11885_v15 = vpack.c.bf16 %v3618_v2, %v3614_v12  ;;  %v3627_v55 = vmax.f32 %v3316_v5, 0.0  ;;  %v3310_v44 = vadd.f32 %v11410_v46, %v11784_v31  ;;  %v3314_v30 = vadd.f32 %v11414_v51, %v11784_v31  ;;  %v14047_v2 = vld [vmem:[#allocation66_spill] sm:$0xff] }
 0x397   : > { %14040 = vst [vmem:[#allocation161_spill] sm:$0xff] %v11877_v53  ;;  %v3322_v41 = vadd.f32 %v11421_v13, %v11787_v16  ;;  %v3326_v52 = vadd.f32 %v11425_v23, %v11787_v16  ;;  %v3320_v57 = vadd.f32 %v11419_v34, %v11784_v31  ;;  %v3324_v14 = vadd.f32 %v11423_v47, %v11784_v31 }
 0x398   : > { %14041 = vst [vmem:[#allocation162_spill] sm:$0xff] %v11885_v15  ;;  %v11895_v10 = vpack.c.bf16 %v3627_v55, %v3623_v20  ;;  %v3332_v46 = vadd.f32 %v11429_v3, %v11787_v16  ;;  %v3622_v6 = vmax.f32 %v3310_v44, 0.0  ;;  %v3626_v9 = vmax.f32 %v3314_v30, 0.0  ;;  %v14048_v20 = vld [vmem:[#allocation67_spill] sm:$0xff]  ;;  %v14050_v30 = vld [vmem:[#allocation70_spill] sm:$0xff] }
 0x399   : > { %v3631_v51 = vmax.f32 %v3322_v41, 0.0  ;;  %v3635_v24 = vmax.f32 %v3326_v52, 0.0  ;;  %v3630_v13 = vmax.f32 %v3320_v57, 0.0  ;;  %v3634_v8 = vmax.f32 %v3324_v14, 0.0 }
 0x39a   : > { %14042 = vst [vmem:[#allocation163_spill] sm:$0xff] %v11895_v10  ;;  %v3336_v23 = vadd.f32 %v11433_v62, %v11787_v16  ;;  %v3639_v29 = vmax.f32 %v3332_v46, 0.0  ;;  %v11907_v34 = vpack.c.bf16 %v3626_v9, %v3622_v6  ;;  %v3330_v3 = vadd.f32 %v11427_v0, %v11784_v31  ;;  %v14046_v62 = vld [vmem:[#allocation68_spill] sm:$0xff]  ;;  %v14054_v9 = vld [vmem:[#allocation69_spill] sm:$0xff] }
 0x39b   : > { %v11909_v47 = vpack.c.bf16 %v3635_v24, %v3631_v51  ;;  %v3334_v45 = vadd.f32 %v11431_v35, %v11784_v31  ;;  %v11915_v48 = vpack.c.bf16 %v3634_v8, %v3630_v13  ;;  %v3342_v56 = vadd.f32 %v11439_v1, %v11787_v16  ;;  %v14055_v51 = vld [vmem:[#allocation71_spill] sm:$0xff] }
 0x39c   : > { %14043 = vst [vmem:[#allocation164_spill] sm:$0xff] %v11907_v34  ;;  %v3346_v11 = vadd.f32 %v14046_v62, %v11787_v16  ;;  %v3340_v5 = vadd.f32 %v14047_v2, %v11784_v31  ;;  %v3344_v0 = vadd.f32 %v14048_v20, %v11784_v31  ;;  %v3352_v41 = vadd.f32 %v14050_v30, %v11799_v36  ;;  %v14052_v16 = vld [vmem:[#allocation72_spill] sm:$0xff]  ;;  %v11948_v62 = vld [vmem:[#allocation13 + $0x4a8] sm:$0xff] }
 0x39d   : > { %3145 = vmatmul.mubr.bf16.gmra.mrb[132].mxu1 %v11346_v17  ;;  %14044 = vst [vmem:[#allocation165_spill] sm:$0xff] %v11909_v47  ;;  %14045 = vst [vmem:[#allocation166_spill] sm:$0xff] %v11915_v48  ;;  %v3643_v17 = vmax.f32 %v3336_v23, 0.0  ;;  %v3642_v12 = vmax.f32 %v3334_v45, 0.0  ;;  %v3647_v35 = vmax.f32 %v3342_v56, 0.0  ;;  %v3356_v14 = vadd.f32 %v14052_v16, %v11799_v36  ;;  %v14057_v23 = vld [vmem:[#allocation74_spill] sm:$0xff] }
 0x39e   : > { %3154 = vmatprep.mubr.bf16.mxu1 %v11137_v32  ;;  %v3638_v32 = vmax.f32 %v3330_v3, 0.0  ;;  %v3651_v44 = vmax.f32 %v3346_v11, 0.0  ;;  %v3646_v1 = vmax.f32 %v3340_v5, 0.0  ;;  %v3650_v57 = vmax.f32 %v3344_v0, 0.0  ;;  %v14058_v3 = vld [vmem:[#allocation76_spill] sm:$0xff]  ;;  %v11946_v56 = vld [vmem:[#allocation13 + $0x488] sm:$0xff] }
 0x39f   : > { %v11925_v55 = vpack.c.bf16 %v3643_v17, %v3639_v29  ;;  %v3655_v6 = vmax.f32 %v3352_v41, 0.0  ;;  %v3350_v31 = vadd.f32 %v14054_v9, %v11795_v37  ;;  %v3354_v24 = vadd.f32 %v14055_v51, %v11795_v37  ;;  %v14059_v17 = vld [vmem:[#allocation21_spill] sm:$0xff]  ;;  %v14061_v5 = vld [vmem:[#allocation75_spill] sm:$0xff]  ;;  %v14066_v51 = vld [vmem:[#allocation80_spill] sm:$0xff] }
 0x3a0   : > { %v11929_v52 = vpack.c.bf16 %v3642_v12, %v3638_v32  ;;  %v11933_v46 = vpack.c.bf16 %v3651_v44, %v3647_v35  ;;  %v11939_v13 = vpack.c.bf16 %v3650_v57, %v3646_v1  ;;  %v3659_v8 = vmax.f32 %v3356_v14, 0.0  ;;  %v14060_v12 = vld [vmem:[#allocation73_spill] sm:$0xff]  ;;  %v14062_v0 = vld [vmem:[#allocation23_spill] sm:$0xff]  ;;  %v14064_v57 = vld [vmem:[#allocation78_spill] sm:$0xff] }
 0x3a1   : > { %14049 = vst [vmem:[#allocation68_spill] sm:$0xff] %v11925_v55  ;;  %v3362_v29 = vadd.f32 %v14057_v23, %v11799_v36  ;;  %v3366_v45 = vadd.f32 %v14058_v3, %v11799_v36  ;;  %v3654_v11 = vmax.f32 %v3350_v31, 0.0  ;;  %v3658_v32 = vmax.f32 %v3354_v24, 0.0  ;;  %v11955_v35 = vld [vmem:[#allocation13 + $0x4c0] sm:$0xff]  ;;  %v14077_v3 = vld [vmem:[#allocation22_spill] sm:$0xff] }
 0x3a2   : > { %14051 = vst [vmem:[#allocation66_spill] sm:$0xff] %v11929_v52  ;;  %14053 = vst [vmem:[#allocation67_spill] sm:$0xff] %v11933_v46  ;;  %v3360_v2 = vadd.f32 %v14060_v12, %v11795_v37  ;;  %v3364_v20 = vadd.f32 %v14061_v5, %v11795_v37  ;;  %v11957_v44 = vld [vmem:[#allocation13 + $0x4e0] sm:$0xff]  ;;  %v11959_v30 = vpack.c.bf16 %v3659_v8, %v3655_v6  ;;  %v14156_v46 = vld [vmem:[#allocation32_spill] sm:$0xff] }
 0x3a3   : > { %14056 = vst [vmem:[#allocation70_spill] sm:$0xff] %v11939_v13  ;;  %v3663_v41 = vmax.f32 %v3362_v29, 0.0  ;;  %v3667_v1 = vmax.f32 %v3366_v45, 0.0  ;;  %v3372_v16 = vadd.f32 %v14064_v57, %v11799_v36  ;;  %v11963_v14 = vpack.c.bf16 %v3658_v32, %v3654_v11  ;;  %v14069_v32 = vld [vmem:[#allocation77_spill] sm:$0xff] }
 0x3a4   : > { %14063 = vst [vmem:[#allocation72_spill] sm:$0xff] %v11959_v30  ;;  %v3662_v9 = vmax.f32 %v3360_v2, 0.0  ;;  %v3666_v31 = vmax.f32 %v3364_v20, 0.0  ;;  %v3376_v24 = vadd.f32 %v14066_v51, %v11799_v36  ;;  %v3370_v12 = vadd.f32 %v14069_v32, %v11795_v37  ;;  %v14070_v2 = vld [vmem:[#allocation79_spill] sm:$0xff]  ;;  %v14071_v20 = vld [vmem:[#allocation82_spill] sm:$0xff] }
 0x3a5   : > { %3155 = vmatmul.mubr.bf16.gmra.mrb[136].mxu1 %v14059_v17  ;;  %14065 = vst [vmem:[#allocation69_spill] sm:$0xff] %v11963_v14  ;;  %v11971_v6 = vpack.c.bf16 %v3667_v1, %v3663_v41  ;;  %v3671_v8 = vmax.f32 %v3372_v16, 0.0  ;;  %v3374_v5 = vadd.f32 %v14070_v2, %v11795_v37  ;;  %v14072_v41 = vld [vmem:[#allocation84_spill] sm:$0xff]  ;;  %v14074_v16 = vld [vmem:[#allocation81_spill] sm:$0xff] }
 0x3a6   : > { %3164 = vmatprep.mubr.bf16.mxu1 %v14062_v0  ;;  %v11977_v17 = vpack.c.bf16 %v3666_v31, %v3662_v9  ;;  %v3675_v11 = vmax.f32 %v3376_v24, 0.0  ;;  %v3382_v0 = vadd.f32 %v14071_v20, %v11799_v36  ;;  %v3386_v1 = vadd.f32 %v14072_v41, %v11799_v36  ;;  %v14075_v9 = vld [vmem:[#allocation83_spill] sm:$0xff]  ;;  %v14076_v24 = vld [vmem:[#allocation86_spill] sm:$0xff]  ;;  %v14078_v36 = vld [vmem:[#allocation88_spill] sm:$0xff] }
 0x3a7   : > { %14067 = vst [vmem:[#allocation71_spill] sm:$0xff] %v11971_v6  ;;  %v3380_v51 = vadd.f32 %v14074_v16, %v11795_v37  ;;  %v3384_v31 = vadd.f32 %v14075_v9, %v11795_v37  ;;  %v3392_v32 = vadd.f32 %v14076_v24, %v11807_v19  ;;  %v3670_v45 = vmax.f32 %v3370_v12, 0.0  ;;  %v14079_v41 = vld [vmem:[#allocation24_spill] sm:$0xff]  ;;  %v14082_v9 = vld [vmem:[#allocation85_spill] sm:$0xff] }
 0x3a8   : > { %14068 = vst [vmem:[#allocation74_spill] sm:$0xff] %v11977_v17  ;;  %v11987_v57 = vpack.c.bf16 %v3675_v11, %v3671_v8  ;;  %v3674_v21 = vmax.f32 %v3374_v5, 0.0  ;;  %v3679_v2 = vmax.f32 %v3382_v0, 0.0  ;;  %v3683_v23 = vmax.f32 %v3386_v1, 0.0  ;;  %v14083_v5 = vld [vmem:[#allocation87_spill] sm:$0xff]  ;;  %v14086_v24 = vld [vmem:[#allocation92_spill] sm:$0xff] }
 0x3a9   : > { %v3678_v20 = vmax.f32 %v3380_v51, 0.0  ;;  %v3682_v29 = vmax.f32 %v3384_v31, 0.0  ;;  %v3396_v8 = vadd.f32 %v14078_v36, %v11807_v19  ;;  %v3687_v11 = vmax.f32 %v3392_v32, 0.0  ;;  %v14085_v51 = vld [vmem:[#allocation90_spill] sm:$0xff] }
 0x3aa   : > { %14073 = vst [vmem:[#allocation76_spill] sm:$0xff] %v11987_v57  ;;  %v11999_v16 = vpack.c.bf16 %v3674_v21, %v3670_v45  ;;  %v12001_v37 = vpack.c.bf16 %v3683_v23, %v3679_v2  ;;  %v3390_v12 = vadd.f32 %v14082_v9, %v11803_v22  ;;  %v3394_v0 = vadd.f32 %v14083_v5, %v11803_v22  ;;  %v14087_v23 = vld [vmem:[#allocation89_spill] sm:$0xff]  ;;  %v14088_v2 = vld [vmem:[#allocation91_spill] sm:$0xff]  ;;  %v12128_v17 = vld [vmem:[#allocation13 + $0x548] sm:$0xff] }
 0x3ab   : > { %v12007_v1 = vpack.c.bf16 %v3682_v29, %v3678_v20  ;;  %v3402_v31 = vadd.f32 %v14085_v51, %v11807_v19  ;;  %v3406_v32 = vadd.f32 %v14086_v24, %v11807_v19  ;;  %v3400_v45 = vadd.f32 %v14087_v23, %v11803_v22  ;;  %v14090_v20 = vld [vmem:[#allocation94_spill] sm:$0xff] }
 0x3ac   : > { %14080 = vst [vmem:[#allocation21_spill] sm:$0xff] %v11999_v16  ;;  %14081 = vst [vmem:[#allocation73_spill] sm:$0xff] %v12001_v37  ;;  %v3686_v36 = vmax.f32 %v3390_v12, 0.0  ;;  %v3690_v21 = vmax.f32 %v3394_v0, 0.0  ;;  %v14092_v12 = vld [vmem:[#allocation96_spill] sm:$0xff] }
 0x3ad   : > { %3165 = vmatmul.mubr.bf16.gmra.mrb[140].mxu1 %v14077_v3  ;;  %14084 = vst [vmem:[#allocation75_spill] sm:$0xff] %v12007_v1  ;;  %v3691_v3 = vmax.f32 %v3396_v8, 0.0  ;;  %v3695_v5 = vmax.f32 %v3402_v31, 0.0  ;;  %v3699_v29 = vmax.f32 %v3406_v32, 0.0  ;;  %v3412_v8 = vadd.f32 %v14090_v20, %v11807_v19  ;;  %v14094_v1 = vld [vmem:[#allocation93_spill] sm:$0xff]  ;;  %v14113_v37 = vld [vmem:[#allocation28_spill] sm:$0xff] }
 0x3ae   : > { %3174 = vmatprep.mubr.bf16.mxu1 %v14079_v41  ;;  %v3404_v41 = vadd.f32 %v14088_v2, %v11803_v22  ;;  %v12021_v33 = vpack.c.bf16 %v3690_v21, %v3686_v36  ;;  %v3694_v51 = vmax.f32 %v3400_v45, 0.0  ;;  %v3416_v0 = vadd.f32 %v14092_v12, %v11807_v19  ;;  %v14097_v45 = vld [vmem:[#allocation25_spill] sm:$0xff]  ;;  %v12049_v12 = vld [vmem:[#allocation13 + $0x528] sm:$0xff] }
 0x3af   : > { %v12017_v9 = vpack.c.bf16 %v3691_v3, %v3687_v11  ;;  %v12025_v24 = vpack.c.bf16 %v3699_v29, %v3695_v5  ;;  %v3703_v23 = vmax.f32 %v3412_v8, 0.0  ;;  %v3410_v2 = vadd.f32 %v14094_v1, %v11803_v22  ;;  %v14095_v11 = vld [vmem:[#allocation95_spill] sm:$0xff]  ;;  %v12040_v5 = vld [vmem:[#allocation13 + $0x4e8] sm:$0xff] }
 0x3b0   : > { %14091 = vst [vmem:[#allocation78_spill] sm:$0xff] %v12021_v33  ;;  %v3698_v60 = vmax.f32 %v3404_v41, 0.0  ;;  %v3414_v3 = vadd.f32 %v14095_v11, %v11803_v22  ;;  %v3707_v32 = vmax.f32 %v3416_v0, 0.0  ;;  %v3422_v36 = vadd.f32 %v11505_v49, %v11807_v19  ;;  %v12038_v41 = vld [vmem:[#allocation13 + $0x4c8] sm:$0xff]  ;;  %v14112_v33 = vld [vmem:[#allocation27_spill] sm:$0xff] }
 0x3b1   : > { %14089 = vst [vmem:[#allocation23_spill] sm:$0xff] %v12017_v9  ;;  %14093 = vst [vmem:[#allocation80_spill] sm:$0xff] %v12025_v24  ;;  %v3426_v21 = vadd.f32 %v11509_v25, %v11807_v19  ;;  %v3702_v29 = vmax.f32 %v3410_v2, 0.0  ;;  %v3420_v20 = vadd.f32 %v11503_v39, %v11803_v22  ;;  %v12047_v49 = vld [vmem:[#allocation13 + $0x508] sm:$0xff]  ;;  %v3432_v2 = vadd.f32 %v11515_v7, %v11815_v58 }
 0x3b2   : > { %v12031_v31 = vpack.c.bf16 %v3698_v60, %v3694_v51  ;;  %v3706_v1 = vmax.f32 %v3414_v3, 0.0  ;;  %v14098_v60 = vld [vmem:[#allocation97_spill] sm:$0xff]  ;;  %v14099_v51 = vld [vmem:[#allocation26_spill] sm:$0xff]  ;;  %v12051_v25 = vpack.c.bf16 %v3707_v32, %v3703_v23  ;;  %v3711_v19 = vmax.f32 %v3422_v36, 0.0 }
 0x3b3   : > { %v3424_v8 = vadd.f32 %v14098_v60, %v11803_v22  ;;  %v3715_v0 = vmax.f32 %v3426_v21, 0.0  ;;  %v3710_v3 = vmax.f32 %v3420_v20, 0.0  ;;  %v3719_v36 = vmax.f32 %v3432_v2, 0.0  ;;  %v14107_v23 = vld [vmem:[#allocation98_spill] sm:$0xff] }
 0x3b4   : > { %14096 = vst [vmem:[#allocation77_spill] sm:$0xff] %v12031_v31  ;;  %14100 = vst [vmem:[#allocation79_spill] sm:$0xff] %v12051_v25  ;;  %v12055_v11 = vpack.c.bf16 %v3706_v1, %v3702_v29  ;;  %v14106_v25 = vld [vmem:[#allocation156_spill] sm:$0xff]  ;;  %v14109_v29 = vld [vmem:[#allocation102_spill] sm:$0xff] }
 0x3b5   : > { %3175 = vmatmul.mubr.bf16.gmra.mrb[144].mxu1 %v14097_v45  ;;  %v3714_v39 = vmax.f32 %v3424_v8, 0.0  ;;  %v14102_v45 = vld [vmem:[#allocation100_spill] sm:$0xff]  ;;  %v12063_v32 = vpack.c.bf16 %v3715_v0, %v3711_v19  ;;  %v3430_v19 = vadd.f32 %v14107_v23, %v14106_v25  ;;  %v14108_v0 = vld [vmem:[#allocation99_spill] sm:$0xff]  ;;  %v3442_v24 = vadd.f32 %v14109_v29, %v11815_v58  ;;  %v14114_v29 = vld [vmem:[#allocation101_spill] sm:$0xff] }
 0x3b6   : > { %3184 = vmatprep.mubr.bf16.mxu1 %v14099_v51  ;;  %14101 = vst [vmem:[#allocation82_spill] sm:$0xff] %v12055_v11  ;;  %v3436_v22 = vadd.f32 %v14102_v45, %v11815_v58  ;;  %v14105_v8 = vld [vmem:[#allocation152_spill] sm:$0xff]  ;;  %v3434_v2 = vadd.f32 %v14108_v0, %v14106_v25  ;;  %v3440_v16 = vadd.f32 %v14114_v29, %v14106_v25 }
 0x3b7   : > { %14103 = vst [vmem:[#allocation84_spill] sm:$0xff] %v12063_v32  ;;  %v12070_v20 = vpack.c.bf16 %v3714_v39, %v3710_v3  ;;  %v14110_v3 = vld [vmem:[#allocation104_spill] sm:$0xff] }
 0x3b8   : > { %v2916_v60 = vpop.f32.mrb[40].mxu1  ;;  %v3723_v11 = vmax.f32 %v3436_v22, 0.0  ;;  %v3446_v39 = vadd.f32 %v14110_v3, %v11815_v58  ;;  %v3722_v0 = vmax.f32 %v3434_v2, 0.0  ;;  %v14115_v3 = vld [vmem:[#allocation103_spill] sm:$0xff] }
 0x3b9   : > { %v2917_v21 = vadd.f32 %v2916_v60, %v11770_v18  ;;  %v2918_v7 = vpop.f32.mrb[41].mxu1  ;;  %14104 = vst [vmem:[#allocation81_spill] sm:$0xff] %v12070_v20  ;;  %v3718_v20 = vmax.f32 %v3430_v19, 0.0 }
 0x3ba   : > { %v2919_v45 = vadd.f32 %v2918_v7, %v14105_v8  ;;  %v2920_v51 = vpop.f32.mrb[42].mxu1  ;;  %v12083_v22 = vpack.c.bf16 %v3723_v11, %v3719_v36  ;;  %v3731_v9 = vmax.f32 %v3446_v39, 0.0  ;;  %v3726_v39 = vmax.f32 %v3440_v16, 0.0  ;;  %v14125_v16 = vld [vmem:[#allocation110_spill] sm:$0xff] }
 0x3bb   : > { %v3588_v60 = vmax.f32 %v2917_v21, 0.0  ;;  %v2921_v32 = vadd.f32 %v2920_v51, %v11770_v18  ;;  %v2922_v31 = vpop.f32.mrb[43].mxu1  ;;  %v3727_v21 = vmax.f32 %v3442_v24, 0.0  ;;  %v14120_v24 = vld [vmem:[#allocation108_spill] sm:$0xff] }
 0x3bc   : > { %v3589_v1 = vmax.f32 %v2919_v45, 0.0  ;;  %v2923_v7 = vadd.f32 %v2922_v31, %v14105_v8  ;;  %14111 = vst [vmem:[#allocation83_spill] sm:$0xff] %v12083_v22  ;;  %v3444_v45 = vadd.f32 %v14115_v3, %v14106_v25  ;;  %v14116_v31 = vld [vmem:[#allocation106_spill] sm:$0xff]  ;;  %v3456_v19 = vadd.f32 %v14120_v24, %v11815_v58 }
 0x3bd   : > { %v3592_v23 = vmax.f32 %v2921_v32, 0.0  ;;  %3185 = vmatmul.mubr.bf16.gmra.mrb[148].mxu1 %v14112_v33  ;;  %v3452_v11 = vadd.f32 %v14116_v31, %v11815_v58  ;;  %v12095_v32 = vpack.c.bf16 %v3722_v0, %v3718_v20  ;;  %v12097_v33 = vpack.c.bf16 %v3731_v9, %v3727_v21  ;;  %v14123_v20 = vld [vmem:[#allocation107_spill] sm:$0xff] }
 0x3be   : > { %v3593_v51 = vmax.f32 %v2923_v7, 0.0  ;;  %3194 = vmatprep.mubr.bf16.mxu1 %v14113_v37  ;;  %v3730_v7 = vmax.f32 %v3444_v45, 0.0  ;;  %v3739_v57 = vmax.f32 %v3456_v19, 0.0  ;;  %v3454_v9 = vadd.f32 %v14123_v20, %v14106_v25  ;;  %v14126_v45 = vld [vmem:[#allocation112_spill] sm:$0xff] }
 0x3bf   : > { %v12093_v36 = vpack.c.bf16 %v3592_v23, %v3588_v60  ;;  %14118 = vst [vmem:[#allocation22_spill] sm:$0xff] %v12095_v32  ;;  %14119 = vst [vmem:[#allocation88_spill] sm:$0xff] %v12097_v33  ;;  %v3735_v29 = vmax.f32 %v3452_v11, 0.0  ;;  %v14122_v60 = vld [vmem:[#allocation105_spill] sm:$0xff]  ;;  %v3466_v31 = vadd.f32 %v14126_v45, %v11815_v58 }
 0x3c0   : > { %v2926_v2 = vpop.f32.mrb[44].mxu1  ;;  %v12101_v37 = vpack.c.bf16 %v3593_v51, %v3589_v1  ;;  %v3450_v23 = vadd.f32 %v14122_v60, %v14106_v25  ;;  %v12110_v1 = vpack.c.bf16 %v3730_v7, %v3726_v39  ;;  %v3462_v51 = vadd.f32 %v14125_v16, %v11815_v58  ;;  %v14128_v39 = vld [vmem:[#allocation144_spill] sm:$0xff]  ;;  %v14129_v7 = vld [vmem:[#allocation146_spill] sm:$0xff]  ;;  %v14131_v58 = vld [vmem:[#allocation29_spill] sm:$0xff] }
 0x3c1   : > { %14117 = vst [vmem:[#allocation86_spill] sm:$0xff] %v12093_v36  ;;  %v2927_v3 = vadd.f32 %v2926_v2, %v11770_v18  ;;  %v2928_v22 = vpop.f32.mrb[45].mxu1  ;;  %v12118_v2 = vpack.c.bf16 %v3739_v57, %v3735_v29  ;;  %v3738_v16 = vmax.f32 %v3454_v9, 0.0  ;;  %v12130_v57 = vld [vmem:[#allocation13 + $0x568] sm:$0xff]  ;;  %v3747_v29 = vmax.f32 %v3466_v31, 0.0 }
 0x3c2   : > { %14121 = vst [vmem:[#allocation24_spill] sm:$0xff] %v12101_v37  ;;  %v2929_v0 = vadd.f32 %v2928_v22, %v14105_v8  ;;  %v2930_v21 = vpop.f32.mrb[46].mxu1  ;;  %5990 = vmatprep.mubr.bf16.mxu0 %v12101_v37  ;;  %14124 = vst [vmem:[#allocation85_spill] sm:$0xff] %v12110_v1  ;;  %v3734_v22 = vmax.f32 %v3450_v23, 0.0  ;;  %v14130_v1 = vcombine.low %v14128_v39, %v14129_v7  ;;  %v3743_v33 = vmax.f32 %v3462_v51, 0.0  ;;  %v14135_v23 = vld [vmem:[#allocation109_spill] sm:$0xff] }
 0x3c3   : > { %v3596_v11 = vmax.f32 %v2927_v3, 0.0  ;;  %v2931_v24 = vadd.f32 %v2930_v21, %v11770_v18  ;;  %v2932_v19 = vpop.f32.mrb[47].mxu1  ;;  %5991 = vmatmul.mubr.bf16.vlgmr.msra.gmra.mrb[224].mxu0 %v12093_v36  ;;  %14127 = vst [vmem:[#allocation87_spill] sm:$0xff] %v12118_v2  ;;  %v14132_v3 = vld [vmem:[#allocation59_spill] sm:$0xff]  ;;  %v14133_v21 = vld [vmem:[#allocation150_spill] sm:$0xff] }
 0x3c4   : > { %v3597_v60 = vmax.f32 %v2929_v0, 0.0  ;;  %v2933_v20 = vadd.f32 %v2932_v19, %v14105_v8  ;;  %6312 = vmatpush1.bf16.msra.mxu0 %v14130_v1  ;;  %v14134_v45 = vcombine.high %v14132_v3, %v14133_v21  ;;  %v3460_v0 = vadd.f32 %v14135_v23, %v14106_v25  ;;  %v14136_v19 = vld [vmem:[#allocation111_spill] sm:$0xff]  ;;  %v14137_v51 = vld [vmem:[#allocation30_spill] sm:$0xff] }
 0x3c5   : > { %v3600_v32 = vmax.f32 %v2931_v24, 0.0  ;;  %3195 = vmatmul.mubr.bf16.gmra.mrb[152].mxu1 %v14131_v58  ;;  %v3464_v1 = vadd.f32 %v14136_v19, %v14106_v25  ;;  %v12137_v24 = vpack.c.bf16 %v3738_v16, %v3734_v22  ;;  %v14139_v39 = vld [vmem:[#allocation158_spill] sm:$0xff]  ;;  %v12147_v14 = vpack.c.bf16 %v3747_v29, %v3743_v33 }
 0x3c6   : > { %6313 = vmatprep.subr.bf16.mxu0 %v14134_v45  ;;  %v3601_v9 = vmax.f32 %v2933_v20, 0.0  ;;  %3204 = vmatprep.mubr.bf16.mxu1 %v14137_v51  ;;  %v14140_v7 = vld [vmem:[#allocation114_spill] sm:$0xff]  ;;  %v14141_v45 = vld [vmem:[#allocation116_spill] sm:$0xff]  ;;  %v3742_v23 = vmax.f32 %v3460_v0, 0.0  ;;  %v14144_v22 = vcombine.low %v14132_v3, %v14133_v21  ;;  %v9606_v16 = vcombine.high %v12047_v49, %v12049_v12 }
 0x3c7   : > { %14138 = vst [vmem:[#allocation90_spill] sm:$0xff] %v12137_v24  ;;  %v3472_v58 = vadd.f32 %v14140_v7, %v14139_v39  ;;  %v3476_v2 = vadd.f32 %v14141_v45, %v14139_v39  ;;  %v12143_v6 = vpack.c.bf16 %v3600_v32, %v3596_v11  ;;  %v12145_v31 = vld [vmem:[#allocation13 + $0x588] sm:$0xff]  ;;  %14142 = vst [vmem:[#allocation92_spill] sm:$0xff] %v12147_v14  ;;  %v3746_v30 = vmax.f32 %v3464_v1, 0.0  ;;  %v14147_v7 = vld [vmem:[#allocation157_spill] sm:$0xff] }
 0x3c8   : > { %v2936_v25 = vpop.f32.mrb[48].mxu1  ;;  %v12149_v20 = vpack.c.bf16 %v3601_v9, %v3597_v60  ;;  %6314 = vmatpush1.bf16.msra.mxu0 %v14144_v22  ;;  %v12158_v11 = vld [vmem:[#allocation13 + $0x5a8] sm:$0xff]  ;;  %v14145_v60 = vcombine.high %v11946_v56, %v11948_v62  ;;  %v14154_v14 = vld [vmem:[#allocation31_spill] sm:$0xff]  ;;  %v14155_v24 = vcombine.high %v12038_v41, %v12040_v5 }
 0x3c9   : > { %v3751_v19 = vmax.f32 %v3472_v58, 0.0  ;;  %v2937_v33 = vadd.f32 %v2936_v25, %v11770_v18  ;;  %v2938_v29 = vpop.f32.mrb[49].mxu1  ;;  %v12168_v0 = vpack.c.bf16 %v3746_v30, %v3742_v23  ;;  %v3755_v51 = vmax.f32 %v3476_v2, 0.0  ;;  %v14148_v58 = vld [vmem:[#allocation113_spill] sm:$0xff]  ;;  %v14149_v25 = vld [vmem:[#allocation115_spill] sm:$0xff]  ;;  %v14150_v30 = vld [vmem:[#allocation118_spill] sm:$0xff] }
 0x3ca   : > { %14143 = vst [vmem:[#allocation89_spill] sm:$0xff] %v12149_v20  ;;  %6315 = vmatprep.subr.bf16.mxu0 %v14145_v60  ;;  %v2939_v1 = vadd.f32 %v2938_v29, %v14105_v8  ;;  %v2940_v9 = vpop.f32.mrb[50].mxu1  ;;  %6000 = vmatprep.mubr.bf16.mxu0 %v12149_v20  ;;  %v3470_v45 = vadd.f32 %v14148_v58, %v14147_v7  ;;  %v14151_v29 = vld [vmem:[#allocation120_spill] sm:$0xff] }
 0x3cb   : > { %14146 = vst [vmem:[#allocation91_spill] sm:$0xff] %v12168_v0  ;;  %v3474_v22 = vadd.f32 %v14149_v25, %v14147_v7  ;;  %v3604_v60 = vmax.f32 %v2937_v33, 0.0  ;;  %v2941_v32 = vadd.f32 %v2940_v9, %v11770_v18  ;;  %v2942_v3 = vpop.f32.mrb[51].mxu1  ;;  %6001 = vmatmul.mubr.bf16.gmra.mrb[228].mxu0 %v12143_v6  ;;  %v3482_v23 = vadd.f32 %v14150_v30, %v14139_v39 }
 0x3cc   : > { %v3486_v21 = vadd.f32 %v14151_v29, %v14139_v39  ;;  %v3605_v0 = vmax.f32 %v2939_v1, 0.0  ;;  %v2943_v2 = vadd.f32 %v2942_v3, %v14105_v8  ;;  %v14152_v58 = vcombine.low %v11946_v56, %v11948_v62  ;;  %v14157_v3 = vld [vmem:[#allocation117_spill] sm:$0xff]  ;;  %v14158_v62 = vld [vmem:[#allocation119_spill] sm:$0xff] }
 0x3cd   : > { %v12186_v25 = vpack.c.bf16 %v3755_v51, %v3751_v19  ;;  %v3750_v33 = vmax.f32 %v3470_v45, 0.0  ;;  %v3608_v9 = vmax.f32 %v2941_v32, 0.0  ;;  %3205 = vmatmul.mubr.bf16.gmra.mrb[156].mxu1 %v14154_v14  ;;  %v3754_v30 = vmax.f32 %v3474_v22, 0.0  ;;  %v14159_v32 = vld [vmem:[#allocation122_spill] sm:$0xff] }
 0x3ce   : > { %6316 = vmatpush1.bf16.msra.mxu0 %v14152_v58  ;;  %v3759_v13 = vmax.f32 %v3482_v23, 0.0  ;;  %v3763_v29 = vmax.f32 %v3486_v21, 0.0  ;;  %v3609_v1 = vmax.f32 %v2943_v2, 0.0  ;;  %3214 = vmatprep.mubr.bf16.mxu1 %v14156_v46  ;;  %v3480_v56 = vadd.f32 %v14157_v3, %v14147_v7  ;;  %v14163_v21 = vld [vmem:[#allocation124_spill] sm:$0xff] }
 0x3cf   : > { %14153 = vst [vmem:[#allocation94_spill] sm:$0xff] %v12186_v25  ;;  %6317 = vmatprep.subr.bf16.mxu0 %v14155_v24  ;;  %v3484_v19 = vadd.f32 %v14158_v62, %v14147_v7  ;;  %v3492_v51 = vadd.f32 %v14159_v32, %v14139_v39  ;;  %v12199_v14 = vpack.c.bf16 %v3608_v9, %v3604_v60 }
 0x3d0   : > { %v12201_v45 = vpack.c.bf16 %v3754_v30, %v3750_v33  ;;  %v12203_v24 = vpack.c.bf16 %v3763_v29, %v3759_v13  ;;  %v3496_v22 = vadd.f32 %v14163_v21, %v14139_v39  ;;  %v2946_v23 = vpop.f32.mrb[52].mxu1  ;;  %v12207_v46 = vpack.c.bf16 %v3609_v1, %v3605_v0  ;;  %v14166_v13 = vld [vmem:[#allocation121_spill] sm:$0xff]  ;;  %v14167_v29 = vld [vmem:[#allocation123_spill] sm:$0xff] }
 0x3d1   : > { %14160 = vst [vmem:[#allocation96_spill] sm:$0xff] %v12199_v14  ;;  %v14165_v2 = vcombine.low %v12038_v41, %v12040_v5  ;;  %v3758_v58 = vmax.f32 %v3480_v56, 0.0  ;;  %v3762_v3 = vmax.f32 %v3484_v19, 0.0  ;;  %v3767_v62 = vmax.f32 %v3492_v51, 0.0  ;;  %v2948_v9 = vpop.f32.mrb[53].mxu1  ;;  %v14169_v5 = vld [vmem:[#allocation38_spill] sm:$0xff] }
 0x3d2   : > { %14161 = vst [vmem:[#allocation93_spill] sm:$0xff] %v12201_v45  ;;  %14162 = vst [vmem:[#allocation95_spill] sm:$0xff] %v12203_v24  ;;  %v2947_v60 = vadd.f32 %v2946_v23, %v11770_v18  ;;  %v3771_v33 = vmax.f32 %v3496_v22, 0.0  ;;  %v3490_v30 = vadd.f32 %v14166_v13, %v14147_v7  ;;  %v3494_v32 = vadd.f32 %v14167_v29, %v14147_v7  ;;  %v2950_v1 = vpop.f32.mrb[54].mxu1  ;;  %v14170_v19 = vld [vmem:[#allocation126_spill] sm:$0xff] }
 0x3d3   : > { %14164 = vst [vmem:[#allocation25_spill] sm:$0xff] %v12207_v46  ;;  %6318 = vmatpush1.bf16.msra.mxu0 %v14165_v2  ;;  %v2949_v0 = vadd.f32 %v2948_v9, %v14105_v8  ;;  %6010 = vmatprep.mubr.bf16.mxu0 %v12207_v46  ;;  %v12219_v41 = vpack.c.bf16 %v3762_v3, %v3758_v58  ;;  %v2952_v22 = vpop.f32.mrb[55].mxu1 }
 0x3d4   : > { %6319 = vmatprep.subr.bf16.mxu0 %v9606_v16  ;;  %v3502_v56 = vadd.f32 %v14169_v5, %v14139_v39  ;;  %v3506_v16 = vadd.f32 %v14170_v19, %v14139_v39  ;;  %v3612_v51 = vmax.f32 %v2947_v60, 0.0  ;;  %v2951_v21 = vadd.f32 %v2950_v1, %v11770_v18  ;;  %6011 = vmatmul.mubr.bf16.gmra.mrb[232].mxu0 %v12199_v14  ;;  %v14173_v39 = vld [vmem:[#allocation33_spill] sm:$0xff] }
 0x3d5   : > { %14168 = vst [vmem:[#allocation97_spill] sm:$0xff] %v12219_v41  ;;  %v12227_v23 = vpack.c.bf16 %v3771_v33, %v3767_v62  ;;  %v3766_v2 = vmax.f32 %v3490_v30, 0.0  ;;  %v3613_v9 = vmax.f32 %v2949_v0, 0.0  ;;  %v2953_v13 = vadd.f32 %v2952_v22, %v14105_v8  ;;  %3215 = vmatmul.mubr.bf16.gmra.mrb[160].mxu1 %v14173_v39  ;;  %v12234_v60 = vld [vmem:[#allocation13 + $0x500] sm:$0xff]  ;;  %v14175_v8 = vld [vmem:[#allocation36_spill] sm:$0xff]  ;;  %v14177_v0 = vld [vmem:[#allocation34_spill] sm:$0xff] }
 0x3d6   : > { %v14172_v58 = vcombine.low %v12047_v49, %v12049_v12  ;;  %v3770_v3 = vmax.f32 %v3494_v32, 0.0  ;;  %v3775_v29 = vmax.f32 %v3502_v56, 0.0  ;;  %v3616_v5 = vmax.f32 %v2951_v21, 0.0  ;;  %v12236_v18 = vld [vmem:[#allocation13 + $0x520] sm:$0xff]  ;;  %3224 = vmatprep.mubr.bf16.mxu1 %v14177_v0  ;;  %v14179_v56 = vld [vmem:[#allocation127_spill] sm:$0xff]  ;;  %v14180_v21 = vld [vmem:[#allocation130_spill] sm:$0xff] }
 0x3d7   : > { %14171 = vst [vmem:[#allocation26_spill] sm:$0xff] %v12227_v23  ;;  %v14174_v62 = vcombine.high %v12128_v17, %v12130_v57  ;;  %v3779_v33 = vmax.f32 %v3506_v16, 0.0  ;;  %v3500_v30 = vadd.f32 %v14175_v8, %v14147_v7  ;;  %v14176_v49 = vld [vmem:[#allocation125_spill] sm:$0xff]  ;;  %v3617_v32 = vmax.f32 %v2953_v13, 0.0  ;;  %v623_v16 = vld [vmem:[#allocation13 + $0x5c8] sm:$0xff] }
 0x3d8   : > { %6320 = vmatpush1.bf16.msra.mxu0 %v14172_v58  ;;  %v3504_v12 = vadd.f32 %v14176_v49, %v14147_v7  ;;  %v12246_v1 = vpack.c.bf16 %v3770_v3, %v3766_v2  ;;  %v3512_v19 = vadd.f32 %v14179_v56, %v11871_v28  ;;  %v3516_v22 = vadd.f32 %v14180_v21, %v11871_v28  ;;  %v2956_v23 = vpop.f32.mrb[56].mxu1  ;;  %v14184_v49 = vld [vmem:[#allocation153_spill] sm:$0xff]  ;;  %v14187_v0 = vld [vmem:[#allocation154_spill] sm:$0xff]  ;;  %v14188_v21 = vld [vmem:[#allocation159_spill] sm:$0xff] }
 0x3d9   : > { %6321 = vmatprep.subr.bf16.mxu0 %v14174_v62  ;;  %v12252_v58 = vpack.c.bf16 %v3616_v5, %v3612_v51  ;;  %v12254_v39 = vpack.c.bf16 %v3779_v33, %v3775_v29  ;;  %v3774_v62 = vmax.f32 %v3500_v30, 0.0  ;;  %v12256_v7 = vpack.c.bf16 %v3617_v32, %v3613_v9  ;;  %v627_v51 = vld [vmem:[#allocation13 + $0x5e8] sm:$0xff]  ;;  %v2958_v33 = vpop.f32.mrb[57].mxu1 }
 0x3da   : > { %14178 = vst [vmem:[#allocation100_spill] sm:$0xff] %v12246_v1  ;;  %v3778_v8 = vmax.f32 %v3504_v12, 0.0  ;;  %v14183_v13 = vcombine.low %v12128_v17, %v12130_v57  ;;  %v9621_v3 = vcombine.low %v12145_v31, %v12158_v11  ;;  %v3783_v5 = vmax.f32 %v3512_v19, 0.0  ;;  %v2960_v17 = vpop.f32.mrb[58].mxu1 }
 0x3db   : > { %14181 = vst [vmem:[#allocation152_spill] sm:$0xff] %v12254_v39  ;;  %14182 = vst [vmem:[#allocation156_spill] sm:$0xff] %v12256_v7  ;;  %v2957_v29 = vadd.f32 %v2956_v23, %v14184_v49  ;;  %v14185_v30 = vcombine.high %v12145_v31, %v12158_v11  ;;  %v9629_v9 = vcombine.low %v623_v16, %v627_v51  ;;  %6020 = vmatprep.mubr.bf16.mxu0 %v12256_v7  ;;  %v14190_v23 = vld [vmem:[#allocation128_spill] sm:$0xff]  ;;  %v2962_v11 = vpop.f32.mrb[59].mxu1 }
 0x3dc   : > { %6322 = vmatpush1.bf16.msra.mxu0 %v14183_v13  ;;  %v9630_v12 = vcombine.high %v623_v16, %v627_v51  ;;  %v12269_v32 = vpack.c.bf16 %v3778_v8, %v3774_v62  ;;  %v2959_v56 = vadd.f32 %v2958_v33, %v14187_v0  ;;  %v3787_v57 = vmax.f32 %v3516_v22, 0.0  ;;  %v14189_v13 = vld [vmem:[#allocation40_spill] sm:$0xff]  ;;  %v14191_v16 = vld [vmem:[#allocation42_spill] sm:$0xff]  ;;  %v14192_v8 = vld [vmem:[#allocation133_spill] sm:$0xff] }
 0x3dd   : > { %6323 = vmatprep.subr.bf16.mxu0 %v14185_v30  ;;  %v3510_v19 = vadd.f32 %v14189_v13, %v14188_v21  ;;  %v3514_v2 = vadd.f32 %v14190_v23, %v14188_v21  ;;  %v3620_v39 = vmax.f32 %v2957_v29, 0.0  ;;  %v2961_v31 = vadd.f32 %v2960_v17, %v14184_v49  ;;  %6021 = vmatmul.mubr.bf16.gmra.mrb[236].mxu0 %v12252_v58  ;;  %v14194_v29 = vld [vmem:[#allocation35_spill] sm:$0xff] }
 0x3de   : > { %14186 = vst [vmem:[#allocation98_spill] sm:$0xff] %v12269_v32  ;;  %v3522_v62 = vadd.f32 %v14191_v16, %v11871_v28  ;;  %v3526_v51 = vadd.f32 %v14192_v8, %v11871_v28  ;;  %v3621_v33 = vmax.f32 %v2959_v56, 0.0  ;;  %v2963_v22 = vadd.f32 %v2962_v11, %v14187_v0  ;;  %3225 = vmatmul.mubr.bf16.gmra.mrb[164].mxu1 %v14194_v29  ;;  %v14195_v16 = vld [vmem:[#allocation39_spill] sm:$0xff]  ;;  %v14196_v56 = vld [vmem:[#allocation132_spill] sm:$0xff] }
 0x3df   : > { %v12284_v30 = vpack.c.bf16 %v3787_v57, %v3783_v5  ;;  %v3782_v13 = vmax.f32 %v3510_v19, 0.0  ;;  %v3624_v23 = vmax.f32 %v2961_v31, 0.0  ;;  %v3786_v17 = vmax.f32 %v3514_v2, 0.0  ;;  %5284 = vmatprep.mubr.bf16.mxu1 %v12101_v37  ;;  %v14201_v2 = vld [vmem:[#allocation135_spill] sm:$0xff] }
 0x3e0   : > { %6324 = vmatpush1.bf16.msra.mxu0 %v9621_v3  ;;  %v3791_v32 = vmax.f32 %v3522_v62, 0.0  ;;  %v3795_v1 = vmax.f32 %v3526_v51, 0.0  ;;  %v3625_v41 = vmax.f32 %v2963_v22, 0.0  ;;  %v3520_v8 = vadd.f32 %v14195_v16, %v14188_v21  ;;  %v14197_v3 = vld [vmem:[#allocation44_spill] sm:$0xff]  ;;  %v2966_v62 = vpop.f32.mrb[60].mxu1 }
 0x3e1   : > { %14193 = vst [vmem:[#allocation99_spill] sm:$0xff] %v12284_v30  ;;  %6325 = vmatprep.subr.bf16.mxu0 %v9630_v12  ;;  %v3524_v11 = vadd.f32 %v14196_v56, %v14188_v21  ;;  %v3532_v5 = vadd.f32 %v14197_v3, %v11871_v28  ;;  %v12294_v57 = vpack.c.bf16 %v3624_v23, %v3620_v39  ;;  %v2968_v37 = vpop.f32.mrb[61].mxu1  ;;  %v14202_v39 = vld [vmem:[#allocation41_spill] sm:$0xff] }
 0x3e2   : > { %v12296_v19 = vpack.c.bf16 %v3786_v17, %v3782_v13  ;;  %v12298_v12 = vpack.c.bf16 %v3795_v1, %v3791_v32  ;;  %v3536_v31 = vadd.f32 %v14201_v2, %v11871_v28  ;;  %v12302_v51 = vpack.c.bf16 %v3625_v41, %v3621_v33  ;;  %v14203_v1 = vld [vmem:[#allocation134_spill] sm:$0xff]  ;;  %v2970_v17 = vpop.f32.mrb[62].mxu1 }
 0x3e3   : > { %14198 = vst [vmem:[#allocation102_spill] sm:$0xff] %v12294_v57  ;;  %v3790_v22 = vmax.f32 %v3520_v8, 0.0  ;;  %v3794_v29 = vmax.f32 %v3524_v11, 0.0  ;;  %v3799_v16 = vmax.f32 %v3532_v5, 0.0  ;;  %v2967_v56 = vadd.f32 %v2966_v62, %v14184_v49  ;;  %v14206_v8 = vld [vmem:[#allocation137_spill] sm:$0xff] }
 0x3e4   : > { %14199 = vst [vmem:[#allocation104_spill] sm:$0xff] %v12296_v19  ;;  %14200 = vst [vmem:[#allocation27_spill] sm:$0xff] %v12298_v12  ;;  %6326 = vmatpush1.bf16.msra.mxu0 %v9629_v9  ;;  %v3803_v3 = vmax.f32 %v3536_v31, 0.0  ;;  %v3530_v13 = vadd.f32 %v14202_v39, %v14188_v21  ;;  %v3534_v32 = vadd.f32 %v14203_v1, %v14188_v21  ;;  %6030 = vmatprep.mubr.bf16.mxu0 %v12302_v51  ;;  %v14205_v9 = vld [vmem:[#allocation46_spill] sm:$0xff]  ;;  %v2972_v31 = vpop.f32.mrb[63].mxu1 }
 0x3e5   : > { %v2969_v23 = vadd.f32 %v2968_v37, %v14187_v0  ;;  %v12311_v41 = vpack.c.bf16 %v3794_v29, %v3790_v22  ;;  %v3542_v33 = vadd.f32 %v14205_v9, %v11871_v28  ;;  %v3546_v11 = vadd.f32 %v14206_v8, %v11871_v28  ;;  %6031 = vmatmul.mubr.bf16.gmra.mrb[240].mxu0 %v12294_v57  ;;  %v12323_v9 = vld [vmem:[#allocation13 + $0x540] sm:$0xff]  ;;  %v14218_v19 = vld [vmem:[#allocation58_spill] sm:$0xff] }
 0x3e6   : > { %v3628_v5 = vmax.f32 %v2967_v56, 0.0  ;;  %v2971_v2 = vadd.f32 %v2970_v17, %v14184_v49  ;;  %v12319_v62 = vpack.c.bf16 %v3803_v3, %v3799_v16  ;;  %v3798_v37 = vmax.f32 %v3530_v13, 0.0  ;;  %5285 = vmatmul.mubr.bf16.vlgmr.msra.gmra.mrb[168].mxu1 %v12093_v36  ;;  %v12325_v28 = vld [vmem:[#allocation13 + $0x560] sm:$0xff]  ;;  %v14208_v17 = vld [vmem:[#allocation43_spill] sm:$0xff]  ;;  %v14209_v16 = vld [vmem:[#allocation136_spill] sm:$0xff] }
 0x3e7   : > { %14204 = vst [vmem:[#allocation28_spill] sm:$0xff] %v12311_v41  ;;  %v3629_v39 = vmax.f32 %v2969_v23, 0.0  ;;  %v2973_v1 = vadd.f32 %v2972_v31, %v14187_v0  ;;  %v3802_v22 = vmax.f32 %v3534_v32, 0.0  ;;  %v3807_v29 = vmax.f32 %v3542_v33, 0.0  ;;  %5294 = vmatprep.mubr.bf16.mxu1 %v12149_v20  ;;  %v14210_v23 = vld [vmem:[#allocation51_spill] sm:$0xff]  ;;  %v14211_v32 = vld [vmem:[#allocation54_spill] sm:$0xff] }
 0x3e8   : > { %14207 = vst [vmem:[#allocation101_spill] sm:$0xff] %v12319_v62  ;;  %v3632_v41 = vmax.f32 %v2971_v2, 0.0  ;;  %v3811_v56 = vmax.f32 %v3546_v11, 0.0  ;;  %v3540_v8 = vadd.f32 %v14208_v17, %v14188_v21  ;;  %v3544_v3 = vadd.f32 %v14209_v16, %v14188_v21  ;;  %v14214_v31 = vld [vmem:[#allocation48_spill] sm:$0xff]  ;;  %v14215_v11 = vld [vmem:[#allocation139_spill] sm:$0xff] }
 0x3e9   : > { %v3633_v13 = vmax.f32 %v2973_v1, 0.0  ;;  %v14212_v33 = vcombine.low %v14210_v23, %v14211_v32  ;;  %v12335_v2 = vpack.c.bf16 %v3802_v22, %v3798_v37  ;;  %v3552_v36 = vadd.f32 %v14214_v31, %v11881_v43  ;;  %v14217_v17 = vld [vmem:[#allocation55_spill] sm:$0xff]  ;;  %v631_v1 = vld [vmem:[#allocation13 + $0x608] sm:$0xff]  ;;  %v2976_v32 = vpop.f32.mrb[64].mxu1 }
 0x3ea   : > { %v3556_v62 = vadd.f32 %v14215_v11, %v11881_v43  ;;  %v12341_v12 = vpack.c.bf16 %v3632_v41, %v3628_v5  ;;  %v14219_v21 = vcombine.high %v14217_v17, %v14218_v19  ;;  %v12346_v16 = vpack.c.bf16 %v3811_v56, %v3807_v29  ;;  %v635_v41 = vld [vmem:[#allocation13 + $0x628] sm:$0xff]  ;;  %v2978_v11 = vpop.f32.mrb[65].mxu1 }
 0x3eb   : > { %5606 = vmatpush1.bf16.msra.mxu1 %v14212_v33  ;;  %14213 = vst [vmem:[#allocation103_spill] sm:$0xff] %v12335_v2  ;;  %v3806_v20 = vmax.f32 %v3540_v8, 0.0  ;;  %v3810_v23 = vmax.f32 %v3544_v3, 0.0  ;;  %v12348_v37 = vpack.c.bf16 %v3633_v13, %v3629_v39  ;;  %v3815_v5 = vmax.f32 %v3552_v36, 0.0  ;;  %v2980_v8 = vpop.f32.mrb[66].mxu1  ;;  %v14224_v13 = vld [vmem:[#allocation45_spill] sm:$0xff] }
 0x3ec   : > { %14216 = vst [vmem:[#allocation106_spill] sm:$0xff] %v12341_v12  ;;  %5607 = vmatprep.subr.bf16.mxu1 %v14219_v21  ;;  %14220 = vst [vmem:[#allocation108_spill] sm:$0xff] %v12346_v16  ;;  %v2977_v31 = vadd.f32 %v2976_v32, %v14184_v49  ;;  %v9637_v21 = vcombine.low %v631_v1, %v635_v41  ;;  %v9638_v2 = vcombine.high %v631_v1, %v635_v41  ;;  %v14225_v32 = vld [vmem:[#allocation138_spill] sm:$0xff]  ;;  %v2982_v1 = vpop.f32.mrb[67].mxu1 }
 0x3ed   : > { %14221 = vst [vmem:[#allocation105_spill] sm:$0xff] %v12348_v37  ;;  %v12355_v29 = vpack.c.bf16 %v3810_v23, %v3806_v20  ;;  %v2979_v56 = vadd.f32 %v2978_v11, %v14187_v0  ;;  %6040 = vmatprep.mubr.bf16.mxu0 %v12348_v37  ;;  %v14223_v39 = vcombine.low %v14217_v17, %v14218_v19  ;;  %v3819_v3 = vmax.f32 %v3556_v62, 0.0  ;;  %v14227_v19 = vld [vmem:[#allocation50_spill] sm:$0xff]  ;;  %v14228_v62 = vld [vmem:[#allocation141_spill] sm:$0xff] }
 0x3ee   : > { %v3550_v36 = vadd.f32 %v14224_v13, %v11875_v54  ;;  %v3554_v33 = vadd.f32 %v14225_v32, %v11875_v54  ;;  %v3636_v22 = vmax.f32 %v2977_v31, 0.0  ;;  %v2981_v20 = vadd.f32 %v2980_v8, %v14184_v49  ;;  %6041 = vmatmul.mubr.bf16.gmra.mrb[244].mxu0 %v12341_v12  ;;  %6327 = vmatprep.subr.bf16.mxu0 %v9638_v2 }
 0x3ef   : > { %14222 = vst [vmem:[#allocation107_spill] sm:$0xff] %v12355_v29  ;;  %5608 = vmatpush1.bf16.msra.mxu1 %v14223_v39  ;;  %v14226_v23 = vcombine.high %v11857_v40, %v11859_v63  ;;  %v3562_v17 = vadd.f32 %v14227_v19, %v11881_v43  ;;  %v3566_v41 = vadd.f32 %v14228_v62, %v11881_v43  ;;  %v3637_v11 = vmax.f32 %v2979_v56, 0.0  ;;  %v14231_v56 = vld [vmem:[#allocation47_spill] sm:$0xff] }
 0x3f0   : > { %v2983_v39 = vadd.f32 %v2982_v1, %v14187_v0  ;;  %v12376_v31 = vpack.c.bf16 %v3819_v3, %v3815_v5  ;;  %v3814_v8 = vmax.f32 %v3550_v36, 0.0  ;;  %v3640_v13 = vmax.f32 %v2981_v20, 0.0  ;;  %5295 = vmatmul.mubr.bf16.gmra.mrb[172].mxu1 %v12143_v6  ;;  %6328 = vmatpush1.bf16.msra.mxu0 %v9637_v21  ;;  %v14232_v5 = vld [vmem:[#allocation140_spill] sm:$0xff]  ;;  %v2986_v62 = vpop.f32.mrb[68].mxu1 }
 0x3f1   : > { %5609 = vmatprep.subr.bf16.mxu1 %v14226_v23  ;;  %v3818_v32 = vmax.f32 %v3554_v33, 0.0  ;;  %v3823_v29 = vmax.f32 %v3562_v17, 0.0  ;;  %v3827_v23 = vmax.f32 %v3566_v41, 0.0  ;;  %5304 = vmatprep.mubr.bf16.mxu1 %v12207_v46  ;;  %v14230_v19 = vcombine.low %v11857_v40, %v11859_v63  ;;  %v14233_v36 = vld [vmem:[#allocation52_spill] sm:$0xff]  ;;  %v14238_v40 = vld [vmem:[#allocation143_spill] sm:$0xff] }
 0x3f2   : > { %14229 = vst [vmem:[#allocation110_spill] sm:$0xff] %v12376_v31  ;;  %v3641_v16 = vmax.f32 %v2983_v39, 0.0  ;;  %v3560_v2 = vadd.f32 %v14231_v56, %v11875_v54  ;;  %v3564_v3 = vadd.f32 %v14232_v5, %v11875_v54  ;;  %v3572_v20 = vadd.f32 %v14233_v36, %v11881_v43  ;;  %v14240_v36 = vld [vmem:[#allocation49_spill] sm:$0xff] }
 0x3f3   : > { %5610 = vmatpush1.bf16.msra.mxu1 %v14230_v19  ;;  %v12389_v21 = vpack.c.bf16 %v3640_v13, %v3636_v22  ;;  %v14235_v33 = vcombine.high %v11955_v35, %v11957_v44  ;;  %v12394_v1 = vpack.c.bf16 %v3818_v32, %v3814_v8  ;;  %v12396_v17 = vpack.c.bf16 %v3827_v23, %v3823_v29  ;;  %v2988_v13 = vpop.f32.mrb[69].mxu1  ;;  %v14241_v8 = vld [vmem:[#allocation142_spill] sm:$0xff] }
 0x3f4   : > { %v3576_v63 = vadd.f32 %v14238_v40, %v11881_v43  ;;  %v12400_v41 = vpack.c.bf16 %v3641_v16, %v3637_v11  ;;  %v3822_v39 = vmax.f32 %v3560_v2, 0.0  ;;  %v3826_v19 = vmax.f32 %v3564_v3, 0.0  ;;  %v2990_v23 = vpop.f32.mrb[70].mxu1  ;;  %v14244_v2 = vld [vmem:[#allocation147_spill] sm:$0xff] }
 0x3f5   : > { %14234 = vst [vmem:[#allocation112_spill] sm:$0xff] %v12389_v21  ;;  %5611 = vmatprep.subr.bf16.mxu1 %v14235_v33  ;;  %14236 = vst [vmem:[#allocation144_spill] sm:$0xff] %v12394_v1  ;;  %v3831_v56 = vmax.f32 %v3572_v20, 0.0  ;;  %v2987_v22 = vadd.f32 %v2986_v62, %v14184_v49  ;;  %v3570_v33 = vadd.f32 %v14240_v36, %v11875_v54  ;;  %v2992_v40 = vpop.f32.mrb[71].mxu1  ;;  %v618_v36 = vld [vmem:[#allocation13 + $0x5a0] sm:$0xff] }
 0x3f6   : > { %14237 = vst [vmem:[#allocation146_spill] sm:$0xff] %v12396_v17  ;;  %14239 = vst [vmem:[#allocation29_spill] sm:$0xff] %v12400_v41  ;;  %v3835_v5 = vmax.f32 %v3576_v63, 0.0  ;;  %v3574_v29 = vadd.f32 %v14241_v8, %v11875_v54  ;;  %v2989_v32 = vadd.f32 %v2988_v13, %v14187_v0  ;;  %6050 = vmatprep.mubr.bf16.mxu0 %v12400_v41 }
 0x3f7   : > { %v14242_v16 = vcombine.low %v11955_v35, %v11957_v44  ;;  %v12412_v11 = vpack.c.bf16 %v3826_v19, %v3822_v39  ;;  %v3582_v3 = vadd.f32 %v14244_v2, %v11881_v43  ;;  %v2991_v20 = vadd.f32 %v2990_v23, %v14184_v49  ;;  %6051 = vmatmul.mubr.bf16.gmra.mrb[248].mxu0 %v12389_v21  ;;  %v614_v19 = vld [vmem:[#allocation13 + $0x580] sm:$0xff] }
 0x3f8   : > { %v14245_v63 = vcombine.high %v12234_v60, %v12236_v18  ;;  %v9612_v62 = vcombine.high %v12323_v9, %v12325_v28  ;;  %v12423_v13 = vpack.c.bf16 %v3835_v5, %v3831_v56  ;;  %v3830_v35 = vmax.f32 %v3570_v33, 0.0  ;;  %v14247_v49 = vld [vmem:[#allocation149_spill] sm:$0xff]  ;;  %5305 = vmatmul.mubr.bf16.gmra.mrb[176].mxu1 %v12199_v14  ;;  %v14249_v56 = vld [vmem:[#allocation148_spill] sm:$0xff]  ;;  %v14253_v14 = vld [vmem:[#allocation131_spill] sm:$0xff] }
 0x3f9   : > { %5612 = vmatpush1.bf16.msra.mxu1 %v14242_v16  ;;  %14243 = vst [vmem:[#allocation59_spill] sm:$0xff] %v12412_v11  ;;  %v3644_v44 = vmax.f32 %v2987_v22, 0.0  ;;  %v2993_v39 = vadd.f32 %v2992_v40, %v14187_v0  ;;  %v3834_v8 = vmax.f32 %v3574_v29, 0.0  ;;  %v3586_v23 = vadd.f32 %v14247_v49, %v11881_v43  ;;  %5314 = vmatprep.mubr.bf16.mxu1 %v12256_v7  ;;  %v639_v40 = vld [vmem:[#allocation13 + $0x648] sm:$0xff]  ;;  %v622_v7 = vld [vmem:[#allocation13 + $0x5c0] sm:$0xff] }
 0x3fa   : > { %5613 = vmatprep.subr.bf16.mxu1 %v14245_v63  ;;  %14246 = vst [vmem:[#allocation150_spill] sm:$0xff] %v12423_v13  ;;  %v3648_v16 = vmax.f32 %v2991_v20, 0.0  ;;  %v3839_v2 = vmax.f32 %v3582_v3, 0.0  ;;  %v14248_v63 = vld [vmem:[#allocation145_spill] sm:$0xff]  ;;  %v3584_v5 = vadd.f32 %v14249_v56, %v11875_v54  ;;  %v3645_v33 = vmax.f32 %v2989_v32, 0.0 }
 0x3fb   : > { %v3580_v46 = vadd.f32 %v14248_v63, %v11875_v54  ;;  %v3649_v22 = vmax.f32 %v2993_v39, 0.0  ;;  %v14250_v0 = vcombine.low %v12234_v60, %v12236_v18  ;;  %v12437_v29 = vpack.c.bf16 %v3834_v8, %v3830_v35  ;;  %v14254_v54 = vld [vmem:[#allocation62_spill] sm:$0xff]  ;;  %v2996_v39 = vpop.f32.mrb[72].mxu1  ;;  %v626_v60 = vld [vmem:[#allocation13 + $0x5e0] sm:$0xff]  ;;  %v14257_v8 = vld [vmem:[#allocation155_spill] sm:$0xff] }
 0x3fc   : > { %v3843_v43 = vmax.f32 %v3586_v23, 0.0  ;;  %v12439_v20 = vpack.c.bf16 %v3648_v16, %v3644_v44  ;;  %v9620_v3 = vcombine.high %v614_v19, %v618_v36  ;;  %v3842_v63 = vmax.f32 %v3584_v5, 0.0  ;;  %v643_v18 = vld [vmem:[#allocation13 + $0x668] sm:$0xff]  ;;  %v2998_v23 = vpop.f32.mrb[73].mxu1 }
 0x3fd   : > { %5614 = vmatpush1.bf16.msra.mxu1 %v14250_v0  ;;  %14251 = vst [vmem:[#allocation109_spill] sm:$0xff] %v12437_v29  ;;  %v3838_v49 = vmax.f32 %v3580_v46, 0.0  ;;  %v12443_v32 = vrot.slane %v14254_v54, %v14253_v14  ;;  %v12445_v56 = vpack.c.bf16 %v3649_v22, %v3645_v33  ;;  %v2997_v44 = vadd.f32 %v2996_v39, %v14257_v8  ;;  %v3000_v5 = vpop.f32.mrb[74].mxu1 }
 0x3fe   : > { %14252 = vst [vmem:[#allocation111_spill] sm:$0xff] %v12439_v20  ;;  %5615 = vmatprep.subr.bf16.mxu1 %v9612_v62  ;;  %v12447_v35 = vpack.c.bf16 %v3843_v43, %v3839_v2  ;;  %v9645_v62 = vcombine.low %v639_v40, %v643_v18  ;;  %v9646_v16 = vcombine.high %v639_v40, %v643_v18  ;;  %v3002_v43 = vpop.f32.mrb[75].mxu1 }
 0x3ff   : > { %14255 = vst [vmem:[#allocation30_spill] sm:$0xff] %v12445_v56  ;;  %v12450_v0 = vpack.c.bf16 %v3842_v63, %v3838_v49  ;;  %v2999_v46 = vadd.f32 %v2998_v23, %v12443_v32  ;;  %6060 = vmatprep.mubr.bf16.mxu0 %v12445_v56  ;;  %v14259_v33 = vcombine.low %v12323_v9, %v12325_v28  ;;  %v630_v49 = vld [vmem:[#allocation13 + $0x600] sm:$0xff]  ;;  %v3652_v39 = vmax.f32 %v2997_v44, 0.0 }
 0x400   : > { %14256 = vst [vmem:[#allocation158_spill] sm:$0xff] %v12447_v35  ;;  %v9619_v22 = vcombine.low %v614_v19, %v618_v36  ;;  %v3001_v2 = vadd.f32 %v3000_v5, %v14257_v8  ;;  %6061 = vmatmul.mubr.bf16.gmra.mrb[252].mxu0 %v12439_v20  ;;  %v9628_v54 = vcombine.high %v622_v7, %v626_v60  ;;  %v634_v63 = vld [vmem:[#allocation13 + $0x620] sm:$0xff]  ;;  %v3006_v23 = vpop.f32.mrb[76].mxu1 }
 0x401   : > { %14258 = vst [vmem:[#allocation114_spill] sm:$0xff] %v12450_v0  ;;  %5616 = vmatpush1.bf16.msra.mxu1 %v14259_v33  ;;  %v3003_v40 = vadd.f32 %v3002_v43, %v12443_v32  ;;  %6329 = vmatprep.subr.bf16.mxu0 %v9646_v16  ;;  %v3653_v9 = vmax.f32 %v2999_v46, 0.0  ;;  %v9627_v19 = vcombine.low %v622_v7, %v626_v60  ;;  %v638_v33 = vld [vmem:[#allocation13 + $0x640] sm:$0xff] }
 0x402   : > { %5617 = vmatprep.subr.bf16.mxu1 %v9620_v3  ;;  %v3656_v18 = vmax.f32 %v3001_v2, 0.0  ;;  %5315 = vmatmul.mubr.bf16.gmra.mrb[180].mxu1 %v12252_v58  ;;  %v9636_v3 = vcombine.high %v630_v49, %v634_v63  ;;  %v642_v16 = vld [vmem:[#allocation13 + $0x660] sm:$0xff]  ;;  %v3007_v44 = vadd.f32 %v3006_v23, %v14257_v8  ;;  %v3008_v2 = vpop.f32.mrb[77].mxu1  ;;  %v647_v23 = vld [vmem:[#allocation13 + $0x688] sm:$0xff] }
 0x403   : > { %6330 = vmatpush1.bf16.msra.mxu0 %v9645_v62  ;;  %v3657_v28 = vmax.f32 %v3003_v40, 0.0  ;;  %5324 = vmatprep.mubr.bf16.mxu1 %v12302_v51  ;;  %v3009_v62 = vadd.f32 %v3008_v2, %v12443_v32  ;;  %v3010_v46 = vpop.f32.mrb[78].mxu1  ;;  %v9644_v43 = vcombine.high %v638_v33, %v642_v16 }
 0x404   : > { %v12462_v36 = vpack.c.bf16 %v3656_v18, %v3652_v39  ;;  %v3011_v7 = vadd.f32 %v3010_v46, %v14257_v8  ;;  %v3012_v60 = vpop.f32.mrb[79].mxu1  ;;  %v3660_v40 = vmax.f32 %v3007_v44, 0.0  ;;  %v651_v44 = vld [vmem:[#allocation13 + $0x6a8] sm:$0xff] }
 0x405   : > { %5618 = vmatpush1.bf16.msra.mxu1 %v9619_v22  ;;  %v12464_v5 = vpack.c.bf16 %v3657_v28, %v3653_v9  ;;  %v9635_v22 = vcombine.low %v630_v49, %v634_v63  ;;  %v3661_v18 = vmax.f32 %v3009_v62, 0.0  ;;  %v9643_v28 = vcombine.low %v638_v33, %v642_v16  ;;  %v646_v63 = vld [vmem:[#allocation13 + $0x680] sm:$0xff] }
 0x406   : > { %14260 = vst [vmem:[#allocation116_spill] sm:$0xff] %v12462_v36  ;;  %5619 = vmatprep.subr.bf16.mxu1 %v9628_v54  ;;  %v3013_v54 = vadd.f32 %v3012_v60, %v12443_v32  ;;  %v3664_v39 = vmax.f32 %v3011_v7, 0.0  ;;  %v9653_v62 = vcombine.low %v647_v23, %v651_v44 }
 0x407   : > { %14261 = vst [vmem:[#allocation157_spill] sm:$0xff] %v12464_v5  ;;  %6070 = vmatprep.mubr.bf16.mxu0 %v12464_v5 }
 0x408   : > { %6071 = vmatmul.mubr.bf16.gmra.mrb[0].mxu0 %v12462_v36  ;;  %v3665_v9 = vmax.f32 %v3013_v54, 0.0  ;;  %v12474_v49 = vpack.c.bf16 %v3664_v39, %v3660_v40  ;;  %v9654_v54 = vcombine.high %v647_v23, %v651_v44 }
 0x409   : > { %5620 = vmatpush1.bf16.msra.mxu1 %v9627_v19  ;;  %v650_v19 = vld [vmem:[#allocation13 + $0x6a0] sm:$0xff] }
 0x40a   : > { %5621 = vmatprep.subr.bf16.mxu1 %v9636_v3  ;;  %5325 = vmatmul.mubr.bf16.gmra.mrb[184].mxu1 %v12294_v57  ;;  %14262 = vst [vmem:[#allocation113_spill] sm:$0xff] %v12474_v49  ;;  %v3016_v3 = vpop.f32.mrb[80].mxu1  ;;  %v12476_v2 = vpack.c.bf16 %v3665_v9, %v3661_v18  ;;  %v9652_v46 = vcombine.high %v646_v63, %v650_v19 }
 0x40b   : > { %5334 = vmatprep.mubr.bf16.mxu1 %v12348_v37  ;;  %v3017_v7 = vadd.f32 %v3016_v3, %v14257_v8  ;;  %v3018_v60 = vpop.f32.mrb[81].mxu1  ;;  %v9651_v33 = vcombine.low %v646_v63, %v650_v19  ;;  %6331 = vmatprep.subr.bf16.mxu0 %v9654_v54 }
 0x40c   : > { %14263 = vst [vmem:[#allocation115_spill] sm:$0xff] %v12476_v2  ;;  %v3019_v37 = vadd.f32 %v3018_v60, %v12443_v32  ;;  %6080 = vmatprep.mubr.bf16.mxu0 %v12476_v2  ;;  %6332 = vmatpush1.bf16.msra.mxu0 %v9653_v62 }
 0x40d   : > { %5622 = vmatpush1.bf16.msra.mxu1 %v9635_v22  ;;  %v3020_v22 = vpop.f32.mrb[82].mxu1  ;;  %v3668_v39 = vmax.f32 %v3017_v7, 0.0 }
 0x40e   : > { %5623 = vmatprep.subr.bf16.mxu1 %v9644_v43  ;;  %v3021_v16 = vadd.f32 %v3020_v22, %v14257_v8  ;;  %v3022_v43 = vpop.f32.mrb[83].mxu1  ;;  %v3669_v9 = vmax.f32 %v3019_v37, 0.0 }
 0x40f   : > { %v3023_v40 = vadd.f32 %v3022_v43, %v12443_v32  ;;  %v14266_v43 = vld [vmem:[#allocation129_spill] sm:$0xff] }
 0x410   : > { %6081 = vmatmul.mubr.bf16.gmra.mrb[4].mxu0 %v12474_v49  ;;  %v3672_v18 = vmax.f32 %v3021_v16, 0.0  ;;  %v3026_v63 = vpop.f32.mrb[84].mxu1 }
 0x411   : > { %5624 = vmatpush1.bf16.msra.mxu1 %v9643_v28  ;;  %v3673_v23 = vmax.f32 %v3023_v40, 0.0  ;;  %v3027_v3 = vadd.f32 %v3026_v63, %v14257_v8  ;;  %v14267_v40 = vld [vmem:[#allocation151_spill] sm:$0xff] }
 0x412   : > { %5625 = vmatprep.subr.bf16.mxu1 %v9652_v46  ;;  %5335 = vmatmul.mubr.bf16.gmra.mrb[188].mxu1 %v12341_v12  ;;  %v12486_v28 = vpack.c.bf16 %v3672_v18, %v3668_v39  ;;  %v3028_v46 = vpop.f32.mrb[85].mxu1  ;;  %v12500_v39 = vrot.slane %v14267_v40, %v14266_v43 }
 0x413   : > { %5344 = vmatprep.mubr.bf16.mxu1 %v12400_v41  ;;  %v12488_v19 = vpack.c.bf16 %v3673_v23, %v3669_v9  ;;  %v3029_v44 = vadd.f32 %v3028_v46, %v12443_v32  ;;  %v3030_v7 = vpop.f32.mrb[86].mxu1  ;;  %v3676_v54 = vmax.f32 %v3027_v3, 0.0  ;;  %v658_v9 = vld [vmem:[#allocation13 + $0x6e0] sm:$0xff]  ;;  %v655_v23 = vld [vmem:[#allocation13 + $0x6c8] sm:$0xff] }
 0x414   : > { %14264 = vst [vmem:[#allocation118_spill] sm:$0xff] %v12486_v28  ;;  %v3031_v60 = vadd.f32 %v3030_v7, %v14257_v8  ;;  %v3032_v37 = vpop.f32.mrb[87].mxu1  ;;  %v654_v8 = vld [vmem:[#allocation13 + $0x6c0] sm:$0xff]  ;;  %v659_v7 = vld [vmem:[#allocation13 + $0x6e8] sm:$0xff] }
 0x415   : > { %5626 = vmatpush1.bf16.msra.mxu1 %v9651_v33  ;;  %14265 = vst [vmem:[#allocation120_spill] sm:$0xff] %v12488_v19  ;;  %6090 = vmatprep.mubr.bf16.mxu0 %v12488_v19  ;;  %v3033_v62 = vadd.f32 %v3032_v37, %v12443_v32  ;;  %v3677_v33 = vmax.f32 %v3029_v44, 0.0  ;;  %v12506_v32 = vrot.slane %v14267_v40, %v14253_v14  ;;  %v667_v41 = vld [vmem:[#allocation13 + $0x728] sm:$0xff] }
 0x416   : > { %v3680_v22 = vmax.f32 %v3031_v60, 0.0  ;;  %v9659_v46 = vcombine.low %v654_v8, %v658_v9  ;;  %v9660_v44 = vcombine.high %v654_v8, %v658_v9 }
 0x417   : > { %v3681_v16 = vmax.f32 %v3033_v62, 0.0  ;;  %v9661_v62 = vcombine.low %v655_v23, %v659_v7 }
 0x418   : > { %6091 = vmatmul.mubr.bf16.gmra.mrb[8].mxu0 %v12486_v28  ;;  %v12502_v18 = vpack.c.bf16 %v3680_v22, %v3676_v54  ;;  %v3036_v63 = vpop.f32.mrb[88].mxu1  ;;  %5627 = vmatprep.subr.bf16.mxu1 %v9660_v44 }
 0x419   : > { %v12508_v3 = vpack.c.bf16 %v3681_v16, %v3677_v33  ;;  %v3037_v60 = vadd.f32 %v3036_v63, %v12500_v39  ;;  %v3038_v37 = vpop.f32.mrb[89].mxu1  ;;  %5628 = vmatpush1.bf16.msra.mxu1 %v9659_v46 }
 0x41a   : > { %5345 = vmatmul.mubr.bf16.gmra.mrb[192].mxu1 %v12389_v21  ;;  %14268 = vst [vmem:[#allocation31_spill] sm:$0xff] %v12502_v18  ;;  %v3039_v54 = vadd.f32 %v3038_v37, %v12506_v32  ;;  %v3040_v22 = vpop.f32.mrb[90].mxu1 }
 0x41b   : > { %5354 = vmatprep.mubr.bf16.mxu1 %v12445_v56  ;;  %14269 = vst [vmem:[#allocation32_spill] sm:$0xff] %v12508_v3  ;;  %v9662_v56 = vcombine.high %v655_v23, %v659_v7  ;;  %6100 = vmatprep.mubr.bf16.mxu0 %v12508_v3  ;;  %v3041_v40 = vadd.f32 %v3040_v22, %v12500_v39  ;;  %v3042_v21 = vpop.f32.mrb[91].mxu1  ;;  %v3684_v16 = vmax.f32 %v3037_v60, 0.0 }
 0x41c   : > { %v3043_v33 = vadd.f32 %v3042_v21, %v12506_v32  ;;  %v3685_v9 = vmax.f32 %v3039_v54, 0.0 }
 0x41d   : > { %6333 = vmatprep.subr.bf16.mxu0 %v9662_v56  ;;  %v3688_v8 = vmax.f32 %v3041_v40, 0.0 }
 0x41e   : > { %6334 = vmatpush1.bf16.msra.mxu0 %v9661_v62  ;;  %v3689_v23 = vmax.f32 %v3043_v33, 0.0 }
 0x41f   : > { %v12518_v63 = vpack.c.bf16 %v3688_v8, %v3684_v16 }
 0x420   : > { %6101 = vmatmul.mubr.bf16.gmra.mrb[12].mxu0 %v12502_v18  ;;  %v3046_v44 = vpop.f32.mrb[92].mxu1  ;;  %v12520_v7 = vpack.c.bf16 %v3689_v23, %v3685_v9  ;;  %v662_v9 = vld [vmem:[#allocation13 + $0x700] sm:$0xff] }
 0x421   : > { %14270 = vst [vmem:[#allocation117_spill] sm:$0xff] %v12518_v63  ;;  %v3047_v37 = vadd.f32 %v3046_v44, %v12500_v39  ;;  %v3048_v56 = vpop.f32.mrb[93].mxu1  ;;  %v666_v23 = vld [vmem:[#allocation13 + $0x720] sm:$0xff]  ;;  %v663_v44 = vld [vmem:[#allocation13 + $0x708] sm:$0xff] }
 0x422   : > { %5355 = vmatmul.mubr.bf16.gmra.mrb[196].mxu1 %v12439_v20  ;;  %14271 = vst [vmem:[#allocation119_spill] sm:$0xff] %v12520_v7  ;;  %v3049_v21 = vadd.f32 %v3048_v56, %v12506_v32  ;;  %v3050_v46 = vpop.f32.mrb[94].mxu1  ;;  %6110 = vmatprep.mubr.bf16.mxu0 %v12520_v7  ;;  %v9668_v20 = vcombine.high %v662_v9, %v666_v23 }
 0x423   : > { %5364 = vmatprep.mubr.bf16.mxu1 %v12464_v5  ;;  %v3051_v60 = vadd.f32 %v3050_v46, %v12500_v39  ;;  %v3052_v62 = vpop.f32.mrb[95].mxu1  ;;  %v3692_v22 = vmax.f32 %v3047_v37, 0.0  ;;  %v9667_v5 = vcombine.low %v662_v9, %v666_v23 }
 0x424   : > { %v3053_v54 = vadd.f32 %v3052_v62, %v12506_v32  ;;  %v3693_v33 = vmax.f32 %v3049_v21, 0.0  ;;  %v9669_v62 = vcombine.low %v663_v44, %v667_v41  ;;  %5629 = vmatprep.subr.bf16.mxu1 %v9668_v20 }
 0x425   : > { %v3696_v40 = vmax.f32 %v3051_v60, 0.0  ;;  %5630 = vmatpush1.bf16.msra.mxu1 %v9667_v5 }
 0x426   : > { %v3697_v16 = vmax.f32 %v3053_v54, 0.0 }
 0x427   : > { %v12530_v8 = vpack.c.bf16 %v3696_v40, %v3692_v22 }
 0x428   : > { %6111 = vmatmul.mubr.bf16.gmra.mrb[16].mxu0 %v12518_v63  ;;  %v3056_v56 = vpop.f32.mrb[96].mxu1  ;;  %v12532_v46 = vpack.c.bf16 %v3697_v16, %v3693_v33 }
 0x429   : > { %14272 = vst [vmem:[#allocation122_spill] sm:$0xff] %v12530_v8  ;;  %v3057_v37 = vadd.f32 %v3056_v56, %v12500_v39  ;;  %v3058_v60 = vpop.f32.mrb[97].mxu1 }
 0x42a   : > { %5365 = vmatmul.mubr.bf16.gmra.mrb[200].mxu1 %v12462_v36  ;;  %14273 = vst [vmem:[#allocation124_spill] sm:$0xff] %v12532_v46  ;;  %v9670_v36 = vcombine.high %v663_v44, %v667_v41  ;;  %v3059_v21 = vadd.f32 %v3058_v60, %v12506_v32  ;;  %v3060_v54 = vpop.f32.mrb[98].mxu1  ;;  %6120 = vmatprep.mubr.bf16.mxu0 %v12532_v46 }
 0x42b   : > { %5374 = vmatprep.mubr.bf16.mxu1 %v12476_v2  ;;  %v3061_v22 = vadd.f32 %v3060_v54, %v12500_v39  ;;  %v3062_v40 = vpop.f32.mrb[99].mxu1  ;;  %v3700_v16 = vmax.f32 %v3057_v37, 0.0  ;;  %v691_v2 = vld [vmem:[#allocation13 + $0x7e8] sm:$0xff] }
 0x42c   : > { %6335 = vmatprep.subr.bf16.mxu0 %v9670_v36  ;;  %v3063_v33 = vadd.f32 %v3062_v40, %v12506_v32  ;;  %v3701_v41 = vmax.f32 %v3059_v21, 0.0 }
 0x42d   : > { %6336 = vmatpush1.bf16.msra.mxu0 %v9669_v62  ;;  %v3704_v9 = vmax.f32 %v3061_v22, 0.0 }
 0x42e   : > { %v3705_v23 = vmax.f32 %v3063_v33, 0.0 }
 0x42f   : > { %v12542_v44 = vpack.c.bf16 %v3704_v9, %v3700_v16  ;;  %v14276_v9 = vld [vmem:[#allocation57_spill] sm:$0xff] }
 0x430   : > { %6121 = vmatmul.mubr.bf16.gmra.mrb[20].mxu0 %v12530_v8  ;;  %v3066_v20 = vpop.f32.mrb[100].mxu1  ;;  %v12544_v56 = vpack.c.bf16 %v3705_v23, %v3701_v41  ;;  %v12556_v41 = vrot.slane %v14276_v9, %v14266_v43 }
 0x431   : > { %14274 = vst [vmem:[#allocation121_spill] sm:$0xff] %v12542_v44  ;;  %v3067_v60 = vadd.f32 %v3066_v20, %v12500_v39  ;;  %v3068_v36 = vpop.f32.mrb[101].mxu1  ;;  %v674_v20 = vld [vmem:[#allocation13 + $0x760] sm:$0xff] }
 0x432   : > { %5375 = vmatmul.mubr.bf16.gmra.mrb[204].mxu1 %v12474_v49  ;;  %14275 = vst [vmem:[#allocation123_spill] sm:$0xff] %v12544_v56  ;;  %v3069_v54 = vadd.f32 %v3068_v36, %v12506_v32  ;;  %v3070_v5 = vpop.f32.mrb[102].mxu1  ;;  %6130 = vmatprep.mubr.bf16.mxu0 %v12544_v56  ;;  %v671_v36 = vld [vmem:[#allocation13 + $0x748] sm:$0xff] }
 0x433   : > { %5384 = vmatprep.mubr.bf16.mxu1 %v12488_v19  ;;  %v3071_v37 = vadd.f32 %v3070_v5, %v12500_v39  ;;  %v3072_v62 = vpop.f32.mrb[103].mxu1  ;;  %v3708_v22 = vmax.f32 %v3067_v60, 0.0  ;;  %v670_v39 = vld [vmem:[#allocation13 + $0x740] sm:$0xff] }
 0x434   : > { %v3073_v21 = vadd.f32 %v3072_v62, %v12506_v32  ;;  %v3709_v33 = vmax.f32 %v3069_v54, 0.0  ;;  %v12562_v32 = vrot.slane %v14276_v9, %v14253_v14  ;;  %v9675_v54 = vcombine.low %v670_v39, %v674_v20  ;;  %v675_v62 = vld [vmem:[#allocation13 + $0x768] sm:$0xff] }
 0x435   : > { %v3712_v40 = vmax.f32 %v3071_v37, 0.0  ;;  %v9676_v37 = vcombine.high %v670_v39, %v674_v20  ;;  %v9678_v19 = vcombine.high %v671_v36, %v675_v62 }
 0x436   : > { %v3713_v16 = vmax.f32 %v3073_v21, 0.0 }
 0x437   : > { %v12558_v23 = vpack.c.bf16 %v3712_v40, %v3708_v22  ;;  %5631 = vmatprep.subr.bf16.mxu1 %v9676_v37  ;;  %6337 = vmatprep.subr.bf16.mxu0 %v9678_v19 }
 0x438   : > { %6131 = vmatmul.mubr.bf16.gmra.mrb[24].mxu0 %v12542_v44  ;;  %v3076_v60 = vpop.f32.mrb[104].mxu1  ;;  %v12564_v5 = vpack.c.bf16 %v3713_v16, %v3709_v33  ;;  %v679_v33 = vld [vmem:[#allocation13 + $0x788] sm:$0xff]  ;;  %5632 = vmatpush1.bf16.msra.mxu1 %v9675_v54 }
 0x439   : > { %14277 = vst [vmem:[#allocation38_spill] sm:$0xff] %v12558_v23  ;;  %v3077_v21 = vadd.f32 %v3076_v60, %v12556_v41  ;;  %v683_v16 = vld [vmem:[#allocation13 + $0x7a8] sm:$0xff] }
 0x43a   : > { %5385 = vmatmul.mubr.bf16.gmra.mrb[208].mxu1 %v12486_v28  ;;  %14278 = vst [vmem:[#allocation126_spill] sm:$0xff] %v12564_v5  ;;  %v9677_v28 = vcombine.low %v671_v36, %v675_v62  ;;  %6140 = vmatprep.mubr.bf16.mxu0 %v12564_v5  ;;  %v9685_v20 = vcombine.low %v679_v33, %v683_v16 }
 0x43b   : > { %5394 = vmatprep.mubr.bf16.mxu1 %v12508_v3  ;;  %v3078_v3 = vpop.f32.mrb[105].mxu1  ;;  %v9686_v36 = vcombine.high %v679_v33, %v683_v16  ;;  %v3716_v60 = vmax.f32 %v3077_v21, 0.0 }
 0x43c   : > { %v3079_v22 = vadd.f32 %v3078_v3, %v12562_v32  ;;  %v3080_v40 = vpop.f32.mrb[106].mxu1  ;;  %6338 = vmatpush1.bf16.msra.mxu0 %v9677_v28 }
 0x43d   : > { %v3081_v9 = vadd.f32 %v3080_v40, %v12556_v41  ;;  %v3082_v49 = vpop.f32.mrb[107].mxu1  ;;  %6339 = vmatprep.subr.bf16.mxu0 %v9686_v36  ;;  %v687_v40 = vld [vmem:[#allocation13 + $0x7c8] sm:$0xff] }
 0x43e   : > { %v3083_v39 = vadd.f32 %v3082_v49, %v12562_v32  ;;  %v3717_v62 = vmax.f32 %v3079_v22, 0.0  ;;  %v9694_v12 = vcombine.high %v687_v40, %v691_v2  ;;  %v9693_v28 = vcombine.low %v687_v40, %v691_v2  ;;  %v682_v2 = vld [vmem:[#allocation13 + $0x7a0] sm:$0xff] }
 0x43f   : > { %v3720_v3 = vmax.f32 %v3081_v9, 0.0 }
 0x440   : > { %6141 = vmatmul.mubr.bf16.gmra.mrb[28].mxu0 %v12558_v23  ;;  %v3721_v37 = vmax.f32 %v3083_v39, 0.0  ;;  %v3086_v57 = vpop.f32.mrb[108].mxu1 }
 0x441   : > { %v12574_v19 = vpack.c.bf16 %v3720_v3, %v3716_v60  ;;  %6340 = vmatpush1.bf16.msra.mxu0 %v9685_v20  ;;  %v3087_v54 = vadd.f32 %v3086_v57, %v12556_v41  ;;  %v3088_v21 = vpop.f32.mrb[109].mxu1  ;;  %v678_v57 = vld [vmem:[#allocation13 + $0x780] sm:$0xff] }
 0x442   : > { %5395 = vmatmul.mubr.bf16.gmra.mrb[212].mxu1 %v12502_v18  ;;  %v12576_v49 = vpack.c.bf16 %v3721_v37, %v3717_v62  ;;  %6341 = vmatprep.subr.bf16.mxu0 %v9694_v12  ;;  %v3089_v22 = vadd.f32 %v3088_v21, %v12562_v32  ;;  %v3090_v9 = vpop.f32.mrb[110].mxu1  ;;  %v9683_v3 = vcombine.low %v678_v57, %v682_v2 }
 0x443   : > { %5404 = vmatprep.mubr.bf16.mxu1 %v12520_v7  ;;  %14279 = vst [vmem:[#allocation33_spill] sm:$0xff] %v12574_v19  ;;  %v3091_v33 = vadd.f32 %v3090_v9, %v12556_v41  ;;  %v3092_v16 = vpop.f32.mrb[111].mxu1  ;;  %v3724_v36 = vmax.f32 %v3087_v54, 0.0  ;;  %v9684_v62 = vcombine.high %v678_v57, %v682_v2 }
 0x444   : > { %14280 = vst [vmem:[#allocation36_spill] sm:$0xff] %v12576_v49  ;;  %6150 = vmatprep.mubr.bf16.mxu0 %v12576_v49  ;;  %v3093_v39 = vadd.f32 %v3092_v16, %v12562_v32  ;;  %v3725_v12 = vmax.f32 %v3089_v22, 0.0 }
 0x445   : > { %6342 = vmatpush1.bf16.msra.mxu0 %v9693_v28  ;;  %v3728_v20 = vmax.f32 %v3091_v33, 0.0  ;;  %5633 = vmatprep.subr.bf16.mxu1 %v9684_v62 }
 0x446   : > { %v3729_v60 = vmax.f32 %v3093_v39, 0.0  ;;  %5634 = vmatpush1.bf16.msra.mxu1 %v9683_v3 }
 0x447   : > { %v12586_v37 = vpack.c.bf16 %v3728_v20, %v3724_v36 }
 0x448   : > { %6151 = vmatmul.mubr.bf16.gmra.mrb[32].mxu0 %v12574_v19  ;;  %v3096_v40 = vpop.f32.mrb[112].mxu1  ;;  %v12588_v21 = vpack.c.bf16 %v3729_v60, %v3725_v12 }
 0x449   : > { %v3097_v28 = vadd.f32 %v3096_v40, %v12556_v41  ;;  %v3098_v54 = vpop.f32.mrb[113].mxu1 }
 0x44a   : > { %5405 = vmatmul.mubr.bf16.gmra.mrb[216].mxu1 %v12518_v63  ;;  %14281 = vst [vmem:[#allocation125_spill] sm:$0xff] %v12588_v21  ;;  %v3099_v9 = vadd.f32 %v3098_v54, %v12562_v32  ;;  %v3100_v33 = vpop.f32.mrb[114].mxu1  ;;  %6160 = vmatprep.mubr.bf16.mxu0 %v12588_v21 }
 0x44b   : > { %5414 = vmatprep.mubr.bf16.mxu1 %v12532_v46  ;;  %v3101_v22 = vadd.f32 %v3100_v33, %v12556_v41  ;;  %v3102_v16 = vpop.f32.mrb[115].mxu1  ;;  %v3732_v36 = vmax.f32 %v3097_v28, 0.0 }
 0x44c   : > { %v3103_v39 = vadd.f32 %v3102_v16, %v12562_v32  ;;  %v3733_v57 = vmax.f32 %v3099_v9, 0.0 }
 0x44d   : > { %v3736_v20 = vmax.f32 %v3101_v22, 0.0 }
 0x44e   : > { %v3737_v2 = vmax.f32 %v3103_v39, 0.0 }
 0x44f   : > { %v12598_v12 = vpack.c.bf16 %v3736_v20, %v3732_v36  ;;  %v686_v36 = vld [vmem:[#allocation13 + $0x7c0] sm:$0xff] }
 0x450   : > { %6161 = vmatmul.mubr.bf16.gmra.mrb[36].mxu0 %v12586_v37  ;;  %v3106_v60 = vpop.f32.mrb[116].mxu1  ;;  %v12600_v3 = vpack.c.bf16 %v3737_v2, %v3733_v57  ;;  %v690_v20 = vld [vmem:[#allocation13 + $0x7e0] sm:$0xff] }
 0x451   : > { %14282 = vst [vmem:[#allocation34_spill] sm:$0xff] %v12598_v12  ;;  %v3107_v62 = vadd.f32 %v3106_v60, %v12556_v41  ;;  %v3108_v40 = vpop.f32.mrb[117].mxu1  ;;  %v9691_v60 = vcombine.low %v686_v36, %v690_v20 }
 0x452   : > { %5415 = vmatmul.mubr.bf16.gmra.mrb[220].mxu1 %v12530_v8  ;;  %14283 = vst [vmem:[#allocation127_spill] sm:$0xff] %v12600_v3  ;;  %v3109_v54 = vadd.f32 %v3108_v40, %v12562_v32  ;;  %v3110_v33 = vpop.f32.mrb[118].mxu1  ;;  %6170 = vmatprep.mubr.bf16.mxu0 %v12600_v3  ;;  %v9692_v40 = vcombine.high %v686_v36, %v690_v20 }
 0x453   : > { %5424 = vmatprep.mubr.bf16.mxu1 %v12544_v56  ;;  %v3111_v28 = vadd.f32 %v3110_v33, %v12556_v41  ;;  %v3112_v22 = vpop.f32.mrb[119].mxu1  ;;  %v3740_v16 = vmax.f32 %v3107_v62, 0.0  ;;  %v14284_v56 = vld [vmem:[#allocation60_spill] sm:$0xff] }
 0x454   : > { %v3113_v9 = vadd.f32 %v3112_v22, %v12562_v32  ;;  %v3741_v57 = vmax.f32 %v3109_v54, 0.0  ;;  %v12612_v41 = vrot.slane %v14284_v56, %v14266_v43  ;;  %v12618_v32 = vrot.slane %v14284_v56, %v14253_v14  ;;  %5635 = vmatprep.subr.bf16.mxu1 %v9692_v40 }
 0x455   : > { %v3744_v39 = vmax.f32 %v3111_v28, 0.0  ;;  %5636 = vmatpush1.bf16.msra.mxu1 %v9691_v60 }
 0x456   : > { %v3745_v2 = vmax.f32 %v3113_v9, 0.0 }
 0x457   : > { %v12614_v33 = vpack.c.bf16 %v3744_v39, %v3740_v16 }
 0x458   : > { %6171 = vmatmul.mubr.bf16.gmra.mrb[40].mxu0 %v12598_v12  ;;  %v3116_v62 = vpop.f32.mrb[120].mxu1  ;;  %v12620_v28 = vpack.c.bf16 %v3745_v2, %v3741_v57 }
 0x459   : > { %14285 = vst [vmem:[#allocation130_spill] sm:$0xff] %v12614_v33  ;;  %v3117_v54 = vadd.f32 %v3116_v62, %v12612_v41  ;;  %v3118_v22 = vpop.f32.mrb[121].mxu1 }
 0x45a   : > { %5425 = vmatmul.mubr.bf16.gmra.mrb[224].mxu1 %v12542_v44  ;;  %14286 = vst [vmem:[#allocation153_spill] sm:$0xff] %v12620_v28  ;;  %v3119_v9 = vadd.f32 %v3118_v22, %v12618_v32  ;;  %v3120_v36 = vpop.f32.mrb[122].mxu1  ;;  %6180 = vmatprep.mubr.bf16.mxu0 %v12620_v28 }
 0x45b   : > { %5434 = vmatprep.mubr.bf16.mxu1 %v12564_v5  ;;  %v3121_v16 = vadd.f32 %v3120_v36, %v12612_v41  ;;  %v3122_v39 = vpop.f32.mrb[123].mxu1  ;;  %v3748_v20 = vmax.f32 %v3117_v54, 0.0 }
 0x45c   : > { %v3123_v56 = vadd.f32 %v3122_v39, %v12618_v32  ;;  %v3749_v2 = vmax.f32 %v3119_v9, 0.0 }
 0x45d   : > { %v3752_v57 = vmax.f32 %v3121_v16, 0.0 }
 0x45e   : > { %v3753_v40 = vmax.f32 %v3123_v56, 0.0 }
 0x45f   : > { %v12630_v60 = vpack.c.bf16 %v3752_v57, %v3748_v20  ;;  %v12641_v20 = vld [vmem:[#allocation13 + $0x10] sm:$0xff] }
 0x460   : > { %6181 = vmatmul.mubr.bf16.gmra.mrb[44].mxu0 %v12614_v33  ;;  %v3126_v62 = vpop.f32.mrb[124].mxu1  ;;  %v12632_v22 = vpack.c.bf16 %v3753_v40, %v3749_v2  ;;  %v12643_v57 = vld [vmem:[#allocation13 + $0x30] sm:$0xff]  ;;  %v12645_v2 = vld [vmem:[#allocation13 + $0x18] sm:$0xff] }
 0x461   : > { %14287 = vst [vmem:[#allocation154_spill] sm:$0xff] %v12630_v60  ;;  %v3127_v36 = vadd.f32 %v3126_v62, %v12612_v41  ;;  %v3128_v5 = vpop.f32.mrb[125].mxu1  ;;  %v9448_v62 = vcombine.high %v12641_v20, %v12643_v57 }
 0x462   : > { %5435 = vmatmul.mubr.bf16.gmra.mrb[228].mxu1 %v12558_v23  ;;  %14288 = vst [vmem:[#allocation159_spill] sm:$0xff] %v12632_v22  ;;  %v3129_v44 = vadd.f32 %v3128_v5, %v12618_v32  ;;  %v3130_v8 = vpop.f32.mrb[126].mxu1  ;;  %6190 = vmatprep.mubr.bf16.mxu0 %v12632_v22 }
 0x463   : > { %5444 = vmatprep.mubr.bf16.mxu1 %v12576_v49  ;;  %v3131_v54 = vadd.f32 %v3130_v8, %v12612_v41  ;;  %v3132_v16 = vpop.f32.mrb[127].mxu1  ;;  %v3756_v39 = vmax.f32 %v3127_v36, 0.0  ;;  %v12652_v36 = vld [vmem:[#allocation13 + $0x38] sm:$0xff]  ;;  %6664 = vmatprep.subr.bf16.mxu1 %v9448_v62 }
 0x464   : > { %v3133_v9 = vadd.f32 %v3132_v16, %v12618_v32  ;;  %v3757_v5 = vmax.f32 %v3129_v44, 0.0 }
 0x465   : > { %v3760_v56 = vmax.f32 %v3131_v54, 0.0 }
 0x466   : > { %v3761_v40 = vmax.f32 %v3133_v9, 0.0 }
 0x467   : > { %v12654_v54 = vpack.c.bf16 %v3760_v56, %v3756_v39 }
 0x468   : > { %6191 = vmatmul.mubr.bf16.gmra.mrb[48].mxu0 %v12630_v60  ;;  %v3136_v44 = vpop.f32.mrb[128].mxu1  ;;  %v12660_v9 = vpack.c.bf16 %v3761_v40, %v3757_v5 }
 0x469   : > { %v3138_v8 = vpop.f32.mrb[129].mxu1 }
 0x46a   : > { %5445 = vmatmul.mubr.bf16.gmra.mrb[232].mxu1 %v12574_v19  ;;  %v9450_v19 = vcombine.high %v12645_v2, %v12652_v36  ;;  %14289 = vst [vmem:[#allocation40_spill] sm:$0xff] %v12660_v9  ;;  %v3139_v49 = vadd.f32 %v3138_v8, %v12618_v32  ;;  %v3140_v23 = vpop.f32.mrb[130].mxu1  ;;  %6200 = vmatprep.mubr.bf16.mxu0 %v12660_v9 }
 0x46b   : > { %5454 = vmatprep.mubr.bf16.mxu1 %v12588_v21  ;;  %v3137_v21 = vadd.f32 %v3136_v44, %v12612_v41  ;;  %v3141_v39 = vadd.f32 %v3140_v23, %v12612_v41  ;;  %v3142_v56 = vpop.f32.mrb[131].mxu1 }
 0x46c   : > { %7370 = vmatprep.subr.bf16.mxu0 %v9450_v19  ;;  %v3143_v16 = vadd.f32 %v3142_v56, %v12618_v32  ;;  %v3765_v40 = vmax.f32 %v3139_v49, 0.0 }
 0x46d   : > { %v3764_v46 = vmax.f32 %v3137_v21, 0.0  ;;  %v3768_v5 = vmax.f32 %v3141_v39, 0.0 }
 0x46e   : > { %v3769_v62 = vmax.f32 %v3143_v16, 0.0 }
 0x46f   : > { %v12670_v19 = vpack.c.bf16 %v3768_v5, %v3764_v46 }
 0x470   : > { %6201 = vmatmul.mubr.bf16.gmra.mrb[52].mxu0 %v12654_v54  ;;  %v3146_v8 = vpop.f32.mrb[132].mxu1  ;;  %v12672_v44 = vpack.c.bf16 %v3769_v62, %v3765_v40 }
 0x471   : > { %v3147_v23 = vadd.f32 %v3146_v8, %v12612_v41  ;;  %v3148_v63 = vpop.f32.mrb[133].mxu1 }
 0x472   : > { %5455 = vmatmul.mubr.bf16.gmra.mrb[236].mxu1 %v12586_v37  ;;  %v3149_v7 = vadd.f32 %v3148_v63, %v12618_v32  ;;  %v3150_v18 = vpop.f32.mrb[134].mxu1  ;;  %6210 = vmatprep.mubr.bf16.mxu0 %v12672_v44  ;;  %v12684_v63 = vrot.slane %v11763_v4, %v14266_v43 }
 0x473   : > { %5464 = vmatprep.mubr.bf16.mxu1 %v12600_v3  ;;  %v3151_v21 = vadd.f32 %v3150_v18, %v12612_v41  ;;  %v3152_v39 = vpop.f32.mrb[135].mxu1  ;;  %v3772_v46 = vmax.f32 %v3147_v23, 0.0  ;;  %v12690_v18 = vrot.slane %v11763_v4, %v14253_v14 }
 0x474   : > { %v3153_v49 = vadd.f32 %v3152_v39, %v12618_v32  ;;  %v3773_v56 = vmax.f32 %v3149_v7, 0.0 }
 0x475   : > { %v3776_v16 = vmax.f32 %v3151_v21, 0.0 }
 0x476   : > { %v3777_v5 = vmax.f32 %v3153_v49, 0.0 }
 0x477   : > { %v12686_v40 = vpack.c.bf16 %v3776_v16, %v3772_v46 }
 0x478   : > { %6211 = vmatmul.mubr.bf16.gmra.mrb[56].mxu0 %v12670_v19  ;;  %v3156_v41 = vpop.f32.mrb[136].mxu1  ;;  %v12692_v32 = vpack.c.bf16 %v3777_v5, %v3773_v56 }
 0x479   : > { %14290 = vst [vmem:[#allocation128_spill] sm:$0xff] %v12686_v40  ;;  %v3157_v62 = vadd.f32 %v3156_v41, %v12684_v63  ;;  %v3158_v8 = vpop.f32.mrb[137].mxu1 }
 0x47a   : > { %5465 = vmatmul.mubr.bf16.gmra.mrb[240].mxu1 %v12598_v12  ;;  %14291 = vst [vmem:[#allocation42_spill] sm:$0xff] %v12692_v32  ;;  %v3159_v7 = vadd.f32 %v3158_v8, %v12690_v18  ;;  %v3160_v23 = vpop.f32.mrb[138].mxu1  ;;  %6220 = vmatprep.mubr.bf16.mxu0 %v12692_v32 }
 0x47b   : > { %5474 = vmatprep.mubr.bf16.mxu1 %v12620_v28  ;;  %v3161_v21 = vadd.f32 %v3160_v23, %v12684_v63  ;;  %v3162_v39 = vpop.f32.mrb[139].mxu1  ;;  %v3780_v4 = vmax.f32 %v3157_v62, 0.0 }
 0x47c   : > { %v3163_v49 = vadd.f32 %v3162_v39, %v12690_v18  ;;  %v3781_v16 = vmax.f32 %v3159_v7, 0.0 }
 0x47d   : > { %v3784_v46 = vmax.f32 %v3161_v21, 0.0 }
 0x47e   : > { %v3785_v56 = vmax.f32 %v3163_v49, 0.0 }
 0x47f   : > { %v12702_v5 = vpack.c.bf16 %v3784_v46, %v3780_v4 }
 0x480   : > { %6221 = vmatmul.mubr.bf16.gmra.mrb[60].mxu0 %v12686_v40  ;;  %v3166_v41 = vpop.f32.mrb[140].mxu1  ;;  %v12704_v8 = vpack.c.bf16 %v3785_v56, %v3781_v16 }
 0x481   : > { %14292 = vst [vmem:[#allocation133_spill] sm:$0xff] %v12702_v5  ;;  %v3167_v23 = vadd.f32 %v3166_v41, %v12684_v63  ;;  %v3168_v28 = vpop.f32.mrb[141].mxu1 }
 0x482   : > { %5475 = vmatmul.mubr.bf16.gmra.mrb[244].mxu1 %v12614_v33  ;;  %14293 = vst [vmem:[#allocation35_spill] sm:$0xff] %v12704_v8  ;;  %v3169_v12 = vadd.f32 %v3168_v28, %v12690_v18  ;;  %v3170_v3 = vpop.f32.mrb[142].mxu1  ;;  %6230 = vmatprep.mubr.bf16.mxu0 %v12704_v8 }
 0x483   : > { %5484 = vmatprep.mubr.bf16.mxu1 %v12632_v22  ;;  %v3171_v62 = vadd.f32 %v3170_v3, %v12684_v63  ;;  %v3172_v21 = vpop.f32.mrb[143].mxu1  ;;  %v3788_v39 = vmax.f32 %v3167_v23, 0.0 }
 0x484   : > { %v3173_v7 = vadd.f32 %v3172_v21, %v12690_v18  ;;  %v3789_v4 = vmax.f32 %v3169_v12, 0.0 }
 0x485   : > { %v3792_v49 = vmax.f32 %v3171_v62, 0.0 }
 0x486   : > { %v3793_v46 = vmax.f32 %v3173_v7, 0.0 }
 0x487   : > { %v12714_v16 = vpack.c.bf16 %v3792_v49, %v3788_v39 }
 0x488   : > { %6231 = vmatmul.mubr.bf16.gmra.mrb[64].mxu0 %v12702_v5  ;;  %v3176_v28 = vpop.f32.mrb[144].mxu1  ;;  %v12716_v56 = vpack.c.bf16 %v3793_v46, %v3789_v4 }
 0x489   : > { %v3177_v3 = vadd.f32 %v3176_v28, %v12684_v63  ;;  %v3178_v41 = vpop.f32.mrb[145].mxu1 }
 0x48a   : > { %5485 = vmatmul.mubr.bf16.gmra.mrb[248].mxu1 %v12630_v60  ;;  %14294 = vst [vmem:[#allocation39_spill] sm:$0xff] %v12716_v56  ;;  %v3179_v22 = vadd.f32 %v3178_v41, %v12690_v18  ;;  %v3180_v33 = vpop.f32.mrb[146].mxu1  ;;  %6240 = vmatprep.mubr.bf16.mxu0 %v12716_v56 }
 0x48b   : > { %5494 = vmatprep.mubr.bf16.mxu1 %v12660_v9  ;;  %v3181_v23 = vadd.f32 %v3180_v33, %v12684_v63  ;;  %v3182_v62 = vpop.f32.mrb[147].mxu1  ;;  %v3796_v21 = vmax.f32 %v3177_v3, 0.0 }
 0x48c   : > { %v3183_v12 = vadd.f32 %v3182_v62, %v12690_v18  ;;  %v3797_v39 = vmax.f32 %v3179_v22, 0.0 }
 0x48d   : > { %v3800_v7 = vmax.f32 %v3181_v23, 0.0 }
 0x48e   : > { %v3801_v49 = vmax.f32 %v3183_v12, 0.0 }
 0x48f   : > { %v12726_v4 = vpack.c.bf16 %v3800_v7, %v3796_v21 }
 0x490   : > { %6241 = vmatmul.mubr.bf16.gmra.mrb[68].mxu0 %v12714_v16  ;;  %v3186_v46 = vpop.f32.mrb[148].mxu1  ;;  %v12728_v28 = vpack.c.bf16 %v3801_v49, %v3797_v39  ;;  %v12740_v39 = vrot.slane %v11767_v50, %v14266_v43 }
 0x491   : > { %v3187_v33 = vadd.f32 %v3186_v46, %v12684_v63  ;;  %v3188_v41 = vpop.f32.mrb[149].mxu1 }
 0x492   : > { %5495 = vmatmul.mubr.bf16.gmra.mrb[252].mxu1 %v12654_v54  ;;  %v3189_v9 = vadd.f32 %v3188_v41, %v12690_v18  ;;  %v3190_v60 = vpop.f32.mrb[150].mxu1  ;;  %6250 = vmatprep.mubr.bf16.mxu0 %v12728_v28 }
 0x493   : > { %5504 = vmatprep.mubr.bf16.mxu1 %v12672_v44  ;;  %v3191_v3 = vadd.f32 %v3190_v60, %v12684_v63  ;;  %v3192_v23 = vpop.f32.mrb[151].mxu1  ;;  %v3804_v62 = vmax.f32 %v3187_v33, 0.0  ;;  %v12746_v60 = vrot.slane %v11767_v50, %v14253_v14 }
 0x494   : > { %v3193_v22 = vadd.f32 %v3192_v23, %v12690_v18  ;;  %v3805_v21 = vmax.f32 %v3189_v9, 0.0 }
 0x495   : > { %v3808_v12 = vmax.f32 %v3191_v3, 0.0 }
 0x496   : > { %v3809_v7 = vmax.f32 %v3193_v22, 0.0 }
 0x497   : > { %v12742_v49 = vpack.c.bf16 %v3808_v12, %v3804_v62 }
 0x498   : > { %6251 = vmatmul.mubr.bf16.gmra.mrb[72].mxu0 %v12726_v4  ;;  %v3196_v63 = vpop.f32.mrb[152].mxu1  ;;  %v12748_v18 = vpack.c.bf16 %v3809_v7, %v3805_v21 }
 0x499   : > { %v3197_v46 = vadd.f32 %v3196_v63, %v12740_v39  ;;  %v3198_v33 = vpop.f32.mrb[153].mxu1 }
 0x49a   : > { %5505 = vmatmul.mubr.bf16.gmra.mrb[0].mxu1 %v12670_v19  ;;  %v3199_v9 = vadd.f32 %v3198_v33, %v12746_v60  ;;  %v3200_v41 = vpop.f32.mrb[154].mxu1  ;;  %6260 = vmatprep.mubr.bf16.mxu0 %v12748_v18 }
 0x49b   : > { %5514 = vmatprep.mubr.bf16.mxu1 %v12692_v32  ;;  %v3201_v3 = vadd.f32 %v3200_v41, %v12740_v39  ;;  %v3202_v23 = vpop.f32.mrb[155].mxu1  ;;  %v3812_v50 = vmax.f32 %v3197_v46, 0.0 }
 0x49c   : > { %v3203_v22 = vadd.f32 %v3202_v23, %v12746_v60  ;;  %v3813_v12 = vmax.f32 %v3199_v9, 0.0 }
 0x49d   : > { %v3816_v62 = vmax.f32 %v3201_v3, 0.0 }
 0x49e   : > { %v3817_v21 = vmax.f32 %v3203_v22, 0.0 }
 0x49f   : > { %v12758_v7 = vpack.c.bf16 %v3816_v62, %v3812_v50 }
 0x4a0   : > { %6261 = vmatmul.mubr.bf16.gmra.mrb[76].mxu0 %v12742_v49  ;;  %v3206_v63 = vpop.f32.mrb[156].mxu1  ;;  %v12760_v33 = vpack.c.bf16 %v3817_v21, %v3813_v12 }
 0x4a1   : > { %v3207_v41 = vadd.f32 %v3206_v63, %v12740_v39  ;;  %v3208_v14 = vpop.f32.mrb[157].mxu1 }
 0x4a2   : > { %5515 = vmatmul.mubr.bf16.gmra.mrb[4].mxu1 %v12686_v40  ;;  %v3209_v43 = vadd.f32 %v3208_v14, %v12746_v60  ;;  %v3210_v32 = vpop.f32.mrb[158].mxu1  ;;  %6270 = vmatprep.mubr.bf16.mxu0 %v12760_v33 }
 0x4a3   : > { %5524 = vmatprep.mubr.bf16.mxu1 %v12704_v8  ;;  %v3211_v46 = vadd.f32 %v3210_v32, %v12740_v39  ;;  %v3212_v3 = vpop.f32.mrb[159].mxu1  ;;  %v3820_v23 = vmax.f32 %v3207_v41, 0.0 }
 0x4a4   : > { %v3213_v9 = vadd.f32 %v3212_v3, %v12746_v60  ;;  %v3821_v50 = vmax.f32 %v3209_v43, 0.0 }
 0x4a5   : > { %v3824_v22 = vmax.f32 %v3211_v46, 0.0 }
 0x4a6   : > { %v3825_v62 = vmax.f32 %v3213_v9, 0.0 }
 0x4a7   : > { %v12770_v12 = vpack.c.bf16 %v3824_v22, %v3820_v23 }
 0x4a8   : > { %6271 = vmatmul.mubr.bf16.gmra.mrb[80].mxu0 %v12758_v7  ;;  %v3216_v14 = vpop.f32.mrb[160].mxu1  ;;  %v12772_v21 = vpack.c.bf16 %v3825_v62, %v3821_v50 }
 0x4a9   : > { %v3217_v32 = vadd.f32 %v3216_v14, %v12740_v39  ;;  %v3218_v63 = vpop.f32.mrb[161].mxu1 }
 0x4aa   : > { %5525 = vmatmul.mubr.bf16.gmra.mrb[8].mxu1 %v12702_v5  ;;  %v3219_v8 = vadd.f32 %v3218_v63, %v12746_v60  ;;  %v3220_v40 = vpop.f32.mrb[162].mxu1  ;;  %6280 = vmatprep.mubr.bf16.mxu0 %v12772_v21 }
 0x4ab   : > { %5534 = vmatprep.mubr.bf16.mxu1 %v12716_v56  ;;  %v3221_v41 = vadd.f32 %v3220_v40, %v12740_v39  ;;  %v3222_v46 = vpop.f32.mrb[163].mxu1  ;;  %v3828_v3 = vmax.f32 %v3217_v32, 0.0 }
 0x4ac   : > { %v3223_v43 = vadd.f32 %v3222_v46, %v12746_v60  ;;  %v3829_v23 = vmax.f32 %v3219_v8, 0.0 }
 0x4ad   : > { %v3832_v9 = vmax.f32 %v3221_v41, 0.0 }
 0x4ae   : > { %v3833_v22 = vmax.f32 %v3223_v43, 0.0 }
 0x4af   : > { %v12782_v50 = vpack.c.bf16 %v3832_v9, %v3828_v3 }
 0x4b0   : > { %6281 = vmatmul.mubr.bf16.gmra.mrb[84].mxu0 %v12770_v12  ;;  %v12784_v14 = vpack.c.bf16 %v3833_v22, %v3829_v23 }
 0x4b1   : > { %v3226_v62 = vpop.f32.mrb[164].mxu1 }
 0x4b2   : > { %5535 = vmatmul.mubr.bf16.gmra.mrb[12].mxu1 %v12714_v16  ;;  %v3227_v40 = vadd.f32 %v3226_v62, %v12740_v39  ;;  %v3228_v63 = vpop.f32.mrb[165].mxu1  ;;  %6290 = vmatprep.mubr.bf16.mxu0 %v12784_v14  ;;  %v461_v62 = vld [vmem:[#allocation13 + $0xb8] sm:$0xff] }
 0x4b3   : > { %5544 = vmatprep.mubr.bf16.mxu1 %v12728_v28  ;;  %v3229_v56 = vadd.f32 %v3228_v63, %v12746_v60  ;;  %v3230_v5 = vpop.f32.mrb[166].mxu1 }
 0x4b4   : > { %v3231_v32 = vadd.f32 %v3230_v5, %v12740_v39  ;;  %v3232_v41 = vpop.f32.mrb[167].mxu1  ;;  %v3836_v46 = vmax.f32 %v3227_v40, 0.0  ;;  %v449_v5 = vld [vmem:[#allocation13 + $0x58] sm:$0xff]  ;;  %v14295_v40 = vcombine.low %v12645_v2, %v12652_v36 }
 0x4b5   : > { %v3233_v8 = vadd.f32 %v3232_v41, %v12746_v60  ;;  %v3837_v3 = vmax.f32 %v3229_v56, 0.0  ;;  %v453_v39 = vld [vmem:[#allocation13 + $0x78] sm:$0xff] }
 0x4b6   : > { %v3840_v43 = vmax.f32 %v3231_v32, 0.0  ;;  %v9458_v56 = vcombine.high %v449_v5, %v453_v39  ;;  %v457_v60 = vld [vmem:[#allocation13 + $0x98] sm:$0xff]  ;;  %v9457_v63 = vcombine.low %v449_v5, %v453_v39 }
 0x4b7   : > { %v3841_v9 = vmax.f32 %v3233_v8, 0.0  ;;  %v9466_v32 = vcombine.high %v457_v60, %v461_v62  ;;  %v465_v41 = vld [vmem:[#allocation13 + $0xd8] sm:$0xff] }
 0x4b8   : > { %6291 = vmatmul.mubr.bf16.gmra.mrb[88].mxu0 %v12782_v50  ;;  %v12794_v23 = vpack.c.bf16 %v3840_v43, %v3836_v46  ;;  %v469_v8 = vld [vmem:[#allocation13 + $0xf8] sm:$0xff]  ;;  %v9465_v46 = vcombine.low %v457_v60, %v461_v62 }
 0x4b9   : > { %v12796_v22 = vpack.c.bf16 %v3841_v9, %v3837_v3  ;;  %v9474_v43 = vcombine.high %v465_v41, %v469_v8  ;;  %v473_v3 = vld [vmem:[#allocation13 + $0x118] sm:$0xff]  ;;  %v9473_v2 = vcombine.low %v465_v41, %v469_v8 }
 0x4ba   : > { %5545 = vmatmul.mubr.bf16.gmra.mrb[16].mxu1 %v12726_v4  ;;  %v477_v9 = vld [vmem:[#allocation13 + $0x138] sm:$0xff] }
 0x4bb   : > { %5554 = vmatprep.mubr.bf16.mxu1 %v12748_v18  ;;  %6300 = vmatprep.mubr.bf16.mxu0 %v12796_v22  ;;  %v9482_v36 = vcombine.high %v473_v3, %v477_v9  ;;  %v481_v5 = vld [vmem:[#allocation13 + $0x158] sm:$0xff] }
 0x4bc   : > { %v485_v39 = vld [vmem:[#allocation13 + $0x178] sm:$0xff] }
 0x4bd   : > { %v9490_v60 = vcombine.high %v481_v5, %v485_v39  ;;  %v489_v62 = vld [vmem:[#allocation13 + $0x198] sm:$0xff] }
 0x4be   : > { %v497_v41 = vld [vmem:[#allocation13 + $0x1d8] sm:$0xff] }
 0x4bf   : > { %v501_v8 = vld [vmem:[#allocation13 + $0x1f8] sm:$0xff] }
 0x4c0   : > { %6301 = vmatmul.mubr.bf16.gmra.mrb[92].mxu0 %v12794_v23 }
 0x4c1   : > { %6343 = vmatprep.mubr.bf16.mxu0 %v11839_v61 }
 0x4c2   : > { %5555 = vmatmul.mubr.bf16.gmra.mrb[20].mxu1 %v12742_v49 }
 0x4c3   : > { %5564 = vmatprep.mubr.bf16.mxu1 %v12760_v33 }
 0x4c8   : > { %6344 = vmatmul.mubr.bf16.vlgmr.msra.gmra.mrb[224].mxu0 %v11841_v26 }
 0x4c9   : > { %6353 = vmatprep.mubr.bf16.mxu0 %v11845_v38  ;;  %7371 = vmatpush1.bf16.msra.mxu0 %v14295_v40  ;;  %v493_v40 = vld [vmem:[#allocation13 + $0x1b8] sm:$0xff] }
 0x4ca   : > { %5565 = vmatmul.mubr.bf16.gmra.mrb[24].mxu1 %v12758_v7  ;;  %7372 = vmatprep.subr.bf16.mxu0 %v9458_v56  ;;  %v9481_v56 = vcombine.low %v473_v3, %v477_v9  ;;  %v9505_v3 = vcombine.low %v497_v41, %v501_v8  ;;  %v448_v9 = vld [vmem:[#allocation13 + $0x50] sm:$0xff] }
 0x4cb   : > { %5574 = vmatprep.mubr.bf16.mxu1 %v12772_v21 }
 0x4cd   : > { %7373 = vmatpush1.bf16.msra.mxu0 %v9457_v63  ;;  %v9489_v63 = vcombine.low %v481_v5, %v485_v39  ;;  %v456_v5 = vld [vmem:[#allocation13 + $0x90] sm:$0xff] }
 0x4ce   : > { %7374 = vmatprep.subr.bf16.mxu0 %v9466_v32  ;;  %v9498_v32 = vcombine.high %v489_v62, %v493_v40  ;;  %v460_v39 = vld [vmem:[#allocation13 + $0xb0] sm:$0xff] }
 0x4d0   : > { %6354 = vmatmul.mubr.bf16.gmra.mrb[228].mxu0 %v11847_v42 }
 0x4d1   : > { %6363 = vmatprep.mubr.bf16.mxu0 %v11861_v59  ;;  %7375 = vmatpush1.bf16.msra.mxu0 %v9465_v46  ;;  %v9497_v46 = vcombine.low %v489_v62, %v493_v40  ;;  %v509_v40 = vld [vmem:[#allocation13 + $0x238] sm:$0xff] }
 0x4d2   : > { %5575 = vmatmul.mubr.bf16.gmra.mrb[28].mxu1 %v12770_v12  ;;  %7376 = vmatprep.subr.bf16.mxu0 %v9474_v43  ;;  %v9506_v43 = vcombine.high %v497_v41, %v501_v8  ;;  %v464_v8 = vld [vmem:[#allocation13 + $0xd0] sm:$0xff] }
 0x4d3   : > { %5584 = vmatprep.mubr.bf16.mxu1 %v12784_v14 }
 0x4d5   : > { %7377 = vmatpush1.bf16.msra.mxu0 %v9473_v2  ;;  %v452_v2 = vld [vmem:[#allocation13 + $0x70] sm:$0xff] }
 0x4d6   : > { %7378 = vmatprep.subr.bf16.mxu0 %v9482_v36  ;;  %v9456_v36 = vcombine.high %v448_v9, %v452_v2  ;;  %v9455_v62 = vcombine.low %v448_v9, %v452_v2 }
 0x4d8   : > { %6364 = vmatmul.mubr.bf16.gmra.mrb[232].mxu0 %v11865_v27 }
 0x4d9   : > { %6373 = vmatprep.mubr.bf16.mxu0 %v11877_v53  ;;  %7379 = vmatpush1.bf16.msra.mxu0 %v9481_v56  ;;  %v505_v56 = vld [vmem:[#allocation13 + $0x218] sm:$0xff] }
 0x4da   : > { %5585 = vmatmul.mubr.bf16.gmra.mrb[32].mxu1 %v12782_v50  ;;  %7380 = vmatprep.subr.bf16.mxu0 %v9490_v60  ;;  %v14296_v60 = vcombine.low %v12641_v20, %v12643_v57  ;;  %v9514_v41 = vcombine.high %v505_v56, %v509_v40  ;;  %v472_v20 = vld [vmem:[#allocation13 + $0x110] sm:$0xff] }
 0x4db   : > { %5594 = vmatprep.mubr.bf16.mxu1 %v12796_v22  ;;  %v476_v57 = vld [vmem:[#allocation13 + $0x130] sm:$0xff] }
 0x4dc   : > { %v9480_v2 = vcombine.high %v472_v20, %v476_v57 }
 0x4dd   : > { %7381 = vmatpush1.bf16.msra.mxu0 %v9489_v63  ;;  %v9464_v63 = vcombine.high %v456_v5, %v460_v39 }
 0x4de   : > { %7382 = vmatprep.subr.bf16.mxu0 %v9498_v32  ;;  %v9513_v32 = vcombine.low %v505_v56, %v509_v40  ;;  %v484_v56 = vld [vmem:[#allocation13 + $0x170] sm:$0xff] }
 0x4df   : > { %v492_v40 = vld [vmem:[#allocation13 + $0x1b0] sm:$0xff] }
 0x4e0   : > { %6374 = vmatmul.mubr.bf16.gmra.mrb[236].mxu0 %v11885_v15 }
 0x4e1   : > { %6383 = vmatprep.mubr.bf16.mxu0 %v11895_v10  ;;  %7383 = vmatpush1.bf16.msra.mxu0 %v9497_v46  ;;  %v468_v46 = vld [vmem:[#allocation13 + $0xf0] sm:$0xff] }
 0x4e2   : > { %5595 = vmatmul.mubr.bf16.gmra.mrb[36].mxu1 %v12794_v23  ;;  %7384 = vmatprep.subr.bf16.mxu0 %v9506_v43  ;;  %v9463_v43 = vcombine.low %v456_v5, %v460_v39  ;;  %v9471_v9 = vcombine.low %v464_v8, %v468_v46  ;;  %v9479_v5 = vcombine.low %v472_v20, %v476_v57  ;;  %v500_v20 = vld [vmem:[#allocation13 + $0x1f0] sm:$0xff] }
 0x4e3   : > { %5637 = vmatprep.mubr.bf16.mxu1 %v11839_v61 }
 0x4e5   : > { %7385 = vmatpush1.bf16.msra.mxu0 %v9505_v3  ;;  %v9472_v3 = vcombine.high %v464_v8, %v468_v46 }
 0x4e6   : > { %7386 = vmatprep.subr.bf16.mxu0 %v9514_v41  ;;  %v517_v41 = vld [vmem:[#allocation13 + $0x278] sm:$0xff] }
 0x4e8   : > { %6384 = vmatmul.mubr.bf16.gmra.mrb[240].mxu0 %v11907_v34 }
 0x4e9   : > { %6393 = vmatprep.mubr.bf16.mxu0 %v11909_v47  ;;  %7387 = vmatpush1.bf16.msra.mxu0 %v9513_v32 }
 0x4ea   : > { %5638 = vmatmul.mubr.bf16.vlgmr.msra.gmra.mrb[168].mxu1 %v11841_v26  ;;  %v14350_v26 = vld [vmem:[#allocation157_spill] sm:$0xff] }
 0x4eb   : > { %5647 = vmatprep.mubr.bf16.mxu1 %v11845_v38  ;;  %6665 = vmatpush1.bf16.msra.mxu1 %v14296_v60  ;;  %v14297_v60 = vld [vmem:[#allocation67_spill] sm:$0xff] }
 0x4ec   : > { %6666 = vmatprep.subr.bf16.mxu1 %v9456_v36  ;;  %v480_v36 = vld [vmem:[#allocation13 + $0x150] sm:$0xff] }
 0x4ed   : > { %v9488_v39 = vcombine.high %v480_v36, %v484_v56  ;;  %v9487_v32 = vcombine.low %v480_v36, %v484_v56 }
 0x4ef   : > { %6667 = vmatpush1.bf16.msra.mxu1 %v9455_v62  ;;  %v488_v62 = vld [vmem:[#allocation13 + $0x190] sm:$0xff] }
 0x4f0   : > { %6394 = vmatmul.mubr.bf16.gmra.mrb[244].mxu0 %v11915_v48  ;;  %6668 = vmatprep.subr.bf16.mxu1 %v9464_v63  ;;  %v513_v63 = vld [vmem:[#allocation13 + $0x258] sm:$0xff]  ;;  %v9496_v8 = vcombine.high %v488_v62, %v492_v40  ;;  %v9495_v57 = vcombine.low %v488_v62, %v492_v40  ;;  %v14300_v40 = vld [vmem:[#allocation69_spill] sm:$0xff] }
 0x4f1   : > { %6403 = vmatprep.mubr.bf16.mxu0 %v11925_v55  ;;  %v9521_v46 = vcombine.low %v513_v63, %v517_v41 }
 0x4f2   : > { %5648 = vmatmul.mubr.bf16.gmra.mrb[172].mxu1 %v11847_v42 }
 0x4f3   : > { %5657 = vmatprep.mubr.bf16.mxu1 %v11861_v59  ;;  %6669 = vmatpush1.bf16.msra.mxu1 %v9463_v43  ;;  %v9522_v43 = vcombine.high %v513_v63, %v517_v41  ;;  %v516_v63 = vld [vmem:[#allocation13 + $0x270] sm:$0xff] }
 0x4f4   : > { %6670 = vmatprep.subr.bf16.mxu1 %v9472_v3  ;;  %v496_v3 = vld [vmem:[#allocation13 + $0x1d0] sm:$0xff] }
 0x4f5   : > { %7388 = vmatprep.subr.bf16.mxu0 %v9522_v43  ;;  %v9503_v36 = vcombine.low %v496_v3, %v500_v20  ;;  %v14301_v41 = vld [vmem:[#allocation71_spill] sm:$0xff]  ;;  %v521_v43 = vld [vmem:[#allocation13 + $0x298] sm:$0xff] }
 0x4f6   : > { %7389 = vmatpush1.bf16.msra.mxu0 %v9521_v46  ;;  %v524_v46 = vld [vmem:[#allocation13 + $0x2b0] sm:$0xff] }
 0x4f7   : > { %6671 = vmatpush1.bf16.msra.mxu1 %v9471_v9  ;;  %v14298_v9 = vld [vmem:[#allocation70_spill] sm:$0xff] }
 0x4f8   : > { %6404 = vmatmul.mubr.bf16.gmra.mrb[248].mxu0 %v11929_v52  ;;  %6672 = vmatprep.subr.bf16.mxu1 %v9480_v2  ;;  %v9504_v2 = vcombine.high %v496_v3, %v500_v20  ;;  %v525_v20 = vld [vmem:[#allocation13 + $0x2b8] sm:$0xff] }
 0x4f9   : > { %6413 = vmatprep.mubr.bf16.mxu0 %v14297_v60 }
 0x4fa   : > { %5658 = vmatmul.mubr.bf16.gmra.mrb[176].mxu1 %v11865_v27  ;;  %v14299_v27 = vld [vmem:[#allocation72_spill] sm:$0xff] }
 0x4fb   : > { %5667 = vmatprep.mubr.bf16.mxu1 %v11877_v53  ;;  %6673 = vmatpush1.bf16.msra.mxu1 %v9479_v5  ;;  %v504_v53 = vld [vmem:[#allocation13 + $0x210] sm:$0xff] }
 0x4fc   : > { %6674 = vmatprep.subr.bf16.mxu1 %v9488_v39  ;;  %v508_v5 = vld [vmem:[#allocation13 + $0x230] sm:$0xff] }
 0x4fd   : > { %v9512_v56 = vcombine.high %v504_v53, %v508_v5  ;;  %v512_v39 = vld [vmem:[#allocation13 + $0x250] sm:$0xff]  ;;  %v9511_v62 = vcombine.low %v504_v53, %v508_v5  ;;  %v9530_v53 = vcombine.high %v521_v43, %v525_v20 }
 0x4fe   : > { %v9519_v3 = vcombine.low %v512_v39, %v516_v63 }
 0x4ff   : > { %6675 = vmatpush1.bf16.msra.mxu1 %v9487_v32  ;;  %v9520_v32 = vcombine.high %v512_v39, %v516_v63  ;;  %7390 = vmatprep.subr.bf16.mxu0 %v9530_v53  ;;  %v14304_v39 = vld [vmem:[#allocation21_spill] sm:$0xff]  ;;  %v14307_v53 = vld [vmem:[#allocation23_spill] sm:$0xff] }
 0x500   : > { %6414 = vmatmul.mubr.bf16.gmra.mrb[252].mxu0 %v14298_v9  ;;  %6676 = vmatprep.subr.bf16.mxu1 %v9496_v8  ;;  %v520_v8 = vld [vmem:[#allocation13 + $0x290] sm:$0xff]  ;;  %v14305_v63 = vld [vmem:[#allocation73_spill] sm:$0xff] }
 0x501   : > { %6423 = vmatprep.mubr.bf16.mxu0 %v14299_v27  ;;  %v9527_v5 = vcombine.low %v520_v8, %v524_v46 }
 0x502   : > { %5668 = vmatmul.mubr.bf16.gmra.mrb[180].mxu1 %v11885_v15  ;;  %v14336_v15 = vld [vmem:[#allocation86_spill] sm:$0xff] }
 0x503   : > { %5677 = vmatprep.mubr.bf16.mxu1 %v11895_v10  ;;  %6677 = vmatpush1.bf16.msra.mxu1 %v9495_v57  ;;  %v9528_v57 = vcombine.high %v520_v8, %v524_v46  ;;  %v529_v8 = vld [vmem:[#allocation13 + $0x2d8] sm:$0xff] }
 0x504   : > { %6678 = vmatprep.subr.bf16.mxu1 %v9504_v2  ;;  %v9529_v2 = vcombine.low %v521_v43, %v525_v20 }
 0x506   : > { %7391 = vmatpush1.bf16.msra.mxu0 %v9529_v2  ;;  %v14306_v2 = vld [vmem:[#allocation75_spill] sm:$0xff] }
 0x507   : > { %6679 = vmatpush1.bf16.msra.mxu1 %v9503_v36  ;;  %v14302_v36 = vld [vmem:[#allocation74_spill] sm:$0xff] }
 0x508   : > { %6424 = vmatmul.mubr.bf16.gmra.mrb[0].mxu0 %v14300_v40  ;;  %6680 = vmatprep.subr.bf16.mxu1 %v9512_v56  ;;  %v14303_v56 = vld [vmem:[#allocation76_spill] sm:$0xff] }
 0x509   : > { %6433 = vmatprep.mubr.bf16.mxu0 %v14301_v41 }
 0x50a   : > { %5678 = vmatmul.mubr.bf16.gmra.mrb[184].mxu1 %v11907_v34  ;;  %v556_v34 = vld [vmem:[#allocation13 + $0x3b0] sm:$0xff] }
 0x50b   : > { %5687 = vmatprep.mubr.bf16.mxu1 %v11909_v47  ;;  %6681 = vmatpush1.bf16.msra.mxu1 %v9511_v62  ;;  %v528_v62 = vld [vmem:[#allocation13 + $0x2d0] sm:$0xff]  ;;  %v14316_v47 = vld [vmem:[#allocation22_spill] sm:$0xff] }
 0x50c   : > { %6682 = vmatprep.subr.bf16.mxu1 %v9520_v32  ;;  %v532_v32 = vld [vmem:[#allocation13 + $0x2f0] sm:$0xff] }
 0x50d   : > { %v9535_v46 = vcombine.low %v528_v62, %v532_v32  ;;  %v9536_v43 = vcombine.high %v528_v62, %v532_v32  ;;  %v536_v62 = vld [vmem:[#allocation13 + $0x310] sm:$0xff] }
 0x50e   : > { %v540_v32 = vld [vmem:[#allocation13 + $0x330] sm:$0xff] }
 0x50f   : > { %6683 = vmatpush1.bf16.msra.mxu1 %v9519_v3  ;;  %v533_v3 = vld [vmem:[#allocation13 + $0x2f8] sm:$0xff] }
 0x510   : > { %6434 = vmatmul.mubr.bf16.gmra.mrb[4].mxu0 %v14302_v36  ;;  %6684 = vmatprep.subr.bf16.mxu1 %v9528_v57  ;;  %v9537_v20 = vcombine.low %v529_v8, %v533_v3  ;;  %v9538_v57 = vcombine.high %v529_v8, %v533_v3  ;;  %v537_v8 = vld [vmem:[#allocation13 + $0x318] sm:$0xff] }
 0x511   : > { %6443 = vmatprep.mubr.bf16.mxu0 %v14303_v56  ;;  %v541_v3 = vld [vmem:[#allocation13 + $0x338] sm:$0xff] }
 0x512   : > { %5688 = vmatmul.mubr.bf16.gmra.mrb[188].mxu1 %v11915_v48  ;;  %7392 = vmatprep.subr.bf16.mxu0 %v9538_v57  ;;  %v9546_v57 = vcombine.high %v537_v8, %v541_v3  ;;  %v565_v48 = vld [vmem:[#allocation13 + $0x3f8] sm:$0xff] }
 0x513   : > { %5697 = vmatprep.mubr.bf16.mxu1 %v11925_v55  ;;  %6685 = vmatpush1.bf16.msra.mxu1 %v9527_v5  ;;  %v14308_v5 = vld [vmem:[#allocation78_spill] sm:$0xff]  ;;  %v561_v55 = vld [vmem:[#allocation13 + $0x3d8] sm:$0xff] }
 0x514   : > { %6686 = vmatprep.subr.bf16.mxu1 %v9536_v43  ;;  %7393 = vmatpush1.bf16.msra.mxu0 %v9537_v20  ;;  %v9544_v43 = vcombine.high %v536_v62, %v540_v32  ;;  %v9545_v20 = vcombine.low %v537_v8, %v541_v3  ;;  %v544_v8 = vld [vmem:[#allocation13 + $0x350] sm:$0xff] }
 0x515   : > { %7394 = vmatprep.subr.bf16.mxu0 %v9546_v57  ;;  %v549_v57 = vld [vmem:[#allocation13 + $0x378] sm:$0xff] }
 0x517   : > { %6687 = vmatpush1.bf16.msra.mxu1 %v9535_v46  ;;  %v9543_v46 = vcombine.low %v536_v62, %v540_v32  ;;  %v14314_v62 = vld [vmem:[#allocation81_spill] sm:$0xff]  ;;  %v14315_v32 = vld [vmem:[#allocation83_spill] sm:$0xff] }
 0x518   : > { %6444 = vmatmul.mubr.bf16.gmra.mrb[8].mxu0 %v14304_v39  ;;  %6688 = vmatprep.subr.bf16.mxu1 %v9544_v43  ;;  %v545_v43 = vld [vmem:[#allocation13 + $0x358] sm:$0xff] }
 0x519   : > { %6453 = vmatprep.mubr.bf16.mxu0 %v14305_v63  ;;  %7395 = vmatpush1.bf16.msra.mxu0 %v9545_v20 }
 0x51a   : > { %5698 = vmatmul.mubr.bf16.gmra.mrb[192].mxu1 %v11929_v52  ;;  %v9553_v52 = vcombine.low %v545_v43, %v549_v57 }
 0x51b   : > { %5707 = vmatprep.mubr.bf16.mxu1 %v14297_v60  ;;  %v14309_v60 = vld [vmem:[#allocation80_spill] sm:$0xff]  ;;  %6689 = vmatpush1.bf16.msra.mxu1 %v9543_v46  ;;  %v548_v46 = vld [vmem:[#allocation13 + $0x370] sm:$0xff] }
 0x51c   : > { %v9551_v3 = vcombine.low %v544_v8, %v548_v46  ;;  %v9552_v20 = vcombine.high %v544_v8, %v548_v46  ;;  %v9570_v8 = vcombine.high %v561_v55, %v565_v48  ;;  %v552_v46 = vld [vmem:[#allocation13 + $0x390] sm:$0xff] }
 0x51e   : > { %6690 = vmatprep.subr.bf16.mxu1 %v9552_v20  ;;  %v9560_v20 = vcombine.high %v552_v46, %v556_v34 }
 0x51f   : > { %6691 = vmatpush1.bf16.msra.mxu1 %v9551_v3  ;;  %v14318_v3 = vld [vmem:[#allocation85_spill] sm:$0xff] }
 0x520   : > { %6454 = vmatmul.mubr.bf16.gmra.mrb[12].mxu0 %v14306_v2  ;;  %6692 = vmatprep.subr.bf16.mxu1 %v9560_v20 }
 0x521   : > { %6463 = vmatprep.mubr.bf16.mxu0 %v14307_v53 }
 0x522   : > { %5708 = vmatmul.mubr.bf16.gmra.mrb[196].mxu1 %v14298_v9  ;;  %v14311_v9 = vld [vmem:[#allocation79_spill] sm:$0xff] }
 0x523   : > { %5717 = vmatprep.mubr.bf16.mxu1 %v14299_v27  ;;  %v14310_v27 = vld [vmem:[#allocation77_spill] sm:$0xff] }
 0x528   : > { %6464 = vmatmul.mubr.bf16.gmra.mrb[16].mxu0 %v14308_v5 }
 0x529   : > { %6473 = vmatprep.mubr.bf16.mxu0 %v14309_v60 }
 0x52a   : > { %5718 = vmatmul.mubr.bf16.gmra.mrb[200].mxu1 %v14300_v40  ;;  %v14312_v40 = vld [vmem:[#allocation82_spill] sm:$0xff] }
 0x52b   : > { %5727 = vmatprep.mubr.bf16.mxu1 %v14301_v41  ;;  %v14313_v41 = vld [vmem:[#allocation84_spill] sm:$0xff] }
 0x530   : > { %6474 = vmatmul.mubr.bf16.gmra.mrb[20].mxu0 %v14310_v27 }
 0x531   : > { %6483 = vmatprep.mubr.bf16.mxu0 %v14311_v9 }
 0x532   : > { %5728 = vmatmul.mubr.bf16.gmra.mrb[204].mxu1 %v14302_v36  ;;  %v557_v36 = vld [vmem:[#allocation13 + $0x3b8] sm:$0xff] }
 0x533   : > { %5737 = vmatprep.mubr.bf16.mxu1 %v14303_v56  ;;  %v553_v56 = vld [vmem:[#allocation13 + $0x398] sm:$0xff] }
 0x538   : > { %6484 = vmatmul.mubr.bf16.gmra.mrb[24].mxu0 %v14312_v40 }
 0x539   : > { %6493 = vmatprep.mubr.bf16.mxu0 %v14313_v41 }
 0x53a   : > { %5738 = vmatmul.mubr.bf16.gmra.mrb[208].mxu1 %v14304_v39  ;;  %v9554_v39 = vcombine.high %v545_v43, %v549_v57  ;;  %v9559_v43 = vcombine.low %v552_v46, %v556_v34  ;;  %v14319_v57 = vld [vmem:[#allocation87_spill] sm:$0xff]  ;;  %v12896_v46 = vld [vmem:[#allocation13 + $0x418] sm:$0xff] }
 0x53b   : > { %5747 = vmatprep.mubr.bf16.mxu1 %v14305_v63  ;;  %v9562_v63 = vcombine.high %v553_v56, %v557_v36  ;;  %v14322_v34 = vld [vmem:[#allocation91_spill] sm:$0xff] }
 0x53c   : > { %7396 = vmatprep.subr.bf16.mxu0 %v9554_v39  ;;  %v9569_v39 = vcombine.low %v561_v55, %v565_v48  ;;  %6693 = vmatpush1.bf16.msra.mxu1 %v9559_v43  ;;  %v560_v48 = vld [vmem:[#allocation13 + $0x3d0] sm:$0xff]  ;;  %v14325_v43 = vld [vmem:[#allocation100_spill] sm:$0xff] }
 0x53d   : > { %7397 = vmatpush1.bf16.msra.mxu0 %v9553_v52  ;;  %v14320_v52 = vld [vmem:[#allocation90_spill] sm:$0xff]  ;;  %v564_v55 = vld [vmem:[#allocation13 + $0x3f0] sm:$0xff] }
 0x53e   : > { %7398 = vmatprep.subr.bf16.mxu0 %v9562_v63  ;;  %v9568_v63 = vcombine.high %v560_v48, %v564_v55 }
 0x540   : > { %6494 = vmatmul.mubr.bf16.gmra.mrb[28].mxu0 %v14314_v62  ;;  %6694 = vmatprep.subr.bf16.mxu1 %v9568_v63  ;;  %v14324_v63 = vld [vmem:[#allocation26_spill] sm:$0xff] }
 0x541   : > { %6503 = vmatprep.mubr.bf16.mxu0 %v14315_v32 }
 0x542   : > { %5748 = vmatmul.mubr.bf16.gmra.mrb[212].mxu1 %v14306_v2  ;;  %v14317_v2 = vld [vmem:[#allocation88_spill] sm:$0xff] }
 0x543   : > { %5757 = vmatprep.mubr.bf16.mxu1 %v14307_v53  ;;  %v9561_v53 = vcombine.low %v553_v56, %v557_v36  ;;  %v14321_v36 = vld [vmem:[#allocation92_spill] sm:$0xff]  ;;  %v9567_v56 = vcombine.low %v560_v48, %v564_v55  ;;  %v14327_v48 = vld [vmem:[#allocation98_spill] sm:$0xff] }
 0x545   : > { %7399 = vmatpush1.bf16.msra.mxu0 %v9561_v53  ;;  %6695 = vmatpush1.bf16.msra.mxu1 %v9567_v56  ;;  %v12892_v53 = vld [vmem:[#allocation13 + $0x410] sm:$0xff]  ;;  %v14323_v56 = vld [vmem:[#allocation97_spill] sm:$0xff] }
 0x546   : > { %7400 = vmatprep.subr.bf16.mxu0 %v9570_v8  ;;  %v12894_v8 = vld [vmem:[#allocation13 + $0x430] sm:$0xff] }
 0x547   : > { %v9576_v20 = vcombine.high %v12892_v53, %v12894_v8 }
 0x548   : > { %6504 = vmatmul.mubr.bf16.gmra.mrb[32].mxu0 %v14316_v47 }
 0x549   : > { %6513 = vmatprep.mubr.bf16.mxu0 %v14317_v2  ;;  %7401 = vmatpush1.bf16.msra.mxu0 %v9569_v39  ;;  %v12903_v39 = vld [vmem:[#allocation13 + $0x438] sm:$0xff] }
 0x54a   : > { %5758 = vmatmul.mubr.bf16.gmra.mrb[216].mxu1 %v14308_v5  ;;  %v9578_v55 = vcombine.high %v12896_v46, %v12903_v39  ;;  %7017 = vmatprep.subr.bf16.mxu1 %v9576_v20  ;;  %v14328_v20 = vld [vmem:[#allocation104_spill] sm:$0xff] }
 0x54b   : > { %5767 = vmatprep.mubr.bf16.mxu1 %v14309_v60  ;;  %v585_v5 = vld [vmem:[#allocation13 + $0x498] sm:$0xff] }
 0x54c   : > { %7723 = vmatprep.subr.bf16.mxu0 %v9578_v55  ;;  %v14329_v55 = vld [vmem:[#allocation27_spill] sm:$0xff] }
 0x550   : > { %6514 = vmatmul.mubr.bf16.gmra.mrb[36].mxu0 %v14318_v3 }
 0x551   : > { %6523 = vmatprep.mubr.bf16.mxu0 %v14319_v57 }
 0x552   : > { %5768 = vmatmul.mubr.bf16.gmra.mrb[220].mxu1 %v14310_v27 }
 0x553   : > { %5777 = vmatprep.mubr.bf16.mxu1 %v14311_v9 }
 0x558   : > { %6524 = vmatmul.mubr.bf16.gmra.mrb[40].mxu0 %v14320_v52 }
 0x559   : > { %6533 = vmatprep.mubr.bf16.mxu0 %v14321_v36 }
 0x55a   : > { %5778 = vmatmul.mubr.bf16.gmra.mrb[224].mxu1 %v14312_v40 }
 0x55b   : > { %5787 = vmatprep.mubr.bf16.mxu1 %v14313_v41 }
 0x560   : > { %6534 = vmatmul.mubr.bf16.gmra.mrb[44].mxu0 %v14322_v34 }
 0x561   : > { %6543 = vmatprep.mubr.bf16.mxu0 %v12186_v25 }
 0x562   : > { %5788 = vmatmul.mubr.bf16.gmra.mrb[228].mxu1 %v14314_v62  ;;  %v14334_v62 = vld [vmem:[#allocation107_spill] sm:$0xff] }
 0x563   : > { %5797 = vmatprep.mubr.bf16.mxu1 %v14315_v32 }
 0x568   : > { %6544 = vmatmul.mubr.bf16.gmra.mrb[48].mxu0 %v12201_v45 }
 0x569   : > { %6553 = vmatprep.mubr.bf16.mxu0 %v12203_v24 }
 0x56a   : > { %5798 = vmatmul.mubr.bf16.gmra.mrb[232].mxu1 %v14316_v47 }
 0x56b   : > { %5807 = vmatprep.mubr.bf16.mxu1 %v14317_v2  ;;  %v14326_v2 = vld [vmem:[#allocation152_spill] sm:$0xff] }
 0x570   : > { %6554 = vmatmul.mubr.bf16.gmra.mrb[52].mxu0 %v14323_v56 }
 0x571   : > { %6563 = vmatprep.mubr.bf16.mxu0 %v14324_v63 }
 0x572   : > { %5808 = vmatmul.mubr.bf16.gmra.mrb[236].mxu1 %v14318_v3 }
 0x573   : > { %5817 = vmatprep.mubr.bf16.mxu1 %v14319_v57  ;;  %v14330_v57 = vld [vmem:[#allocation28_spill] sm:$0xff] }
 0x578   : > { %6564 = vmatmul.mubr.bf16.gmra.mrb[56].mxu0 %v14325_v43 }
 0x579   : > { %6573 = vmatprep.mubr.bf16.mxu0 %v14326_v2 }
 0x57a   : > { %5818 = vmatmul.mubr.bf16.gmra.mrb[240].mxu1 %v14320_v52  ;;  %v14331_v52 = vld [vmem:[#allocation101_spill] sm:$0xff] }
 0x57b   : > { %5827 = vmatprep.mubr.bf16.mxu1 %v14321_v36  ;;  %v14332_v36 = vld [vmem:[#allocation103_spill] sm:$0xff] }
 0x580   : > { %6574 = vmatmul.mubr.bf16.gmra.mrb[60].mxu0 %v14327_v48 }
 0x581   : > { %6583 = vmatprep.mubr.bf16.mxu0 %v12284_v30 }
 0x582   : > { %5828 = vmatmul.mubr.bf16.gmra.mrb[244].mxu1 %v14322_v34  ;;  %v14333_v34 = vld [vmem:[#allocation108_spill] sm:$0xff] }
 0x583   : > { %5837 = vmatprep.mubr.bf16.mxu1 %v12186_v25 }
 0x588   : > { %6584 = vmatmul.mubr.bf16.gmra.mrb[64].mxu0 %v14328_v20 }
 0x589   : > { %6593 = vmatprep.mubr.bf16.mxu0 %v14329_v55 }
 0x58a   : > { %5838 = vmatmul.mubr.bf16.gmra.mrb[248].mxu1 %v12201_v45 }
 0x58b   : > { %5847 = vmatprep.mubr.bf16.mxu1 %v12203_v24 }
 0x590   : > { %6594 = vmatmul.mubr.bf16.gmra.mrb[68].mxu0 %v14330_v57 }
 0x591   : > { %6603 = vmatprep.mubr.bf16.mxu0 %v14331_v52 }
 0x592   : > { %5848 = vmatmul.mubr.bf16.gmra.mrb[252].mxu1 %v14323_v56 }
 0x593   : > { %5857 = vmatprep.mubr.bf16.mxu1 %v14324_v63 }
 0x598   : > { %6604 = vmatmul.mubr.bf16.gmra.mrb[72].mxu0 %v14332_v36 }
 0x599   : > { %6613 = vmatprep.mubr.bf16.mxu0 %v14333_v34 }
 0x59a   : > { %5858 = vmatmul.mubr.bf16.gmra.mrb[0].mxu1 %v14325_v43 }
 0x59b   : > { %5867 = vmatprep.mubr.bf16.mxu1 %v14326_v2  ;;  %v6345_v25 = vpop.f32.mrb[224].mxu0 }
 0x59c   : > { %v6347_v45 = vpop.f32.mrb[225].mxu0 }
 0x59d   : > { %v6349_v3 = vpop.f32.mrb[226].mxu0 }
 0x59e   : > { %v8110_v24 = vmax.f32 %v6345_v25, %v6349_v3  ;;  %v6351_v47 = vpop.f32.mrb[227].mxu0 }
 0x59f   : > { %v8123_v32 = vmax.f32 %v6347_v45, %v6351_v47 }
 0x5a0   : > { %6614 = vmatmul.mubr.bf16.gmra.mrb[76].mxu0 %v14334_v62 }
 0x5a1   : > { %6623 = vmatprep.mubr.bf16.mxu0 %v12376_v31 }
 0x5a2   : > { %5868 = vmatmul.mubr.bf16.gmra.mrb[4].mxu1 %v14327_v48 }
 0x5a3   : > { %5877 = vmatprep.mubr.bf16.mxu1 %v12284_v30  ;;  %v6355_v63 = vpop.f32.mrb[228].mxu0 }
 0x5a4   : > { %v8111_v56 = vmax.f32 %v8110_v24, %v6355_v63  ;;  %v6357_v41 = vpop.f32.mrb[229].mxu0 }
 0x5a5   : > { %v8124_v43 = vmax.f32 %v8123_v32, %v6357_v41  ;;  %v6359_v40 = vpop.f32.mrb[230].mxu0 }
 0x5a6   : > { %v8112_v2 = vmax.f32 %v8111_v56, %v6359_v40  ;;  %v6361_v9 = vpop.f32.mrb[231].mxu0 }
 0x5a7   : > { %v8125_v27 = vmax.f32 %v8124_v43, %v6361_v9 }
 0x5a8   : > { %6624 = vmatmul.mubr.bf16.gmra.mrb[80].mxu0 %v12394_v1 }
 0x5a9   : > { %6633 = vmatprep.mubr.bf16.mxu0 %v12396_v17 }
 0x5aa   : > { %5878 = vmatmul.mubr.bf16.gmra.mrb[8].mxu1 %v14328_v20 }
 0x5ab   : > { %5887 = vmatprep.mubr.bf16.mxu1 %v14329_v55  ;;  %v6365_v47 = vpop.f32.mrb[232].mxu0 }
 0x5ac   : > { %v8113_v25 = vmax.f32 %v8112_v2, %v6365_v47  ;;  %v6367_v45 = vpop.f32.mrb[233].mxu0 }
 0x5ad   : > { %v8126_v3 = vmax.f32 %v8125_v27, %v6367_v45  ;;  %v6369_v30 = vpop.f32.mrb[234].mxu0 }
 0x5ae   : > { %v8114_v24 = vmax.f32 %v8113_v25, %v6369_v30  ;;  %v6371_v63 = vpop.f32.mrb[235].mxu0 }
 0x5af   : > { %v8127_v41 = vmax.f32 %v8126_v3, %v6371_v63 }
 0x5b0   : > { %6634 = vmatmul.mubr.bf16.gmra.mrb[84].mxu0 %v12412_v11 }
 0x5b1   : > { %6643 = vmatprep.mubr.bf16.mxu0 %v12423_v13 }
 0x5b2   : > { %5888 = vmatmul.mubr.bf16.gmra.mrb[12].mxu1 %v14330_v57 }
 0x5b3   : > { %5897 = vmatprep.mubr.bf16.mxu1 %v14331_v52  ;;  %v6375_v9 = vpop.f32.mrb[236].mxu0  ;;  %v581_v52 = vld [vmem:[#allocation13 + $0x478] sm:$0xff] }
 0x5b4   : > { %v8115_v40 = vmax.f32 %v8114_v24, %v6375_v9  ;;  %v6377_v32 = vpop.f32.mrb[237].mxu0 }
 0x5b5   : > { %v8128_v43 = vmax.f32 %v8127_v41, %v6377_v32  ;;  %v6379_v56 = vpop.f32.mrb[238].mxu0 }
 0x5b6   : > { %v12945_v2 = vmax.f32 %v8115_v40, %v6379_v56  ;;  %v6381_v27 = vpop.f32.mrb[239].mxu0 }
 0x5b7   : > { %v12947_v47 = vmax.f32 %v8128_v43, %v6381_v27  ;;  %v14335_v27 = vld [vmem:[#allocation24_spill] sm:$0xff] }
 0x5b8   : > { %6644 = vmatmul.mubr.bf16.gmra.mrb[88].mxu0 %v12437_v29 }
 0x5b9   : > { %6653 = vmatprep.mubr.bf16.mxu0 %v12447_v35 }
 0x5ba   : > { %5898 = vmatmul.mubr.bf16.gmra.mrb[16].mxu1 %v14332_v36  ;;  %v577_v36 = vld [vmem:[#allocation13 + $0x458] sm:$0xff] }
 0x5bb   : > { %5907 = vmatprep.mubr.bf16.mxu1 %v14333_v34  ;;  %v6385_v30 = vpop.f32.mrb[240].mxu0  ;;  %v9586_v48 = vcombine.high %v577_v36, %v581_v52 }
 0x5bc   : > { %v6387_v25 = vpop.f32.mrb[241].mxu0 }
 0x5bd   : > { %v5639_v45 = vpop.f32.mrb[168].mxu1  ;;  %v6389_v3 = vpop.f32.mrb[242].mxu0 }
 0x5be   : > { %v8214_v24 = vmax.f32 %v6385_v30, %v6389_v3  ;;  %v5641_v63 = vpop.f32.mrb[169].mxu1  ;;  %v6391_v41 = vpop.f32.mrb[243].mxu0 }
 0x5bf   : > { %v8227_v9 = vmax.f32 %v6387_v25, %v6391_v41  ;;  %v5643_v40 = vpop.f32.mrb[170].mxu1 }
 0x5c0   : > { %v8084_v32 = vmax.f32 %v5639_v45, %v5643_v40  ;;  %v5645_v43 = vpop.f32.mrb[171].mxu1  ;;  %6654 = vmatmul.mubr.bf16.gmra.mrb[92].mxu0 %v12450_v0 }
 0x5c1   : > { %v8097_v56 = vmax.f32 %v5641_v63, %v5645_v43  ;;  %7402 = vmatprep.mubr.bf16.mxu0 %v14335_v27 }
 0x5c2   : > { %5908 = vmatmul.mubr.bf16.gmra.mrb[20].mxu1 %v14334_v62  ;;  %v589_v62 = vld [vmem:[#allocation13 + $0x4b8] sm:$0xff] }
 0x5c3   : > { %5917 = vmatprep.mubr.bf16.mxu1 %v12376_v31  ;;  %v6395_v34 = vpop.f32.mrb[244].mxu0 }
 0x5c4   : > { %v8215_v57 = vmax.f32 %v8214_v24, %v6395_v34  ;;  %v6397_v30 = vpop.f32.mrb[245].mxu0  ;;  %v14337_v34 = vld [vmem:[#allocation89_spill] sm:$0xff]  ;;  %v14338_v24 = vcombine.low %v12896_v46, %v12903_v39  ;;  %v8117_v46 = vrot.slane %v12945_v2, 4 }
 0x5c5   : > { %v8228_v3 = vmax.f32 %v8227_v9, %v6397_v30  ;;  %v5649_v55 = vpop.f32.mrb[172].mxu1  ;;  %v6399_v25 = vpop.f32.mrb[246].mxu0  ;;  %v593_v9 = vld [vmem:[#allocation13 + $0x4d8] sm:$0xff] }
 0x5c6   : > { %v8085_v41 = vmax.f32 %v8084_v32, %v5649_v55  ;;  %v8216_v45 = vmax.f32 %v8215_v57, %v6399_v25  ;;  %v5651_v40 = vpop.f32.mrb[173].mxu1  ;;  %v6401_v20 = vpop.f32.mrb[247].mxu0  ;;  %v9585_v57 = vcombine.low %v577_v36, %v581_v52  ;;  %v9594_v55 = vcombine.high %v585_v5, %v589_v62 }
 0x5c7   : > { %v8098_v63 = vmax.f32 %v8097_v56, %v5651_v40  ;;  %v8229_v43 = vmax.f32 %v8228_v3, %v6401_v20  ;;  %v5653_v60 = vpop.f32.mrb[174].mxu1  ;;  %v9593_v25 = vcombine.low %v585_v5, %v589_v62  ;;  %v8130_v40 = vrot.slane %v12947_v47, 4  ;;  %v14339_v62 = vld [vmem:[#allocation25_spill] sm:$0xff] }
 0x5c8   : > { %v8086_v10 = vmax.f32 %v8085_v41, %v5653_v60  ;;  %v5655_v31 = vpop.f32.mrb[175].mxu1  ;;  %7403 = vmatmul.mubr.bf16.vlgmr.msra.gmra.mrb[96].mxu0 %v14336_v15  ;;  %v597_v60 = vld [vmem:[#allocation13 + $0x4f8] sm:$0xff] }
 0x5c9   : > { %v8099_v59 = vmax.f32 %v8098_v63, %v5655_v31  ;;  %7412 = vmatprep.mubr.bf16.mxu0 %v14337_v34  ;;  %7724 = vmatpush1.bf16.msra.mxu0 %v14338_v24 }
 0x5ca   : > { %5918 = vmatmul.mubr.bf16.gmra.mrb[24].mxu1 %v12394_v1  ;;  %7725 = vmatprep.subr.bf16.mxu0 %v9586_v48  ;;  %v9602_v48 = vcombine.high %v593_v9, %v597_v60  ;;  %v621_v1 = vld [vmem:[#allocation13 + $0x5b8] sm:$0xff] }
 0x5cb   : > { %5927 = vmatprep.mubr.bf16.mxu1 %v12396_v17  ;;  %v6405_v20 = vpop.f32.mrb[248].mxu0 }
 0x5cc   : > { %v8217_v32 = vmax.f32 %v8216_v45, %v6405_v20  ;;  %v6407_v56 = vpop.f32.mrb[249].mxu0  ;;  %v601_v45 = vld [vmem:[#allocation13 + $0x518] sm:$0xff] }
 0x5cd   : > { %v8230_v30 = vmax.f32 %v8229_v43, %v6407_v56  ;;  %v5659_v31 = vpop.f32.mrb[176].mxu1  ;;  %v6409_v3 = vpop.f32.mrb[250].mxu0  ;;  %7726 = vmatpush1.bf16.msra.mxu0 %v9585_v57  ;;  %v605_v20 = vld [vmem:[#allocation13 + $0x538] sm:$0xff]  ;;  %v8118_v57 = vmax.f32 %v12945_v2, %v8117_v46 }
 0x5ce   : > { %v8087_v39 = vmax.f32 %v8086_v10, %v5659_v31  ;;  %v8218_v52 = vmax.f32 %v8217_v32, %v6409_v3  ;;  %v5661_v36 = vpop.f32.mrb[177].mxu1  ;;  %v6411_v41 = vpop.f32.mrb[251].mxu0  ;;  %7727 = vmatprep.subr.bf16.mxu0 %v9594_v55  ;;  %v9601_v10 = vcombine.low %v593_v9, %v597_v60  ;;  %v9610_v55 = vcombine.high %v601_v45, %v605_v20 }
 0x5cf   : > { %v8100_v63 = vmax.f32 %v8099_v59, %v5661_v36  ;;  %v8231_v24 = vmax.f32 %v8230_v30, %v6411_v41  ;;  %v5663_v17 = vpop.f32.mrb[178].mxu1  ;;  %v8131_v59 = vmax.f32 %v12947_v47, %v8130_v40  ;;  %v613_v30 = vld [vmem:[#allocation13 + $0x578] sm:$0xff]  ;;  %v9609_v9 = vcombine.low %v601_v45, %v605_v20 }
 0x5d0   : > { %v8088_v43 = vmax.f32 %v8087_v39, %v5663_v17  ;;  %v5665_v56 = vpop.f32.mrb[179].mxu1  ;;  %7413 = vmatmul.mubr.bf16.gmra.mrb[100].mxu0 %v12143_v6  ;;  %v609_v17 = vld [vmem:[#allocation13 + $0x558] sm:$0xff]  ;;  %v8119_v60 = vrot.slane %v8118_v57, 2 }
 0x5d1   : > { %v8101_v5 = vmax.f32 %v8100_v63, %v5665_v56  ;;  %7422 = vmatprep.mubr.bf16.mxu0 %v14339_v62  ;;  %7728 = vmatpush1.bf16.msra.mxu0 %v9593_v25  ;;  %v9618_v63 = vcombine.high %v609_v17, %v613_v30  ;;  %v8132_v47 = vrot.slane %v8131_v59, 2 }
 0x5d2   : > { %5928 = vmatmul.mubr.bf16.gmra.mrb[28].mxu1 %v12412_v11  ;;  %7729 = vmatprep.subr.bf16.mxu0 %v9602_v48  ;;  %v617_v11 = vld [vmem:[#allocation13 + $0x598] sm:$0xff] }
 0x5d3   : > { %5937 = vmatprep.mubr.bf16.mxu1 %v12423_v13  ;;  %v6415_v32 = vpop.f32.mrb[252].mxu0 }
 0x5d4   : > { %v8219_v31 = vmax.f32 %v8218_v52, %v6415_v32  ;;  %v6417_v3 = vpop.f32.mrb[253].mxu0 }
 0x5d5   : > { %v8232_v39 = vmax.f32 %v8231_v24, %v6417_v3  ;;  %v5669_v36 = vpop.f32.mrb[180].mxu1  ;;  %v6419_v41 = vpop.f32.mrb[254].mxu0  ;;  %7730 = vmatpush1.bf16.msra.mxu0 %v9601_v10  ;;  %v14340_v3 = vld [vmem:[#allocation96_spill] sm:$0xff]  ;;  %v9617_v10 = vcombine.low %v609_v17, %v613_v30 }
 0x5d6   : > { %v8089_v2 = vmax.f32 %v8088_v43, %v5669_v36  ;;  %v8220_v25 = vmax.f32 %v8219_v31, %v6419_v41  ;;  %v5671_v46 = vpop.f32.mrb[181].mxu1  ;;  %v6421_v48 = vpop.f32.mrb[255].mxu0  ;;  %7731 = vmatprep.subr.bf16.mxu0 %v9610_v55  ;;  %v14341_v43 = vld [vmem:[#allocation156_spill] sm:$0xff]  ;;  %v8120_v55 = vmax.f32 %v8118_v57, %v8119_v60 }
 0x5d7   : > { %v8102_v40 = vmax.f32 %v8101_v5, %v5671_v46  ;;  %v8233_v56 = vmax.f32 %v8232_v39, %v6421_v48  ;;  %v5673_v13 = vpop.f32.mrb[182].mxu1  ;;  %v9626_v5 = vcombine.high %v617_v11, %v621_v1  ;;  %v8133_v39 = vmax.f32 %v8131_v59, %v8132_v47 }
 0x5d8   : > { %v8221_v52 = vrot.slane %v8220_v25, 4  ;;  %v12972_v32 = vmax.f32 %v8089_v2, %v5673_v13  ;;  %v5675_v24 = vpop.f32.mrb[183].mxu1  ;;  %7423 = vmatmul.mubr.bf16.gmra.mrb[104].mxu0 %v14340_v3 }
 0x5d9   : > { %v8234_v45 = vrot.slane %v8233_v56, 4  ;;  %v12975_v20 = vmax.f32 %v8102_v40, %v5675_v24  ;;  %7432 = vmatprep.mubr.bf16.mxu0 %v14341_v43  ;;  %7732 = vmatpush1.bf16.msra.mxu0 %v9609_v9  ;;  %v9625_v24 = vcombine.low %v617_v11, %v621_v1  ;;  %v8121_v9 = vrot.slane %v8120_v55, 1 }
 0x5da   : > { %v8222_v31 = vmax.f32 %v8220_v25, %v8221_v52  ;;  %5938 = vmatmul.mubr.bf16.gmra.mrb[32].mxu1 %v12437_v29  ;;  %7733 = vmatprep.subr.bf16.mxu0 %v9618_v63  ;;  %v8134_v25 = vrot.slane %v8133_v39, 1 }
 0x5db   : > { %v8235_v36 = vmax.f32 %v8233_v56, %v8234_v45  ;;  %5947 = vmatprep.mubr.bf16.mxu1 %v12447_v35  ;;  %v6425_v13 = vpop.f32.mrb[0].mxu0  ;;  %v8122_v1 = vmax.f32 %v8120_v55, %v8121_v9  ;;  %v576_v55 = vld [vmem:[#allocation13 + $0x450] sm:$0xff] }
 0x5dc   : > { %v8223_v41 = vrot.slane %v8222_v31, 2  ;;  %v6427_v2 = vpop.f32.mrb[1].mxu0 }
 0x5dd   : > { %v8236_v46 = vrot.slane %v8235_v36, 2  ;;  %v5679_v48 = vpop.f32.mrb[184].mxu1  ;;  %v6429_v40 = vpop.f32.mrb[2].mxu0  ;;  %7734 = vmatpush1.bf16.msra.mxu0 %v9617_v10  ;;  %v8135_v10 = vmax.f32 %v8133_v39, %v8134_v25  ;;  %v625_v25 = vld [vmem:[#allocation13 + $0x5d8] sm:$0xff] }
 0x5de   : > { %v8224_v17 = vmax.f32 %v8222_v31, %v8223_v41  ;;  %v8318_v57 = vmax.f32 %v6425_v13, %v6429_v40  ;;  %v5681_v30 = vpop.f32.mrb[185].mxu1  ;;  %v6431_v60 = vpop.f32.mrb[3].mxu0  ;;  %7735 = vmatprep.subr.bf16.mxu0 %v9626_v5 }
 0x5df   : > { %v8237_v63 = vmax.f32 %v8235_v36, %v8236_v46  ;;  %v8331_v59 = vmax.f32 %v6427_v2, %v6431_v60  ;;  %v5683_v47 = vpop.f32.mrb[186].mxu1 }
 0x5e0   : > { %v8225_v56 = vrot.slane %v8224_v17, 1  ;;  %v8188_v52 = vmax.f32 %v5679_v48, %v5683_v47  ;;  %v5685_v45 = vpop.f32.mrb[187].mxu1  ;;  %7433 = vmatmul.mubr.bf16.gmra.mrb[108].mxu0 %v12252_v58 }
 0x5e1   : > { %v8238_v35 = vrot.slane %v8237_v63, 1  ;;  %v8201_v29 = vmax.f32 %v5681_v30, %v5685_v45  ;;  %7442 = vmatprep.mubr.bf16.mxu0 %v12302_v51  ;;  %7736 = vmatpush1.bf16.msra.mxu0 %v9625_v24  ;;  %v580_v24 = vld [vmem:[#allocation13 + $0x470] sm:$0xff]  ;;  %v629_v45 = vld [vmem:[#allocation13 + $0x5f8] sm:$0xff] }
 0x5e2   : > { %v8226_v11 = vmax.f32 %v8224_v17, %v8225_v56  ;;  %5948 = vmatmul.mubr.bf16.gmra.mrb[36].mxu1 %v12450_v0  ;;  %v9584_v56 = vcombine.high %v576_v55, %v580_v24 }
 0x5e3   : > { %v8239_v31 = vmax.f32 %v8237_v63, %v8238_v35  ;;  %v6435_v5 = vpop.f32.mrb[4].mxu0  ;;  %6696 = vmatprep.mubr.bf16.mxu1 %v14335_v27 }
 0x5e4   : > { %v12985_v36 = vsel %vm1619_vm0, %v8226_v11, %v8122_v1  ;;  %v8319_v13 = vmax.f32 %v8318_v57, %v6435_v5  ;;  %v6437_v41 = vpop.f32.mrb[5].mxu0  ;;  %v14342_v57 = vld [vmem:[#allocation102_spill] sm:$0xff]  ;;  %v584_v11 = vld [vmem:[#allocation13 + $0x490] sm:$0xff]  ;;  %v633_v5 = vld [vmem:[#allocation13 + $0x618] sm:$0xff] }
 0x5e5   : > { %v12988_v2 = vsel %vm1619_vm0, %v8239_v31, %v8135_v10  ;;  %v8332_v46 = vmax.f32 %v8331_v59, %v6437_v41  ;;  %v5689_v48 = vpop.f32.mrb[188].mxu1  ;;  %v6439_v40 = vpop.f32.mrb[6].mxu0  ;;  %v14343_v59 = vld [vmem:[#allocation105_spill] sm:$0xff]  ;;  %v588_v10 = vld [vmem:[#allocation13 + $0x4b0] sm:$0xff]  ;;  %v9633_v31 = vcombine.low %v625_v25, %v629_v45  ;;  %v9583_v41 = vcombine.low %v576_v55, %v580_v24 }
 0x5e6   : > { %v8189_v9 = vmax.f32 %v8188_v52, %v5689_v48  ;;  %v8320_v17 = vmax.f32 %v8319_v13, %v6439_v40  ;;  %v5691_v39 = vpop.f32.mrb[189].mxu1  ;;  %v6441_v35 = vpop.f32.mrb[7].mxu0  ;;  %v9634_v52 = vcombine.high %v625_v25, %v629_v45  ;;  %v14344_v13 = vcombine.low %v12892_v53, %v12894_v8  ;;  %v596_v25 = vld [vmem:[#allocation13 + $0x4f0] sm:$0xff] }
 0x5e7   : > { %v8202_v30 = vmax.f32 %v8201_v29, %v5691_v39  ;;  %v8333_v60 = vmax.f32 %v8332_v46, %v6441_v35  ;;  %v5693_v27 = vpop.f32.mrb[190].mxu1  ;;  %v637_v46 = vld [vmem:[#allocation13 + $0x638] sm:$0xff]  ;;  %v8091_v8 = vrot.slane %v12972_v32, 4 }
 0x5e8   : > { %v8190_v63 = vmax.f32 %v8189_v9, %v5693_v27  ;;  %v5695_v47 = vpop.f32.mrb[191].mxu1  ;;  %7443 = vmatmul.mubr.bf16.gmra.mrb[112].mxu0 %v14342_v57  ;;  %v9592_v9 = vcombine.high %v584_v11, %v588_v10  ;;  %7737 = vmatprep.subr.bf16.mxu0 %v9634_v52  ;;  %v9642_v39 = vcombine.high %v633_v5, %v637_v46 }
 0x5e9   : > { %v8203_v1 = vmax.f32 %v8202_v30, %v5695_v47  ;;  %7452 = vmatprep.mubr.bf16.mxu0 %v14343_v59  ;;  %7738 = vmatpush1.bf16.msra.mxu0 %v9633_v31  ;;  %v9641_v47 = vcombine.low %v633_v5, %v637_v46  ;;  %v8104_v31 = vrot.slane %v12975_v20, 4  ;;  %v14346_v5 = vld [vmem:[#allocation29_spill] sm:$0xff]  ;;  %v600_v46 = vld [vmem:[#allocation13 + $0x510] sm:$0xff] }
 0x5ea   : > { %6697 = vmatmul.mubr.bf16.vlgmr.msra.gmra.mrb[40].mxu1 %v14336_v15  ;;  %v592_v15 = vld [vmem:[#allocation13 + $0x4d0] sm:$0xff]  ;;  %7739 = vmatprep.subr.bf16.mxu0 %v9642_v39 }
 0x5eb   : > { %v6445_v29 = vpop.f32.mrb[8].mxu0  ;;  %6706 = vmatprep.mubr.bf16.mxu1 %v14337_v34  ;;  %7018 = vmatpush1.bf16.msra.mxu1 %v14344_v13  ;;  %v9600_v13 = vcombine.high %v592_v15, %v596_v25 }
 0x5ec   : > { %v8321_v48 = vmax.f32 %v8320_v17, %v6445_v29  ;;  %v6447_v40 = vpop.f32.mrb[9].mxu0  ;;  %7019 = vmatprep.subr.bf16.mxu1 %v9584_v56  ;;  %v9591_v56 = vcombine.low %v584_v11, %v588_v10  ;;  %v14345_v29 = vld [vmem:[#allocation106_spill] sm:$0xff]  ;;  %v9599_v11 = vcombine.low %v592_v15, %v596_v25 }
 0x5ed   : > { %v8334_v35 = vmax.f32 %v8333_v60, %v6447_v40  ;;  %v5699_v30 = vpop.f32.mrb[192].mxu1  ;;  %v6449_v27 = vpop.f32.mrb[10].mxu0  ;;  %7740 = vmatpush1.bf16.msra.mxu0 %v9641_v47  ;;  %v612_v47 = vld [vmem:[#allocation13 + $0x570] sm:$0xff] }
 0x5ee   : > { %v8191_v34 = vmax.f32 %v8190_v63, %v5699_v30  ;;  %v8322_v45 = vmax.f32 %v8321_v48, %v6449_v27  ;;  %v5701_v0 = vpop.f32.mrb[193].mxu1  ;;  %v6451_v53 = vpop.f32.mrb[11].mxu0  ;;  %v604_v48 = vld [vmem:[#allocation13 + $0x530] sm:$0xff] }
 0x5ef   : > { %v8204_v55 = vmax.f32 %v8203_v1, %v5701_v0  ;;  %v8335_v24 = vmax.f32 %v8334_v35, %v6451_v53  ;;  %v5703_v17 = vpop.f32.mrb[194].mxu1  ;;  %7020 = vmatpush1.bf16.msra.mxu1 %v9583_v41  ;;  %v8092_v0 = vmax.f32 %v12972_v32, %v8091_v8  ;;  %v9608_v40 = vcombine.high %v600_v46, %v604_v48  ;;  %v608_v27 = vld [vmem:[#allocation13 + $0x550] sm:$0xff] }
 0x5f0   : > { %v8192_v52 = vmax.f32 %v8191_v34, %v5703_v17  ;;  %v5705_v60 = vpop.f32.mrb[195].mxu1  ;;  %7453 = vmatmul.mubr.bf16.gmra.mrb[116].mxu0 %v14345_v29  ;;  %7021 = vmatprep.subr.bf16.mxu1 %v9592_v9  ;;  %v8105_v9 = vmax.f32 %v12975_v20, %v8104_v31  ;;  %v9607_v15 = vcombine.low %v600_v46, %v604_v48 }
 0x5f1   : > { %v8205_v63 = vmax.f32 %v8204_v55, %v5705_v60  ;;  %7462 = vmatprep.mubr.bf16.mxu0 %v14346_v5  ;;  %v8093_v8 = vrot.slane %v8092_v0, 2  ;;  %v14347_v60 = vld [vmem:[#allocation112_spill] sm:$0xff]  ;;  %v9616_v20 = vcombine.high %v608_v27, %v612_v47 }
 0x5f2   : > { %6707 = vmatmul.mubr.bf16.gmra.mrb[44].mxu1 %v12143_v6 }
 0x5f3   : > { %v6455_v1 = vpop.f32.mrb[12].mxu0  ;;  %6716 = vmatprep.mubr.bf16.mxu1 %v14339_v62  ;;  %7022 = vmatpush1.bf16.msra.mxu1 %v9591_v56 }
 0x5f4   : > { %v8323_v10 = vmax.f32 %v8322_v45, %v6455_v1  ;;  %v6457_v41 = vpop.f32.mrb[13].mxu0  ;;  %7023 = vmatprep.subr.bf16.mxu1 %v9600_v13  ;;  %v616_v1 = vld [vmem:[#allocation13 + $0x590] sm:$0xff] }
 0x5f5   : > { %v8336_v39 = vmax.f32 %v8335_v24, %v6457_v41  ;;  %v5709_v35 = vpop.f32.mrb[196].mxu1  ;;  %v6459_v30 = vpop.f32.mrb[14].mxu0  ;;  %v8106_v24 = vrot.slane %v8105_v9, 2 }
 0x5f6   : > { %v8193_v34 = vmax.f32 %v8192_v52, %v5709_v35  ;;  %v8324_v6 = vmax.f32 %v8323_v10, %v6459_v30  ;;  %v5711_v53 = vpop.f32.mrb[197].mxu1  ;;  %v6461_v32 = vpop.f32.mrb[15].mxu0  ;;  %v14348_v52 = vld [vmem:[#allocation30_spill] sm:$0xff]  ;;  %v620_v10 = vld [vmem:[#allocation13 + $0x5b0] sm:$0xff] }
 0x5f7   : > { %v8206_v55 = vmax.f32 %v8205_v63, %v5711_v53  ;;  %v8337_v62 = vmax.f32 %v8336_v39, %v6461_v32  ;;  %v5713_v17 = vpop.f32.mrb[198].mxu1  ;;  %7024 = vmatpush1.bf16.msra.mxu1 %v9599_v11  ;;  %v8094_v11 = vmax.f32 %v8092_v0, %v8093_v8  ;;  %v9624_v53 = vcombine.high %v616_v1, %v620_v10 }
 0x5f8   : > { %v8325_v25 = vrot.slane %v8324_v6, 4  ;;  %v8194_v45 = vmax.f32 %v8193_v34, %v5713_v17  ;;  %v5715_v56 = vpop.f32.mrb[199].mxu1  ;;  %7463 = vmatmul.mubr.bf16.gmra.mrb[120].mxu0 %v14347_v60  ;;  %7025 = vmatprep.subr.bf16.mxu1 %v9608_v40  ;;  %v9615_v40 = vcombine.low %v608_v27, %v612_v47  ;;  %v8107_v32 = vmax.f32 %v8105_v9, %v8106_v24 }
 0x5f9   : > { %v8338_v13 = vrot.slane %v8337_v62, 4  ;;  %v8207_v31 = vmax.f32 %v8206_v55, %v5715_v56  ;;  %7472 = vmatprep.mubr.bf16.mxu0 %v14348_v52  ;;  %v624_v56 = vld [vmem:[#allocation13 + $0x5d0] sm:$0xff] }
 0x5fa   : > { %v8326_v41 = vmax.f32 %v8324_v6, %v8325_v25  ;;  %v8195_v63 = vrot.slane %v8194_v45, 4  ;;  %6717 = vmatmul.mubr.bf16.gmra.mrb[48].mxu1 %v14340_v3  ;;  %v628_v3 = vld [vmem:[#allocation13 + $0x5f0] sm:$0xff] }
 0x5fb   : > { %v8339_v46 = vmax.f32 %v8337_v62, %v8338_v13  ;;  %v8208_v48 = vrot.slane %v8207_v31, 4  ;;  %v6465_v39 = vpop.f32.mrb[16].mxu0  ;;  %6726 = vmatprep.mubr.bf16.mxu1 %v14341_v43  ;;  %7026 = vmatpush1.bf16.msra.mxu1 %v9607_v15  ;;  %v9623_v43 = vcombine.low %v616_v1, %v620_v10  ;;  %v8095_v15 = vrot.slane %v8094_v11, 1  ;;  %v632_v1 = vld [vmem:[#allocation13 + $0x610] sm:$0xff] }
 0x5fc   : > { %v8327_v35 = vrot.slane %v8326_v41, 2  ;;  %v8196_v30 = vmax.f32 %v8194_v45, %v8195_v63  ;;  %v6467_v34 = vpop.f32.mrb[17].mxu0  ;;  %7027 = vmatprep.subr.bf16.mxu1 %v9616_v20  ;;  %v9632_v38 = vcombine.high %v624_v56, %v628_v3  ;;  %v636_v10 = vld [vmem:[#allocation13 + $0x630] sm:$0xff] }
 0x5fd   : > { %v8340_v55 = vrot.slane %v8339_v46, 2  ;;  %v8209_v17 = vmax.f32 %v8207_v31, %v8208_v48  ;;  %v5719_v6 = vpop.f32.mrb[200].mxu1  ;;  %v6469_v25 = vpop.f32.mrb[18].mxu0  ;;  %v14349_v48 = vld [vmem:[#allocation111_spill] sm:$0xff] }
 0x5fe   : > { %v8328_v0 = vmax.f32 %v8326_v41, %v8327_v35  ;;  %v8197_v8 = vrot.slane %v8196_v30, 2  ;;  %v8422_v62 = vmax.f32 %v6465_v39, %v6469_v25  ;;  %v5721_v13 = vpop.f32.mrb[201].mxu1  ;;  %v6471_v42 = vpop.f32.mrb[19].mxu0  ;;  %v8108_v41 = vrot.slane %v8107_v32, 1 }
 0x5ff   : > { %v8341_v27 = vmax.f32 %v8339_v46, %v8340_v55  ;;  %v8210_v47 = vrot.slane %v8209_v17, 2  ;;  %v8435_v45 = vmax.f32 %v6467_v34, %v6471_v42  ;;  %v5723_v63 = vpop.f32.mrb[202].mxu1  ;;  %7028 = vmatpush1.bf16.msra.mxu1 %v9615_v40  ;;  %v8096_v40 = vmax.f32 %v8094_v11, %v8095_v15 }
 0x600   : > { %v8329_v20 = vrot.slane %v8328_v0, 1  ;;  %v8198_v9 = vmax.f32 %v8196_v30, %v8197_v8  ;;  %v8292_v24 = vmax.f32 %v5719_v6, %v5723_v63  ;;  %v5725_v31 = vpop.f32.mrb[203].mxu1  ;;  %7473 = vmatmul.mubr.bf16.gmra.mrb[124].mxu0 %v14349_v48  ;;  %7029 = vmatprep.subr.bf16.mxu1 %v9624_v53  ;;  %v9631_v53 = vcombine.low %v624_v56, %v628_v3 }
 0x601   : > { %v8342_v35 = vrot.slane %v8341_v27, 1  ;;  %v8211_v39 = vmax.f32 %v8209_v17, %v8210_v47  ;;  %v8305_v25 = vmax.f32 %v5721_v13, %v5725_v31  ;;  %7482 = vmatprep.mubr.bf16.mxu0 %v14350_v26  ;;  %v8109_v47 = vmax.f32 %v8107_v32, %v8108_v41  ;;  %v644_v31 = vld [vmem:[#allocation13 + $0x670] sm:$0xff] }
 0x602   : > { %v8330_v46 = vmax.f32 %v8328_v0, %v8329_v20  ;;  %v8199_v42 = vrot.slane %v8198_v9, 1  ;;  %6727 = vmatmul.mubr.bf16.gmra.mrb[52].mxu1 %v12252_v58  ;;  %v9640_v0 = vcombine.high %v632_v1, %v636_v10 }
 0x603   : > { %v8343_v30 = vmax.f32 %v8341_v27, %v8342_v35  ;;  %v8212_v34 = vrot.slane %v8211_v39, 1  ;;  %v6475_v55 = vpop.f32.mrb[20].mxu0  ;;  %6736 = vmatprep.mubr.bf16.mxu1 %v12302_v51  ;;  %7030 = vmatpush1.bf16.msra.mxu1 %v9623_v43 }
 0x604   : > { %v13015_v17 = vsel %vm1621_vm1, %v8330_v46, %v12985_v36  ;;  %v8200_v6 = vmax.f32 %v8198_v9, %v8199_v42  ;;  %v8423_v8 = vmax.f32 %v8422_v62, %v6475_v55  ;;  %v6477_v13 = vpop.f32.mrb[21].mxu0  ;;  %7031 = vmatprep.subr.bf16.mxu1 %v9632_v38  ;;  %v640_v9 = vld [vmem:[#allocation13 + $0x650] sm:$0xff]  ;;  %v645_v46 = vld [vmem:[#allocation13 + $0x678] sm:$0xff] }
 0x605   : > { %v13019_v58 = vsel %vm1621_vm1, %v8343_v30, %v12988_v2  ;;  %v8213_v11 = vmax.f32 %v8211_v39, %v8212_v34  ;;  %v8436_v15 = vmax.f32 %v8435_v45, %v6477_v13  ;;  %v5729_v27 = vpop.f32.mrb[204].mxu1  ;;  %v6479_v51 = vpop.f32.mrb[22].mxu0  ;;  %v9639_v2 = vcombine.low %v632_v1, %v636_v10  ;;  %v641_v45 = vld [vmem:[#allocation13 + $0x658] sm:$0xff]  ;;  %v652_v55 = vld [vmem:[#allocation13 + $0x6b0] sm:$0xff] }
 0x606   : > { %v13022_v56 = vsel %vm1619_vm0, %v8200_v6, %v8096_v40  ;;  %v8293_v3 = vmax.f32 %v8292_v24, %v5729_v27  ;;  %v8424_v36 = vmax.f32 %v8423_v8, %v6479_v51  ;;  %v5731_v43 = vpop.f32.mrb[205].mxu1  ;;  %v6481_v63 = vpop.f32.mrb[23].mxu0  ;;  %v14351_v39 = vld [vmem:[#allocation116_spill] sm:$0xff]  ;;  %v9648_v24 = vcombine.high %v640_v9, %v644_v31  ;;  %v14352_v40 = vld [vmem:[#allocation115_spill] sm:$0xff] }
 0x607   : > { %v13025_v62 = vsel %vm1619_vm0, %v8213_v11, %v8109_v47  ;;  %v8306_v38 = vmax.f32 %v8305_v25, %v5731_v43  ;;  %v8437_v32 = vmax.f32 %v8436_v15, %v6481_v63  ;;  %v5733_v20 = vpop.f32.mrb[206].mxu1  ;;  %7032 = vmatpush1.bf16.msra.mxu1 %v9631_v53  ;;  %v9649_v30 = vcombine.low %v641_v45, %v645_v46  ;;  %v648_v25 = vld [vmem:[#allocation13 + $0x690] sm:$0xff]  ;;  %v649_v1 = vld [vmem:[#allocation13 + $0x698] sm:$0xff] }
 0x608   : > { %v8294_v41 = vmax.f32 %v8293_v3, %v5733_v20  ;;  %v5735_v35 = vpop.f32.mrb[207].mxu1  ;;  %7483 = vmatmul.mubr.bf16.gmra.mrb[128].mxu0 %v14351_v39  ;;  %7033 = vmatprep.subr.bf16.mxu1 %v9640_v0  ;;  %v9650_v34 = vcombine.high %v641_v45, %v645_v46  ;;  %v9647_v53 = vcombine.low %v640_v9, %v644_v31  ;;  %v653_v6 = vld [vmem:[#allocation13 + $0x6b8] sm:$0xff]  ;;  %v14353_v31 = vld [vmem:[#allocation113_spill] sm:$0xff] }
 0x609   : > { %v8307_v42 = vmax.f32 %v8306_v38, %v5735_v35  ;;  %7492 = vmatprep.mubr.bf16.mxu0 %v14352_v40  ;;  %v9656_v0 = vcombine.high %v648_v25, %v652_v55  ;;  %v9658_v47 = vcombine.high %v649_v1, %v653_v6  ;;  %v14354_v45 = vld [vmem:[#allocation120_spill] sm:$0xff] }
 0x60a   : > { %6737 = vmatmul.mubr.bf16.gmra.mrb[56].mxu1 %v14342_v57  ;;  %7741 = vmatprep.subr.bf16.mxu0 %v9650_v34  ;;  %v9657_v57 = vcombine.low %v649_v1, %v653_v6 }
 0x60b   : > { %v6485_v10 = vpop.f32.mrb[24].mxu0  ;;  %6746 = vmatprep.mubr.bf16.mxu1 %v14343_v59  ;;  %7034 = vmatpush1.bf16.msra.mxu1 %v9639_v2 }
 0x60c   : > { %v8425_v8 = vmax.f32 %v8424_v36, %v6485_v10  ;;  %v6487_v13 = vpop.f32.mrb[25].mxu0  ;;  %7035 = vmatprep.subr.bf16.mxu1 %v9648_v24  ;;  %7742 = vmatpush1.bf16.msra.mxu0 %v9649_v30  ;;  %v9655_v36 = vcombine.low %v648_v25, %v652_v55 }
 0x60d   : > { %v8438_v11 = vmax.f32 %v8437_v32, %v6487_v13  ;;  %v5739_v15 = vpop.f32.mrb[208].mxu1  ;;  %v6489_v27 = vpop.f32.mrb[26].mxu0  ;;  %7743 = vmatprep.subr.bf16.mxu0 %v9658_v47 }
 0x60e   : > { %v8295_v51 = vmax.f32 %v8294_v41, %v5739_v15  ;;  %v8426_v3 = vmax.f32 %v8425_v8, %v6489_v27  ;;  %v5741_v43 = vpop.f32.mrb[209].mxu1  ;;  %v6491_v63 = vpop.f32.mrb[27].mxu0 }
 0x60f   : > { %v8308_v59 = vmax.f32 %v8307_v42, %v5741_v43  ;;  %v8439_v38 = vmax.f32 %v8438_v11, %v6491_v63  ;;  %v5743_v20 = vpop.f32.mrb[210].mxu1  ;;  %7036 = vmatpush1.bf16.msra.mxu1 %v9647_v53  ;;  %v14356_v11 = vld [vmem:[#allocation32_spill] sm:$0xff] }
 0x610   : > { %v8296_v2 = vmax.f32 %v8295_v51, %v5743_v20  ;;  %v5745_v9 = vpop.f32.mrb[211].mxu1  ;;  %7493 = vmatmul.mubr.bf16.gmra.mrb[132].mxu0 %v14353_v31  ;;  %7037 = vmatprep.subr.bf16.mxu1 %v9656_v0 }
 0x611   : > { %v8309_v32 = vmax.f32 %v8308_v59, %v5745_v9  ;;  %7502 = vmatprep.mubr.bf16.mxu0 %v14354_v45  ;;  %7744 = vmatpush1.bf16.msra.mxu0 %v9657_v57 }
 0x612   : > { %6747 = vmatmul.mubr.bf16.gmra.mrb[60].mxu1 %v14345_v29  ;;  %v14355_v29 = vld [vmem:[#allocation118_spill] sm:$0xff] }
 0x613   : > { %v6495_v41 = vpop.f32.mrb[28].mxu0  ;;  %6756 = vmatprep.mubr.bf16.mxu1 %v14346_v5  ;;  %7038 = vmatpush1.bf16.msra.mxu1 %v9655_v36 }
 0x614   : > { %v8427_v35 = vmax.f32 %v8426_v3, %v6495_v41  ;;  %v6497_v24 = vpop.f32.mrb[29].mxu0 }
 0x615   : > { %v8440_v46 = vmax.f32 %v8439_v38, %v6497_v24  ;;  %v5749_v42 = vpop.f32.mrb[212].mxu1  ;;  %v6499_v30 = vpop.f32.mrb[30].mxu0 }
 0x616   : > { %v8297_v34 = vmax.f32 %v8296_v2, %v5749_v42  ;;  %v8428_v25 = vmax.f32 %v8427_v35, %v6499_v30  ;;  %v5751_v55 = vpop.f32.mrb[213].mxu1  ;;  %v6501_v1 = vpop.f32.mrb[31].mxu0 }
 0x617   : > { %v8310_v10 = vmax.f32 %v8309_v32, %v5751_v55  ;;  %v8441_v53 = vmax.f32 %v8440_v46, %v6501_v1  ;;  %v5753_v6 = vpop.f32.mrb[214].mxu1  ;;  %v14357_v1 = vld [vmem:[#allocation31_spill] sm:$0xff] }
 0x618   : > { %v8429_v8 = vrot.slane %v8428_v25, 4  ;;  %v8298_v13 = vmax.f32 %v8297_v34, %v5753_v6  ;;  %v5755_v0 = vpop.f32.mrb[215].mxu1  ;;  %7503 = vmatmul.mubr.bf16.gmra.mrb[136].mxu0 %v14355_v29 }
 0x619   : > { %v8442_v47 = vrot.slane %v8441_v53, 4  ;;  %v8311_v5 = vmax.f32 %v8310_v10, %v5755_v0  ;;  %7512 = vmatprep.mubr.bf16.mxu0 %v14356_v11 }
 0x61a   : > { %v8430_v15 = vmax.f32 %v8428_v25, %v8429_v8  ;;  %v8299_v27 = vrot.slane %v8298_v13, 4  ;;  %6757 = vmatmul.mubr.bf16.gmra.mrb[64].mxu1 %v14347_v60  ;;  %v14358_v8 = vld [vmem:[#allocation119_spill] sm:$0xff] }
 0x61b   : > { %v8443_v57 = vmax.f32 %v8441_v53, %v8442_v47  ;;  %v8312_v51 = vrot.slane %v8311_v5, 4  ;;  %v6505_v3 = vpop.f32.mrb[32].mxu0  ;;  %6766 = vmatprep.mubr.bf16.mxu1 %v14348_v52 }
 0x61c   : > { %v8431_v43 = vrot.slane %v8430_v15, 2  ;;  %v8300_v63 = vmax.f32 %v8298_v13, %v8299_v27  ;;  %v6507_v59 = vpop.f32.mrb[33].mxu0 }
 0x61d   : > { %v8444_v38 = vrot.slane %v8443_v57, 2  ;;  %v8313_v20 = vmax.f32 %v8311_v5, %v8312_v51  ;;  %v5759_v36 = vpop.f32.mrb[216].mxu1  ;;  %v6509_v2 = vpop.f32.mrb[34].mxu0 }
 0x61e   : > { %v8432_v9 = vmax.f32 %v8430_v15, %v8431_v43  ;;  %v8301_v32 = vrot.slane %v8300_v63, 2  ;;  %v8526_v41 = vmax.f32 %v6505_v3, %v6509_v2  ;;  %v5761_v35 = vpop.f32.mrb[217].mxu1  ;;  %v6511_v24 = vpop.f32.mrb[35].mxu0 }
 0x61f   : > { %v8445_v46 = vmax.f32 %v8443_v57, %v8444_v38  ;;  %v8314_v42 = vrot.slane %v8313_v20, 2  ;;  %v8539_v60 = vmax.f32 %v6507_v59, %v6511_v24  ;;  %v5763_v30 = vpop.f32.mrb[218].mxu1 }
 0x620   : > { %v8433_v34 = vrot.slane %v8432_v9, 1  ;;  %v8302_v25 = vmax.f32 %v8300_v63, %v8301_v32  ;;  %v8396_v55 = vmax.f32 %v5759_v36, %v5763_v30  ;;  %v5765_v52 = vpop.f32.mrb[219].mxu1  ;;  %7513 = vmatmul.mubr.bf16.gmra.mrb[140].mxu0 %v14357_v1  ;;  %v657_v30 = vld [vmem:[#allocation13 + $0x6d8] sm:$0xff] }
 0x621   : > { %v8446_v10 = vrot.slane %v8445_v46, 1  ;;  %v8315_v53 = vmax.f32 %v8313_v20, %v8314_v42  ;;  %v8409_v6 = vmax.f32 %v5761_v35, %v5765_v52  ;;  %7522 = vmatprep.mubr.bf16.mxu0 %v14358_v8  ;;  %v656_v42 = vld [vmem:[#allocation13 + $0x6d0] sm:$0xff]  ;;  %v661_v52 = vld [vmem:[#allocation13 + $0x6f8] sm:$0xff] }
 0x622   : > { %v8434_v13 = vmax.f32 %v8432_v9, %v8433_v34  ;;  %v8303_v0 = vrot.slane %v8302_v25, 1  ;;  %6767 = vmatmul.mubr.bf16.gmra.mrb[68].mxu1 %v14349_v48  ;;  %v14360_v34 = vld [vmem:[#allocation124_spill] sm:$0xff] }
 0x623   : > { %v8447_v47 = vmax.f32 %v8445_v46, %v8446_v10  ;;  %v8316_v5 = vrot.slane %v8315_v53, 1  ;;  %v6515_v15 = vpop.f32.mrb[36].mxu0  ;;  %6776 = vmatprep.mubr.bf16.mxu1 %v14350_v26  ;;  %v14359_v46 = vld [vmem:[#allocation117_spill] sm:$0xff]  ;;  %v9666_v10 = vcombine.high %v657_v30, %v661_v52 }
 0x624   : > { %v13045_v27 = vsel %vm1623_vm2, %v8434_v13, %v13015_v17  ;;  %v8304_v57 = vmax.f32 %v8302_v25, %v8303_v0  ;;  %v8527_v51 = vmax.f32 %v8526_v41, %v6515_v15  ;;  %v6517_v3 = vpop.f32.mrb[37].mxu0  ;;  %v665_v13 = vld [vmem:[#allocation13 + $0x718] sm:$0xff] }
 0x625   : > { %v13049_v43 = vsel %vm1623_vm2, %v8447_v47, %v13019_v58  ;;  %v8317_v63 = vmax.f32 %v8315_v53, %v8316_v5  ;;  %v8540_v59 = vmax.f32 %v8539_v60, %v6517_v3  ;;  %v5769_v38 = vpop.f32.mrb[220].mxu1  ;;  %v6519_v48 = vpop.f32.mrb[38].mxu0  ;;  %v660_v60 = vld [vmem:[#allocation13 + $0x6f0] sm:$0xff]  ;;  %v669_v5 = vld [vmem:[#allocation13 + $0x738] sm:$0xff]  ;;  %7745 = vmatprep.subr.bf16.mxu0 %v9666_v10 }
 0x626   : > { %v13053_v20 = vsel %vm1621_vm1, %v8304_v57, %v13022_v56  ;;  %v8397_v26 = vmax.f32 %v8396_v55, %v5769_v38  ;;  %v8528_v36 = vmax.f32 %v8527_v51, %v6519_v48  ;;  %v5771_v2 = vpop.f32.mrb[221].mxu1  ;;  %v6521_v17 = vpop.f32.mrb[39].mxu0  ;;  %v9663_v25 = vcombine.low %v656_v42, %v660_v60  ;;  %v664_v53 = vld [vmem:[#allocation13 + $0x710] sm:$0xff] }
 0x627   : > { %v13057_v9 = vsel %vm1621_vm1, %v8317_v63, %v13025_v62  ;;  %v8410_v32 = vmax.f32 %v8409_v6, %v5771_v2  ;;  %v8541_v41 = vmax.f32 %v8540_v59, %v6521_v17  ;;  %v5773_v58 = vpop.f32.mrb[222].mxu1  ;;  %v9664_v55 = vcombine.high %v656_v42, %v660_v60  ;;  %v668_v6 = vld [vmem:[#allocation13 + $0x730] sm:$0xff]  ;;  %v14361_v42 = vld [vmem:[#allocation122_spill] sm:$0xff] }
 0x628   : > { %v8398_v35 = vmax.f32 %v8397_v26, %v5773_v58  ;;  %v5775_v24 = vpop.f32.mrb[223].mxu1  ;;  %7523 = vmatmul.mubr.bf16.gmra.mrb[144].mxu0 %v14359_v46  ;;  %v9665_v62 = vcombine.low %v657_v30, %v661_v52  ;;  %v9672_v47 = vcombine.high %v664_v53, %v668_v6  ;;  %v9671_v51 = vcombine.low %v664_v53, %v668_v6 }
 0x629   : > { %v8411_v56 = vmax.f32 %v8410_v32, %v5775_v24  ;;  %7532 = vmatprep.mubr.bf16.mxu0 %v14360_v34  ;;  %7039 = vmatprep.subr.bf16.mxu1 %v9664_v55  ;;  %v9674_v3 = vcombine.high %v665_v13, %v669_v5  ;;  %v9673_v38 = vcombine.low %v665_v13, %v669_v5 }
 0x62a   : > { %6777 = vmatmul.mubr.bf16.gmra.mrb[72].mxu1 %v14351_v39  ;;  %7746 = vmatpush1.bf16.msra.mxu0 %v9665_v62 }
 0x62b   : > { %v6525_v0 = vpop.f32.mrb[40].mxu0  ;;  %6786 = vmatprep.mubr.bf16.mxu1 %v14352_v40  ;;  %7040 = vmatpush1.bf16.msra.mxu1 %v9663_v25 }
 0x62c   : > { %v8529_v15 = vmax.f32 %v8528_v36, %v6525_v0  ;;  %v6527_v57 = vpop.f32.mrb[41].mxu0  ;;  %7041 = vmatprep.subr.bf16.mxu1 %v9672_v47  ;;  %7747 = vmatprep.subr.bf16.mxu0 %v9674_v3 }
 0x62d   : > { %v8542_v63 = vmax.f32 %v8541_v41, %v6527_v57  ;;  %v5779_v59 = vpop.f32.mrb[224].mxu1  ;;  %v6529_v39 = vpop.f32.mrb[42].mxu0  ;;  %v14362_v41 = vld [vmem:[#allocation123_spill] sm:$0xff] }
 0x62e   : > { %v8399_v48 = vmax.f32 %v8398_v35, %v5779_v59  ;;  %v8530_v26 = vmax.f32 %v8529_v15, %v6529_v39  ;;  %v5781_v2 = vpop.f32.mrb[225].mxu1  ;;  %v6531_v17 = vpop.f32.mrb[43].mxu0  ;;  %7748 = vmatpush1.bf16.msra.mxu0 %v9673_v38 }
 0x62f   : > { %v8412_v40 = vmax.f32 %v8411_v56, %v5781_v2  ;;  %v8543_v32 = vmax.f32 %v8542_v63, %v6531_v17  ;;  %v5783_v58 = vpop.f32.mrb[226].mxu1  ;;  %7042 = vmatpush1.bf16.msra.mxu1 %v9671_v51  ;;  %v14363_v51 = vld [vmem:[#allocation121_spill] sm:$0xff] }
 0x630   : > { %v8400_v36 = vmax.f32 %v8399_v48, %v5783_v58  ;;  %v5785_v24 = vpop.f32.mrb[227].mxu1  ;;  %7533 = vmatmul.mubr.bf16.gmra.mrb[148].mxu0 %v14361_v42 }
 0x631   : > { %v8413_v60 = vmax.f32 %v8412_v40, %v5785_v24  ;;  %7542 = vmatprep.mubr.bf16.mxu0 %v14362_v41 }
 0x632   : > { %6787 = vmatmul.mubr.bf16.gmra.mrb[76].mxu1 %v14353_v31 }
 0x633   : > { %v6535_v30 = vpop.f32.mrb[44].mxu0  ;;  %6796 = vmatprep.mubr.bf16.mxu1 %v14354_v45  ;;  %v14364_v45 = vld [vmem:[#allocation126_spill] sm:$0xff] }
 0x634   : > { %v8531_v35 = vmax.f32 %v8530_v26, %v6535_v30  ;;  %v6537_v25 = vpop.f32.mrb[45].mxu0 }
 0x635   : > { %v8544_v55 = vmax.f32 %v8543_v32, %v6537_v25  ;;  %v5789_v56 = vpop.f32.mrb[228].mxu1  ;;  %v6539_v52 = vpop.f32.mrb[46].mxu0 }
 0x636   : > { %v8401_v62 = vmax.f32 %v8400_v36, %v5789_v56  ;;  %v8532_v10 = vmax.f32 %v8531_v35, %v6539_v52  ;;  %v5791_v53 = vpop.f32.mrb[229].mxu1  ;;  %v6541_v6 = vpop.f32.mrb[47].mxu0 }
 0x637   : > { %v8414_v13 = vmax.f32 %v8413_v60, %v5791_v53  ;;  %v8545_v0 = vmax.f32 %v8544_v55, %v6541_v6  ;;  %v5793_v47 = vpop.f32.mrb[230].mxu1  ;;  %v14365_v6 = vld [vmem:[#allocation38_spill] sm:$0xff] }
 0x638   : > { %v8533_v5 = vrot.slane %v8532_v10, 4  ;;  %v8402_v15 = vmax.f32 %v8401_v62, %v5793_v47  ;;  %v5795_v57 = vpop.f32.mrb[231].mxu1  ;;  %7543 = vmatmul.mubr.bf16.gmra.mrb[152].mxu0 %v14363_v51 }
 0x639   : > { %v8546_v31 = vrot.slane %v8545_v0, 4  ;;  %v8415_v3 = vmax.f32 %v8414_v13, %v5795_v57  ;;  %7552 = vmatprep.mubr.bf16.mxu0 %v14364_v45 }
 0x63a   : > { %v8534_v63 = vmax.f32 %v8532_v10, %v8533_v5  ;;  %v8403_v59 = vrot.slane %v8402_v15, 4  ;;  %6797 = vmatmul.mubr.bf16.gmra.mrb[80].mxu1 %v14355_v29  ;;  %v14366_v5 = vld [vmem:[#allocation36_spill] sm:$0xff] }
 0x63b   : > { %v8547_v39 = vmax.f32 %v8545_v0, %v8546_v31  ;;  %v8416_v38 = vrot.slane %v8415_v3, 4  ;;  %v6545_v48 = vpop.f32.mrb[48].mxu0  ;;  %6806 = vmatprep.mubr.bf16.mxu1 %v14356_v11 }
 0x63c   : > { %v8535_v26 = vrot.slane %v8534_v63, 2  ;;  %v8404_v2 = vmax.f32 %v8402_v15, %v8403_v59  ;;  %v6547_v17 = vpop.f32.mrb[49].mxu0 }
 0x63d   : > { %v8548_v40 = vrot.slane %v8547_v39, 2  ;;  %v8417_v32 = vmax.f32 %v8415_v3, %v8416_v38  ;;  %v5799_v58 = vpop.f32.mrb[232].mxu1  ;;  %v6549_v36 = vpop.f32.mrb[50].mxu0 }
 0x63e   : > { %v8536_v24 = vmax.f32 %v8534_v63, %v8535_v26  ;;  %v8405_v60 = vrot.slane %v8404_v2, 2  ;;  %v8630_v30 = vmax.f32 %v6545_v48, %v6549_v36  ;;  %v5801_v35 = vpop.f32.mrb[233].mxu1  ;;  %v6551_v25 = vpop.f32.mrb[51].mxu0 }
 0x63f   : > { %v8549_v55 = vmax.f32 %v8547_v39, %v8548_v40  ;;  %v8418_v56 = vrot.slane %v8417_v32, 2  ;;  %v8643_v29 = vmax.f32 %v6547_v17, %v6551_v25  ;;  %v5803_v52 = vpop.f32.mrb[234].mxu1 }
 0x640   : > { %v8537_v62 = vrot.slane %v8536_v24, 1  ;;  %v8406_v10 = vmax.f32 %v8404_v2, %v8405_v60  ;;  %v8500_v53 = vmax.f32 %v5799_v58, %v5803_v52  ;;  %v5805_v11 = vpop.f32.mrb[235].mxu1  ;;  %7553 = vmatmul.mubr.bf16.gmra.mrb[156].mxu0 %v14365_v6  ;;  %v676_v52 = vld [vmem:[#allocation13 + $0x770] sm:$0xff] }
 0x641   : > { %v8550_v13 = vrot.slane %v8549_v55, 1  ;;  %v8419_v0 = vmax.f32 %v8417_v32, %v8418_v56  ;;  %v8513_v47 = vmax.f32 %v5801_v35, %v5805_v11  ;;  %7562 = vmatprep.mubr.bf16.mxu0 %v14366_v5  ;;  %v677_v11 = vld [vmem:[#allocation13 + $0x778] sm:$0xff] }
 0x642   : > { %v8538_v15 = vmax.f32 %v8536_v24, %v8537_v62  ;;  %v8407_v57 = vrot.slane %v8406_v10, 1  ;;  %6807 = vmatmul.mubr.bf16.gmra.mrb[84].mxu1 %v14357_v1  ;;  %v673_v62 = vld [vmem:[#allocation13 + $0x758] sm:$0xff] }
 0x643   : > { %v8551_v31 = vmax.f32 %v8549_v55, %v8550_v13  ;;  %v8420_v3 = vrot.slane %v8419_v0, 1  ;;  %v6555_v63 = vpop.f32.mrb[52].mxu0  ;;  %6816 = vmatprep.mubr.bf16.mxu1 %v14358_v8  ;;  %v14367_v55 = vld [vmem:[#allocation33_spill] sm:$0xff]  ;;  %v681_v13 = vld [vmem:[#allocation13 + $0x798] sm:$0xff] }
 0x644   : > { %v13077_v59 = vsel %vm1625_vm3, %v8538_v15, %v13045_v27  ;;  %v8408_v39 = vmax.f32 %v8406_v10, %v8407_v57  ;;  %v8631_v38 = vmax.f32 %v8630_v30, %v6555_v63  ;;  %v6557_v48 = vpop.f32.mrb[53].mxu0  ;;  %v9681_v57 = vcombine.low %v673_v62, %v677_v11 }
 0x645   : > { %v13081_v26 = vsel %vm1625_vm3, %v8551_v31, %v13049_v43  ;;  %v8421_v2 = vmax.f32 %v8419_v0, %v8420_v3  ;;  %v8644_v17 = vmax.f32 %v8643_v29, %v6557_v48  ;;  %v5809_v40 = vpop.f32.mrb[236].mxu1  ;;  %v6559_v1 = vpop.f32.mrb[54].mxu0  ;;  %v14368_v29 = vld [vmem:[#allocation125_spill] sm:$0xff]  ;;  %v685_v0 = vld [vmem:[#allocation13 + $0x7b8] sm:$0xff]  ;;  %v9682_v31 = vcombine.high %v673_v62, %v677_v11  ;;  %v680_v3 = vld [vmem:[#allocation13 + $0x790] sm:$0xff] }
 0x646   : > { %v13085_v32 = vsel %vm1623_vm2, %v8408_v39, %v13053_v20  ;;  %v8501_v8 = vmax.f32 %v8500_v53, %v5809_v40  ;;  %v8632_v58 = vmax.f32 %v8631_v38, %v6559_v1  ;;  %v5811_v36 = vpop.f32.mrb[237].mxu1  ;;  %v6561_v27 = vpop.f32.mrb[55].mxu0  ;;  %v672_v20 = vld [vmem:[#allocation13 + $0x750] sm:$0xff]  ;;  %v689_v48 = vld [vmem:[#allocation13 + $0x7d8] sm:$0xff] }
 0x647   : > { %v13089_v24 = vsel %vm1623_vm2, %v8421_v2, %v13057_v9  ;;  %v8514_v60 = vmax.f32 %v8513_v47, %v5811_v36  ;;  %v8645_v30 = vmax.f32 %v8644_v17, %v6561_v27  ;;  %v5813_v43 = vpop.f32.mrb[238].mxu1  ;;  %v9679_v9 = vcombine.low %v672_v20, %v676_v52  ;;  %v693_v2 = vld [vmem:[#allocation13 + $0x7f8] sm:$0xff]  ;;  %v684_v17 = vld [vmem:[#allocation13 + $0x7b0] sm:$0xff]  ;;  %7749 = vmatprep.subr.bf16.mxu0 %v9682_v31 }
 0x648   : > { %v8502_v35 = vmax.f32 %v8501_v8, %v5813_v43  ;;  %v5815_v25 = vpop.f32.mrb[239].mxu1  ;;  %7563 = vmatmul.mubr.bf16.gmra.mrb[160].mxu0 %v14367_v55  ;;  %v9680_v53 = vcombine.high %v672_v20, %v676_v52  ;;  %v9688_v43 = vcombine.high %v680_v3, %v684_v17  ;;  %v9698_v20 = vcombine.high %v689_v48, %v693_v2 }
 0x649   : > { %v8515_v56 = vmax.f32 %v8514_v60, %v5815_v25  ;;  %7572 = vmatprep.mubr.bf16.mxu0 %v14368_v29  ;;  %7750 = vmatpush1.bf16.msra.mxu0 %v9681_v57  ;;  %v9689_v60 = vcombine.low %v681_v13, %v685_v0  ;;  %v9687_v52 = vcombine.low %v680_v3, %v684_v17  ;;  %v14371_v17 = vld [vmem:[#allocation153_spill] sm:$0xff] }
 0x64a   : > { %6817 = vmatmul.mubr.bf16.gmra.mrb[88].mxu1 %v14359_v46  ;;  %7043 = vmatprep.subr.bf16.mxu1 %v9680_v53  ;;  %v9690_v46 = vcombine.high %v681_v13, %v685_v0 }
 0x64b   : > { %v6565_v10 = vpop.f32.mrb[56].mxu0  ;;  %6826 = vmatprep.mubr.bf16.mxu1 %v14360_v34  ;;  %7044 = vmatpush1.bf16.msra.mxu1 %v9679_v9 }
 0x64c   : > { %v8633_v47 = vmax.f32 %v8632_v58, %v6565_v10  ;;  %v6567_v15 = vpop.f32.mrb[57].mxu0  ;;  %7751 = vmatprep.subr.bf16.mxu0 %v9690_v46  ;;  %7045 = vmatprep.subr.bf16.mxu1 %v9688_v43  ;;  %v14370_v46 = vld [vmem:[#allocation34_spill] sm:$0xff] }
 0x64d   : > { %v8646_v63 = vmax.f32 %v8645_v30, %v6567_v15  ;;  %v5819_v39 = vpop.f32.mrb[240].mxu1  ;;  %v6569_v38 = vpop.f32.mrb[58].mxu0  ;;  %7752 = vmatpush1.bf16.msra.mxu0 %v9689_v60 }
 0x64e   : > { %v8503_v40 = vmax.f32 %v8502_v35, %v5819_v39  ;;  %v8634_v34 = vmax.f32 %v8633_v47, %v6569_v38  ;;  %v5821_v1 = vpop.f32.mrb[241].mxu1  ;;  %v6571_v8 = vpop.f32.mrb[59].mxu0  ;;  %v14369_v35 = vld [vmem:[#allocation127_spill] sm:$0xff]  ;;  %7753 = vmatprep.subr.bf16.mxu0 %v9698_v20 }
 0x64f   : > { %v8516_v36 = vmax.f32 %v8515_v56, %v5821_v1  ;;  %v8647_v58 = vmax.f32 %v8646_v63, %v6571_v8  ;;  %v5823_v27 = vpop.f32.mrb[242].mxu1  ;;  %v9697_v56 = vcombine.low %v689_v48, %v693_v2  ;;  %7046 = vmatpush1.bf16.msra.mxu1 %v9687_v52  ;;  %v688_v1 = vld [vmem:[#allocation13 + $0x7d0] sm:$0xff] }
 0x650   : > { %v8504_v30 = vmax.f32 %v8503_v40, %v5823_v27  ;;  %v5825_v25 = vpop.f32.mrb[243].mxu1  ;;  %7573 = vmatmul.mubr.bf16.gmra.mrb[164].mxu0 %v12586_v37  ;;  %v692_v8 = vld [vmem:[#allocation13 + $0x7f0] sm:$0xff] }
 0x651   : > { %v8517_v62 = vmax.f32 %v8516_v36, %v5825_v25  ;;  %7582 = vmatprep.mubr.bf16.mxu0 %v14369_v35  ;;  %7754 = vmatpush1.bf16.msra.mxu0 %v9697_v56  ;;  %v9695_v60 = vcombine.low %v688_v1, %v692_v8  ;;  %v9696_v43 = vcombine.high %v688_v1, %v692_v8 }
 0x652   : > { %6827 = vmatmul.mubr.bf16.gmra.mrb[92].mxu1 %v14361_v42 }
 0x653   : > { %v6575_v10 = vpop.f32.mrb[60].mxu0  ;;  %6836 = vmatprep.mubr.bf16.mxu1 %v14362_v41  ;;  %7047 = vmatprep.subr.bf16.mxu1 %v9696_v43 }
 0x654   : > { %v8635_v9 = vmax.f32 %v8634_v34, %v6575_v10  ;;  %v6577_v53 = vpop.f32.mrb[61].mxu0  ;;  %7048 = vmatpush1.bf16.msra.mxu1 %v9695_v60 }
 0x655   : > { %v8648_v11 = vmax.f32 %v8647_v58, %v6577_v53  ;;  %v5829_v13 = vpop.f32.mrb[244].mxu1  ;;  %v6579_v0 = vpop.f32.mrb[62].mxu0 }
 0x656   : > { %v8505_v47 = vmax.f32 %v8504_v30, %v5829_v13  ;;  %v8636_v15 = vmax.f32 %v8635_v9, %v6579_v0  ;;  %v5831_v57 = vpop.f32.mrb[245].mxu1  ;;  %v6581_v31 = vpop.f32.mrb[63].mxu0 }
 0x657   : > { %v8518_v3 = vmax.f32 %v8517_v62, %v5831_v57  ;;  %v8649_v63 = vmax.f32 %v8648_v11, %v6581_v31  ;;  %v5833_v39 = vpop.f32.mrb[246].mxu1 }
 0x658   : > { %v8637_v42 = vrot.slane %v8636_v15, 4  ;;  %v8506_v38 = vmax.f32 %v8505_v47, %v5833_v39  ;;  %v5835_v41 = vpop.f32.mrb[247].mxu1  ;;  %7583 = vmatmul.mubr.bf16.gmra.mrb[168].mxu0 %v14370_v46  ;;  %v14372_v39 = vld [vmem:[#allocation130_spill] sm:$0xff] }
 0x659   : > { %v8650_v48 = vrot.slane %v8649_v63, 4  ;;  %v8519_v2 = vmax.f32 %v8518_v3, %v5835_v41  ;;  %7592 = vmatprep.mubr.bf16.mxu0 %v14371_v17 }
 0x65a   : > { %v8638_v40 = vmax.f32 %v8636_v15, %v8637_v42  ;;  %v8507_v34 = vrot.slane %v8506_v38, 4  ;;  %6837 = vmatmul.mubr.bf16.gmra.mrb[96].mxu1 %v14363_v51 }
 0x65b   : > { %v8651_v36 = vmax.f32 %v8649_v63, %v8650_v48  ;;  %v8520_v58 = vrot.slane %v8519_v2, 4  ;;  %v6585_v27 = vpop.f32.mrb[64].mxu0  ;;  %6846 = vmatprep.mubr.bf16.mxu1 %v14364_v45  ;;  %v14373_v48 = vld [vmem:[#allocation159_spill] sm:$0xff] }
 0x65c   : > { %v8639_v30 = vrot.slane %v8638_v40, 2  ;;  %v8508_v25 = vmax.f32 %v8506_v38, %v8507_v34  ;;  %v6587_v20 = vpop.f32.mrb[65].mxu0 }
 0x65d   : > { %v8652_v52 = vrot.slane %v8651_v36, 2  ;;  %v8521_v62 = vmax.f32 %v8519_v2, %v8520_v58  ;;  %v5839_v10 = vpop.f32.mrb[248].mxu1  ;;  %v6589_v56 = vpop.f32.mrb[66].mxu0 }
 0x65e   : > { %v8640_v9 = vmax.f32 %v8638_v40, %v8639_v30  ;;  %v8509_v53 = vrot.slane %v8508_v25, 2  ;;  %v8734_v51 = vmax.f32 %v6585_v27, %v6589_v56  ;;  %v5841_v11 = vpop.f32.mrb[249].mxu1  ;;  %v6591_v13 = vpop.f32.mrb[67].mxu0 }
 0x65f   : > { %v8653_v0 = vmax.f32 %v8651_v36, %v8652_v52  ;;  %v8522_v47 = vrot.slane %v8521_v62, 2  ;;  %v8747_v15 = vmax.f32 %v6587_v20, %v6591_v13  ;;  %v5843_v45 = vpop.f32.mrb[250].mxu1  ;;  %v14374_v13 = vld [vmem:[#allocation154_spill] sm:$0xff] }
 0x660   : > { %v8641_v57 = vrot.slane %v8640_v9, 1  ;;  %v8510_v31 = vmax.f32 %v8508_v25, %v8509_v53  ;;  %v8604_v3 = vmax.f32 %v5839_v10, %v5843_v45  ;;  %v5845_v63 = vpop.f32.mrb[251].mxu1  ;;  %7593 = vmatmul.mubr.bf16.gmra.mrb[172].mxu0 %v14372_v39 }
 0x661   : > { %v8654_v42 = vrot.slane %v8653_v0, 1  ;;  %v8523_v38 = vmax.f32 %v8521_v62, %v8522_v47  ;;  %v8617_v41 = vmax.f32 %v5841_v11, %v5845_v63  ;;  %7602 = vmatprep.mubr.bf16.mxu0 %v14373_v48  ;;  %v14375_v47 = vld [vmem:[#allocation40_spill] sm:$0xff] }
 0x662   : > { %v8642_v2 = vmax.f32 %v8640_v9, %v8641_v57  ;;  %v8511_v40 = vrot.slane %v8510_v31, 1  ;;  %6847 = vmatmul.mubr.bf16.gmra.mrb[100].mxu1 %v14365_v6 }
 0x663   : > { %v8655_v34 = vmax.f32 %v8653_v0, %v8654_v42  ;;  %v8524_v1 = vrot.slane %v8523_v38, 1  ;;  %v6595_v8 = vpop.f32.mrb[68].mxu0  ;;  %6856 = vmatprep.mubr.bf16.mxu1 %v14366_v5 }
 0x664   : > { %v13109_v36 = vsel %vm1627_vm4, %v8642_v2, %v13077_v59  ;;  %v8512_v58 = vmax.f32 %v8510_v31, %v8511_v40  ;;  %v8735_v27 = vmax.f32 %v8734_v51, %v6595_v8  ;;  %v6597_v60 = vpop.f32.mrb[69].mxu0 }
 0x665   : > { %v13113_v43 = vsel %vm1627_vm4, %v8655_v34, %v13081_v26  ;;  %v8525_v30 = vmax.f32 %v8523_v38, %v8524_v1  ;;  %v8748_v25 = vmax.f32 %v8747_v15, %v6597_v60  ;;  %v5849_v20 = vpop.f32.mrb[252].mxu1  ;;  %v6599_v6 = vpop.f32.mrb[70].mxu0 }
 0x666   : > { %v13117_v52 = vsel %vm1625_vm3, %v8512_v58, %v13085_v32  ;;  %v8605_v5 = vmax.f32 %v8604_v3, %v5849_v20  ;;  %v8736_v62 = vmax.f32 %v8735_v27, %v6599_v6  ;;  %v5851_v10 = vpop.f32.mrb[253].mxu1  ;;  %v6601_v59 = vpop.f32.mrb[71].mxu0 }
 0x667   : > { %v13121_v56 = vsel %vm1625_vm3, %v8525_v30, %v13089_v24  ;;  %v8618_v9 = vmax.f32 %v8617_v41, %v5851_v10  ;;  %v8749_v53 = vmax.f32 %v8748_v25, %v6601_v59  ;;  %v5853_v26 = vpop.f32.mrb[254].mxu1 }
 0x668   : > { %v8606_v51 = vmax.f32 %v8605_v5, %v5853_v26  ;;  %v5855_v11 = vpop.f32.mrb[255].mxu1  ;;  %7603 = vmatmul.mubr.bf16.gmra.mrb[176].mxu0 %v14374_v13 }
 0x669   : > { %v8619_v0 = vmax.f32 %v8618_v9, %v5855_v11  ;;  %7612 = vmatprep.mubr.bf16.mxu0 %v14375_v47 }
 0x66a   : > { %6857 = vmatmul.mubr.bf16.gmra.mrb[104].mxu1 %v14367_v55 }
 0x66b   : > { %v6605_v32 = vpop.f32.mrb[72].mxu0  ;;  %6866 = vmatprep.mubr.bf16.mxu1 %v14368_v29 }
 0x66c   : > { %v8737_v15 = vmax.f32 %v8736_v62, %v6605_v32  ;;  %v6607_v45 = vpop.f32.mrb[73].mxu0 }
 0x66d   : > { %v8750_v57 = vmax.f32 %v8749_v53, %v6607_v45  ;;  %v5859_v24 = vpop.f32.mrb[0].mxu1  ;;  %v6609_v31 = vpop.f32.mrb[74].mxu0 }
 0x66e   : > { %v8607_v3 = vmax.f32 %v8606_v51, %v5859_v24  ;;  %v8738_v63 = vmax.f32 %v8737_v15, %v6609_v31  ;;  %v5861_v42 = vpop.f32.mrb[1].mxu1  ;;  %v6611_v38 = vpop.f32.mrb[75].mxu0 }
 0x66f   : > { %v8620_v41 = vmax.f32 %v8619_v0, %v5861_v42  ;;  %v8751_v2 = vmax.f32 %v8750_v57, %v6611_v38  ;;  %v5863_v40 = vpop.f32.mrb[2].mxu1 }
 0x670   : > { %v8608_v34 = vmax.f32 %v8607_v3, %v5863_v40  ;;  %v5865_v1 = vpop.f32.mrb[3].mxu1  ;;  %7613 = vmatmul.mubr.bf16.gmra.mrb[180].mxu0 %v12654_v54 }
 0x671   : > { %v8621_v55 = vmax.f32 %v8620_v41, %v5865_v1  ;;  %7622 = vmatprep.mubr.bf16.mxu0 %v12672_v44 }
 0x672   : > { %6867 = vmatmul.mubr.bf16.gmra.mrb[108].mxu1 %v12586_v37 }
 0x673   : > { %v6615_v29 = vpop.f32.mrb[76].mxu0  ;;  %6876 = vmatprep.mubr.bf16.mxu1 %v14369_v35  ;;  %v14376_v35 = vld [vmem:[#allocation42_spill] sm:$0xff] }
 0x674   : > { %v8739_v8 = vmax.f32 %v8738_v63, %v6615_v29  ;;  %v6617_v58 = vpop.f32.mrb[77].mxu0 }
 0x675   : > { %v8752_v27 = vmax.f32 %v8751_v2, %v6617_v58  ;;  %v5869_v60 = vpop.f32.mrb[4].mxu1  ;;  %v6619_v30 = vpop.f32.mrb[78].mxu0 }
 0x676   : > { %v8609_v25 = vmax.f32 %v8608_v34, %v5869_v60  ;;  %v8740_v20 = vmax.f32 %v8739_v8, %v6619_v30  ;;  %v5871_v6 = vpop.f32.mrb[5].mxu1  ;;  %v6621_v5 = vpop.f32.mrb[79].mxu0  ;;  %v14377_v30 = vld [vmem:[#allocation128_spill] sm:$0xff] }
 0x677   : > { %v8622_v62 = vmax.f32 %v8621_v55, %v5871_v6  ;;  %v8753_v10 = vmax.f32 %v8752_v27, %v6621_v5  ;;  %v5873_v59 = vpop.f32.mrb[6].mxu1  ;;  %v14378_v5 = vld [vmem:[#allocation35_spill] sm:$0xff] }
 0x678   : > { %v8741_v9 = vrot.slane %v8740_v20, 4  ;;  %v8610_v53 = vmax.f32 %v8609_v25, %v5873_v59  ;;  %v5875_v26 = vpop.f32.mrb[7].mxu1  ;;  %7623 = vmatmul.mubr.bf16.gmra.mrb[184].mxu0 %v12670_v19 }
 0x679   : > { %v8754_v37 = vrot.slane %v8753_v10, 4  ;;  %v8623_v51 = vmax.f32 %v8622_v62, %v5875_v26  ;;  %7632 = vmatprep.mubr.bf16.mxu0 %v14376_v35 }
 0x67a   : > { %v8742_v11 = vmax.f32 %v8740_v20, %v8741_v9  ;;  %v8611_v0 = vrot.slane %v8610_v53, 4  ;;  %6877 = vmatmul.mubr.bf16.gmra.mrb[112].mxu1 %v14370_v46 }
 0x67b   : > { %v8755_v32 = vmax.f32 %v8753_v10, %v8754_v37  ;;  %v8624_v15 = vrot.slane %v8623_v51, 4  ;;  %v6625_v45 = vpop.f32.mrb[80].mxu0  ;;  %6886 = vmatprep.mubr.bf16.mxu1 %v14371_v17 }
 0x67c   : > { %v8743_v57 = vrot.slane %v8742_v11, 2  ;;  %v8612_v24 = vmax.f32 %v8610_v53, %v8611_v0  ;;  %v6627_v31 = vpop.f32.mrb[81].mxu0 }
 0x67d   : > { %v8756_v3 = vrot.slane %v8755_v32, 2  ;;  %v8625_v63 = vmax.f32 %v8623_v51, %v8624_v15  ;;  %v5879_v42 = vpop.f32.mrb[8].mxu1  ;;  %v6629_v38 = vpop.f32.mrb[82].mxu0 }
 0x67e   : > { %v8744_v41 = vmax.f32 %v8742_v11, %v8743_v57  ;;  %v8613_v2 = vrot.slane %v8612_v24, 2  ;;  %v8838_v40 = vmax.f32 %v6625_v45, %v6629_v38  ;;  %v5881_v34 = vpop.f32.mrb[9].mxu1  ;;  %v6631_v1 = vpop.f32.mrb[83].mxu0 }
 0x67f   : > { %v8757_v55 = vmax.f32 %v8755_v32, %v8756_v3  ;;  %v8626_v29 = vrot.slane %v8625_v63, 2  ;;  %v8851_v46 = vmax.f32 %v6627_v31, %v6631_v1  ;;  %v5883_v8 = vpop.f32.mrb[10].mxu1 }
 0x680   : > { %v8745_v58 = vrot.slane %v8744_v41, 1  ;;  %v8614_v27 = vmax.f32 %v8612_v24, %v8613_v2  ;;  %v8708_v60 = vmax.f32 %v5879_v42, %v5883_v8  ;;  %v5885_v17 = vpop.f32.mrb[11].mxu1  ;;  %7633 = vmatmul.mubr.bf16.gmra.mrb[188].mxu0 %v14377_v30  ;;  %v14379_v2 = vld [vmem:[#allocation133_spill] sm:$0xff] }
 0x681   : > { %v8758_v25 = vrot.slane %v8757_v55, 1  ;;  %v8627_v20 = vmax.f32 %v8625_v63, %v8626_v29  ;;  %v8721_v6 = vmax.f32 %v5881_v34, %v5885_v17  ;;  %7642 = vmatprep.mubr.bf16.mxu0 %v14378_v5  ;;  %v14380_v34 = vld [vmem:[#allocation39_spill] sm:$0xff] }
 0x682   : > { %v8746_v62 = vmax.f32 %v8744_v41, %v8745_v58  ;;  %v8615_v10 = vrot.slane %v8614_v27, 1  ;;  %6887 = vmatmul.mubr.bf16.gmra.mrb[116].mxu1 %v14372_v39 }
 0x683   : > { %v8759_v59 = vmax.f32 %v8757_v55, %v8758_v25  ;;  %v8628_v9 = vrot.slane %v8627_v20, 1  ;;  %v6635_v53 = vpop.f32.mrb[84].mxu0  ;;  %6896 = vmatprep.mubr.bf16.mxu1 %v14373_v48 }
 0x684   : > { %v13141_v26 = vsel %vm1629_vm5, %v8746_v62, %v13109_v36  ;;  %v8616_v37 = vmax.f32 %v8614_v27, %v8615_v10  ;;  %v8839_v51 = vmax.f32 %v8838_v40, %v6635_v53  ;;  %v6637_v11 = vpop.f32.mrb[85].mxu0 }
 0x685   : > { %v13145_v0 = vsel %vm1629_vm5, %v8759_v59, %v13113_v43  ;;  %v8629_v32 = vmax.f32 %v8627_v20, %v8628_v9  ;;  %v8852_v15 = vmax.f32 %v8851_v46, %v6637_v11  ;;  %v5889_v45 = vpop.f32.mrb[12].mxu1  ;;  %v6639_v39 = vpop.f32.mrb[86].mxu0 }
 0x686   : > { %v13149_v57 = vsel %vm1627_vm4, %v8616_v37, %v13117_v52  ;;  %v8709_v48 = vmax.f32 %v8708_v60, %v5889_v45  ;;  %v8840_v24 = vmax.f32 %v8839_v51, %v6639_v39  ;;  %v5891_v31 = vpop.f32.mrb[13].mxu1  ;;  %v6641_v36 = vpop.f32.mrb[87].mxu0 }
 0x687   : > { %v13153_v3 = vsel %vm1627_vm4, %v8629_v32, %v13121_v56  ;;  %v8722_v63 = vmax.f32 %v8721_v6, %v5891_v31  ;;  %v8853_v42 = vmax.f32 %v8852_v15, %v6641_v36  ;;  %v5893_v43 = vpop.f32.mrb[14].mxu1 }
 0x688   : > { %v8710_v38 = vmax.f32 %v8709_v48, %v5893_v43  ;;  %v5895_v41 = vpop.f32.mrb[15].mxu1  ;;  %7643 = vmatmul.mubr.bf16.gmra.mrb[192].mxu0 %v14379_v2 }
 0x689   : > { %v8723_v40 = vmax.f32 %v8722_v63, %v5895_v41  ;;  %7652 = vmatprep.mubr.bf16.mxu0 %v14380_v34 }
 0x68a   : > { %6897 = vmatmul.mubr.bf16.gmra.mrb[120].mxu1 %v14374_v13 }
 0x68b   : > { %v6645_v52 = vpop.f32.mrb[88].mxu0  ;;  %6906 = vmatprep.mubr.bf16.mxu1 %v14375_v47 }
 0x68c   : > { %v8841_v1 = vmax.f32 %v8840_v24, %v6645_v52  ;;  %v6647_v55 = vpop.f32.mrb[89].mxu0 }
 0x68d   : > { %v8854_v29 = vmax.f32 %v8853_v42, %v6647_v55  ;;  %v5899_v56 = vpop.f32.mrb[16].mxu1  ;;  %v6649_v46 = vpop.f32.mrb[90].mxu0 }
 0x68e   : > { %v8711_v8 = vmax.f32 %v8710_v38, %v5899_v56  ;;  %v8842_v58 = vmax.f32 %v8841_v1, %v6649_v46  ;;  %v5901_v27 = vpop.f32.mrb[17].mxu1  ;;  %v6651_v60 = vpop.f32.mrb[91].mxu0  ;;  %v13170_v56 = vld [vmem:[%s13519_s6] sm:$0xff] }
 0x68f   : > { %v8724_v17 = vmax.f32 %v8723_v40, %v5901_v27  ;;  %v8855_v25 = vmax.f32 %v8854_v29, %v6651_v60  ;;  %v5903_v20 = vpop.f32.mrb[18].mxu1 }
 0x690   : > { %v8712_v6 = vmax.f32 %v8711_v8, %v5903_v20  ;;  %v5905_v62 = vpop.f32.mrb[19].mxu1  ;;  %7653 = vmatmul.mubr.bf16.gmra.mrb[196].mxu0 %v12714_v16  ;;  %v14381_v20 = vld [vmem:[#allocation53_spill] sm:$0xff] }
 0x691   : > { %v8725_v13 = vmax.f32 %v8724_v17, %v5905_v62  ;;  %7662 = vmatprep.mubr.bf16.mxu0 %v12728_v28 }
 0x692   : > { %6907 = vmatmul.mubr.bf16.gmra.mrb[124].mxu1 %v12654_v54 }
 0x693   : > { %v6655_v47 = vpop.f32.mrb[92].mxu0  ;;  %6916 = vmatprep.mubr.bf16.mxu1 %v12672_v44 }
 0x694   : > { %v8843_v10 = vmax.f32 %v8842_v58, %v6655_v47  ;;  %v6657_v59 = vpop.f32.mrb[93].mxu0 }
 0x695   : > { %v8856_v9 = vmax.f32 %v8855_v25, %v6657_v59  ;;  %v5909_v53 = vpop.f32.mrb[20].mxu1  ;;  %v6659_v37 = vpop.f32.mrb[94].mxu0  ;;  %v14382_v59 = vld [vmem:[#allocation56_spill] sm:$0xff] }
 0x696   : > { %v8713_v51 = vmax.f32 %v8712_v6, %v5909_v53  ;;  %v8844_v11 = vmax.f32 %v8843_v10, %v6659_v37  ;;  %v5911_v32 = vpop.f32.mrb[21].mxu1  ;;  %v6661_v15 = vpop.f32.mrb[95].mxu0  ;;  %v9081_v6 = vrot.slane %v13170_v56, %v14381_v20 }
 0x697   : > { %v8726_v45 = vmax.f32 %v8725_v13, %v5911_v32  ;;  %v8857_v39 = vmax.f32 %v8856_v9, %v6661_v15  ;;  %v5913_v48 = vpop.f32.mrb[22].mxu1  ;;  %v9085_v9 = vrot.slane %v13170_v56, %v14382_v59 }
 0x698   : > { %v8845_v24 = vrot.slane %v8844_v11, 4  ;;  %v8714_v31 = vmax.f32 %v8713_v51, %v5913_v48  ;;  %v5915_v36 = vpop.f32.mrb[23].mxu1  ;;  %7663 = vmatmul.mubr.bf16.gmra.mrb[200].mxu0 %v12726_v4 }
 0x699   : > { %v8858_v54 = vrot.slane %v8857_v39, 4  ;;  %v8727_v63 = vmax.f32 %v8726_v45, %v5915_v36  ;;  %7672 = vmatprep.mubr.bf16.mxu0 %v12748_v18 }
 0x69a   : > { %v8846_v44 = vmax.f32 %v8844_v11, %v8845_v24  ;;  %v8715_v42 = vrot.slane %v8714_v31, 4  ;;  %6917 = vmatmul.mubr.bf16.gmra.mrb[128].mxu1 %v12670_v19 }
 0x69b   : > { %v8859_v43 = vmax.f32 %v8857_v39, %v8858_v54  ;;  %v8728_v38 = vrot.slane %v8727_v63, 4  ;;  %6926 = vmatprep.mubr.bf16.mxu1 %v14376_v35 }
 0x69c   : > { %v8847_v41 = vrot.slane %v8846_v44, 2  ;;  %v8716_v40 = vmax.f32 %v8714_v31, %v8715_v42 }
 0x69d   : > { %v8860_v52 = vrot.slane %v8859_v43, 2  ;;  %v8729_v1 = vmax.f32 %v8727_v63, %v8728_v38  ;;  %v5919_v55 = vpop.f32.mrb[24].mxu1 }
 0x69e   : > { %v8848_v29 = vmax.f32 %v8846_v44, %v8847_v41  ;;  %v8717_v46 = vrot.slane %v8716_v40, 2  ;;  %v5921_v8 = vpop.f32.mrb[25].mxu1 }
 0x69f   : > { %v8861_v58 = vmax.f32 %v8859_v43, %v8860_v52  ;;  %v8730_v19 = vrot.slane %v8729_v1, 2  ;;  %v5923_v27 = vpop.f32.mrb[26].mxu1 }
 0x6a0   : > { %v8849_v60 = vrot.slane %v8848_v29, 1  ;;  %v8718_v17 = vmax.f32 %v8716_v40, %v8717_v46  ;;  %v8812_v35 = vmax.f32 %v5919_v55, %v5923_v27  ;;  %v5925_v25 = vpop.f32.mrb[27].mxu1  ;;  %7673 = vmatmul.mubr.bf16.gmra.mrb[204].mxu0 %v12742_v49 }
 0x6a1   : > { %v8862_v62 = vrot.slane %v8861_v58, 1  ;;  %v8731_v13 = vmax.f32 %v8729_v1, %v8730_v19  ;;  %v8825_v47 = vmax.f32 %v5921_v8, %v5925_v25  ;;  %7682 = vmatprep.mubr.bf16.mxu0 %v12760_v33 }
 0x6a2   : > { %v8850_v10 = vmax.f32 %v8848_v29, %v8849_v60  ;;  %v8719_v53 = vrot.slane %v8718_v17, 1  ;;  %6927 = vmatmul.mubr.bf16.gmra.mrb[132].mxu1 %v14377_v30 }
 0x6a3   : > { %v8863_v37 = vmax.f32 %v8861_v58, %v8862_v62  ;;  %v8732_v51 = vrot.slane %v8731_v13, 1  ;;  %6936 = vmatprep.mubr.bf16.mxu1 %v14378_v5 }
 0x6a4   : > { %v9000_v11 = vsel %vm1631_vm6, %v8850_v10, %v13141_v26  ;;  %v8720_v32 = vmax.f32 %v8718_v17, %v8719_v53 }
 0x6a5   : > { %v9112_v15 = vadd.f32 %v9081_v6, %v9000_v11  ;;  %v9007_v45 = vsel %vm1631_vm6, %v8863_v37, %v13145_v0  ;;  %v8733_v39 = vmax.f32 %v8731_v13, %v8732_v51  ;;  %v5929_v48 = vpop.f32.mrb[28].mxu1  ;;  %v14383_v6 = vld [vmem:[#allocation129_spill] sm:$0xff]  ;;  %v14384_v13 = vld [vmem:[#allocation131_spill] sm:$0xff] }
 0x6a6   : > { %v9113_v24 = vadd.f32 %v9085_v9, %v9007_v45  ;;  %v8985_v31 = vsel %vm1629_vm5, %v8720_v32, %v13149_v57  ;;  %v8813_v36 = vmax.f32 %v8812_v35, %v5929_v48  ;;  %v5931_v30 = vpop.f32.mrb[29].mxu1  ;;  %v14385_v51 = vld [vmem:[#allocation61_spill] sm:$0xff]  ;;  %v14400_v45 = vld [vmem:[#allocation72_spill] sm:$0xff]  ;;  %v14402_v48 = vld [vmem:[#allocation71_spill] sm:$0xff] }
 0x6a7   : > { %9120 = vst [vmem:[%s13187_s20 + $0x10] sm:$0xff] %v9112_v15  ;;  %v8992_v5 = vsel %vm1629_vm5, %v8733_v39, %v13153_v3  ;;  %v8826_v26 = vmax.f32 %v8825_v47, %v5931_v30  ;;  %v5933_v54 = vpop.f32.mrb[30].mxu1  ;;  %v9077_v47 = vrot.slane %v13170_v56, %v14384_v13  ;;  %v14389_v11 = vld [vmem:[#allocation65_spill] sm:$0xff]  ;;  %v14391_v15 = vld [vmem:[#allocation162_spill] sm:$0xff] }
 0x6a8   : > { %9121 = vst [vmem:[%s13187_s20 + $0x18] sm:$0xff] %v9113_v24  ;;  %v8814_v0 = vmax.f32 %v8813_v36, %v5933_v54  ;;  %v5935_v63 = vpop.f32.mrb[31].mxu1  ;;  %7683 = vmatmul.mubr.bf16.gmra.mrb[208].mxu0 %v12758_v7  ;;  %v14390_v32 = vld [vmem:[#allocation161_spill] sm:$0xff]  ;;  %v14403_v24 = vld [vmem:[#allocation74_spill] sm:$0xff] }
 0x6a9   : > { %v8827_v44 = vmax.f32 %v8826_v26, %v5935_v63  ;;  %7692 = vmatprep.mubr.bf16.mxu0 %v12772_v21  ;;  %v14401_v39 = vld [vmem:[#allocation69_spill] sm:$0xff]  ;;  %v14408_v26 = vld [vmem:[#allocation23_spill] sm:$0xff]  ;;  %v14409_v54 = vld [vmem:[#allocation78_spill] sm:$0xff] }
 0x6aa   : > { %6937 = vmatmul.mubr.bf16.gmra.mrb[136].mxu1 %v14379_v2  ;;  %v14405_v36 = vld [vmem:[#allocation21_spill] sm:$0xff] }
 0x6ab   : > { %6946 = vmatprep.mubr.bf16.mxu1 %v14380_v34  ;;  %v14406_v30 = vld [vmem:[#allocation73_spill] sm:$0xff] }
 0x6ac   : > { %v14411_v63 = vld [vmem:[#allocation77_spill] sm:$0xff] }
 0x6ad   : > { %v5939_v57 = vpop.f32.mrb[32].mxu1 }
 0x6ae   : > { %v8815_v42 = vmax.f32 %v8814_v0, %v5939_v57  ;;  %v5941_v43 = vpop.f32.mrb[33].mxu1  ;;  %v14410_v0 = vld [vmem:[#allocation80_spill] sm:$0xff]  ;;  %v14413_v57 = vld [vmem:[#allocation82_spill] sm:$0xff] }
 0x6af   : > { %v8828_v38 = vmax.f32 %v8827_v44, %v5941_v43  ;;  %v5943_v41 = vpop.f32.mrb[34].mxu1  ;;  %v14412_v44 = vld [vmem:[#allocation79_spill] sm:$0xff]  ;;  %v14415_v43 = vld [vmem:[#allocation81_spill] sm:$0xff] }
 0x6b0   : > { %v8816_v3 = vmax.f32 %v8815_v42, %v5943_v41  ;;  %v5945_v40 = vpop.f32.mrb[35].mxu1  ;;  %7693 = vmatmul.mubr.bf16.gmra.mrb[212].mxu0 %v12770_v12  ;;  %v14414_v42 = vld [vmem:[#allocation84_spill] sm:$0xff]  ;;  %v14417_v41 = vld [vmem:[#allocation22_spill] sm:$0xff] }
 0x6b1   : > { %v8829_v52 = vmax.f32 %v8828_v38, %v5945_v40  ;;  %7702 = vmatprep.mubr.bf16.mxu0 %v12784_v14  ;;  %v14416_v38 = vld [vmem:[#allocation83_spill] sm:$0xff]  ;;  %v14419_v40 = vld [vmem:[#allocation85_spill] sm:$0xff] }
 0x6b2   : > { %6947 = vmatmul.mubr.bf16.gmra.mrb[140].mxu1 %v12714_v16 }
 0x6b3   : > { %6956 = vmatprep.mubr.bf16.mxu1 %v12728_v28 }
 0x6b5   : > { %v5949_v1 = vpop.f32.mrb[36].mxu1 }
 0x6b6   : > { %v8817_v2 = vmax.f32 %v8816_v3, %v5949_v1  ;;  %v5951_v55 = vpop.f32.mrb[37].mxu1  ;;  %v14418_v3 = vld [vmem:[#allocation88_spill] sm:$0xff]  ;;  %v14421_v1 = vld [vmem:[#allocation90_spill] sm:$0xff] }
 0x6b7   : > { %v8830_v34 = vmax.f32 %v8829_v52, %v5951_v55  ;;  %v5953_v29 = vpop.f32.mrb[38].mxu1  ;;  %v14420_v52 = vld [vmem:[#allocation87_spill] sm:$0xff] }
 0x6b8   : > { %v8818_v46 = vmax.f32 %v8817_v2, %v5953_v29  ;;  %v5955_v8 = vpop.f32.mrb[39].mxu1  ;;  %7703 = vmatmul.mubr.bf16.gmra.mrb[216].mxu0 %v12782_v50  ;;  %v14422_v2 = vld [vmem:[#allocation92_spill] sm:$0xff]  ;;  %v14423_v55 = vld [vmem:[#allocation91_spill] sm:$0xff]  ;;  %v14425_v29 = vld [vmem:[#allocation93_spill] sm:$0xff] }
 0x6b9   : > { %v8831_v58 = vmax.f32 %v8830_v34, %v5955_v8  ;;  %7712 = vmatprep.mubr.bf16.mxu0 %v12796_v22  ;;  %v14424_v34 = vld [vmem:[#allocation94_spill] sm:$0xff]  ;;  %v14427_v8 = vld [vmem:[#allocation97_spill] sm:$0xff] }
 0x6ba   : > { %v8819_v19 = vrot.slane %v8818_v46, 4  ;;  %6957 = vmatmul.mubr.bf16.gmra.mrb[144].mxu1 %v12726_v4  ;;  %v9073_v4 = vrot.slane %v13170_v56, %v14383_v6  ;;  %v14388_v56 = vld [vmem:[#allocation63_spill] sm:$0xff]  ;;  %v14438_v6 = vld [vmem:[#allocation108_spill] sm:$0xff] }
 0x6bb   : > { %v8832_v27 = vrot.slane %v8831_v58, 4  ;;  %6966 = vmatprep.mubr.bf16.mxu1 %v12748_v18 }
 0x6bc   : > { %v8820_v16 = vmax.f32 %v8818_v46, %v8819_v19  ;;  %v14426_v46 = vld [vmem:[#allocation95_spill] sm:$0xff]  ;;  %v14429_v19 = vld [vmem:[#allocation100_spill] sm:$0xff] }
 0x6bd   : > { %v8833_v28 = vmax.f32 %v8831_v58, %v8832_v27  ;;  %v14428_v58 = vld [vmem:[#allocation26_spill] sm:$0xff]  ;;  %v14430_v27 = vld [vmem:[#allocation152_spill] sm:$0xff] }
 0x6be   : > { %v8821_v60 = vrot.slane %v8820_v16, 2 }
 0x6bf   : > { %v8834_v17 = vrot.slane %v8833_v28, 2 }
 0x6c0   : > { %v8822_v35 = vmax.f32 %v8820_v16, %v8821_v60  ;;  %7713 = vmatmul.mubr.bf16.gmra.mrb[220].mxu0 %v12794_v23  ;;  %v14431_v16 = vld [vmem:[#allocation98_spill] sm:$0xff]  ;;  %v14433_v60 = vld [vmem:[#allocation104_spill] sm:$0xff] }
 0x6c1   : > { %v8835_v25 = vmax.f32 %v8833_v28, %v8834_v17  ;;  %7755 = vmatprep.mubr.bf16.mxu0 %v11839_v61  ;;  %v14432_v28 = vld [vmem:[#allocation99_spill] sm:$0xff] }
 0x6c2   : > { %v8823_v20 = vrot.slane %v8822_v35, 1  ;;  %6967 = vmatmul.mubr.bf16.gmra.mrb[148].mxu1 %v12742_v49  ;;  %v14386_v49 = vld [vmem:[#allocation64_spill] sm:$0xff]  ;;  %v14434_v17 = vld [vmem:[#allocation27_spill] sm:$0xff] }
 0x6c3   : > { %v8836_v62 = vrot.slane %v8835_v25, 1  ;;  %6976 = vmatprep.mubr.bf16.mxu1 %v12760_v33  ;;  %v14387_v33 = vld [vmem:[#allocation160_spill] sm:$0xff] }
 0x6c4   : > { %v8824_v18 = vmax.f32 %v8822_v35, %v8823_v20  ;;  %v14435_v35 = vld [vmem:[#allocation28_spill] sm:$0xff]  ;;  %v14437_v20 = vld [vmem:[#allocation103_spill] sm:$0xff] }
 0x6c5   : > { %v8837_v10 = vmax.f32 %v8835_v25, %v8836_v62  ;;  %v14436_v25 = vld [vmem:[#allocation101_spill] sm:$0xff] }
 0x6c6   : > { %v8986_v59 = vsel %vm1631_vm6, %v8824_v18, %v8985_v31  ;;  %v14404_v31 = vld [vmem:[#allocation76_spill] sm:$0xff] }
 0x6c7   : > { %v9110_v9 = vadd.f32 %v9073_v4, %v8986_v59  ;;  %v8993_v53 = vsel %vm1631_vm6, %v8837_v10, %v8992_v5  ;;  %v14407_v5 = vld [vmem:[#allocation75_spill] sm:$0xff] }
 0x6c8   : > { %v9111_v37 = vadd.f32 %v9077_v47, %v8993_v53  ;;  %7756 = vmatmul.mubr.bf16.vlgmr.msra.gmra.mrb[96].mxu0 %v14385_v51  ;;  %v14439_v59 = vld [vmem:[#allocation107_spill] sm:$0xff] }
 0x6c9   : > { %9118 = vst [vmem:[%s13187_s20] sm:$0xff] %v9110_v9  ;;  %7765 = vmatprep.mubr.bf16.mxu0 %v14386_v49  ;;  %v14440_v9 = vld [vmem:[#allocation110_spill] sm:$0xff] }
 0x6ca   : > { %9119 = vst [vmem:[%s13187_s20 + $0x8] sm:$0xff] %v9111_v37  ;;  %6977 = vmatmul.mubr.bf16.gmra.mrb[152].mxu1 %v12758_v7  ;;  %v14392_v7 = vld [vmem:[#allocation163_spill] sm:$0xff] }
 0x6cb   : > { %6986 = vmatprep.mubr.bf16.mxu1 %v12772_v21  ;;  %v14393_v21 = vld [vmem:[#allocation164_spill] sm:$0xff] }
 0x6d0   : > { %7766 = vmatmul.mubr.bf16.gmra.mrb[100].mxu0 %v14387_v33 }
 0x6d1   : > { %7775 = vmatprep.mubr.bf16.mxu0 %v14388_v56 }
 0x6d2   : > { %6987 = vmatmul.mubr.bf16.gmra.mrb[156].mxu1 %v12770_v12  ;;  %v14394_v12 = vld [vmem:[#allocation165_spill] sm:$0xff] }
 0x6d3   : > { %6996 = vmatprep.mubr.bf16.mxu1 %v12784_v14  ;;  %v14395_v14 = vld [vmem:[#allocation166_spill] sm:$0xff] }
 0x6d8   : > { %7776 = vmatmul.mubr.bf16.gmra.mrb[104].mxu0 %v14389_v11 }
 0x6d9   : > { %7785 = vmatprep.mubr.bf16.mxu0 %v14390_v32 }
 0x6da   : > { %6997 = vmatmul.mubr.bf16.gmra.mrb[160].mxu1 %v12782_v50  ;;  %v14396_v50 = vld [vmem:[#allocation68_spill] sm:$0xff] }
 0x6db   : > { %7006 = vmatprep.mubr.bf16.mxu1 %v12796_v22  ;;  %v14397_v22 = vld [vmem:[#allocation66_spill] sm:$0xff] }
 0x6e0   : > { %7786 = vmatmul.mubr.bf16.gmra.mrb[108].mxu0 %v14391_v15 }
 0x6e1   : > { %7795 = vmatprep.mubr.bf16.mxu0 %v14392_v7 }
 0x6e2   : > { %7007 = vmatmul.mubr.bf16.gmra.mrb[164].mxu1 %v12794_v23  ;;  %v14398_v23 = vld [vmem:[#allocation67_spill] sm:$0xff] }
 0x6e3   : > { %7049 = vmatprep.mubr.bf16.mxu1 %v11839_v61  ;;  %v14399_v61 = vld [vmem:[#allocation70_spill] sm:$0xff] }
 0x6e8   : > { %7796 = vmatmul.mubr.bf16.gmra.mrb[112].mxu0 %v14393_v21 }
 0x6e9   : > { %7805 = vmatprep.mubr.bf16.mxu0 %v14394_v12 }
 0x6ea   : > { %7050 = vmatmul.mubr.bf16.vlgmr.msra.gmra.mrb[40].mxu1 %v14385_v51 }
 0x6eb   : > { %7059 = vmatprep.mubr.bf16.mxu1 %v14386_v49 }
 0x6f0   : > { %7806 = vmatmul.mubr.bf16.gmra.mrb[116].mxu0 %v14395_v14 }
 0x6f1   : > { %7815 = vmatprep.mubr.bf16.mxu0 %v14396_v50 }
 0x6f2   : > { %7060 = vmatmul.mubr.bf16.gmra.mrb[44].mxu1 %v14387_v33 }
 0x6f3   : > { %7069 = vmatprep.mubr.bf16.mxu1 %v14388_v56 }
 0x6f8   : > { %7816 = vmatmul.mubr.bf16.gmra.mrb[120].mxu0 %v14397_v22 }
 0x6f9   : > { %7825 = vmatprep.mubr.bf16.mxu0 %v14398_v23 }
 0x6fa   : > { %7070 = vmatmul.mubr.bf16.gmra.mrb[48].mxu1 %v14389_v11 }
 0x6fb   : > { %7079 = vmatprep.mubr.bf16.mxu1 %v14390_v32 }
 0x700   : > { %7826 = vmatmul.mubr.bf16.gmra.mrb[124].mxu0 %v14399_v61 }
 0x701   : > { %7835 = vmatprep.mubr.bf16.mxu0 %v14400_v45 }
 0x702   : > { %7080 = vmatmul.mubr.bf16.gmra.mrb[52].mxu1 %v14391_v15  ;;  %v14441_v15 = vld [vmem:[#allocation144_spill] sm:$0xff] }
 0x703   : > { %7089 = vmatprep.mubr.bf16.mxu1 %v14392_v7  ;;  %v14442_v7 = vld [vmem:[#allocation146_spill] sm:$0xff] }
 0x708   : > { %7836 = vmatmul.mubr.bf16.gmra.mrb[128].mxu0 %v14401_v39 }
 0x709   : > { %7845 = vmatprep.mubr.bf16.mxu0 %v14402_v48 }
 0x70a   : > { %7090 = vmatmul.mubr.bf16.gmra.mrb[56].mxu1 %v14393_v21 }
 0x70b   : > { %7099 = vmatprep.mubr.bf16.mxu1 %v14394_v12 }
 0x710   : > { %7846 = vmatmul.mubr.bf16.gmra.mrb[132].mxu0 %v14403_v24 }
 0x711   : > { %7855 = vmatprep.mubr.bf16.mxu0 %v14404_v31 }
 0x712   : > { %7100 = vmatmul.mubr.bf16.gmra.mrb[60].mxu1 %v14395_v14 }
 0x713   : > { %7109 = vmatprep.mubr.bf16.mxu1 %v14396_v50 }
 0x718   : > { %7856 = vmatmul.mubr.bf16.gmra.mrb[136].mxu0 %v14405_v36 }
 0x719   : > { %7865 = vmatprep.mubr.bf16.mxu0 %v14406_v30 }
 0x71a   : > { %7110 = vmatmul.mubr.bf16.gmra.mrb[64].mxu1 %v14397_v22 }
 0x71b   : > { %7119 = vmatprep.mubr.bf16.mxu1 %v14398_v23 }
 0x720   : > { %7866 = vmatmul.mubr.bf16.gmra.mrb[140].mxu0 %v14407_v5 }
 0x721   : > { %7875 = vmatprep.mubr.bf16.mxu0 %v14408_v26 }
 0x722   : > { %7120 = vmatmul.mubr.bf16.gmra.mrb[68].mxu1 %v14399_v61 }
 0x723   : > { %7129 = vmatprep.mubr.bf16.mxu1 %v14400_v45 }
 0x728   : > { %7876 = vmatmul.mubr.bf16.gmra.mrb[144].mxu0 %v14409_v54 }
 0x729   : > { %7885 = vmatprep.mubr.bf16.mxu0 %v14410_v0 }
 0x72a   : > { %7130 = vmatmul.mubr.bf16.gmra.mrb[72].mxu1 %v14401_v39  ;;  %v14443_v39 = vld [vmem:[#allocation59_spill] sm:$0xff] }
 0x72b   : > { %7139 = vmatprep.mubr.bf16.mxu1 %v14402_v48  ;;  %v14444_v48 = vld [vmem:[#allocation150_spill] sm:$0xff] }
 0x730   : > { %7886 = vmatmul.mubr.bf16.gmra.mrb[148].mxu0 %v14411_v63 }
 0x731   : > { %7895 = vmatprep.mubr.bf16.mxu0 %v14412_v44 }
 0x732   : > { %7140 = vmatmul.mubr.bf16.gmra.mrb[76].mxu1 %v14403_v24 }
 0x733   : > { %7149 = vmatprep.mubr.bf16.mxu1 %v14404_v31 }
 0x738   : > { %7896 = vmatmul.mubr.bf16.gmra.mrb[152].mxu0 %v14413_v57 }
 0x739   : > { %7905 = vmatprep.mubr.bf16.mxu0 %v14414_v42 }
 0x73a   : > { %7150 = vmatmul.mubr.bf16.gmra.mrb[80].mxu1 %v14405_v36 }
 0x73b   : > { %7159 = vmatprep.mubr.bf16.mxu1 %v14406_v30 }
 0x740   : > { %7906 = vmatmul.mubr.bf16.gmra.mrb[156].mxu0 %v14415_v43 }
 0x741   : > { %7915 = vmatprep.mubr.bf16.mxu0 %v14416_v38 }
 0x742   : > { %7160 = vmatmul.mubr.bf16.gmra.mrb[84].mxu1 %v14407_v5 }
 0x743   : > { %7169 = vmatprep.mubr.bf16.mxu1 %v14408_v26 }
 0x748   : > { %7916 = vmatmul.mubr.bf16.gmra.mrb[160].mxu0 %v14417_v41 }
 0x749   : > { %7925 = vmatprep.mubr.bf16.mxu0 %v14418_v3 }
 0x74a   : > { %7170 = vmatmul.mubr.bf16.gmra.mrb[88].mxu1 %v14409_v54 }
 0x74b   : > { %7179 = vmatprep.mubr.bf16.mxu1 %v14410_v0 }
 0x750   : > { %7926 = vmatmul.mubr.bf16.gmra.mrb[164].mxu0 %v14419_v40 }
 0x751   : > { %7935 = vmatprep.mubr.bf16.mxu0 %v14420_v52 }
 0x752   : > { %7180 = vmatmul.mubr.bf16.gmra.mrb[92].mxu1 %v14411_v63  ;;  %v14445_v63 = vld [vmem:[#allocation109_spill] sm:$0xff] }
 0x753   : > { %7189 = vmatprep.mubr.bf16.mxu1 %v14412_v44  ;;  %v14446_v44 = vld [vmem:[#allocation158_spill] sm:$0xff] }
 0x758   : > { %7936 = vmatmul.mubr.bf16.gmra.mrb[168].mxu0 %v14421_v1 }
 0x759   : > { %7945 = vmatprep.mubr.bf16.mxu0 %v14422_v2 }
 0x75a   : > { %7190 = vmatmul.mubr.bf16.gmra.mrb[96].mxu1 %v14413_v57 }
 0x75b   : > { %7199 = vmatprep.mubr.bf16.mxu1 %v14414_v42 }
 0x760   : > { %7946 = vmatmul.mubr.bf16.gmra.mrb[172].mxu0 %v14423_v55 }
 0x761   : > { %7955 = vmatprep.mubr.bf16.mxu0 %v14424_v34 }
 0x762   : > { %7200 = vmatmul.mubr.bf16.gmra.mrb[100].mxu1 %v14415_v43 }
 0x763   : > { %7209 = vmatprep.mubr.bf16.mxu1 %v14416_v38 }
 0x768   : > { %7956 = vmatmul.mubr.bf16.gmra.mrb[176].mxu0 %v14425_v29 }
 0x769   : > { %7965 = vmatprep.mubr.bf16.mxu0 %v14426_v46 }
 0x76a   : > { %7210 = vmatmul.mubr.bf16.gmra.mrb[104].mxu1 %v14417_v41 }
 0x76b   : > { %7219 = vmatprep.mubr.bf16.mxu1 %v14418_v3 }
 0x770   : > { %7966 = vmatmul.mubr.bf16.gmra.mrb[180].mxu0 %v14427_v8 }
 0x771   : > { %7975 = vmatprep.mubr.bf16.mxu0 %v14428_v58 }
 0x772   : > { %7220 = vmatmul.mubr.bf16.gmra.mrb[108].mxu1 %v14419_v40 }
 0x773   : > { %7229 = vmatprep.mubr.bf16.mxu1 %v14420_v52 }
 0x778   : > { %7976 = vmatmul.mubr.bf16.gmra.mrb[184].mxu0 %v14429_v19 }
 0x779   : > { %7985 = vmatprep.mubr.bf16.mxu0 %v14430_v27 }
 0x77a   : > { %7230 = vmatmul.mubr.bf16.gmra.mrb[112].mxu1 %v14421_v1 }
 0x77b   : > { %7239 = vmatprep.mubr.bf16.mxu1 %v14422_v2 }
 0x780   : > { %7986 = vmatmul.mubr.bf16.gmra.mrb[188].mxu0 %v14431_v16 }
 0x781   : > { %7995 = vmatprep.mubr.bf16.mxu0 %v14432_v28 }
 0x782   : > { %7240 = vmatmul.mubr.bf16.gmra.mrb[116].mxu1 %v14423_v55 }
 0x783   : > { %7249 = vmatprep.mubr.bf16.mxu1 %v14424_v34  ;;  %v14447_v34 = vld [vmem:[#allocation114_spill] sm:$0xff] }
 0x788   : > { %7996 = vmatmul.mubr.bf16.gmra.mrb[192].mxu0 %v14433_v60 }
 0x789   : > { %8005 = vmatprep.mubr.bf16.mxu0 %v14434_v17 }
 0x78a   : > { %7250 = vmatmul.mubr.bf16.gmra.mrb[120].mxu1 %v14425_v29 }
 0x78b   : > { %7259 = vmatprep.mubr.bf16.mxu1 %v14426_v46 }
 0x790   : > { %8006 = vmatmul.mubr.bf16.gmra.mrb[196].mxu0 %v14435_v35 }
 0x791   : > { %8015 = vmatprep.mubr.bf16.mxu0 %v14436_v25 }
 0x792   : > { %7260 = vmatmul.mubr.bf16.gmra.mrb[124].mxu1 %v14427_v8 }
 0x793   : > { %7269 = vmatprep.mubr.bf16.mxu1 %v14428_v58 }
 0x798   : > { %8016 = vmatmul.mubr.bf16.gmra.mrb[200].mxu0 %v14437_v20 }
 0x799   : > { %8025 = vmatprep.mubr.bf16.mxu0 %v14438_v6 }
 0x79a   : > { %7270 = vmatmul.mubr.bf16.gmra.mrb[128].mxu1 %v14429_v19 }
 0x79b   : > { %7279 = vmatprep.mubr.bf16.mxu1 %v14430_v27  ;;  %v7757_v4 = vpop.f32.mrb[96].mxu0 }
 0x79c   : > { %v7759_v62 = vpop.f32.mrb[97].mxu0 }
 0x79d   : > { %v7761_v18 = vpop.f32.mrb[98].mxu0 }
 0x79e   : > { %v8162_v13 = vmax.f32 %v7757_v4, %v7761_v18  ;;  %v7763_v47 = vpop.f32.mrb[99].mxu0 }
 0x79f   : > { %v8175_v10 = vmax.f32 %v7759_v62, %v7763_v47 }
 0x7a0   : > { %8026 = vmatmul.mubr.bf16.gmra.mrb[204].mxu0 %v14439_v59 }
 0x7a1   : > { %8035 = vmatprep.mubr.bf16.mxu0 %v14440_v9 }
 0x7a2   : > { %7280 = vmatmul.mubr.bf16.gmra.mrb[132].mxu1 %v14431_v16 }
 0x7a3   : > { %7289 = vmatprep.mubr.bf16.mxu1 %v14432_v28  ;;  %v7767_v53 = vpop.f32.mrb[100].mxu0 }
 0x7a4   : > { %v8163_v37 = vmax.f32 %v8162_v13, %v7767_v53  ;;  %v7769_v51 = vpop.f32.mrb[101].mxu0 }
 0x7a5   : > { %v8176_v49 = vmax.f32 %v8175_v10, %v7769_v51  ;;  %v7771_v33 = vpop.f32.mrb[102].mxu0 }
 0x7a6   : > { %v8164_v56 = vmax.f32 %v8163_v37, %v7771_v33  ;;  %v7773_v11 = vpop.f32.mrb[103].mxu0 }
 0x7a7   : > { %v8177_v32 = vmax.f32 %v8176_v49, %v7773_v11 }
 0x7a8   : > { %8036 = vmatmul.mubr.bf16.gmra.mrb[208].mxu0 %v14441_v15 }
 0x7a9   : > { %8045 = vmatprep.mubr.bf16.mxu0 %v14442_v7 }
 0x7aa   : > { %7290 = vmatmul.mubr.bf16.gmra.mrb[136].mxu1 %v14433_v60 }
 0x7ab   : > { %7299 = vmatprep.mubr.bf16.mxu1 %v14434_v17  ;;  %v7777_v21 = vpop.f32.mrb[104].mxu0 }
 0x7ac   : > { %v8165_v12 = vmax.f32 %v8164_v56, %v7777_v21  ;;  %v7779_v14 = vpop.f32.mrb[105].mxu0 }
 0x7ad   : > { %v8178_v50 = vmax.f32 %v8177_v32, %v7779_v14  ;;  %v7781_v22 = vpop.f32.mrb[106].mxu0 }
 0x7ae   : > { %v8166_v23 = vmax.f32 %v8165_v12, %v7781_v22  ;;  %v7783_v61 = vpop.f32.mrb[107].mxu0 }
 0x7af   : > { %v8179_v45 = vmax.f32 %v8178_v50, %v7783_v61 }
 0x7b0   : > { %8046 = vmatmul.mubr.bf16.gmra.mrb[212].mxu0 %v14443_v39 }
 0x7b1   : > { %8055 = vmatprep.mubr.bf16.mxu0 %v14444_v48 }
 0x7b2   : > { %7300 = vmatmul.mubr.bf16.gmra.mrb[140].mxu1 %v14435_v35 }
 0x7b3   : > { %7309 = vmatprep.mubr.bf16.mxu1 %v14436_v25  ;;  %v7787_v24 = vpop.f32.mrb[108].mxu0 }
 0x7b4   : > { %v8167_v31 = vmax.f32 %v8166_v23, %v7787_v24  ;;  %v7789_v36 = vpop.f32.mrb[109].mxu0 }
 0x7b5   : > { %v8180_v30 = vmax.f32 %v8179_v45, %v7789_v36  ;;  %v7791_v5 = vpop.f32.mrb[110].mxu0 }
 0x7b6   : > { %v8168_v26 = vmax.f32 %v8167_v31, %v7791_v5  ;;  %v7793_v54 = vpop.f32.mrb[111].mxu0 }
 0x7b7   : > { %v8181_v0 = vmax.f32 %v8180_v30, %v7793_v54 }
 0x7b8   : > { %8056 = vmatmul.mubr.bf16.gmra.mrb[216].mxu0 %v14445_v63  ;;  %v8169_v37 = vrot.slane %v8168_v26, 4 }
 0x7b9   : > { %8065 = vmatprep.mubr.bf16.mxu0 %v14446_v44  ;;  %v8182_v11 = vrot.slane %v8181_v0, 4 }
 0x7ba   : > { %7310 = vmatmul.mubr.bf16.gmra.mrb[144].mxu1 %v14437_v20  ;;  %v8170_v22 = vmax.f32 %v8168_v26, %v8169_v37 }
 0x7bb   : > { %7319 = vmatprep.mubr.bf16.mxu1 %v14438_v6  ;;  %v7797_v57 = vpop.f32.mrb[112].mxu0 }
 0x7bc   : > { %v7799_v42 = vpop.f32.mrb[113].mxu0  ;;  %v8171_v30 = vrot.slane %v8170_v22, 2 }
 0x7bd   : > { %v7051_v43 = vpop.f32.mrb[40].mxu1  ;;  %v7801_v38 = vpop.f32.mrb[114].mxu0 }
 0x7be   : > { %v8266_v41 = vmax.f32 %v7797_v57, %v7801_v38  ;;  %v7053_v3 = vpop.f32.mrb[41].mxu1  ;;  %v7803_v40 = vpop.f32.mrb[115].mxu0 }
 0x7bf   : > { %v8279_v52 = vmax.f32 %v7799_v42, %v7803_v40  ;;  %v7055_v1 = vpop.f32.mrb[42].mxu1 }
 0x7c0   : > { %v8136_v2 = vmax.f32 %v7051_v43, %v7055_v1  ;;  %v7057_v55 = vpop.f32.mrb[43].mxu1  ;;  %8066 = vmatmul.mubr.bf16.gmra.mrb[220].mxu0 %v14447_v34 }
 0x7c1   : > { %v8149_v29 = vmax.f32 %v7053_v3, %v7057_v55 }
 0x7c2   : > { %7320 = vmatmul.mubr.bf16.gmra.mrb[148].mxu1 %v14439_v59 }
 0x7c3   : > { %7329 = vmatprep.mubr.bf16.mxu1 %v14440_v9  ;;  %v7807_v46 = vpop.f32.mrb[116].mxu0 }
 0x7c4   : > { %v8267_v8 = vmax.f32 %v8266_v41, %v7807_v46  ;;  %v7809_v58 = vpop.f32.mrb[117].mxu0 }
 0x7c5   : > { %v8280_v19 = vmax.f32 %v8279_v52, %v7809_v58  ;;  %v7061_v27 = vpop.f32.mrb[44].mxu1  ;;  %v7811_v16 = vpop.f32.mrb[118].mxu0  ;;  %v8172_v52 = vmax.f32 %v8170_v22, %v8171_v30 }
 0x7c6   : > { %v8137_v28 = vmax.f32 %v8136_v2, %v7061_v27  ;;  %v8268_v60 = vmax.f32 %v8267_v8, %v7811_v16  ;;  %v7063_v17 = vpop.f32.mrb[45].mxu1  ;;  %v7813_v35 = vpop.f32.mrb[119].mxu0 }
 0x7c7   : > { %v8150_v25 = vmax.f32 %v8149_v29, %v7063_v17  ;;  %v8281_v20 = vmax.f32 %v8280_v19, %v7813_v35  ;;  %v7065_v6 = vpop.f32.mrb[46].mxu1  ;;  %v8173_v16 = vrot.slane %v8172_v52, 1 }
 0x7c8   : > { %v8138_v4 = vmax.f32 %v8137_v28, %v7065_v6  ;;  %v7067_v62 = vpop.f32.mrb[47].mxu1 }
 0x7c9   : > { %v8151_v18 = vmax.f32 %v8150_v25, %v7067_v62 }
 0x7ca   : > { %7330 = vmatmul.mubr.bf16.gmra.mrb[152].mxu1 %v14441_v15 }
 0x7cb   : > { %7339 = vmatprep.mubr.bf16.mxu1 %v14442_v7  ;;  %v7817_v13 = vpop.f32.mrb[120].mxu0  ;;  %v8183_v7 = vmax.f32 %v8181_v0, %v8182_v11 }
 0x7cc   : > { %v8269_v47 = vmax.f32 %v8268_v60, %v7817_v13  ;;  %v7819_v10 = vpop.f32.mrb[121].mxu0 }
 0x7cd   : > { %v8282_v59 = vmax.f32 %v8281_v20, %v7819_v10  ;;  %v7071_v9 = vpop.f32.mrb[48].mxu1  ;;  %v7821_v53 = vpop.f32.mrb[122].mxu0  ;;  %v8184_v43 = vrot.slane %v8183_v7, 2 }
 0x7ce   : > { %v8139_v51 = vmax.f32 %v8138_v4, %v7071_v9  ;;  %v8270_v49 = vmax.f32 %v8269_v47, %v7821_v53  ;;  %v7073_v33 = vpop.f32.mrb[49].mxu1  ;;  %v7823_v56 = vpop.f32.mrb[123].mxu0  ;;  %v8174_v47 = vmax.f32 %v8172_v52, %v8173_v16 }
 0x7cf   : > { %v8152_v32 = vmax.f32 %v8151_v18, %v7073_v33  ;;  %v8283_v21 = vmax.f32 %v8282_v59, %v7823_v56  ;;  %v7075_v12 = vpop.f32.mrb[50].mxu1  ;;  %v8185_v2 = vmax.f32 %v8183_v7, %v8184_v43 }
 0x7d0   : > { %v8140_v14 = vmax.f32 %v8139_v51, %v7075_v12  ;;  %v7077_v50 = vpop.f32.mrb[51].mxu1 }
 0x7d1   : > { %v8153_v15 = vmax.f32 %v8152_v32, %v7077_v50  ;;  %v8186_v25 = vrot.slane %v8185_v2, 1 }
 0x7d2   : > { %7340 = vmatmul.mubr.bf16.gmra.mrb[156].mxu1 %v14443_v39 }
 0x7d3   : > { %7349 = vmatprep.mubr.bf16.mxu1 %v14444_v48  ;;  %v7827_v23 = vpop.f32.mrb[124].mxu0  ;;  %v8187_v59 = vmax.f32 %v8185_v2, %v8186_v25 }
 0x7d4   : > { %v8271_v61 = vmax.f32 %v8270_v49, %v7827_v23  ;;  %v7829_v45 = vpop.f32.mrb[125].mxu0 }
 0x7d5   : > { %v8284_v24 = vmax.f32 %v8283_v21, %v7829_v45  ;;  %v7081_v31 = vpop.f32.mrb[52].mxu1  ;;  %v7831_v36 = vpop.f32.mrb[126].mxu0 }
 0x7d6   : > { %v8141_v5 = vmax.f32 %v8140_v14, %v7081_v31  ;;  %v8272_v54 = vmax.f32 %v8271_v61, %v7831_v36  ;;  %v7083_v57 = vpop.f32.mrb[53].mxu1  ;;  %v7833_v42 = vpop.f32.mrb[127].mxu0 }
 0x7d7   : > { %v8154_v38 = vmax.f32 %v8153_v15, %v7083_v57  ;;  %v8285_v41 = vmax.f32 %v8284_v24, %v7833_v42  ;;  %v7085_v26 = vpop.f32.mrb[54].mxu1 }
 0x7d8   : > { %v8273_v3 = vrot.slane %v8272_v54, 4  ;;  %v13348_v39 = vmax.f32 %v8141_v5, %v7085_v26  ;;  %v7087_v0 = vpop.f32.mrb[55].mxu1 }
 0x7d9   : > { %v8286_v48 = vrot.slane %v8285_v41, 4  ;;  %v13350_v40 = vmax.f32 %v8154_v38, %v7087_v0 }
 0x7da   : > { %v8274_v1 = vmax.f32 %v8272_v54, %v8273_v3  ;;  %7350 = vmatmul.mubr.bf16.gmra.mrb[160].mxu1 %v14445_v63  ;;  %v8143_v3 = vrot.slane %v13348_v39, 4 }
 0x7db   : > { %v8287_v55 = vmax.f32 %v8285_v41, %v8286_v48  ;;  %7359 = vmatprep.mubr.bf16.mxu1 %v14446_v44  ;;  %v7837_v29 = vpop.f32.mrb[128].mxu0  ;;  %v8156_v52 = vrot.slane %v13350_v40, 4 }
 0x7dc   : > { %v8275_v46 = vrot.slane %v8274_v1, 2  ;;  %v7839_v8 = vpop.f32.mrb[129].mxu0 }
 0x7dd   : > { %v8288_v58 = vrot.slane %v8287_v55, 2  ;;  %v7091_v19 = vpop.f32.mrb[56].mxu1  ;;  %v7841_v27 = vpop.f32.mrb[130].mxu0 }
 0x7de   : > { %v8276_v28 = vmax.f32 %v8274_v1, %v8275_v46  ;;  %v8370_v60 = vmax.f32 %v7837_v29, %v7841_v27  ;;  %v7093_v17 = vpop.f32.mrb[57].mxu1  ;;  %v7843_v35 = vpop.f32.mrb[131].mxu0 }
 0x7df   : > { %v8289_v20 = vmax.f32 %v8287_v55, %v8288_v58  ;;  %v8383_v6 = vmax.f32 %v7839_v8, %v7843_v35  ;;  %v7095_v4 = vpop.f32.mrb[58].mxu1  ;;  %v8144_v55 = vmax.f32 %v13348_v39, %v8143_v3  ;;  %v8157_v8 = vmax.f32 %v13350_v40, %v8156_v52 }
 0x7e0   : > { %v8277_v63 = vrot.slane %v8276_v28, 1  ;;  %v8240_v62 = vmax.f32 %v7091_v19, %v7095_v4  ;;  %v7097_v18 = vpop.f32.mrb[59].mxu1 }
 0x7e1   : > { %v8290_v13 = vrot.slane %v8289_v20, 1  ;;  %v8253_v44 = vmax.f32 %v7093_v17, %v7097_v18  ;;  %v8158_v18 = vrot.slane %v8157_v8, 2 }
 0x7e2   : > { %v8278_v10 = vmax.f32 %v8276_v28, %v8277_v63  ;;  %7360 = vmatmul.mubr.bf16.gmra.mrb[164].mxu1 %v14447_v34 }
 0x7e3   : > { %v8291_v9 = vmax.f32 %v8289_v20, %v8290_v13  ;;  %v7847_v53 = vpop.f32.mrb[132].mxu0 }
 0x7e4   : > { %v13356_v37 = vsel %vm1619_vm0, %v8278_v10, %v8174_v47  ;;  %v8371_v51 = vmax.f32 %v8370_v60, %v7847_v53  ;;  %v7849_v49 = vpop.f32.mrb[133].mxu0 }
 0x7e5   : > { %v13359_v33 = vsel %vm1619_vm0, %v8291_v9, %v8187_v59  ;;  %v8384_v56 = vmax.f32 %v8383_v6, %v7849_v49  ;;  %v7101_v11 = vpop.f32.mrb[60].mxu1  ;;  %v7851_v32 = vpop.f32.mrb[134].mxu0  ;;  %v8145_v6 = vrot.slane %v8144_v55, 2 }
 0x7e6   : > { %v8241_v21 = vmax.f32 %v8240_v62, %v7101_v11  ;;  %v8372_v12 = vmax.f32 %v8371_v51, %v7851_v32  ;;  %v7103_v14 = vpop.f32.mrb[61].mxu1  ;;  %v7853_v50 = vpop.f32.mrb[135].mxu0 }
 0x7e7   : > { %v8254_v15 = vmax.f32 %v8253_v44, %v7103_v14  ;;  %v8385_v34 = vmax.f32 %v8384_v56, %v7853_v50  ;;  %v7105_v22 = vpop.f32.mrb[62].mxu1  ;;  %v8146_v9 = vmax.f32 %v8144_v55, %v8145_v6  ;;  %v8159_v56 = vmax.f32 %v8157_v8, %v8158_v18 }
 0x7e8   : > { %v8242_v7 = vmax.f32 %v8241_v21, %v7105_v22  ;;  %v7107_v23 = vpop.f32.mrb[63].mxu1 }
 0x7e9   : > { %v8255_v61 = vmax.f32 %v8254_v15, %v7107_v23 }
 0x7eb   : > { %v7857_v45 = vpop.f32.mrb[136].mxu0 }
 0x7ec   : > { %v8373_v24 = vmax.f32 %v8372_v12, %v7857_v45  ;;  %v7859_v31 = vpop.f32.mrb[137].mxu0 }
 0x7ed   : > { %v8386_v36 = vmax.f32 %v8385_v34, %v7859_v31  ;;  %v7111_v30 = vpop.f32.mrb[64].mxu1  ;;  %v7861_v5 = vpop.f32.mrb[138].mxu0 }
 0x7ee   : > { %v8243_v54 = vmax.f32 %v8242_v7, %v7111_v30  ;;  %v8374_v57 = vmax.f32 %v8373_v24, %v7861_v5  ;;  %v7113_v42 = vpop.f32.mrb[65].mxu1  ;;  %v7863_v43 = vpop.f32.mrb[139].mxu0  ;;  %v8147_v24 = vrot.slane %v8146_v9, 1 }
 0x7ef   : > { %v8256_v38 = vmax.f32 %v8255_v61, %v7113_v42  ;;  %v8387_v41 = vmax.f32 %v8386_v36, %v7863_v43  ;;  %v7115_v26 = vpop.f32.mrb[66].mxu1 }
 0x7f0   : > { %v8244_v0 = vmax.f32 %v8243_v54, %v7115_v26  ;;  %v7117_v48 = vpop.f32.mrb[67].mxu1  ;;  %v8160_v54 = vrot.slane %v8159_v56, 1 }
 0x7f1   : > { %v8257_v1 = vmax.f32 %v8256_v38, %v7117_v48  ;;  %v8148_v48 = vmax.f32 %v8146_v9, %v8147_v24 }
 0x7f3   : > { %v7867_v2 = vpop.f32.mrb[140].mxu0 }
 0x7f4   : > { %v8375_v29 = vmax.f32 %v8374_v57, %v7867_v2  ;;  %v7869_v46 = vpop.f32.mrb[141].mxu0 }
 0x7f5   : > { %v8388_v58 = vmax.f32 %v8387_v41, %v7869_v46  ;;  %v7121_v19 = vpop.f32.mrb[68].mxu1  ;;  %v7871_v27 = vpop.f32.mrb[142].mxu0 }
 0x7f6   : > { %v8245_v16 = vmax.f32 %v8244_v0, %v7121_v19  ;;  %v8376_v28 = vmax.f32 %v8375_v29, %v7871_v27  ;;  %v7123_v60 = vpop.f32.mrb[69].mxu1  ;;  %v7873_v17 = vpop.f32.mrb[143].mxu0  ;;  %v8161_v29 = vmax.f32 %v8159_v56, %v8160_v54 }
 0x7f7   : > { %v8258_v35 = vmax.f32 %v8257_v1, %v7123_v60  ;;  %v8389_v25 = vmax.f32 %v8388_v58, %v7873_v17  ;;  %v7125_v20 = vpop.f32.mrb[70].mxu1 }
 0x7f8   : > { %v8377_v4 = vrot.slane %v8376_v28, 4  ;;  %v8246_v63 = vmax.f32 %v8245_v16, %v7125_v20  ;;  %v7127_v62 = vpop.f32.mrb[71].mxu1 }
 0x7f9   : > { %v8390_v39 = vrot.slane %v8389_v25, 4  ;;  %v8259_v13 = vmax.f32 %v8258_v35, %v7127_v62 }
 0x7fa   : > { %v8378_v44 = vmax.f32 %v8376_v28, %v8377_v4  ;;  %v8247_v47 = vrot.slane %v8246_v63, 4 }
 0x7fb   : > { %v8391_v40 = vmax.f32 %v8389_v25, %v8390_v39  ;;  %v8260_v10 = vrot.slane %v8259_v13, 4  ;;  %v7877_v59 = vpop.f32.mrb[144].mxu0 }
 0x7fc   : > { %v8379_v53 = vrot.slane %v8378_v44, 2  ;;  %v8248_v51 = vmax.f32 %v8246_v63, %v8247_v47  ;;  %v7879_v49 = vpop.f32.mrb[145].mxu0 }
 0x7fd   : > { %v8392_v11 = vrot.slane %v8391_v40, 2  ;;  %v8261_v32 = vmax.f32 %v8259_v13, %v8260_v10  ;;  %v7131_v21 = vpop.f32.mrb[72].mxu1  ;;  %v7881_v12 = vpop.f32.mrb[146].mxu0 }
 0x7fe   : > { %v8380_v14 = vmax.f32 %v8378_v44, %v8379_v53  ;;  %v8249_v50 = vrot.slane %v8248_v51, 2  ;;  %v8474_v15 = vmax.f32 %v7877_v59, %v7881_v12  ;;  %v7133_v34 = vpop.f32.mrb[73].mxu1  ;;  %v7883_v22 = vpop.f32.mrb[147].mxu0 }
 0x7ff   : > { %v8393_v7 = vmax.f32 %v8391_v40, %v8392_v11  ;;  %v8262_v23 = vrot.slane %v8261_v32, 2  ;;  %v8487_v61 = vmax.f32 %v7879_v49, %v7883_v22  ;;  %v7135_v45 = vpop.f32.mrb[74].mxu1 }
 0x800   : > { %v8381_v31 = vrot.slane %v8380_v14, 1  ;;  %v8250_v36 = vmax.f32 %v8248_v51, %v8249_v50  ;;  %v8344_v30 = vmax.f32 %v7131_v21, %v7135_v45  ;;  %v7137_v5 = vpop.f32.mrb[75].mxu1 }
 0x801   : > { %v8394_v57 = vrot.slane %v8393_v7, 1  ;;  %v8263_v42 = vmax.f32 %v8261_v32, %v8262_v23  ;;  %v8357_v43 = vmax.f32 %v7133_v34, %v7137_v5 }
 0x802   : > { %v8382_v38 = vmax.f32 %v8380_v14, %v8381_v31  ;;  %v8251_v41 = vrot.slane %v8250_v36, 1 }
 0x803   : > { %v8395_v26 = vmax.f32 %v8393_v7, %v8394_v57  ;;  %v8264_v3 = vrot.slane %v8263_v42, 1  ;;  %v7887_v0 = vpop.f32.mrb[148].mxu0 }
 0x804   : > { %v13367_v52 = vsel %vm1621_vm1, %v8382_v38, %v13356_v37  ;;  %v8252_v1 = vmax.f32 %v8250_v36, %v8251_v41  ;;  %v8475_v2 = vmax.f32 %v8474_v15, %v7887_v0  ;;  %v7889_v55 = vpop.f32.mrb[149].mxu0 }
 0x805   : > { %v13371_v46 = vsel %vm1621_vm1, %v8395_v26, %v13359_v33  ;;  %v8265_v8 = vmax.f32 %v8263_v42, %v8264_v3  ;;  %v8488_v58 = vmax.f32 %v8487_v61, %v7889_v55  ;;  %v7141_v19 = vpop.f32.mrb[76].mxu1  ;;  %v7891_v27 = vpop.f32.mrb[150].mxu0 }
 0x806   : > { %v13374_v16 = vsel %vm1619_vm0, %v8252_v1, %v8148_v48  ;;  %v8345_v28 = vmax.f32 %v8344_v30, %v7141_v19  ;;  %v8476_v60 = vmax.f32 %v8475_v2, %v7891_v27  ;;  %v7143_v17 = vpop.f32.mrb[77].mxu1  ;;  %v7893_v37 = vpop.f32.mrb[151].mxu0 }
 0x807   : > { %v13377_v35 = vsel %vm1619_vm0, %v8265_v8, %v8161_v29  ;;  %v8358_v25 = vmax.f32 %v8357_v43, %v7143_v17  ;;  %v8489_v20 = vmax.f32 %v8488_v58, %v7893_v37  ;;  %v7145_v6 = vpop.f32.mrb[78].mxu1 }
 0x808   : > { %v8346_v4 = vmax.f32 %v8345_v28, %v7145_v6  ;;  %v7147_v33 = vpop.f32.mrb[79].mxu1 }
 0x809   : > { %v8359_v63 = vmax.f32 %v8358_v25, %v7147_v33 }
 0x80b   : > { %v7897_v62 = vpop.f32.mrb[152].mxu0 }
 0x80c   : > { %v8477_v18 = vmax.f32 %v8476_v60, %v7897_v62  ;;  %v7899_v39 = vpop.f32.mrb[153].mxu0 }
 0x80d   : > { %v8490_v13 = vmax.f32 %v8489_v20, %v7899_v39  ;;  %v7151_v44 = vpop.f32.mrb[80].mxu1  ;;  %v7901_v47 = vpop.f32.mrb[154].mxu0 }
 0x80e   : > { %v8347_v40 = vmax.f32 %v8346_v4, %v7151_v44  ;;  %v8478_v10 = vmax.f32 %v8477_v18, %v7901_v47  ;;  %v7153_v59 = vpop.f32.mrb[81].mxu1  ;;  %v7903_v9 = vpop.f32.mrb[155].mxu0 }
 0x80f   : > { %v8360_v53 = vmax.f32 %v8359_v63, %v7153_v59  ;;  %v8491_v51 = vmax.f32 %v8490_v13, %v7903_v9  ;;  %v7155_v49 = vpop.f32.mrb[82].mxu1 }
 0x810   : > { %v8348_v56 = vmax.f32 %v8347_v40, %v7155_v49  ;;  %v7157_v11 = vpop.f32.mrb[83].mxu1 }
 0x811   : > { %v8361_v32 = vmax.f32 %v8360_v53, %v7157_v11 }
 0x813   : > { %v7907_v21 = vpop.f32.mrb[156].mxu0 }
 0x814   : > { %v8479_v12 = vmax.f32 %v8478_v10, %v7907_v21  ;;  %v7909_v14 = vpop.f32.mrb[157].mxu0 }
 0x815   : > { %v8492_v50 = vmax.f32 %v8491_v51, %v7909_v14  ;;  %v7161_v15 = vpop.f32.mrb[84].mxu1  ;;  %v7911_v34 = vpop.f32.mrb[158].mxu0 }
 0x816   : > { %v8349_v22 = vmax.f32 %v8348_v56, %v7161_v15  ;;  %v8480_v7 = vmax.f32 %v8479_v12, %v7911_v34  ;;  %v7163_v23 = vpop.f32.mrb[85].mxu1  ;;  %v7913_v61 = vpop.f32.mrb[159].mxu0 }
 0x817   : > { %v8362_v45 = vmax.f32 %v8361_v32, %v7163_v23  ;;  %v8493_v24 = vmax.f32 %v8492_v50, %v7913_v61  ;;  %v7165_v31 = vpop.f32.mrb[86].mxu1 }
 0x818   : > { %v8481_v36 = vrot.slane %v8480_v7, 4  ;;  %v8350_v30 = vmax.f32 %v8349_v22, %v7165_v31  ;;  %v7167_v5 = vpop.f32.mrb[87].mxu1 }
 0x819   : > { %v8494_v54 = vrot.slane %v8493_v24, 4  ;;  %v8363_v57 = vmax.f32 %v8362_v45, %v7167_v5 }
 0x81a   : > { %v8482_v42 = vmax.f32 %v8480_v7, %v8481_v36  ;;  %v8351_v43 = vrot.slane %v8350_v30, 4 }
 0x81b   : > { %v8495_v38 = vmax.f32 %v8493_v24, %v8494_v54  ;;  %v8364_v41 = vrot.slane %v8363_v57, 4  ;;  %v7917_v26 = vpop.f32.mrb[160].mxu0 }
 0x81c   : > { %v8483_v3 = vrot.slane %v8482_v42, 2  ;;  %v8352_v0 = vmax.f32 %v8350_v30, %v8351_v43  ;;  %v7919_v48 = vpop.f32.mrb[161].mxu0 }
 0x81d   : > { %v8496_v1 = vrot.slane %v8495_v38, 2  ;;  %v8365_v2 = vmax.f32 %v8363_v57, %v8364_v41  ;;  %v7171_v55 = vpop.f32.mrb[88].mxu1  ;;  %v7921_v29 = vpop.f32.mrb[162].mxu0 }
 0x81e   : > { %v8484_v8 = vmax.f32 %v8482_v42, %v8483_v3  ;;  %v8353_v58 = vrot.slane %v8352_v0, 2  ;;  %v8578_v19 = vmax.f32 %v7917_v26, %v7921_v29  ;;  %v7173_v27 = vpop.f32.mrb[89].mxu1  ;;  %v7923_v28 = vpop.f32.mrb[163].mxu0 }
 0x81f   : > { %v8497_v60 = vmax.f32 %v8495_v38, %v8496_v1  ;;  %v8366_v17 = vrot.slane %v8365_v2, 2  ;;  %v8591_v37 = vmax.f32 %v7919_v48, %v7923_v28  ;;  %v7175_v25 = vpop.f32.mrb[90].mxu1 }
 0x820   : > { %v8485_v20 = vrot.slane %v8484_v8, 1  ;;  %v8354_v6 = vmax.f32 %v8352_v0, %v8353_v58  ;;  %v8448_v4 = vmax.f32 %v7171_v55, %v7175_v25  ;;  %v7177_v33 = vpop.f32.mrb[91].mxu1 }
 0x821   : > { %v8498_v63 = vrot.slane %v8497_v60, 1  ;;  %v8367_v62 = vmax.f32 %v8365_v2, %v8366_v17  ;;  %v8461_v18 = vmax.f32 %v7173_v27, %v7177_v33 }
 0x822   : > { %v8486_v39 = vmax.f32 %v8484_v8, %v8485_v20  ;;  %v8355_v13 = vrot.slane %v8354_v6, 1 }
 0x823   : > { %v8499_v44 = vmax.f32 %v8497_v60, %v8498_v63  ;;  %v8368_v47 = vrot.slane %v8367_v62, 1  ;;  %v7927_v40 = vpop.f32.mrb[164].mxu0 }
 0x824   : > { %v13381_v10 = vsel %vm1623_vm2, %v8486_v39, %v13367_v52  ;;  %v8356_v59 = vmax.f32 %v8354_v6, %v8355_v13  ;;  %v8579_v9 = vmax.f32 %v8578_v19, %v7927_v40  ;;  %v7929_v53 = vpop.f32.mrb[165].mxu0 }
 0x825   : > { %v13385_v51 = vsel %vm1623_vm2, %v8499_v44, %v13371_v46  ;;  %v8369_v49 = vmax.f32 %v8367_v62, %v8368_v47  ;;  %v8592_v56 = vmax.f32 %v8591_v37, %v7929_v53  ;;  %v7181_v11 = vpop.f32.mrb[92].mxu1  ;;  %v7931_v32 = vpop.f32.mrb[166].mxu0 }
 0x826   : > { %v13389_v21 = vsel %vm1621_vm1, %v8356_v59, %v13374_v16  ;;  %v8449_v12 = vmax.f32 %v8448_v4, %v7181_v11  ;;  %v8580_v14 = vmax.f32 %v8579_v9, %v7931_v32  ;;  %v7183_v50 = vpop.f32.mrb[93].mxu1  ;;  %v7933_v52 = vpop.f32.mrb[167].mxu0 }
 0x827   : > { %v13393_v15 = vsel %vm1621_vm1, %v8369_v49, %v13377_v35  ;;  %v8462_v34 = vmax.f32 %v8461_v18, %v7183_v50  ;;  %v8593_v22 = vmax.f32 %v8592_v56, %v7933_v52  ;;  %v7185_v46 = vpop.f32.mrb[94].mxu1 }
 0x828   : > { %v8450_v7 = vmax.f32 %v8449_v12, %v7185_v46  ;;  %v7187_v23 = vpop.f32.mrb[95].mxu1 }
 0x829   : > { %v8463_v61 = vmax.f32 %v8462_v34, %v7187_v23 }
 0x82b   : > { %v7937_v45 = vpop.f32.mrb[168].mxu0 }
 0x82c   : > { %v8581_v24 = vmax.f32 %v8580_v14, %v7937_v45  ;;  %v7939_v31 = vpop.f32.mrb[169].mxu0 }
 0x82d   : > { %v8594_v36 = vmax.f32 %v8593_v22, %v7939_v31  ;;  %v7191_v16 = vpop.f32.mrb[96].mxu1  ;;  %v7941_v30 = vpop.f32.mrb[170].mxu0 }
 0x82e   : > { %v8451_v5 = vmax.f32 %v8450_v7, %v7191_v16  ;;  %v8582_v54 = vmax.f32 %v8581_v24, %v7941_v30  ;;  %v7193_v57 = vpop.f32.mrb[97].mxu1  ;;  %v7943_v42 = vpop.f32.mrb[171].mxu0 }
 0x82f   : > { %v8464_v43 = vmax.f32 %v8463_v61, %v7193_v57  ;;  %v8595_v38 = vmax.f32 %v8594_v36, %v7943_v42  ;;  %v7195_v35 = vpop.f32.mrb[98].mxu1 }
 0x830   : > { %v8452_v41 = vmax.f32 %v8451_v5, %v7195_v35  ;;  %v7197_v26 = vpop.f32.mrb[99].mxu1 }
 0x831   : > { %v8465_v3 = vmax.f32 %v8464_v43, %v7197_v26 }
 0x833   : > { %v7947_v0 = vpop.f32.mrb[172].mxu0 }
 0x834   : > { %v8583_v48 = vmax.f32 %v8582_v54, %v7947_v0  ;;  %v7949_v1 = vpop.f32.mrb[173].mxu0 }
 0x835   : > { %v8596_v2 = vmax.f32 %v8595_v38, %v7949_v1  ;;  %v7201_v55 = vpop.f32.mrb[100].mxu1  ;;  %v7951_v29 = vpop.f32.mrb[174].mxu0 }
 0x836   : > { %v8453_v8 = vmax.f32 %v8452_v41, %v7201_v55  ;;  %v8584_v58 = vmax.f32 %v8583_v48, %v7951_v29  ;;  %v7203_v19 = vpop.f32.mrb[101].mxu1  ;;  %v7953_v27 = vpop.f32.mrb[175].mxu0 }
 0x837   : > { %v8466_v28 = vmax.f32 %v8465_v3, %v7203_v19  ;;  %v8597_v60 = vmax.f32 %v8596_v2, %v7953_v27  ;;  %v7205_v17 = vpop.f32.mrb[102].mxu1 }
 0x838   : > { %v8585_v37 = vrot.slane %v8584_v58, 4  ;;  %v8454_v25 = vmax.f32 %v8453_v8, %v7205_v17  ;;  %v7207_v20 = vpop.f32.mrb[103].mxu1 }
 0x839   : > { %v8598_v6 = vrot.slane %v8597_v60, 4  ;;  %v8467_v4 = vmax.f32 %v8466_v28, %v7207_v20 }
 0x83a   : > { %v8586_v33 = vmax.f32 %v8584_v58, %v8585_v37  ;;  %v8455_v63 = vrot.slane %v8454_v25, 4 }
 0x83b   : > { %v8599_v62 = vmax.f32 %v8597_v60, %v8598_v6  ;;  %v8468_v18 = vrot.slane %v8467_v4, 4  ;;  %v7957_v39 = vpop.f32.mrb[176].mxu0 }
 0x83c   : > { %v8587_v13 = vrot.slane %v8586_v33, 2  ;;  %v8456_v44 = vmax.f32 %v8454_v25, %v8455_v63  ;;  %v7959_v47 = vpop.f32.mrb[177].mxu0 }
 0x83d   : > { %v8600_v40 = vrot.slane %v8599_v62, 2  ;;  %v8469_v59 = vmax.f32 %v8467_v4, %v8468_v18  ;;  %v7211_v9 = vpop.f32.mrb[104].mxu1  ;;  %v7961_v53 = vpop.f32.mrb[178].mxu0 }
 0x83e   : > { %v8588_v49 = vmax.f32 %v8586_v33, %v8587_v13  ;;  %v8457_v56 = vrot.slane %v8456_v44, 2  ;;  %v8682_v11 = vmax.f32 %v7957_v39, %v7961_v53  ;;  %v7213_v32 = vpop.f32.mrb[105].mxu1  ;;  %v7963_v12 = vpop.f32.mrb[179].mxu0 }
 0x83f   : > { %v8601_v14 = vmax.f32 %v8599_v62, %v8600_v40  ;;  %v8470_v50 = vrot.slane %v8469_v59, 2  ;;  %v8695_v52 = vmax.f32 %v7959_v47, %v7963_v12  ;;  %v7215_v34 = vpop.f32.mrb[106].mxu1 }
 0x840   : > { %v8589_v22 = vrot.slane %v8588_v49, 1  ;;  %v8458_v46 = vmax.f32 %v8456_v44, %v8457_v56  ;;  %v8552_v7 = vmax.f32 %v7211_v9, %v7215_v34  ;;  %v7217_v23 = vpop.f32.mrb[107].mxu1 }
 0x841   : > { %v8602_v61 = vrot.slane %v8601_v14, 1  ;;  %v8471_v45 = vmax.f32 %v8469_v59, %v8470_v50  ;;  %v8565_v24 = vmax.f32 %v7213_v32, %v7217_v23 }
 0x842   : > { %v8590_v31 = vmax.f32 %v8588_v49, %v8589_v22  ;;  %v8459_v36 = vrot.slane %v8458_v46, 1 }
 0x843   : > { %v8603_v16 = vmax.f32 %v8601_v14, %v8602_v61  ;;  %v8472_v30 = vrot.slane %v8471_v45, 1  ;;  %v7967_v5 = vpop.f32.mrb[180].mxu0 }
 0x844   : > { %v13397_v54 = vsel %vm1625_vm3, %v8590_v31, %v13381_v10  ;;  %v8460_v57 = vmax.f32 %v8458_v46, %v8459_v36  ;;  %v8683_v42 = vmax.f32 %v8682_v11, %v7967_v5  ;;  %v7969_v43 = vpop.f32.mrb[181].mxu0 }
 0x845   : > { %v13401_v38 = vsel %vm1625_vm3, %v8603_v16, %v13385_v51  ;;  %v8473_v35 = vmax.f32 %v8471_v45, %v8472_v30  ;;  %v8696_v41 = vmax.f32 %v8695_v52, %v7969_v43  ;;  %v7221_v26 = vpop.f32.mrb[108].mxu1  ;;  %v7971_v3 = vpop.f32.mrb[182].mxu0 }
 0x846   : > { %v13405_v0 = vsel %vm1623_vm2, %v8460_v57, %v13389_v21  ;;  %v8553_v48 = vmax.f32 %v8552_v7, %v7221_v26  ;;  %v8684_v1 = vmax.f32 %v8683_v42, %v7971_v3  ;;  %v7223_v2 = vpop.f32.mrb[109].mxu1  ;;  %v7973_v10 = vpop.f32.mrb[183].mxu0 }
 0x847   : > { %v13409_v55 = vsel %vm1623_vm2, %v8473_v35, %v13393_v15  ;;  %v8566_v29 = vmax.f32 %v8565_v24, %v7223_v2  ;;  %v8697_v8 = vmax.f32 %v8696_v41, %v7973_v10  ;;  %v7225_v51 = vpop.f32.mrb[110].mxu1 }
 0x848   : > { %v8554_v58 = vmax.f32 %v8553_v48, %v7225_v51  ;;  %v7227_v19 = vpop.f32.mrb[111].mxu1 }
 0x849   : > { %v8567_v27 = vmax.f32 %v8566_v29, %v7227_v19 }
 0x84b   : > { %v7977_v28 = vpop.f32.mrb[184].mxu0 }
 0x84c   : > { %v8685_v60 = vmax.f32 %v8684_v1, %v7977_v28  ;;  %v7979_v17 = vpop.f32.mrb[185].mxu0 }
 0x84d   : > { %v8698_v37 = vmax.f32 %v8697_v8, %v7979_v17  ;;  %v7231_v21 = vpop.f32.mrb[112].mxu1  ;;  %v7981_v25 = vpop.f32.mrb[186].mxu0 }
 0x84e   : > { %v8555_v20 = vmax.f32 %v8554_v58, %v7231_v21  ;;  %v8686_v6 = vmax.f32 %v8685_v60, %v7981_v25  ;;  %v7233_v4 = vpop.f32.mrb[113].mxu1  ;;  %v7983_v33 = vpop.f32.mrb[187].mxu0 }
 0x84f   : > { %v8568_v63 = vmax.f32 %v8567_v27, %v7233_v4  ;;  %v8699_v62 = vmax.f32 %v8698_v37, %v7983_v33  ;;  %v7235_v15 = vpop.f32.mrb[114].mxu1 }
 0x850   : > { %v8556_v18 = vmax.f32 %v8555_v20, %v7235_v15  ;;  %v7237_v39 = vpop.f32.mrb[115].mxu1 }
 0x851   : > { %v8569_v13 = vmax.f32 %v8568_v63, %v7237_v39 }
 0x853   : > { %v7987_v44 = vpop.f32.mrb[188].mxu0 }
 0x854   : > { %v8687_v47 = vmax.f32 %v8686_v6, %v7987_v44  ;;  %v7989_v40 = vpop.f32.mrb[189].mxu0 }
 0x855   : > { %v8700_v59 = vmax.f32 %v8699_v62, %v7989_v40  ;;  %v7241_v9 = vpop.f32.mrb[116].mxu1  ;;  %v7991_v53 = vpop.f32.mrb[190].mxu0 }
 0x856   : > { %v8557_v49 = vmax.f32 %v8556_v18, %v7241_v9  ;;  %v8688_v56 = vmax.f32 %v8687_v47, %v7991_v53  ;;  %v7243_v11 = vpop.f32.mrb[117].mxu1  ;;  %v7993_v32 = vpop.f32.mrb[191].mxu0 }
 0x857   : > { %v8570_v12 = vmax.f32 %v8569_v13, %v7243_v11  ;;  %v8701_v14 = vmax.f32 %v8700_v59, %v7993_v32  ;;  %v7245_v50 = vpop.f32.mrb[118].mxu1 }
 0x858   : > { %v8689_v52 = vrot.slane %v8688_v56, 4  ;;  %v8558_v34 = vmax.f32 %v8557_v49, %v7245_v50  ;;  %v7247_v22 = vpop.f32.mrb[119].mxu1 }
 0x859   : > { %v8702_v46 = vrot.slane %v8701_v14, 4  ;;  %v8571_v7 = vmax.f32 %v8570_v12, %v7247_v22 }
 0x85a   : > { %v8690_v23 = vmax.f32 %v8688_v56, %v8689_v52  ;;  %v8559_v61 = vrot.slane %v8558_v34, 4 }
 0x85b   : > { %v8703_v45 = vmax.f32 %v8701_v14, %v8702_v46  ;;  %v8572_v24 = vrot.slane %v8571_v7, 4  ;;  %v7997_v31 = vpop.f32.mrb[192].mxu0 }
 0x85c   : > { %v8691_v36 = vrot.slane %v8690_v23, 2  ;;  %v8560_v16 = vmax.f32 %v8558_v34, %v8559_v61  ;;  %v7999_v30 = vpop.f32.mrb[193].mxu0 }
 0x85d   : > { %v8704_v5 = vrot.slane %v8703_v45, 2  ;;  %v8573_v57 = vmax.f32 %v8571_v7, %v8572_v24  ;;  %v7251_v42 = vpop.f32.mrb[120].mxu1  ;;  %v8001_v43 = vpop.f32.mrb[194].mxu0 }
 0x85e   : > { %v8692_v35 = vmax.f32 %v8690_v23, %v8691_v36  ;;  %v8561_v41 = vrot.slane %v8560_v16, 2  ;;  %v8786_v26 = vmax.f32 %v7997_v31, %v8001_v43  ;;  %v7253_v3 = vpop.f32.mrb[121].mxu1  ;;  %v8003_v48 = vpop.f32.mrb[195].mxu0 }
 0x85f   : > { %v8705_v1 = vmax.f32 %v8703_v45, %v8704_v5  ;;  %v8574_v2 = vrot.slane %v8573_v57, 2  ;;  %v8799_v10 = vmax.f32 %v7999_v30, %v8003_v48  ;;  %v7255_v29 = vpop.f32.mrb[122].mxu1 }
 0x860   : > { %v8693_v8 = vrot.slane %v8692_v35, 1  ;;  %v8562_v51 = vmax.f32 %v8560_v16, %v8561_v41  ;;  %v8656_v58 = vmax.f32 %v7251_v42, %v7255_v29  ;;  %v7257_v19 = vpop.f32.mrb[123].mxu1 }
 0x861   : > { %v8706_v27 = vrot.slane %v8705_v1, 1  ;;  %v8575_v28 = vmax.f32 %v8573_v57, %v8574_v2  ;;  %v8669_v60 = vmax.f32 %v7253_v3, %v7257_v19 }
 0x862   : > { %v8694_v17 = vmax.f32 %v8692_v35, %v8693_v8  ;;  %v8563_v37 = vrot.slane %v8562_v51, 1 }
 0x863   : > { %v8707_v21 = vmax.f32 %v8705_v1, %v8706_v27  ;;  %v8576_v25 = vrot.slane %v8575_v28, 1  ;;  %v8007_v20 = vpop.f32.mrb[196].mxu0 }
 0x864   : > { %v13413_v6 = vsel %vm1627_vm4, %v8694_v17, %v13397_v54  ;;  %v8564_v4 = vmax.f32 %v8562_v51, %v8563_v37  ;;  %v8787_v33 = vmax.f32 %v8786_v26, %v8007_v20  ;;  %v8009_v63 = vpop.f32.mrb[197].mxu0 }
 0x865   : > { %v13417_v62 = vsel %vm1627_vm4, %v8707_v21, %v13401_v38  ;;  %v8577_v15 = vmax.f32 %v8575_v28, %v8576_v25  ;;  %v8800_v18 = vmax.f32 %v8799_v10, %v8009_v63  ;;  %v7261_v39 = vpop.f32.mrb[124].mxu1  ;;  %v8011_v13 = vpop.f32.mrb[198].mxu0 }
 0x866   : > { %v13421_v44 = vsel %vm1625_vm3, %v8564_v4, %v13405_v0  ;;  %v8657_v47 = vmax.f32 %v8656_v58, %v7261_v39  ;;  %v8788_v40 = vmax.f32 %v8787_v33, %v8011_v13  ;;  %v7263_v59 = vpop.f32.mrb[125].mxu1  ;;  %v8013_v54 = vpop.f32.mrb[199].mxu0 }
 0x867   : > { %v13425_v9 = vsel %vm1625_vm3, %v8577_v15, %v13409_v55  ;;  %v8670_v53 = vmax.f32 %v8669_v60, %v7263_v59  ;;  %v8801_v49 = vmax.f32 %v8800_v18, %v8013_v54  ;;  %v7265_v38 = vpop.f32.mrb[126].mxu1 }
 0x868   : > { %v8658_v56 = vmax.f32 %v8657_v47, %v7265_v38  ;;  %v7267_v11 = vpop.f32.mrb[127].mxu1 }
 0x869   : > { %v8671_v32 = vmax.f32 %v8670_v53, %v7267_v11 }
 0x86b   : > { %v8017_v12 = vpop.f32.mrb[200].mxu0 }
 0x86c   : > { %v8789_v14 = vmax.f32 %v8788_v40, %v8017_v12  ;;  %v8019_v50 = vpop.f32.mrb[201].mxu0 }
 0x86d   : > { %v8802_v52 = vmax.f32 %v8801_v49, %v8019_v50  ;;  %v7271_v0 = vpop.f32.mrb[128].mxu1  ;;  %v8021_v34 = vpop.f32.mrb[202].mxu0 }
 0x86e   : > { %v8659_v22 = vmax.f32 %v8658_v56, %v7271_v0  ;;  %v8790_v46 = vmax.f32 %v8789_v14, %v8021_v34  ;;  %v7273_v7 = vpop.f32.mrb[129].mxu1  ;;  %v8023_v23 = vpop.f32.mrb[203].mxu0 }
 0x86f   : > { %v8672_v61 = vmax.f32 %v8671_v32, %v7273_v7  ;;  %v8803_v45 = vmax.f32 %v8802_v52, %v8023_v23  ;;  %v7275_v55 = vpop.f32.mrb[130].mxu1 }
 0x870   : > { %v8660_v24 = vmax.f32 %v8659_v22, %v7275_v55  ;;  %v7277_v31 = vpop.f32.mrb[131].mxu1 }
 0x871   : > { %v8673_v36 = vmax.f32 %v8672_v61, %v7277_v31 }
 0x873   : > { %v8027_v16 = vpop.f32.mrb[204].mxu0 }
 0x874   : > { %v8791_v30 = vmax.f32 %v8790_v46, %v8027_v16  ;;  %v8029_v5 = vpop.f32.mrb[205].mxu0 }
 0x875   : > { %v8804_v57 = vmax.f32 %v8803_v45, %v8029_v5  ;;  %v7281_v42 = vpop.f32.mrb[132].mxu1  ;;  %v8031_v43 = vpop.f32.mrb[206].mxu0 }
 0x876   : > { %v8661_v35 = vmax.f32 %v8660_v24, %v7281_v42  ;;  %v8792_v41 = vmax.f32 %v8791_v30, %v8031_v43  ;;  %v7283_v26 = vpop.f32.mrb[133].mxu1  ;;  %v8033_v3 = vpop.f32.mrb[207].mxu0 }
 0x877   : > { %v8674_v48 = vmax.f32 %v8673_v36, %v7283_v26  ;;  %v8805_v1 = vmax.f32 %v8804_v57, %v8033_v3  ;;  %v7285_v2 = vpop.f32.mrb[134].mxu1 }
 0x878   : > { %v8793_v10 = vrot.slane %v8792_v41, 4  ;;  %v8662_v29 = vmax.f32 %v8661_v35, %v7285_v2  ;;  %v7287_v8 = vpop.f32.mrb[135].mxu1 }
 0x879   : > { %v8806_v51 = vrot.slane %v8805_v1, 4  ;;  %v8675_v58 = vmax.f32 %v8674_v48, %v7287_v8 }
 0x87a   : > { %v8794_v19 = vmax.f32 %v8792_v41, %v8793_v10  ;;  %v8663_v27 = vrot.slane %v8662_v29, 4 }
 0x87b   : > { %v8807_v28 = vmax.f32 %v8805_v1, %v8806_v51  ;;  %v8676_v60 = vrot.slane %v8675_v58, 4  ;;  %v8037_v17 = vpop.f32.mrb[208].mxu0 }
 0x87c   : > { %v8795_v37 = vrot.slane %v8794_v19, 2  ;;  %v8664_v21 = vmax.f32 %v8662_v29, %v8663_v27  ;;  %v8039_v25 = vpop.f32.mrb[209].mxu0 }
 0x87d   : > { %v8808_v20 = vrot.slane %v8807_v28, 2  ;;  %v8677_v4 = vmax.f32 %v8675_v58, %v8676_v60  ;;  %v7291_v33 = vpop.f32.mrb[136].mxu1  ;;  %v8041_v63 = vpop.f32.mrb[210].mxu0 }
 0x87e   : > { %v8796_v15 = vmax.f32 %v8794_v19, %v8795_v37  ;;  %v8665_v18 = vrot.slane %v8664_v21, 2  ;;  %v8890_v39 = vmax.f32 %v8037_v17, %v8041_v63  ;;  %v7293_v13 = vpop.f32.mrb[137].mxu1  ;;  %v8043_v47 = vpop.f32.mrb[211].mxu0 }
 0x87f   : > { %v8809_v40 = vmax.f32 %v8807_v28, %v8808_v20  ;;  %v8678_v59 = vrot.slane %v8677_v4, 2  ;;  %v8903_v54 = vmax.f32 %v8039_v25, %v8043_v47  ;;  %v7295_v53 = vpop.f32.mrb[138].mxu1 }
 0x880   : > { %v8797_v49 = vrot.slane %v8796_v15, 1  ;;  %v8666_v38 = vmax.f32 %v8664_v21, %v8665_v18  ;;  %v8760_v56 = vmax.f32 %v7291_v33, %v7295_v53  ;;  %v7297_v11 = vpop.f32.mrb[139].mxu1 }
 0x881   : > { %v8810_v32 = vrot.slane %v8809_v40, 1  ;;  %v8679_v12 = vmax.f32 %v8677_v4, %v8678_v59  ;;  %v8773_v14 = vmax.f32 %v7293_v13, %v7297_v11 }
 0x882   : > { %v8798_v50 = vmax.f32 %v8796_v15, %v8797_v49  ;;  %v8667_v52 = vrot.slane %v8666_v38, 1 }
 0x883   : > { %v8811_v0 = vmax.f32 %v8809_v40, %v8810_v32  ;;  %v8680_v34 = vrot.slane %v8679_v12, 1  ;;  %v8047_v22 = vpop.f32.mrb[212].mxu0 }
 0x884   : > { %v13429_v46 = vsel %vm1629_vm5, %v8798_v50, %v13413_v6  ;;  %v8668_v7 = vmax.f32 %v8666_v38, %v8667_v52  ;;  %v8891_v23 = vmax.f32 %v8890_v39, %v8047_v22  ;;  %v8049_v61 = vpop.f32.mrb[213].mxu0 }
 0x885   : > { %v13433_v45 = vsel %vm1629_vm5, %v8811_v0, %v13417_v62  ;;  %v8681_v55 = vmax.f32 %v8679_v12, %v8680_v34  ;;  %v8904_v24 = vmax.f32 %v8903_v54, %v8049_v61  ;;  %v7301_v31 = vpop.f32.mrb[140].mxu1  ;;  %v8051_v36 = vpop.f32.mrb[214].mxu0  ;;  %v14448_v0 = vld [vmem:[#allocation37_spill] sm:$0xff] }
 0x886   : > { %v13437_v16 = vsel %vm1627_vm4, %v8668_v7, %v13421_v44  ;;  %v8761_v30 = vmax.f32 %v8760_v56, %v7301_v31  ;;  %v8892_v5 = vmax.f32 %v8891_v23, %v8051_v36  ;;  %v7303_v57 = vpop.f32.mrb[141].mxu1  ;;  %v8053_v6 = vpop.f32.mrb[215].mxu0  ;;  %v9096_v34 = vsub.s32 6, %v14448_v0 }
 0x887   : > { %v13441_v42 = vsel %vm1627_vm4, %v8681_v55, %v13425_v9  ;;  %v8774_v43 = vmax.f32 %v8773_v14, %v7303_v57  ;;  %v8905_v35 = vmax.f32 %v8904_v24, %v8053_v6  ;;  %v7305_v62 = vpop.f32.mrb[142].mxu1  ;;  %v9100_v55 = vsub.s32 7, %v14448_v0 }
 0x888   : > { %v8762_v41 = vmax.f32 %v8761_v30, %v7305_v62  ;;  %v7307_v26 = vpop.f32.mrb[143].mxu1  ;;  %v10580_v62 = vld [vmem:[%s13519_s6] sm:$0xff] }
 0x889   : > { %v8775_v3 = vmax.f32 %v8774_v43, %v7307_v26 }
 0x88b   : > { %v8057_v48 = vpop.f32.mrb[216].mxu0 }
 0x88c   : > { %v8893_v1 = vmax.f32 %v8892_v5, %v8057_v48  ;;  %v8059_v2 = vpop.f32.mrb[217].mxu0 }
 0x88d   : > { %v8906_v10 = vmax.f32 %v8905_v35, %v8059_v2  ;;  %v7311_v44 = vpop.f32.mrb[144].mxu1  ;;  %v8061_v29 = vpop.f32.mrb[218].mxu0  ;;  %v9101_v2 = vrot.slane %v10580_v62, %v9100_v55 }
 0x88e   : > { %v8763_v8 = vmax.f32 %v8762_v41, %v7311_v44  ;;  %v8894_v51 = vmax.f32 %v8893_v1, %v8061_v29  ;;  %v7313_v58 = vpop.f32.mrb[145].mxu1  ;;  %v8063_v19 = vpop.f32.mrb[219].mxu0  ;;  %v9097_v41 = vrot.slane %v10580_v62, %v9096_v34 }
 0x88f   : > { %v8776_v27 = vmax.f32 %v8775_v3, %v7313_v58  ;;  %v8907_v28 = vmax.f32 %v8906_v10, %v8063_v19  ;;  %v7315_v9 = vpop.f32.mrb[146].mxu1 }
 0x890   : > { %v8764_v60 = vmax.f32 %v8763_v8, %v7315_v9  ;;  %v7317_v17 = vpop.f32.mrb[147].mxu1 }
 0x891   : > { %v8777_v37 = vmax.f32 %v8776_v27, %v7317_v17 }
 0x893   : > { %v8067_v21 = vpop.f32.mrb[220].mxu0 }
 0x894   : > { %v8895_v25 = vmax.f32 %v8894_v51, %v8067_v21  ;;  %v8069_v20 = vpop.f32.mrb[221].mxu0 }
 0x895   : > { %v8908_v4 = vmax.f32 %v8907_v28, %v8069_v20  ;;  %v7321_v33 = vpop.f32.mrb[148].mxu1  ;;  %v8071_v63 = vpop.f32.mrb[222].mxu0 }
 0x896   : > { %v8765_v15 = vmax.f32 %v8764_v60, %v7321_v33  ;;  %v8896_v18 = vmax.f32 %v8895_v25, %v8071_v63  ;;  %v7323_v39 = vpop.f32.mrb[149].mxu1  ;;  %v8073_v13 = vpop.f32.mrb[223].mxu0 }
 0x897   : > { %v8778_v47 = vmax.f32 %v8777_v37, %v7323_v39  ;;  %v8909_v40 = vmax.f32 %v8908_v4, %v8073_v13  ;;  %v7325_v59 = vpop.f32.mrb[150].mxu1 }
 0x898   : > { %v8897_v54 = vrot.slane %v8896_v18, 4  ;;  %v8766_v53 = vmax.f32 %v8765_v15, %v7325_v59  ;;  %v7327_v49 = vpop.f32.mrb[151].mxu1 }
 0x899   : > { %v8910_v38 = vrot.slane %v8909_v40, 4  ;;  %v8779_v56 = vmax.f32 %v8778_v47, %v7327_v49 }
 0x89a   : > { %v8898_v11 = vmax.f32 %v8896_v18, %v8897_v54  ;;  %v8767_v32 = vrot.slane %v8766_v53, 4 }
 0x89b   : > { %v8911_v12 = vmax.f32 %v8909_v40, %v8910_v38  ;;  %v8780_v14 = vrot.slane %v8779_v56, 4 }
 0x89c   : > { %v8899_v50 = vrot.slane %v8898_v11, 2  ;;  %v8768_v52 = vmax.f32 %v8766_v53, %v8767_v32 }
 0x89d   : > { %v8912_v22 = vrot.slane %v8911_v12, 2  ;;  %v8781_v7 = vmax.f32 %v8779_v56, %v8780_v14  ;;  %v7331_v23 = vpop.f32.mrb[152].mxu1 }
 0x89e   : > { %v8900_v61 = vmax.f32 %v8898_v11, %v8899_v50  ;;  %v8769_v24 = vrot.slane %v8768_v52, 2  ;;  %v7333_v31 = vpop.f32.mrb[153].mxu1 }
 0x89f   : > { %v8913_v36 = vmax.f32 %v8911_v12, %v8912_v22  ;;  %v8782_v30 = vrot.slane %v8781_v7, 2  ;;  %v7335_v5 = vpop.f32.mrb[154].mxu1 }
 0x8a0   : > { %v8901_v57 = vrot.slane %v8900_v61, 1  ;;  %v8770_v6 = vmax.f32 %v8768_v52, %v8769_v24  ;;  %v8864_v43 = vmax.f32 %v7331_v23, %v7335_v5  ;;  %v7337_v35 = vpop.f32.mrb[155].mxu1  ;;  %v9088_v52 = vsub.s32 4, %v14448_v0 }
 0x8a1   : > { %v8914_v26 = vrot.slane %v8913_v36, 1  ;;  %v8783_v3 = vmax.f32 %v8781_v7, %v8782_v30  ;;  %v8877_v48 = vmax.f32 %v7333_v31, %v7337_v35  ;;  %v9092_v7 = vsub.s32 5, %v14448_v0 }
 0x8a2   : > { %v8902_v1 = vmax.f32 %v8900_v61, %v8901_v57  ;;  %v8771_v10 = vrot.slane %v8770_v6, 1  ;;  %v9089_v55 = vrot.slane %v10580_v62, %v9088_v52 }
 0x8a3   : > { %v8915_v44 = vmax.f32 %v8913_v36, %v8914_v26  ;;  %v8784_v29 = vrot.slane %v8783_v3, 1  ;;  %v9093_v36 = vrot.slane %v10580_v62, %v9092_v7 }
 0x8a4   : > { %v9028_v8 = vsel %vm1631_vm6, %v8902_v1, %v13429_v46  ;;  %v8772_v51 = vmax.f32 %v8770_v6, %v8771_v10 }
 0x8a5   : > { %v9116_v58 = vadd.f32 %v9097_v41, %v9028_v8  ;;  %v9035_v19 = vsel %vm1631_vm6, %v8915_v44, %v13433_v45  ;;  %v8785_v27 = vmax.f32 %v8783_v3, %v8784_v29  ;;  %v7341_v28 = vpop.f32.mrb[156].mxu1 }
 0x8a6   : > { %v9117_v9 = vadd.f32 %v9101_v2, %v9035_v19  ;;  %v9013_v60 = vsel %vm1629_vm5, %v8772_v51, %v13437_v16  ;;  %v8865_v17 = vmax.f32 %v8864_v43, %v7341_v28  ;;  %v7343_v37 = vpop.f32.mrb[157].mxu1 }
 0x8a7   : > { %9124 = vst [vmem:[%s13187_s20 + $0x30] sm:$0xff] %v9116_v58  ;;  %v9020_v21 = vsel %vm1629_vm5, %v8785_v27, %v13441_v42  ;;  %v8878_v25 = vmax.f32 %v8877_v48, %v7343_v37  ;;  %v7345_v20 = vpop.f32.mrb[158].mxu1 }
 0x8a8   : > { %9125 = vst [vmem:[%s13187_s20 + $0x38] sm:$0xff] %v9117_v9  ;;  %v8866_v46 = vmax.f32 %v8865_v17, %v7345_v20  ;;  %v7347_v4 = vpop.f32.mrb[159].mxu1 }
 0x8a9   : > { %v8879_v33 = vmax.f32 %v8878_v25, %v7347_v4 }
 0x8ad   : > { %v7351_v63 = vpop.f32.mrb[160].mxu1 }
 0x8ae   : > { %v8867_v45 = vmax.f32 %v8866_v46, %v7351_v63  ;;  %v7353_v15 = vpop.f32.mrb[161].mxu1 }
 0x8af   : > { %v8880_v18 = vmax.f32 %v8879_v33, %v7353_v15  ;;  %v7355_v39 = vpop.f32.mrb[162].mxu1 }
 0x8b0   : > { %v8868_v13 = vmax.f32 %v8867_v45, %v7355_v39  ;;  %v7357_v47 = vpop.f32.mrb[163].mxu1 }
 0x8b1   : > { %v8881_v16 = vmax.f32 %v8880_v18, %v7357_v47 }
 0x8b5   : > { %v7361_v40 = vpop.f32.mrb[164].mxu1 }
 0x8b6   : > { %v8869_v59 = vmax.f32 %v8868_v13, %v7361_v40  ;;  %v7363_v54 = vpop.f32.mrb[165].mxu1 }
 0x8b7   : > { %v8882_v53 = vmax.f32 %v8881_v16, %v7363_v54  ;;  %v7365_v49 = vpop.f32.mrb[166].mxu1 }
 0x8b8   : > { %v8870_v42 = vmax.f32 %v8869_v59, %v7365_v49  ;;  %v7367_v38 = vpop.f32.mrb[167].mxu1 }
 0x8b9   : > { %v8883_v56 = vmax.f32 %v8882_v53, %v7367_v38 }
 0x8ba   : > { %v8871_v11 = vrot.slane %v8870_v42, 4 }
 0x8bb   : > { %v8884_v32 = vrot.slane %v8883_v56, 4 }
 0x8bc   : > { %v8872_v12 = vmax.f32 %v8870_v42, %v8871_v11 }
 0x8bd   : > { %v8885_v14 = vmax.f32 %v8883_v56, %v8884_v32 }
 0x8be   : > { %v8873_v50 = vrot.slane %v8872_v12, 2 }
 0x8bf   : > { %v8886_v34 = vrot.slane %v8885_v14, 2 }
 0x8c0   : > { %v8874_v22 = vmax.f32 %v8872_v12, %v8873_v50 }
 0x8c1   : > { %v8887_v23 = vmax.f32 %v8885_v14, %v8886_v34 }
 0x8c2   : > { %v8875_v61 = vrot.slane %v8874_v22, 1 }
 0x8c3   : > { %v8888_v24 = vrot.slane %v8887_v23, 1 }
 0x8c4   : > { %v8876_v31 = vmax.f32 %v8874_v22, %v8875_v61 }
 0x8c5   : > { %v8889_v30 = vmax.f32 %v8887_v23, %v8888_v24 }
 0x8c6   : > { %v9014_v5 = vsel %vm1631_vm6, %v8876_v31, %v9013_v60 }
 0x8c7   : > { %v9114_v57 = vadd.f32 %v9089_v55, %v9014_v5  ;;  %v9021_v6 = vsel %vm1631_vm6, %v8889_v30, %v9020_v21 }
 0x8c8   : > { %v9115_v43 = vadd.f32 %v9093_v36, %v9021_v6 }
 0x8c9   : > { %9122 = vst [vmem:[%s13187_s20 + $0x20] sm:$0xff] %v9114_v57 }
 0x8ca   : > { %9123 = vst [vmem:[%s13187_s20 + $0x28] sm:$0xff] %v9115_v43 }
 0x8cb   : > { %10736 = shalt.err (!%p10733_p13)
}
 0x8cc   : > { %s10737_s11 = scalar_lea.hbm %s13467_s24, 1024  ;;  %s10741_s29 = scalar_lea.hbm %s13520_s7, 2048 }
 0x8cd   : > { %p10738_p0 = scmp.ne.s32.totalorder %s13467_s24, %s10737_s11  ;;  %p10742_p1 = scmp.lt.u32.totalorder %s13467_s24, %s13520_s7 }
 0x8ce   : > { %p10743_p2 = scmp.lt.u32.totalorder %s10741_s29, %s10737_s11  ;;  %p10745_p6 = scmp.lt.u32.totalorder %s10737_s11, %s13467_s24 }
 0x8cf   : > { %p10739_p5 = pnand %p10738_p0, %p11000_p8 }
 0x8d0   : > { %p10744_p4 = por %p10743_p2, %p10742_p1 }
 0x8d1   : > { %p10740_p11 = pneg %p10739_p5 }
 0x8d2   : > { %p10746_p10 = por %p10745_p6, %p10744_p4 }
 0x8d4   : > { %p10747_p12 = pnand %p10746_p10, %p10740_p11 }
 0x8d6   : > { %10750 = shalt.err (!%p10747_p12)
}
 0x8d7   : > { %10253 = dma.vmem_to_hbm [thread:$0]  (%p11000_p8), %s13469_s22, 1024, %s13467_s24, %s9127_s28  }
 0x8d8 PF: > { %s14449_s18 = sld [smem:[#allocation19_spill]]  ;;  %s14450_s19 = sld [smem:[#allocation20_spill]] }
 0x8d9   : > { %p14452_p7 = scmp.ge.s32.totalorder %s10797_s27, 2 }
 0x8de   : > { %s9153_s10 = sand.u32 1, %s14449_s18   ;;  %p14451_p3 = scmp.ne.s32.totalorder %s14450_s19, 0 }
 0x8df   : > { %s9154_s23 = scalar_lea.sflag [#allocation7], %s9153_s10 }
 0x8e0   : > { %p10273_p9 = pnand %p14452_p7, %p14451_p3 }
 0x8e2   : > { %10780 = dma.done.wait (!%p10273_p9), %s9154_s23, 1024  }
 0x8e3   : > { %10782 = vsyncadd (!%p10273_p9), %s9154_s23, 4294966272  ;;  %p22_p13 = scmp.ge.s32.totalorder %s10987_s14, 4   ;;  %s14453_s24 = smov %s10789_s25 }
 0x8e4   : > { %s14454_s25 = smov %s10793_s26  ;;  %s14455_s26 = smov %s10996_s13 }
 0x8e5   : > { %s14456_s27 = smov %s10987_s14  ;;  %24 = sbr.rel (!%p22_p13) target bundleno = 7 (0x7), region = 109 }
 0x8ec   :  { %9159 = vsyncpa [#allocation6], 1 }
 0x8ed   :  { %9161 = vsyncpa [#allocation6 + $0x1], 1 }
 0x8ee   :  { %9162 = vsyncpa [#allocation9], 1 }
 0x8ef   :  { %9163 = vsyncpa [#allocation12], 1 }
 0x8f0   :  { %9164 = vsyncpa [#allocation7], 1 }
 0x8f1   :  { %9166 = vsyncpa [#allocation7 + $0x1], 1 }

</bundles_post_ra>
